<compile_context>
chip_gen: v5e
topology: v5e:2x2
jax: 0.10.0
libtpu: 0.0.40
codegen_flags: <defaults>
</compile_context>

<pallas_src>
import functools

import jax
import jax.numpy as jnp
from jax.experimental import pallas as pl
from jax.experimental.pallas import tpu as pltpu

LN_EPS = 1e-5


def _layernorm(v, gamma, beta):
    mu = jnp.mean(v, axis=-1, keepdims=True)
    c = v - mu
    var = jnp.mean(c * c, axis=-1, keepdims=True)
    return c * jax.lax.rsqrt(var + LN_EPS) * gamma + beta


def _sigmoid(v):
    return 1.0 / (1.0 + jnp.exp(-v))


def triangle_mult_kernel(x_ref, wall_ref, ball_ref, gin_ref, bin_ref,
                         gout_ref, bout_ref, wo_ref, bo_ref, o_ref,
                         *, hidden: int, ingoing: bool):
    N = x_ref.shape[1]
    D = x_ref.shape[3]
    H = hidden

    # (N, N, D) -> (N*N, D): rows on sublanes, channels on lanes.
    x = x_ref[0].reshape(N * N, D).astype(jnp.float32)
    xn = _layernorm(x, gin_ref[...], bin_ref[...])

    # Fused projection: [left | right | left_gate | right_gate | out_gate].
    p = jnp.dot(xn.astype(jnp.bfloat16), wall_ref[...],
                preferred_element_type=jnp.float32) + ball_ref[...]

    left = p[:, 0 * H:1 * H] * _sigmoid(p[:, 2 * H:3 * H])
    right = p[:, 1 * H:2 * H] * _sigmoid(p[:, 3 * H:4 * H])
    out_gate = _sigmoid(p[:, 4 * H:5 * H])

    left3 = left.reshape(N, N, H)     # indexed as [k, j, d] (ingoing)
    right3 = right.reshape(N, N, H)   # indexed as [k, i, d] (ingoing)

    # Triangle mix, statically unrolled over the contraction index k.
    acc = jnp.zeros((N, N, H), jnp.float32)
    for k in range(N):
        if ingoing:
            # out[i, j, d] = sum_k right[k, i, d] * left[k, j, d]
            acc = acc + right3[k][:, None, :] * left3[k][None, :, :]
        else:
            # out[i, j, d] = sum_k left[i, k, d] * right[j, k, d]
            acc = acc + left3[:, k, :][:, None, :] * right3[:, k, :][None, :, :]

    out = _layernorm(acc.reshape(N * N, H), gout_ref[...], bout_ref[...])
    out = out * out_gate
    res = jnp.dot(out.astype(jnp.bfloat16), wo_ref[...],
                  preferred_element_type=jnp.float32) + bo_ref[...]
    o_ref[...] = res.reshape(1, N, N, D).astype(o_ref.dtype)


def triangle_multiplicative(x, params, *, mix="ingoing"):
    assert mix in ("ingoing", "outgoing")
    B, N, N2, D = x.shape
    assert N == N2, "feature map must be symmetrical"
    H = params["w_left"].shape[1]

    # Fuse the five projection weights/biases; store weights bf16 for the MXU.
    w_all = jnp.concatenate(
        [params["w_left"], params["w_right"], params["w_lgate"],
         params["w_rgate"], params["w_ogate"]], axis=1).astype(jnp.bfloat16)
    b_all = jnp.concatenate(
        [params["b_left"], params["b_right"], params["b_lgate"],
         params["b_rgate"], params["b_ogate"]], axis=1)
    w_out = params["w_out"].astype(jnp.bfloat16)

    kernel = functools.partial(triangle_mult_kernel, hidden=H,
                               ingoing=(mix == "ingoing"))
    full = lambda b: (0, 0)

    return pl.pallas_call(
        kernel,
        out_shape=jax.ShapeDtypeStruct((B, N, N, D), x.dtype),
        grid=(B,),
        in_specs=[
            pl.BlockSpec((1, N, N, D), lambda b: (b, 0, 0, 0)),        # x
            pl.BlockSpec((D, 5 * H), full),                            # fused W
            pl.BlockSpec((1, 5 * H), full),                            # fused b
            pl.BlockSpec((1, D), full), pl.BlockSpec((1, D), full),    # LN in
            pl.BlockSpec((1, H), full), pl.BlockSpec((1, H), full),    # LN out
            pl.BlockSpec((H, D), full),                                # W_out
            pl.BlockSpec((1, D), full),                                # b_out
        ],
        out_specs=pl.BlockSpec((1, N, N, D), lambda b: (b, 0, 0, 0)),
        compiler_params=pltpu.CompilerParams(dimension_semantics=("parallel",)),
    )(x, w_all, b_all,
      params["g_norm_in"], params["b_norm_in"],
      params["g_norm_out"], params["b_norm_out"],
      w_out, params["b_out"])


def triangle_multiplicative_ref(x, params, *, mix="ingoing"):
    """Pure-JAX reference matching the PyTorch forward."""
    ln = lambda v, g, b: ((v - v.mean(-1, keepdims=True))
                          * jax.lax.rsqrt(v.var(-1, keepdims=True) + LN_EPS)
                          * g + b)
    xn = ln(x, params["g_norm_in"], params["b_norm_in"])
    left = xn @ params["w_left"] + params["b_left"]
    right = xn @ params["w_right"] + params["b_right"]
    lg = jax.nn.sigmoid(xn @ params["w_lgate"] + params["b_lgate"])
    rg = jax.nn.sigmoid(xn @ params["w_rgate"] + params["b_rgate"])
    og = jax.nn.sigmoid(xn @ params["w_ogate"] + params["b_ogate"])
    left = left * lg
    right = right * rg
    if mix == "ingoing":
        out = jnp.einsum('bkjd,bkid->bijd', left, right)
    else:
        out = jnp.einsum('bikd,bjkd->bijd', left, right)
    out = ln(out, params["g_norm_out"], params["b_norm_out"])
    out = out * og
    return out @ params["w_out"] + params["b_out"]


def init_params(key, dim, hidden):
    """PyTorch-style init: uniform(+-1/sqrt(fan_in)) for left/right/out linears,
    zero-weight / one-bias for the three gates, ones/zeros LayerNorm affine."""
    ks = jax.random.split(key, 3)

    def linear(k, fan_in, fan_out):
        kw, kb = jax.random.split(k)
        bound = 1.0 / float(fan_in) ** 0.5
        w = jax.random.uniform(kw, (fan_in, fan_out), jnp.float32, -bound, bound)
        b = jax.random.uniform(kb, (1, fan_out), jnp.float32, -bound, bound)
        return w, b

    w_left, b_left = linear(ks[0], dim, hidden)
    w_right, b_right = linear(ks[1], dim, hidden)
    w_out, b_out = linear(ks[2], hidden, dim)
    return {
        "g_norm_in": jnp.ones((1, dim), jnp.float32),
        "b_norm_in": jnp.zeros((1, dim), jnp.float32),
        "w_left": w_left, "b_left": b_left,
        "w_right": w_right, "b_right": b_right,
        "w_lgate": jnp.zeros((dim, hidden), jnp.float32),
        "b_lgate": jnp.ones((1, hidden), jnp.float32),
        "w_rgate": jnp.zeros((dim, hidden), jnp.float32),
        "b_rgate": jnp.ones((1, hidden), jnp.float32),
        "w_ogate": jnp.zeros((dim, hidden), jnp.float32),
        "b_ogate": jnp.ones((1, hidden), jnp.float32),
        "g_norm_out": jnp.ones((1, hidden), jnp.float32),
        "b_norm_out": jnp.zeros((1, hidden), jnp.float32),
        "w_out": w_out, "b_out": b_out,
    }


if __name__ == "__main__":
    B, N, dim = 2, 16, 32
    hidden = dim                      # module default: hidden_dim = dim
    key = jax.random.PRNGKey(0)
    kx, kp = jax.random.split(key)
    x = jax.random.normal(kx, (B, N, N, dim), jnp.float32)
    params = init_params(kp, dim, hidden)

    out = triangle_multiplicative(x, params, mix="ingoing")
    jax.block_until_ready(out)
    assert out.shape == (B, N, N, dim)

    ref = triangle_multiplicative_ref(x, params, mix="ingoing")
    err = float(jnp.max(jnp.abs(out - ref)))
    assert err < 0.1, f"max abs err vs reference: {err}"
    print("KERNEL_OK")
</pallas_src>

<mosaic_0001>
module attributes {stable_mosaic.version = 11 : i64} {
  func.func @triangle_mult_kernel(%arg0: i32, %arg1: memref<1x16x16x32xf32, #tpu.memory_space<vmem>>, %arg2: memref<32x160xbf16, #tpu.memory_space<vmem>>, %arg3: memref<1x160xf32, #tpu.memory_space<vmem>>, %arg4: memref<1x32xf32, #tpu.memory_space<vmem>>, %arg5: memref<1x32xf32, #tpu.memory_space<vmem>>, %arg6: memref<1x32xf32, #tpu.memory_space<vmem>>, %arg7: memref<1x32xf32, #tpu.memory_space<vmem>>, %arg8: memref<32x32xbf16, #tpu.memory_space<vmem>>, %arg9: memref<1x32xf32, #tpu.memory_space<vmem>>, %arg10: memref<1x16x16x32xf32, #tpu.memory_space<vmem>>) attributes {dimension_semantics = [#tpu.dimension_semantics<parallel>], iteration_bounds = array<i64: 2>, scalar_prefetch = 0 : i64, scratch_operands = 0 : i64, tpu.core_type = #tpu.core_type<tc>, window_params = [{transform_indices = @transform_0, window_bounds = array<i64: 1, 16, 16, 32>}, {pipeline_mode = #tpu.pipeline_mode<synchronous>, transform_indices = @transform_1, window_bounds = array<i64: 32, 160>}, {pipeline_mode = #tpu.pipeline_mode<synchronous>, transform_indices = @transform_2, window_bounds = array<i64: 1, 160>}, {pipeline_mode = #tpu.pipeline_mode<synchronous>, transform_indices = @transform_3, window_bounds = array<i64: 1, 32>}, {pipeline_mode = #tpu.pipeline_mode<synchronous>, transform_indices = @transform_4, window_bounds = array<i64: 1, 32>}, {pipeline_mode = #tpu.pipeline_mode<synchronous>, transform_indices = @transform_5, window_bounds = array<i64: 1, 32>}, {pipeline_mode = #tpu.pipeline_mode<synchronous>, transform_indices = @transform_6, window_bounds = array<i64: 1, 32>}, {pipeline_mode = #tpu.pipeline_mode<synchronous>, transform_indices = @transform_7, window_bounds = array<i64: 32, 32>}, {pipeline_mode = #tpu.pipeline_mode<synchronous>, transform_indices = @transform_8, window_bounds = array<i64: 1, 32>}, {transform_indices = @transform_9, window_bounds = array<i64: 1, 16, 16, 32>}]} {
    %c0 = arith.constant 0 : index
    %c0_0 = arith.constant 0 : index
    %c0_1 = arith.constant 0 : index
    %c0_2 = arith.constant 0 : index
    %0 = vector.load %arg1[%c0, %c0_0, %c0_1, %c0_2] : memref<1x16x16x32xf32, #tpu.memory_space<vmem>>, vector<1x16x16x32xf32>
    %1 = vector.shape_cast %0 : vector<1x16x16x32xf32> to vector<16x16x32xf32>
    %2 = vector.shape_cast %1 : vector<16x16x32xf32> to vector<256x32xf32>
    %c0_3 = arith.constant 0 : index
    %c0_4 = arith.constant 0 : index
    %3 = vector.load %arg4[%c0_3, %c0_4] : memref<1x32xf32, #tpu.memory_space<vmem>>, vector<1x32xf32>
    %c0_5 = arith.constant 0 : index
    %c0_6 = arith.constant 0 : index
    %4 = vector.load %arg5[%c0_5, %c0_6] : memref<1x32xf32, #tpu.memory_space<vmem>>, vector<1x32xf32>
    %cst = arith.constant dense<0.000000e+00> : vector<256xf32>
    %5 = vector.multi_reduction <add>, %2, %cst [1] : vector<256x32xf32> to vector<256xf32>
    %6 = vector.shape_cast %5 : vector<256xf32> to vector<256x1xf32>
    %cst_7 = arith.constant 3.200000e+01 : f32
    %7 = vector.broadcast %cst_7 : f32 to vector<256x1xf32>
    %8 = arith.divf %6, %7 : vector<256x1xf32>
    %9 = vector.broadcast %8 : vector<256x1xf32> to vector<256x32xf32>
    %10 = arith.subf %2, %9 : vector<256x32xf32>
    %11 = arith.mulf %10, %10 : vector<256x32xf32>
    %cst_8 = arith.constant dense<0.000000e+00> : vector<256xf32>
    %12 = vector.multi_reduction <add>, %11, %cst_8 [1] : vector<256x32xf32> to vector<256xf32>
    %13 = vector.shape_cast %12 : vector<256xf32> to vector<256x1xf32>
    %cst_9 = arith.constant 3.200000e+01 : f32
    %14 = vector.broadcast %cst_9 : f32 to vector<256x1xf32>
    %15 = arith.divf %13, %14 : vector<256x1xf32>
    %cst_10 = arith.constant 9.99999974E-6 : f32
    %16 = vector.broadcast %cst_10 : f32 to vector<256x1xf32>
    %17 = arith.addf %15, %16 : vector<256x1xf32>
    %18 = math.rsqrt %17 : vector<256x1xf32>
    %19 = vector.broadcast %18 : vector<256x1xf32> to vector<256x32xf32>
    %20 = arith.mulf %10, %19 : vector<256x32xf32>
    %21 = vector.broadcast %3 : vector<1x32xf32> to vector<256x32xf32>
    %22 = arith.mulf %20, %21 : vector<256x32xf32>
    %23 = vector.broadcast %4 : vector<1x32xf32> to vector<256x32xf32>
    %24 = arith.addf %22, %23 : vector<256x32xf32>
    %25 = arith.truncf %24 : vector<256x32xf32> to vector<256x32xbf16>
    %c0_11 = arith.constant 0 : index
    %c0_12 = arith.constant 0 : index
    %26 = vector.load %arg2[%c0_11, %c0_12] : memref<32x160xbf16, #tpu.memory_space<vmem>>, vector<32x160xbf16>
    %cst_13 = arith.constant dense<0.000000e+00> : vector<256x160xf32>
    %27 = tpu.matmul %25, %26, %cst_13 {dimension_numbers = #tpu.dot_dimension_numbers<[1], [0], [0], [1], [0, 0, 1, 1], [], []>} : vector<256x32xbf16>, vector<32x160xbf16>, vector<256x160xf32> -> vector<256x160xf32>
    %c0_14 = arith.constant 0 : index
    %c0_15 = arith.constant 0 : index
    %28 = vector.load %arg3[%c0_14, %c0_15] : memref<1x160xf32, #tpu.memory_space<vmem>>, vector<1x160xf32>
    %29 = vector.broadcast %28 : vector<1x160xf32> to vector<256x160xf32>
    %30 = arith.addf %27, %29 : vector<256x160xf32>
    %31 = vector.extract_strided_slice %30 {offsets = [0, 0], sizes = [256, 32], strides = [1, 1]} : vector<256x160xf32> to vector<256x32xf32>
    %32 = vector.extract_strided_slice %30 {offsets = [0, 64], sizes = [256, 32], strides = [1, 1]} : vector<256x160xf32> to vector<256x32xf32>
    %cst_16 = arith.constant 0.000000e+00 : f32
    %33 = vector.broadcast %cst_16 : f32 to vector<256x32xf32>
    %34 = arith.subf %33, %32 : vector<256x32xf32>
    %35 = math.exp %34 : vector<256x32xf32>
    %cst_17 = arith.constant 1.000000e+00 : f32
    %36 = vector.broadcast %cst_17 : f32 to vector<256x32xf32>
    %37 = arith.addf %36, %35 : vector<256x32xf32>
    %cst_18 = arith.constant 1.000000e+00 : f32
    %38 = vector.broadcast %cst_18 : f32 to vector<256x32xf32>
    %39 = arith.divf %38, %37 : vector<256x32xf32>
    %40 = arith.mulf %31, %39 : vector<256x32xf32>
    %41 = vector.extract_strided_slice %30 {offsets = [0, 32], sizes = [256, 32], strides = [1, 1]} : vector<256x160xf32> to vector<256x32xf32>
    %42 = vector.extract_strided_slice %30 {offsets = [0, 96], sizes = [256, 32], strides = [1, 1]} : vector<256x160xf32> to vector<256x32xf32>
    %cst_19 = arith.constant 0.000000e+00 : f32
    %43 = vector.broadcast %cst_19 : f32 to vector<256x32xf32>
    %44 = arith.subf %43, %42 : vector<256x32xf32>
    %45 = math.exp %44 : vector<256x32xf32>
    %cst_20 = arith.constant 1.000000e+00 : f32
    %46 = vector.broadcast %cst_20 : f32 to vector<256x32xf32>
    %47 = arith.addf %46, %45 : vector<256x32xf32>
    %cst_21 = arith.constant 1.000000e+00 : f32
    %48 = vector.broadcast %cst_21 : f32 to vector<256x32xf32>
    %49 = arith.divf %48, %47 : vector<256x32xf32>
    %50 = arith.mulf %41, %49 : vector<256x32xf32>
    %51 = vector.extract_strided_slice %30 {offsets = [0, 128], sizes = [256, 32], strides = [1, 1]} : vector<256x160xf32> to vector<256x32xf32>
    %cst_22 = arith.constant 0.000000e+00 : f32
    %52 = vector.broadcast %cst_22 : f32 to vector<256x32xf32>
    %53 = arith.subf %52, %51 : vector<256x32xf32>
    %54 = math.exp %53 : vector<256x32xf32>
    %cst_23 = arith.constant 1.000000e+00 : f32
    %55 = vector.broadcast %cst_23 : f32 to vector<256x32xf32>
    %56 = arith.addf %55, %54 : vector<256x32xf32>
    %cst_24 = arith.constant 1.000000e+00 : f32
    %57 = vector.broadcast %cst_24 : f32 to vector<256x32xf32>
    %58 = arith.divf %57, %56 : vector<256x32xf32>
    %59 = vector.shape_cast %40 : vector<256x32xf32> to vector<16x16x32xf32>
    %60 = vector.shape_cast %50 : vector<256x32xf32> to vector<16x16x32xf32>
    %cst_25 = arith.constant 0.000000e+00 : f32
    %61 = vector.broadcast %cst_25 : f32 to vector<16x16x32xf32>
    %62 = vector.extract_strided_slice %60 {offsets = [0, 0, 0], sizes = [1, 16, 32], strides = [1, 1, 1]} : vector<16x16x32xf32> to vector<1x16x32xf32>
    %63 = vector.shape_cast %62 : vector<1x16x32xf32> to vector<16x32xf32>
    %64 = vector.shape_cast %63 : vector<16x32xf32> to vector<16x1x32xf32>
    %65 = vector.extract_strided_slice %59 {offsets = [0, 0, 0], sizes = [1, 16, 32], strides = [1, 1, 1]} : vector<16x16x32xf32> to vector<1x16x32xf32>
    %66 = vector.shape_cast %65 : vector<1x16x32xf32> to vector<16x32xf32>
    %67 = vector.shape_cast %66 : vector<16x32xf32> to vector<1x16x32xf32>
    %68 = vector.broadcast %64 : vector<16x1x32xf32> to vector<16x16x32xf32>
    %69 = vector.broadcast %67 : vector<1x16x32xf32> to vector<16x16x32xf32>
    %70 = arith.mulf %68, %69 : vector<16x16x32xf32>
    %71 = arith.addf %61, %70 : vector<16x16x32xf32>
    %72 = vector.extract_strided_slice %60 {offsets = [1, 0, 0], sizes = [1, 16, 32], strides = [1, 1, 1]} : vector<16x16x32xf32> to vector<1x16x32xf32>
    %73 = vector.shape_cast %72 : vector<1x16x32xf32> to vector<16x32xf32>
    %74 = vector.shape_cast %73 : vector<16x32xf32> to vector<16x1x32xf32>
    %75 = vector.extract_strided_slice %59 {offsets = [1, 0, 0], sizes = [1, 16, 32], strides = [1, 1, 1]} : vector<16x16x32xf32> to vector<1x16x32xf32>
    %76 = vector.shape_cast %75 : vector<1x16x32xf32> to vector<16x32xf32>
    %77 = vector.shape_cast %76 : vector<16x32xf32> to vector<1x16x32xf32>
    %78 = vector.broadcast %74 : vector<16x1x32xf32> to vector<16x16x32xf32>
    %79 = vector.broadcast %77 : vector<1x16x32xf32> to vector<16x16x32xf32>
    %80 = arith.mulf %78, %79 : vector<16x16x32xf32>
    %81 = arith.addf %71, %80 : vector<16x16x32xf32>
    %82 = vector.extract_strided_slice %60 {offsets = [2, 0, 0], sizes = [1, 16, 32], strides = [1, 1, 1]} : vector<16x16x32xf32> to vector<1x16x32xf32>
    %83 = vector.shape_cast %82 : vector<1x16x32xf32> to vector<16x32xf32>
    %84 = vector.shape_cast %83 : vector<16x32xf32> to vector<16x1x32xf32>
    %85 = vector.extract_strided_slice %59 {offsets = [2, 0, 0], sizes = [1, 16, 32], strides = [1, 1, 1]} : vector<16x16x32xf32> to vector<1x16x32xf32>
    %86 = vector.shape_cast %85 : vector<1x16x32xf32> to vector<16x32xf32>
    %87 = vector.shape_cast %86 : vector<16x32xf32> to vector<1x16x32xf32>
    %88 = vector.broadcast %84 : vector<16x1x32xf32> to vector<16x16x32xf32>
    %89 = vector.broadcast %87 : vector<1x16x32xf32> to vector<16x16x32xf32>
    %90 = arith.mulf %88, %89 : vector<16x16x32xf32>
    %91 = arith.addf %81, %90 : vector<16x16x32xf32>
    %92 = vector.extract_strided_slice %60 {offsets = [3, 0, 0], sizes = [1, 16, 32], strides = [1, 1, 1]} : vector<16x16x32xf32> to vector<1x16x32xf32>
    %93 = vector.shape_cast %92 : vector<1x16x32xf32> to vector<16x32xf32>
    %94 = vector.shape_cast %93 : vector<16x32xf32> to vector<16x1x32xf32>
    %95 = vector.extract_strided_slice %59 {offsets = [3, 0, 0], sizes = [1, 16, 32], strides = [1, 1, 1]} : vector<16x16x32xf32> to vector<1x16x32xf32>
    %96 = vector.shape_cast %95 : vector<1x16x32xf32> to vector<16x32xf32>
    %97 = vector.shape_cast %96 : vector<16x32xf32> to vector<1x16x32xf32>
    %98 = vector.broadcast %94 : vector<16x1x32xf32> to vector<16x16x32xf32>
    %99 = vector.broadcast %97 : vector<1x16x32xf32> to vector<16x16x32xf32>
    %100 = arith.mulf %98, %99 : vector<16x16x32xf32>
    %101 = arith.addf %91, %100 : vector<16x16x32xf32>
    %102 = vector.extract_strided_slice %60 {offsets = [4, 0, 0], sizes = [1, 16, 32], strides = [1, 1, 1]} : vector<16x16x32xf32> to vector<1x16x32xf32>
    %103 = vector.shape_cast %102 : vector<1x16x32xf32> to vector<16x32xf32>
    %104 = vector.shape_cast %103 : vector<16x32xf32> to vector<16x1x32xf32>
    %105 = vector.extract_strided_slice %59 {offsets = [4, 0, 0], sizes = [1, 16, 32], strides = [1, 1, 1]} : vector<16x16x32xf32> to vector<1x16x32xf32>
    %106 = vector.shape_cast %105 : vector<1x16x32xf32> to vector<16x32xf32>
    %107 = vector.shape_cast %106 : vector<16x32xf32> to vector<1x16x32xf32>
    %108 = vector.broadcast %104 : vector<16x1x32xf32> to vector<16x16x32xf32>
    %109 = vector.broadcast %107 : vector<1x16x32xf32> to vector<16x16x32xf32>
    %110 = arith.mulf %108, %109 : vector<16x16x32xf32>
    %111 = arith.addf %101, %110 : vector<16x16x32xf32>
    %112 = vector.extract_strided_slice %60 {offsets = [5, 0, 0], sizes = [1, 16, 32], strides = [1, 1, 1]} : vector<16x16x32xf32> to vector<1x16x32xf32>
    %113 = vector.shape_cast %112 : vector<1x16x32xf32> to vector<16x32xf32>
    %114 = vector.shape_cast %113 : vector<16x32xf32> to vector<16x1x32xf32>
    %115 = vector.extract_strided_slice %59 {offsets = [5, 0, 0], sizes = [1, 16, 32], strides = [1, 1, 1]} : vector<16x16x32xf32> to vector<1x16x32xf32>
    %116 = vector.shape_cast %115 : vector<1x16x32xf32> to vector<16x32xf32>
    %117 = vector.shape_cast %116 : vector<16x32xf32> to vector<1x16x32xf32>
    %118 = vector.broadcast %114 : vector<16x1x32xf32> to vector<16x16x32xf32>
    %119 = vector.broadcast %117 : vector<1x16x32xf32> to vector<16x16x32xf32>
    %120 = arith.mulf %118, %119 : vector<16x16x32xf32>
    %121 = arith.addf %111, %120 : vector<16x16x32xf32>
    %122 = vector.extract_strided_slice %60 {offsets = [6, 0, 0], sizes = [1, 16, 32], strides = [1, 1, 1]} : vector<16x16x32xf32> to vector<1x16x32xf32>
    %123 = vector.shape_cast %122 : vector<1x16x32xf32> to vector<16x32xf32>
    %124 = vector.shape_cast %123 : vector<16x32xf32> to vector<16x1x32xf32>
    %125 = vector.extract_strided_slice %59 {offsets = [6, 0, 0], sizes = [1, 16, 32], strides = [1, 1, 1]} : vector<16x16x32xf32> to vector<1x16x32xf32>
    %126 = vector.shape_cast %125 : vector<1x16x32xf32> to vector<16x32xf32>
    %127 = vector.shape_cast %126 : vector<16x32xf32> to vector<1x16x32xf32>
    %128 = vector.broadcast %124 : vector<16x1x32xf32> to vector<16x16x32xf32>
    %129 = vector.broadcast %127 : vector<1x16x32xf32> to vector<16x16x32xf32>
    %130 = arith.mulf %128, %129 : vector<16x16x32xf32>
    %131 = arith.addf %121, %130 : vector<16x16x32xf32>
    %132 = vector.extract_strided_slice %60 {offsets = [7, 0, 0], sizes = [1, 16, 32], strides = [1, 1, 1]} : vector<16x16x32xf32> to vector<1x16x32xf32>
    %133 = vector.shape_cast %132 : vector<1x16x32xf32> to vector<16x32xf32>
    %134 = vector.shape_cast %133 : vector<16x32xf32> to vector<16x1x32xf32>
    %135 = vector.extract_strided_slice %59 {offsets = [7, 0, 0], sizes = [1, 16, 32], strides = [1, 1, 1]} : vector<16x16x32xf32> to vector<1x16x32xf32>
    %136 = vector.shape_cast %135 : vector<1x16x32xf32> to vector<16x32xf32>
    %137 = vector.shape_cast %136 : vector<16x32xf32> to vector<1x16x32xf32>
    %138 = vector.broadcast %134 : vector<16x1x32xf32> to vector<16x16x32xf32>
    %139 = vector.broadcast %137 : vector<1x16x32xf32> to vector<16x16x32xf32>
    %140 = arith.mulf %138, %139 : vector<16x16x32xf32>
    %141 = arith.addf %131, %140 : vector<16x16x32xf32>
    %142 = vector.extract_strided_slice %60 {offsets = [8, 0, 0], sizes = [1, 16, 32], strides = [1, 1, 1]} : vector<16x16x32xf32> to vector<1x16x32xf32>
    %143 = vector.shape_cast %142 : vector<1x16x32xf32> to vector<16x32xf32>
    %144 = vector.shape_cast %143 : vector<16x32xf32> to vector<16x1x32xf32>
    %145 = vector.extract_strided_slice %59 {offsets = [8, 0, 0], sizes = [1, 16, 32], strides = [1, 1, 1]} : vector<16x16x32xf32> to vector<1x16x32xf32>
    %146 = vector.shape_cast %145 : vector<1x16x32xf32> to vector<16x32xf32>
    %147 = vector.shape_cast %146 : vector<16x32xf32> to vector<1x16x32xf32>
    %148 = vector.broadcast %144 : vector<16x1x32xf32> to vector<16x16x32xf32>
    %149 = vector.broadcast %147 : vector<1x16x32xf32> to vector<16x16x32xf32>
    %150 = arith.mulf %148, %149 : vector<16x16x32xf32>
    %151 = arith.addf %141, %150 : vector<16x16x32xf32>
    %152 = vector.extract_strided_slice %60 {offsets = [9, 0, 0], sizes = [1, 16, 32], strides = [1, 1, 1]} : vector<16x16x32xf32> to vector<1x16x32xf32>
    %153 = vector.shape_cast %152 : vector<1x16x32xf32> to vector<16x32xf32>
    %154 = vector.shape_cast %153 : vector<16x32xf32> to vector<16x1x32xf32>
    %155 = vector.extract_strided_slice %59 {offsets = [9, 0, 0], sizes = [1, 16, 32], strides = [1, 1, 1]} : vector<16x16x32xf32> to vector<1x16x32xf32>
    %156 = vector.shape_cast %155 : vector<1x16x32xf32> to vector<16x32xf32>
    %157 = vector.shape_cast %156 : vector<16x32xf32> to vector<1x16x32xf32>
    %158 = vector.broadcast %154 : vector<16x1x32xf32> to vector<16x16x32xf32>
    %159 = vector.broadcast %157 : vector<1x16x32xf32> to vector<16x16x32xf32>
    %160 = arith.mulf %158, %159 : vector<16x16x32xf32>
    %161 = arith.addf %151, %160 : vector<16x16x32xf32>
    %162 = vector.extract_strided_slice %60 {offsets = [10, 0, 0], sizes = [1, 16, 32], strides = [1, 1, 1]} : vector<16x16x32xf32> to vector<1x16x32xf32>
    %163 = vector.shape_cast %162 : vector<1x16x32xf32> to vector<16x32xf32>
    %164 = vector.shape_cast %163 : vector<16x32xf32> to vector<16x1x32xf32>
    %165 = vector.extract_strided_slice %59 {offsets = [10, 0, 0], sizes = [1, 16, 32], strides = [1, 1, 1]} : vector<16x16x32xf32> to vector<1x16x32xf32>
    %166 = vector.shape_cast %165 : vector<1x16x32xf32> to vector<16x32xf32>
    %167 = vector.shape_cast %166 : vector<16x32xf32> to vector<1x16x32xf32>
    %168 = vector.broadcast %164 : vector<16x1x32xf32> to vector<16x16x32xf32>
    %169 = vector.broadcast %167 : vector<1x16x32xf32> to vector<16x16x32xf32>
    %170 = arith.mulf %168, %169 : vector<16x16x32xf32>
    %171 = arith.addf %161, %170 : vector<16x16x32xf32>
    %172 = vector.extract_strided_slice %60 {offsets = [11, 0, 0], sizes = [1, 16, 32], strides = [1, 1, 1]} : vector<16x16x32xf32> to vector<1x16x32xf32>
    %173 = vector.shape_cast %172 : vector<1x16x32xf32> to vector<16x32xf32>
    %174 = vector.shape_cast %173 : vector<16x32xf32> to vector<16x1x32xf32>
    %175 = vector.extract_strided_slice %59 {offsets = [11, 0, 0], sizes = [1, 16, 32], strides = [1, 1, 1]} : vector<16x16x32xf32> to vector<1x16x32xf32>
    %176 = vector.shape_cast %175 : vector<1x16x32xf32> to vector<16x32xf32>
    %177 = vector.shape_cast %176 : vector<16x32xf32> to vector<1x16x32xf32>
    %178 = vector.broadcast %174 : vector<16x1x32xf32> to vector<16x16x32xf32>
    %179 = vector.broadcast %177 : vector<1x16x32xf32> to vector<16x16x32xf32>
    %180 = arith.mulf %178, %179 : vector<16x16x32xf32>
    %181 = arith.addf %171, %180 : vector<16x16x32xf32>
    %182 = vector.extract_strided_slice %60 {offsets = [12, 0, 0], sizes = [1, 16, 32], strides = [1, 1, 1]} : vector<16x16x32xf32> to vector<1x16x32xf32>
    %183 = vector.shape_cast %182 : vector<1x16x32xf32> to vector<16x32xf32>
    %184 = vector.shape_cast %183 : vector<16x32xf32> to vector<16x1x32xf32>
    %185 = vector.extract_strided_slice %59 {offsets = [12, 0, 0], sizes = [1, 16, 32], strides = [1, 1, 1]} : vector<16x16x32xf32> to vector<1x16x32xf32>
    %186 = vector.shape_cast %185 : vector<1x16x32xf32> to vector<16x32xf32>
    %187 = vector.shape_cast %186 : vector<16x32xf32> to vector<1x16x32xf32>
    %188 = vector.broadcast %184 : vector<16x1x32xf32> to vector<16x16x32xf32>
    %189 = vector.broadcast %187 : vector<1x16x32xf32> to vector<16x16x32xf32>
    %190 = arith.mulf %188, %189 : vector<16x16x32xf32>
    %191 = arith.addf %181, %190 : vector<16x16x32xf32>
    %192 = vector.extract_strided_slice %60 {offsets = [13, 0, 0], sizes = [1, 16, 32], strides = [1, 1, 1]} : vector<16x16x32xf32> to vector<1x16x32xf32>
    %193 = vector.shape_cast %192 : vector<1x16x32xf32> to vector<16x32xf32>
    %194 = vector.shape_cast %193 : vector<16x32xf32> to vector<16x1x32xf32>
    %195 = vector.extract_strided_slice %59 {offsets = [13, 0, 0], sizes = [1, 16, 32], strides = [1, 1, 1]} : vector<16x16x32xf32> to vector<1x16x32xf32>
    %196 = vector.shape_cast %195 : vector<1x16x32xf32> to vector<16x32xf32>
    %197 = vector.shape_cast %196 : vector<16x32xf32> to vector<1x16x32xf32>
    %198 = vector.broadcast %194 : vector<16x1x32xf32> to vector<16x16x32xf32>
    %199 = vector.broadcast %197 : vector<1x16x32xf32> to vector<16x16x32xf32>
    %200 = arith.mulf %198, %199 : vector<16x16x32xf32>
    %201 = arith.addf %191, %200 : vector<16x16x32xf32>
    %202 = vector.extract_strided_slice %60 {offsets = [14, 0, 0], sizes = [1, 16, 32], strides = [1, 1, 1]} : vector<16x16x32xf32> to vector<1x16x32xf32>
    %203 = vector.shape_cast %202 : vector<1x16x32xf32> to vector<16x32xf32>
    %204 = vector.shape_cast %203 : vector<16x32xf32> to vector<16x1x32xf32>
    %205 = vector.extract_strided_slice %59 {offsets = [14, 0, 0], sizes = [1, 16, 32], strides = [1, 1, 1]} : vector<16x16x32xf32> to vector<1x16x32xf32>
    %206 = vector.shape_cast %205 : vector<1x16x32xf32> to vector<16x32xf32>
    %207 = vector.shape_cast %206 : vector<16x32xf32> to vector<1x16x32xf32>
    %208 = vector.broadcast %204 : vector<16x1x32xf32> to vector<16x16x32xf32>
    %209 = vector.broadcast %207 : vector<1x16x32xf32> to vector<16x16x32xf32>
    %210 = arith.mulf %208, %209 : vector<16x16x32xf32>
    %211 = arith.addf %201, %210 : vector<16x16x32xf32>
    %212 = vector.extract_strided_slice %60 {offsets = [15, 0, 0], sizes = [1, 16, 32], strides = [1, 1, 1]} : vector<16x16x32xf32> to vector<1x16x32xf32>
    %213 = vector.shape_cast %212 : vector<1x16x32xf32> to vector<16x32xf32>
    %214 = vector.shape_cast %213 : vector<16x32xf32> to vector<16x1x32xf32>
    %215 = vector.extract_strided_slice %59 {offsets = [15, 0, 0], sizes = [1, 16, 32], strides = [1, 1, 1]} : vector<16x16x32xf32> to vector<1x16x32xf32>
    %216 = vector.shape_cast %215 : vector<1x16x32xf32> to vector<16x32xf32>
    %217 = vector.shape_cast %216 : vector<16x32xf32> to vector<1x16x32xf32>
    %218 = vector.broadcast %214 : vector<16x1x32xf32> to vector<16x16x32xf32>
    %219 = vector.broadcast %217 : vector<1x16x32xf32> to vector<16x16x32xf32>
    %220 = arith.mulf %218, %219 : vector<16x16x32xf32>
    %221 = arith.addf %211, %220 : vector<16x16x32xf32>
    %222 = vector.shape_cast %221 : vector<16x16x32xf32> to vector<256x32xf32>
    %c0_26 = arith.constant 0 : index
    %c0_27 = arith.constant 0 : index
    %223 = vector.load %arg6[%c0_26, %c0_27] : memref<1x32xf32, #tpu.memory_space<vmem>>, vector<1x32xf32>
    %c0_28 = arith.constant 0 : index
    %c0_29 = arith.constant 0 : index
    %224 = vector.load %arg7[%c0_28, %c0_29] : memref<1x32xf32, #tpu.memory_space<vmem>>, vector<1x32xf32>
    %cst_30 = arith.constant dense<0.000000e+00> : vector<256xf32>
    %225 = vector.multi_reduction <add>, %222, %cst_30 [1] : vector<256x32xf32> to vector<256xf32>
    %226 = vector.shape_cast %225 : vector<256xf32> to vector<256x1xf32>
    %cst_31 = arith.constant 3.200000e+01 : f32
    %227 = vector.broadcast %cst_31 : f32 to vector<256x1xf32>
    %228 = arith.divf %226, %227 : vector<256x1xf32>
    %229 = vector.broadcast %228 : vector<256x1xf32> to vector<256x32xf32>
    %230 = arith.subf %222, %229 : vector<256x32xf32>
    %231 = arith.mulf %230, %230 : vector<256x32xf32>
    %cst_32 = arith.constant dense<0.000000e+00> : vector<256xf32>
    %232 = vector.multi_reduction <add>, %231, %cst_32 [1] : vector<256x32xf32> to vector<256xf32>
    %233 = vector.shape_cast %232 : vector<256xf32> to vector<256x1xf32>
    %cst_33 = arith.constant 3.200000e+01 : f32
    %234 = vector.broadcast %cst_33 : f32 to vector<256x1xf32>
    %235 = arith.divf %233, %234 : vector<256x1xf32>
    %cst_34 = arith.constant 9.99999974E-6 : f32
    %236 = vector.broadcast %cst_34 : f32 to vector<256x1xf32>
    %237 = arith.addf %235, %236 : vector<256x1xf32>
    %238 = math.rsqrt %237 : vector<256x1xf32>
    %239 = vector.broadcast %238 : vector<256x1xf32> to vector<256x32xf32>
    %240 = arith.mulf %230, %239 : vector<256x32xf32>
    %241 = vector.broadcast %223 : vector<1x32xf32> to vector<256x32xf32>
    %242 = arith.mulf %240, %241 : vector<256x32xf32>
    %243 = vector.broadcast %224 : vector<1x32xf32> to vector<256x32xf32>
    %244 = arith.addf %242, %243 : vector<256x32xf32>
    %245 = arith.mulf %244, %58 : vector<256x32xf32>
    %246 = arith.truncf %245 : vector<256x32xf32> to vector<256x32xbf16>
    %c0_35 = arith.constant 0 : index
    %c0_36 = arith.constant 0 : index
    %247 = vector.load %arg8[%c0_35, %c0_36] : memref<32x32xbf16, #tpu.memory_space<vmem>>, vector<32x32xbf16>
    %cst_37 = arith.constant dense<0.000000e+00> : vector<256x32xf32>
    %248 = tpu.matmul %246, %247, %cst_37 {dimension_numbers = #tpu.dot_dimension_numbers<[1], [0], [0], [1], [0, 0, 1, 1], [], []>} : vector<256x32xbf16>, vector<32x32xbf16>, vector<256x32xf32> -> vector<256x32xf32>
    %c0_38 = arith.constant 0 : index
    %c0_39 = arith.constant 0 : index
    %249 = vector.load %arg9[%c0_38, %c0_39] : memref<1x32xf32, #tpu.memory_space<vmem>>, vector<1x32xf32>
    %250 = vector.broadcast %249 : vector<1x32xf32> to vector<256x32xf32>
    %251 = arith.addf %248, %250 : vector<256x32xf32>
    %252 = vector.shape_cast %251 : vector<256x32xf32> to vector<1x16x16x32xf32>
    %c0_40 = arith.constant 0 : index
    %c0_41 = arith.constant 0 : index
    %c0_42 = arith.constant 0 : index
    %c0_43 = arith.constant 0 : index
    %253 = vector.load %arg10[%c0_40, %c0_41, %c0_42, %c0_43] : memref<1x16x16x32xf32, #tpu.memory_space<vmem>>, vector<1x16x16x32xf32>
    tpu.vector_store %arg10[%c0_40, %c0_41, %c0_42, %c0_43], %252 {strides = array<i32>} : memref<1x16x16x32xf32, #tpu.memory_space<vmem>>, vector<1x16x16x32xf32>,
    return
  }
  func.func @transform_0(%arg0: i32) -> (i32, i32, i32, i32) {
    %c0_i32 = arith.constant 0 : i32
    %c0_i32_0 = arith.constant 0 : i32
    %c0_i32_1 = arith.constant 0 : i32
    %c0_i32_2 = arith.constant 0 : i32
    return %arg0, %c0_i32, %c0_i32_0, %c0_i32_1 : i32, i32, i32, i32
  }
  func.func @transform_1(%arg0: i32) -> (i32, i32) {
    %c0_i32 = arith.constant 0 : i32
    %c0_i32_0 = arith.constant 0 : i32
    %c0_i32_1 = arith.constant 0 : i32
    return %c0_i32, %c0_i32_0 : i32, i32
  }
  func.func @transform_2(%arg0: i32) -> (i32, i32) {
    %c0_i32 = arith.constant 0 : i32
    %c0_i32_0 = arith.constant 0 : i32
    %c0_i32_1 = arith.constant 0 : i32
    return %c0_i32, %c0_i32_0 : i32, i32
  }
  func.func @transform_3(%arg0: i32) -> (i32, i32) {
    %c0_i32 = arith.constant 0 : i32
    %c0_i32_0 = arith.constant 0 : i32
    %c0_i32_1 = arith.constant 0 : i32
    return %c0_i32, %c0_i32_0 : i32, i32
  }
  func.func @transform_4(%arg0: i32) -> (i32, i32) {
    %c0_i32 = arith.constant 0 : i32
    %c0_i32_0 = arith.constant 0 : i32
    %c0_i32_1 = arith.constant 0 : i32
    return %c0_i32, %c0_i32_0 : i32, i32
  }
  func.func @transform_5(%arg0: i32) -> (i32, i32) {
    %c0_i32 = arith.constant 0 : i32
    %c0_i32_0 = arith.constant 0 : i32
    %c0_i32_1 = arith.constant 0 : i32
    return %c0_i32, %c0_i32_0 : i32, i32
  }
  func.func @transform_6(%arg0: i32) -> (i32, i32) {
    %c0_i32 = arith.constant 0 : i32
    %c0_i32_0 = arith.constant 0 : i32
    %c0_i32_1 = arith.constant 0 : i32
    return %c0_i32, %c0_i32_0 : i32, i32
  }
  func.func @transform_7(%arg0: i32) -> (i32, i32) {
    %c0_i32 = arith.constant 0 : i32
    %c0_i32_0 = arith.constant 0 : i32
    %c0_i32_1 = arith.constant 0 : i32
    return %c0_i32, %c0_i32_0 : i32, i32
  }
  func.func @transform_8(%arg0: i32) -> (i32, i32) {
    %c0_i32 = arith.constant 0 : i32
    %c0_i32_0 = arith.constant 0 : i32
    %c0_i32_1 = arith.constant 0 : i32
    return %c0_i32, %c0_i32_0 : i32, i32
  }
  func.func @transform_9(%arg0: i32) -> (i32, i32, i32, i32) {
    %c0_i32 = arith.constant 0 : i32
    %c0_i32_0 = arith.constant 0 : i32
    %c0_i32_1 = arith.constant 0 : i32
    %c0_i32_2 = arith.constant 0 : i32
    return %arg0, %c0_i32, %c0_i32_0, %c0_i32_1 : i32, i32, i32, i32
  }
}

</mosaic_0001>

<bundles_post_ra>
// kernel: tpu_custom_call.1
= control target key start
LH: loop header
LB: loop body
LE: loop exit
PB: predicated region body
PF: predicated region fallthrough
CT: control target
= control target key end

     0   :  { %s13343_s0 = inlined_call_operand.hbm [shape: f32[2,16,16,32], index: 0, kind: input, shape index: {}]   ;;  %s13344_s1 = inlined_call_operand.hbm [shape: bf16[32,160], index: 1, kind: input, shape index: {}]   ;;  %s13345_s2 = inlined_call_operand.hbm [shape: f32[1,160], index: 2, kind: input, shape index: {}]   ;;  %s13346_s3 = inlined_call_operand.vmem [shape: f32[1,32], index: 3, kind: input, shape index: {}]   ;;  %s13347_s4 = inlined_call_operand.vmem [shape: f32[1,32], index: 4, kind: input, shape index: {}]   ;;  %s13348_s5 = inlined_call_operand.vmem [shape: f32[1,32], index: 5, kind: input, shape index: {}]   ;;  %s13349_s6 = inlined_call_operand.vmem [shape: f32[1,32], index: 6, kind: input, shape index: {}]   ;;  %s13350_s7 = inlined_call_operand.hbm [shape: bf16[32,32], index: 7, kind: input, shape index: {}]   ;;  %s13351_s8 = inlined_call_operand.vmem [shape: f32[1,32], index: 8, kind: input, shape index: {}]   ;;  %s13352_s9 = inlined_call_operand.hbm [shape: f32[2,16,16,32], index: 9, kind: output, shape index: {}]  }
   0x1   :  { %13749 = sst [smem:[#allocation269_spill]] %s13344_s1 }
   0x2   :  { %13750 = sst [smem:[#allocation270_spill]] %s13345_s2 }
   0x3   :  { %13751 = sst [smem:[#allocation271_spill]] %s13350_s7 }
   0x4   :  { %14 = vsyncpa [#allocation3], 0 }
   0x5   :  { %16 = vsyncpa [#allocation3 + $0x1], 0 }
   0x6   :  { %17 = vsyncpa [#allocation6], 0 }
   0x7   :  { %18 = vsyncpa [#allocation9], 0 }
   0x8   :  { %19 = vsyncpa [#allocation4], 0 }
   0x9   :  { %21 = vsyncpa [#allocation4 + $0x1], 0  ;;  %s7166_s30 = smov 0   ;;  %s7168_s10 = smov 0  }
   0xa   :  { %s7170_s11 = smov 0   ;;  %s7172_s12 = smov 0  }
   0xb LB: > { %s7187_s13 = sadd.s32 4294967295, %s7101_s12   ;;  %s6321_s14 = sadd.s32 4294967294, %s7101_s12   ;;  %s7101_s12 = sphi %s7172_s12, %s14919_s12   ;;  %s7097_s11 = sphi %s7170_s11, %s14918_s11   ;;  %s7093_s10 = sphi %s7168_s10, %s14917_s10   ;;  %s7089_s30 = sphi %s7166_s30, %s14916_s30  }
   0xc   : > { %p47_p0 = scmp.ne.s32.totalorder %s7093_s10, %s7089_s30  ;;  %p48_p1 = scmp.eq.s32.totalorder %s7187_s13, 0 }
   0xd   : > { %p239_p2 = scmp.eq.s32.totalorder %s7187_s13, 1  ;;  %p245_p3 = scmp.eq.s32.totalorder %s6321_s14, 1 }
   0xe   : > { %p7196_p4 = por %p48_p1, %p47_p0  ;;  %p6322_p5 = scmp.ge.s32.totalorder %s7101_s12, 1 }
   0xf   : > { %p7201_p6 = por %p245_p3, %p47_p0  ;;  %p252_p7 = scmp.lt.s32.totalorder %s7101_s12, 3 }
  0x10   : > { %s13754_s1 = sld [smem:[#allocation269_spill]]  ;;  %s7103_s21 = smov [#allocation5]  }
  0x11   : > { %p7209_p8 = pnand %p6322_p5, %p252_p7  ;;  %s265_s22 = sshll.u32 %s7103_s21, 4  ;;  %s266_s22 = int_to_ptr.vmem [resolvable:$true] %s265_s22 }
  0x12   : > { %s13757_s2 = sld [smem:[#allocation270_spill]]  ;;  %s13353_s27 = smov 128  }
  0x13   : > { %p6443_p9 = pneg %p7209_p8  ;;  %s13354_s28 = smov 8  }
  0x14   : > { %s7106_s29 = smov [#allocation7]   ;;  %s13758_s7 = sld [smem:[#allocation271_spill]] }
  0x15   : > { %p7217_p10 = pnand %p6443_p9, %p48_p1  ;;  %s280_s14 = sshll.u32 %s7106_s29, 4  ;;  %s281_s14 = int_to_ptr.vmem [resolvable:$true] %s280_s14 }
  0x16   : > { %s263_s19 = sshll.u32 %s13754_s1, 4  ;;  %s7107_s24 = smov [#allocation8]   ;;  %s264_s19 = int_to_ptr.hbm [resolvable:$true] %s263_s19 }
  0x17   : > { %6446 = dma.hbm_to_vmem [thread:$0]  (!%p7217_p10), %s264_s19, 512, %s266_s22, [#allocation6], %s13353_s27, %s13353_s27, %s13354_s28  }
  0x18   : > { %s278_s26 = sshll.u32 %s13757_s2, 4  ;;  %s303_s19 = sshll.u32 %s7107_s24, 4  ;;  %s279_s26 = int_to_ptr.hbm [resolvable:$true] %s278_s26  ;;  %s304_s19 = int_to_ptr.vmem [resolvable:$true] %s303_s19 }
  0x19   : > { %6449 = dma.hbm_to_vmem [thread:$0]  (!%p7217_p10), %s279_s26, 32, %s281_s14, [#allocation6]  }
  0x1a   : > { %s301_s21 = sshll.u32 %s13758_s7, 4  ;;  %s7108_s22 = smov 64   ;;  %s302_s21 = int_to_ptr.hbm [resolvable:$true] %s301_s21 }
  0x1b   : > { %s7109_s25 = smov 4   ;;  %s7238_s29 = sadd.s32 1, %s7101_s12  }
  0x1c   : > { %6452 = dma.hbm_to_vmem [thread:$0]  (!%p7217_p10), %s302_s21, 256, %s304_s19, [#allocation9], %s7108_s22, %s7108_s22, %s7109_s25  }
  0x1d   : > { %s31_s17 = ssub.s32 %s7101_s12, %s7238_s29  ;;  %s34_s18 = sadd.s32 1, %s7097_s11 }
  0x1e   : > { %p32_p12 = scmp.eq.s32.totalorder %s31_s17, 0  ;;  %p41_p13 = scmp.ne.s32.totalorder %s7097_s11, %s7093_s10 }
  0x1f   : > { %p42_p0 = scmp.eq.s32.totalorder %s7101_s12, 0  ;;  %p6464_p5 = scmp.lt.s32.totalorder %s7101_s12, 2 }
  0x20   : > { %s7247_s27 = scalar_select %p32_p12, %s7097_s11, %s34_s18  }
  0x21   : > { %p7251_p3 = por %p239_p2, %p41_p13  ;;  %s320_s14 = sand.u32 1, %s7097_s11  }
  0x22   : > { %s6413_s24 = sshll.u32 %s7101_s12, 8  ;;  %p43_p7 = por %p42_p0, %p41_p13 }
  0x23   : > { %s6327_s23 = sshll.u32 %s320_s14, 8  ;;  %s329_s22 = scalar_lea.hbm %s13343_s0, %s6413_s24 }
  0x24   : > { %s330_s25 = sshll.u32 %s329_s22, 4  ;;  %s324_s17 = scalar_lea.vmem [#allocation2], %s6327_s23  ;;  %s331_s25 = int_to_ptr.hbm [resolvable:$true] %s330_s25 }
  0x25   : > { %s332_s28 = sshll.u32 %s324_s17, 4  ;;  %p7261_p9 = pnand %p6464_p5, %p43_p7  ;;  %s333_s28 = int_to_ptr.vmem [resolvable:$true] %s332_s28 }
  0x26   : > { %s321_s1 = scalar_lea.sflag [#allocation3], %s320_s14  ;;  %s6997_s2 = sshra.s32 %s331_s25, 4  ;;  %s6998_s2 = int_to_ptr.hbm [resolvable:$true] %s6997_s2 }
  0x27   : > { %s6999_s7 = scalar_lea.hbm %s6998_s2, 256  ;;  %p7001_p10 = pneg %p7261_p9 }
  0x28   : > { %p7000_p2 = scmp.ne.s32.totalorder %s6998_s2, %s6999_s7  ;;  %s7004_s23 = scalar_lea.hbm %s13343_s0, 512 }
  0x29   : > { %p7005_p0 = scmp.lt.s32.totalorder %s6998_s2, %s13343_s0  ;;  %p7006_p5 = scmp.lt.s32.totalorder %s7004_s23, %s6999_s7 }
  0x2a   : > { %p7002_p12 = pnand %p7001_p10, %p7000_p2 }
  0x2b   : > { %p7007_p7 = por %p7006_p5, %p7005_p0 }
  0x2c   : > { %p7003_p13 = pneg %p7002_p12 }
  0x2e   : > { %p7008_p11 = pnand %p7007_p7, %p7003_p13 }
  0x30   : > { %7011 = shalt.err (!%p7008_p11)
}
  0x31   : > { %s13761_s14 = smov 8   ;;  %s13762_s17 = smov 128  }
  0x32   : > { %6456 = dma.hbm_to_vmem [thread:$0]  (!%p7261_p9), %s331_s25, 4096, %s333_s28, %s321_s1, %s13762_s17, %s13762_s17, %s13761_s14  }
  0x33   : > { %344 = sbr.rel (%p7209_p8) target bundleno = 2353 (0x931), region = 56 }
  0x38   : > { %s7281_s24 = sand.u32 1, %s7093_s10  }
  0x39   : > { %s6331_s2 = sshll.u32 %s7281_s24, 8  ;;  %s347_s7 = scalar_lea.sflag [#allocation3], %s7281_s24 }
  0x3a   : > { %s7287_s21 = scalar_lea.vmem [#allocation2], %s6331_s2 }
  0x3b   : > { %7072 = dma.done.wait (%p7196_p4), %s347_s7, 4096  }
  0x3c   : > { %7074 = vsyncadd (%p7196_p4), %s347_s7, 4294963200 }
  0x3d   : > { %7076 = dma.done.wait (%p48_p1), [#allocation6], 544  }
  0x3e   : > { %7078 = vsyncadd (%p48_p1), [#allocation6], 4294966752 }
  0x3f   : > { %7080 = dma.done.wait (%p48_p1), [#allocation9], 256  }
  0x40   : > { %7082 = vsyncadd (%p48_p1), [#allocation9], 4294967040  ;;  %vm436_vm0 = vcmask 261120   ;;  %v7302_v0 = vld [vmem:[%s7287_s21 + $0x20] sm:$0xff]  ;;  %v7305_v1 = vld [vmem:[%s7287_s21 + $0x10] sm:$0xff]  ;;  %v7110_v62 = vmov 32.0  }
  0x41   : > { %v7308_v2 = vld [vmem:[%s7287_s21] sm:$0xff]  ;;  %v449_v3 = vsel %vm436_vm0, %v7302_v0, 0.0  ;;  %v443_v4 = vsel %vm436_vm0, %v7305_v1, 0.0  ;;  %v7317_v6 = vld [vmem:[%s7287_s21 + $0x28] sm:$0xff]  ;;  %v7320_v7 = vld [vmem:[%s7287_s21 + $0x18] sm:$0xff]  ;;  %6519 = vrcp.f32 %v7110_v62  ;;  %s7111_s22 = smov 32  }
  0x42   : > { %v437_v5 = vsel %vm436_vm0, %v7308_v2, 0.0  ;;  %450 = vadd.xlane.f32.xlu2 %v449_v3  ;;  %444 = vadd.xlane.f32.xlu1 %v443_v4  ;;  %v7323_v8 = vld [vmem:[%s7287_s21 + $0x8] sm:$0xff]  ;;  %v452_v9 = vsel %vm436_vm0, %v7317_v6, 0.0  ;;  %v446_v10 = vsel %vm436_vm0, %v7320_v7, 0.0  ;;  %v7332_v12 = vld [vmem:[%s7287_s21 + $0x30] sm:$0xff]  ;;  %v7338_v14 = vld [vmem:[%s7287_s21 + $0x38] sm:$0xff] }
  0x43   : > { %438 = vadd.xlane.f32.xlu0 %v437_v5  ;;  %v440_v11 = vsel %vm436_vm0, %v7323_v8, 0.0  ;;  %v7335_v13 = vld [vmem:[%s7287_s21 + $0x48] sm:$0xff]  ;;  %v455_v15 = vsel %vm436_vm0, %v7332_v12, 0.0  ;;  %v458_v17 = vsel %vm436_vm0, %v7338_v14, 0.0  ;;  %v7347_v18 = vld [vmem:[%s7287_s21 + $0x58] sm:$0xff]  ;;  %v7350_v19 = vld [vmem:[%s7287_s21 + $0x50] sm:$0xff] }
  0x44   : > { %v464_v16 = vsel %vm436_vm0, %v7335_v13, 0.0  ;;  %v7353_v20 = vld [vmem:[%s7287_s21 + $0x40] sm:$0xff]  ;;  %v470_v21 = vsel %vm436_vm0, %v7347_v18, 0.0  ;;  %v467_v22 = vsel %vm436_vm0, %v7350_v19, 0.0  ;;  %v7362_v24 = vld [vmem:[%s7287_s21 + $0x78] sm:$0xff]  ;;  %v7368_v26 = vld [vmem:[%s7287_s21 + $0x68] sm:$0xff] }
  0x45   : > { %v461_v23 = vsel %vm436_vm0, %v7353_v20, 0.0  ;;  %v7365_v25 = vld [vmem:[%s7287_s21 + $0x60] sm:$0xff]  ;;  %v482_v27 = vsel %vm436_vm0, %v7362_v24, 0.0  ;;  %v476_v29 = vsel %vm436_vm0, %v7368_v26, 0.0  ;;  %v7380_v31 = vld [vmem:[%s7287_s21 + $0x88] sm:$0xff]  ;;  %v7383_v32 = vld [vmem:[%s7287_s21 + $0x70] sm:$0xff] }
  0x46   : > { %v473_v28 = vsel %vm436_vm0, %v7365_v25, 0.0  ;;  %v7377_v30 = vld [vmem:[%s7287_s21 + $0x80] sm:$0xff]  ;;  %v488_v34 = vsel %vm436_vm0, %v7380_v31, 0.0  ;;  %v479_v35 = vsel %vm436_vm0, %v7383_v32, 0.0  ;;  %v7392_v36 = vld [vmem:[%s7287_s21 + $0xc8] sm:$0xff]  ;;  %v7395_v37 = vld [vmem:[%s7287_s21 + $0x98] sm:$0xff] }
  0x47   : > { %v485_v33 = vsel %vm436_vm0, %v7377_v30, 0.0  ;;  %v7398_v38 = vld [vmem:[%s7287_s21 + $0xc0] sm:$0xff]  ;;  %v512_v39 = vsel %vm436_vm0, %v7392_v36, 0.0  ;;  %v494_v40 = vsel %vm436_vm0, %v7395_v37, 0.0  ;;  %v7407_v42 = vld [vmem:[%s7287_s21 + $0x90] sm:$0xff]  ;;  %v7410_v43 = vld [vmem:[%s7287_s21 + $0xa8] sm:$0xff]  ;;  %v6520_v63 = vpop.eup %6519 }
  0x48   : > { %v509_v41 = vsel %vm436_vm0, %v7398_v38, 0.0  ;;  %v7413_v44 = vld [vmem:[%s7287_s21 + $0xd0] sm:$0xff]  ;;  %v491_v45 = vsel %vm436_vm0, %v7407_v42, 0.0  ;;  %v500_v46 = vsel %vm436_vm0, %v7410_v43, 0.0  ;;  %v7422_v48 = vld [vmem:[%s7287_s21 + $0xd8] sm:$0xff]  ;;  %v7428_v50 = vld [vmem:[%s7287_s21 + $0xe0] sm:$0xff]  ;;  %vm538_vm1 = vweird.f32 %v6520_v63 }
  0x49   : > { %v515_v47 = vsel %vm436_vm0, %v7413_v44, 0.0  ;;  %v7425_v49 = vld [vmem:[%s7287_s21 + $0xb8] sm:$0xff]  ;;  %v518_v51 = vsel %vm436_vm0, %v7422_v48, 0.0  ;;  %v521_v53 = vsel %vm436_vm0, %v7428_v50, 0.0  ;;  %v7437_v54 = vld [vmem:[%s7287_s21 + $0xa0] sm:$0xff]  ;;  %v7440_v55 = vld [vmem:[%s7287_s21 + $0xf0] sm:$0xff] }
  0x4a   : > { %453 = vadd.xlane.f32.xlu2 %v452_v9  ;;  %447 = vadd.xlane.f32.xlu1 %v446_v10  ;;  %v506_v52 = vsel %vm436_vm0, %v7425_v49, 0.0  ;;  %v497_v56 = vsel %vm436_vm0, %v7437_v54, 0.0  ;;  %v527_v57 = vsel %vm436_vm0, %v7440_v55, 0.0  ;;  %v7447_v58 = vld [vmem:[%s7287_s21 + $0xe8] sm:$0xff]  ;;  %v7452_v60 = vld [vmem:[%s7287_s21 + $0xb0] sm:$0xff]  ;;  %v534_v3 = vmul.f32 32.0, %v6520_v63 }
  0x4b   : > { %441 = vadd.xlane.f32.xlu0 %v440_v11  ;;  %v524_v59 = vsel %vm436_vm0, %v7447_v58, 0.0  ;;  %v503_v61 = vsel %vm436_vm0, %v7452_v60, 0.0  ;;  %s7112_s1 = smov 64   ;;  %s7113_s15 = smov 96  }
  0x4c   : > { %v535_v4 = vsub.f32 1.0, %v534_v3  ;;  %s13121_s25 = scalar_lea.vmem [#allocation10], %s6331_s2  ;;  %s6420_s2 = sshll.u32 %s7187_s13, 8 }
  0x4d   : > { %s6215_s19 = scalar_lea.hbm %s13352_s9, %s6420_s2  ;;  %s6204_s13 = scalar_lea.sflag [#allocation4], %s7281_s24 }
  0x4e   : > { %v536_v5 = vmul.f32 %v6520_v63, %v535_v4  ;;  %s6218_s14 = sshll.u32 %s6215_s19, 4  ;;  %s6219_s14 = int_to_ptr.hbm [resolvable:$true] %s6218_s14 }
  0x4f   : > { %s7041_s17 = sshra.s32 %s6219_s14, 4  ;;  %s7042_s17 = int_to_ptr.hbm [resolvable:$true] %s7041_s17 }
  0x50   : > { %v537_v9 = vadd.f32 %v6520_v63, %v536_v5  ;;  %s7043_s7 = scalar_lea.hbm %s7042_s17, 256  ;;  %p7048_p11 = scmp.lt.s32.totalorder %s7042_s17, %s13352_s9 }
  0x51   : > { %p7044_p1 = scmp.ne.s32.totalorder %s7042_s17, %s7043_s7 }
  0x52   : > { %456 = vadd.xlane.f32.xlu2 %v455_v15  ;;  %465 = vadd.xlane.f32.xlu1 %v464_v16  ;;  %v7456_v10 = vsel %vm538_vm1, %v6520_v63, %v537_v9 }
  0x53   : > { %459 = vadd.xlane.f32.xlu0 %v458_v17  ;;  %13763 = vst [vmem:[#allocation15_spill] sm:$0xff] %v7456_v10  ;;  %p7045_p4 = pnand %p7044_p1, %p7251_p3 }
  0x55   : > { %p7046_p8 = pneg %p7045_p4 }
  0x5a   : > { %471 = vadd.xlane.f32.xlu2 %v470_v21  ;;  %468 = vadd.xlane.f32.xlu1 %v467_v22 }
  0x5b   : > { %462 = vadd.xlane.f32.xlu0 %v461_v23 }
  0x62   : > { %483 = vadd.xlane.f32.xlu1 %v482_v27  ;;  %474 = vadd.xlane.f32.xlu2 %v473_v28 }
  0x63   : > { %477 = vadd.xlane.f32.xlu0 %v476_v29 }
  0x6a   : > { %486 = vadd.xlane.f32.xlu1 %v485_v33  ;;  %489 = vadd.xlane.f32.xlu2 %v488_v34 }
  0x6b   : > { %480 = vadd.xlane.f32.xlu0 %v479_v35 }
  0x72   : > { %513 = vadd.xlane.f32.xlu1 %v512_v39  ;;  %495 = vadd.xlane.f32.xlu2 %v494_v40 }
  0x73   : > { %510 = vadd.xlane.f32.xlu0 %v509_v41 }
  0x7a   : > { %492 = vadd.xlane.f32.xlu1 %v491_v45  ;;  %501 = vadd.xlane.f32.xlu2 %v500_v46 }
  0x7b   : > { %516 = vadd.xlane.f32.xlu0 %v515_v47 }
  0x82   : > { %519 = vadd.xlane.f32.xlu1 %v518_v51  ;;  %507 = vadd.xlane.f32.xlu2 %v506_v52 }
  0x83   : > { %522 = vadd.xlane.f32.xlu0 %v521_v53 }
  0x8a   : > { %498 = vadd.xlane.f32.xlu1 %v497_v56  ;;  %528 = vadd.xlane.f32.xlu2 %v527_v57 }
  0x92   : > { %525 = vadd.xlane.f32.xlu1 %v524_v59 }
  0x9a   : > { %504 = vadd.xlane.f32.xlu1 %v503_v61 }
  0xb5   : > { %v451_v11 = vpop.xlane.xlu2 %450  ;;  %v445_v15 = vpop.xlane.xlu1 %444 }
  0xb6   : > { %v439_v16 = vpop.xlane.xlu0 %438  ;;  %v544_v39 = vmul.f32 %v7456_v10, %v451_v11  ;;  %v542_v41 = vmul.f32 %v7456_v10, %v445_v15 }
  0xb7   : > { %v540_v17 = vmul.f32 %v7456_v10, %v439_v16 }
  0xb8   : > { %v7491_v53 = vsub.f32 %v7305_v1, %v542_v41 }
  0xb9   : > { %v7460_v21 = vsub.f32 %v7308_v2, %v540_v17 }
  0xba   : > { %v606_v3 = vmul.f32 %v7491_v53, %v7491_v53 }
  0xbb   : > { %v604_v22 = vmul.f32 %v7460_v21, %v7460_v21 }
  0xbc   : > { %v642_v17 = vsel %vm436_vm0, %v606_v3, 0.0 }
  0xbd   : > { %v454_v23 = vpop.xlane.xlu2 %453  ;;  %v448_v27 = vpop.xlane.xlu1 %447  ;;  %v636_v28 = vsel %vm436_vm0, %v604_v22, 0.0 }
  0xbe   : > { %v545_v29 = vmul.f32 %v7456_v10, %v454_v23  ;;  %v543_v33 = vmul.f32 %v7456_v10, %v448_v27  ;;  %637 = vadd.xlane.f32.xlu0 %v636_v28  ;;  %v442_v34 = vpop.xlane.xlu0 %441 }
  0xbf   : > { %v541_v35 = vmul.f32 %v7456_v10, %v442_v34 }
  0xc0   : > { %v7470_v2 = vsub.f32 %v7317_v6, %v545_v29  ;;  %v7473_v40 = vsub.f32 %v7320_v7, %v543_v33  ;;  %v7486_v6 = vsub.f32 %v7302_v0, %v544_v39 }
  0xc1   : > { %v7477_v45 = vsub.f32 %v7323_v8, %v541_v35 }
  0xc2   : > { %v607_v46 = vmul.f32 %v7473_v40, %v7473_v40  ;;  %v609_v47 = vmul.f32 %v7470_v2, %v7470_v2  ;;  %v608_v63 = vmul.f32 %v7486_v6, %v7486_v6 }
  0xc3   : > { %v605_v51 = vmul.f32 %v7477_v45, %v7477_v45 }
  0xc4   : > { %v645_v7 = vsel %vm436_vm0, %v607_v46, 0.0  ;;  %v651_v52 = vsel %vm436_vm0, %v609_v47, 0.0  ;;  %v648_v9 = vsel %vm436_vm0, %v608_v63, 0.0 }
  0xc5   : > { %v457_v8 = vpop.xlane.xlu2 %456  ;;  %646 = vadd.xlane.f32.xlu2 %v645_v7  ;;  %v466_v56 = vpop.xlane.xlu1 %465  ;;  %v639_v57 = vsel %vm436_vm0, %v605_v51, 0.0 }
  0xc6   : > { %v546_v59 = vmul.f32 %v7456_v10, %v457_v8  ;;  %v549_v61 = vmul.f32 %v7456_v10, %v466_v56  ;;  %652 = vadd.xlane.f32.xlu0 %v651_v52  ;;  %640 = vadd.xlane.f32.xlu1 %v639_v57  ;;  %v460_v0 = vpop.xlane.xlu0 %459 }
  0xc7   : > { %v547_v1 = vmul.f32 %v7456_v10, %v460_v0 }
  0xc8   : > { %v7497_v62 = vsub.f32 %v7332_v12, %v546_v59  ;;  %v7505_v4 = vsub.f32 %v7335_v13, %v549_v61 }
  0xc9   : > { %v7512_v12 = vsub.f32 %v7338_v14, %v547_v1 }
  0xca   : > { %v610_v5 = vmul.f32 %v7497_v62, %v7497_v62  ;;  %v613_v27 = vmul.f32 %v7505_v4, %v7505_v4 }
  0xcb   : > { %v611_v29 = vmul.f32 %v7512_v12, %v7512_v12 }
  0xcc   : > { %v654_v11 = vsel %vm436_vm0, %v610_v5, 0.0  ;;  %v663_v34 = vsel %vm436_vm0, %v613_v27, 0.0 }
  0xcd   : > { %v472_v15 = vpop.xlane.xlu2 %471  ;;  %649 = vadd.xlane.f32.xlu2 %v648_v9  ;;  %v469_v16 = vpop.xlane.xlu1 %468  ;;  %v657_v46 = vsel %vm436_vm0, %v611_v29, 0.0 }
  0xce   : > { %v551_v22 = vmul.f32 %v7456_v10, %v472_v15  ;;  %v550_v13 = vmul.f32 %v7456_v10, %v469_v16  ;;  %655 = vadd.xlane.f32.xlu0 %v654_v11  ;;  %643 = vadd.xlane.f32.xlu1 %v642_v17  ;;  %v463_v23 = vpop.xlane.xlu0 %462 }
  0xcf   : > { %v548_v14 = vmul.f32 %v7456_v10, %v463_v23 }
  0xd0   : > { %v7520_v28 = vsub.f32 %v7347_v18, %v551_v22  ;;  %v7526_v33 = vsub.f32 %v7350_v19, %v550_v13 }
  0xd1   : > { %v7533_v41 = vsub.f32 %v7353_v20, %v548_v14 }
  0xd2   : > { %v615_v35 = vmul.f32 %v7520_v28, %v7520_v28  ;;  %v614_v7 = vmul.f32 %v7526_v33, %v7526_v33 }
  0xd3   : > { %v612_v56 = vmul.f32 %v7533_v41, %v7533_v41 }
  0xd4   : > { %v669_v39 = vsel %vm436_vm0, %v615_v35, 0.0  ;;  %v666_v59 = vsel %vm436_vm0, %v614_v7, 0.0 }
  0xd5   : > { %664 = vadd.xlane.f32.xlu2 %v663_v34  ;;  %v484_v18 = vpop.xlane.xlu1 %483  ;;  %v475_v47 = vpop.xlane.xlu2 %474  ;;  %v660_v1 = vsel %vm436_vm0, %v612_v56, 0.0 }
  0xd6   : > { %670 = vadd.xlane.f32.xlu0 %v669_v39  ;;  %658 = vadd.xlane.f32.xlu1 %v657_v46  ;;  %v478_v51 = vpop.xlane.xlu0 %477  ;;  %v552_v19 = vmul.f32 %v7456_v10, %v475_v47  ;;  %v555_v52 = vmul.f32 %v7456_v10, %v484_v18 }
  0xd7   : > { %v553_v8 = vmul.f32 %v7456_v10, %v478_v51 }
  0xd8   : > { %v7547_v57 = vsub.f32 %v7365_v25, %v552_v19  ;;  %v7551_v61 = vsub.f32 %v7362_v24, %v555_v52 }
  0xd9   : > { %v7542_v20 = vsub.f32 %v7368_v26, %v553_v8 }
  0xda   : > { %v616_v25 = vmul.f32 %v7547_v57, %v7547_v57  ;;  %v619_v24 = vmul.f32 %v7551_v61, %v7551_v61 }
  0xdb   : > { %v617_v0 = vmul.f32 %v7542_v20, %v7542_v20 }
  0xdc   : > { %v672_v15 = vsel %vm436_vm0, %v616_v25, 0.0  ;;  %v681_v22 = vsel %vm436_vm0, %v619_v24, 0.0 }
  0xdd   : > { %667 = vadd.xlane.f32.xlu2 %v666_v59  ;;  %v487_v63 = vpop.xlane.xlu1 %486  ;;  %v675_v26 = vsel %vm436_vm0, %v617_v0, 0.0  ;;  %v490_v3 = vpop.xlane.xlu2 %489 }
  0xde   : > { %661 = vadd.xlane.f32.xlu1 %v660_v1  ;;  %676 = vadd.xlane.f32.xlu0 %v675_v26  ;;  %v481_v5 = vpop.xlane.xlu0 %480  ;;  %v557_v9 = vmul.f32 %v7456_v10, %v490_v3  ;;  %v556_v27 = vmul.f32 %v7456_v10, %v487_v63 }
  0xdf   : > { %v554_v11 = vmul.f32 %v7456_v10, %v481_v5 }
  0xe0   : > { %v7568_v17 = vsub.f32 %v7380_v31, %v557_v9  ;;  %v7582_v39 = vsub.f32 %v7377_v30, %v556_v27 }
  0xe1   : > { %v7565_v16 = vsub.f32 %v7383_v32, %v554_v11 }
  0xe2   : > { %13764 = vst [vmem:[#allocation16_spill] sm:$0xff] %v7568_v17  ;;  %v621_v32 = vmul.f32 %v7568_v17, %v7568_v17  ;;  %v620_v52 = vmul.f32 %v7582_v39, %v7582_v39 }
  0xe3   : > { %v618_v29 = vmul.f32 %v7565_v16, %v7565_v16  ;;  %13765 = vst [vmem:[#allocation17_spill] sm:$0xff] %v7582_v39 }
  0xe4   : > { %v687_v47 = vsel %vm436_vm0, %v621_v32, 0.0  ;;  %v684_v1 = vsel %vm436_vm0, %v620_v52, 0.0 }
  0xe5   : > { %673 = vadd.xlane.f32.xlu2 %v672_v15  ;;  %v514_v13 = vpop.xlane.xlu1 %513  ;;  %v496_v23 = vpop.xlane.xlu2 %495  ;;  %v678_v46 = vsel %vm436_vm0, %v618_v29, 0.0  ;;  %v7618_v15 = vld [vmem:[%s7287_s21 + $0xf8] sm:$0xff] }
  0xe6   : > { %v565_v14 = vmul.f32 %v7456_v10, %v514_v13  ;;  %682 = vadd.xlane.f32.xlu0 %v681_v22  ;;  %v511_v34 = vpop.xlane.xlu0 %510  ;;  %v559_v30 = vmul.f32 %v7456_v10, %v496_v23  ;;  %v530_v29 = vsel %vm436_vm0, %v7618_v15, 0.0 }
  0xe7   : > { %v564_v31 = vmul.f32 %v7456_v10, %v511_v34 }
  0xe8   : > { %v7579_v35 = vsub.f32 %v7392_v36, %v565_v14  ;;  %v7602_v0 = vsub.f32 %v7395_v37, %v559_v30 }
  0xe9   : > { %v7589_v51 = vsub.f32 %v7398_v38, %v564_v31 }
  0xea   : > { %v629_v18 = vmul.f32 %v7579_v35, %v7579_v35  ;;  %13767 = vst [vmem:[#allocation19_spill] sm:$0xff] %v7602_v0 }
  0xeb   : > { %v628_v56 = vmul.f32 %v7589_v51, %v7589_v51 }
  0xec   : > { %v711_v19 = vsel %vm436_vm0, %v629_v18, 0.0 }
  0xed   : > { %v493_v7 = vpop.xlane.xlu1 %492  ;;  %712 = vadd.xlane.f32.xlu1 %v711_v19  ;;  %679 = vadd.xlane.f32.xlu2 %v678_v46  ;;  %v502_v59 = vpop.xlane.xlu2 %501  ;;  %v708_v26 = vsel %vm436_vm0, %v628_v56, 0.0 }
  0xee   : > { %v558_v36 = vmul.f32 %v7456_v10, %v493_v7  ;;  %688 = vadd.xlane.f32.xlu0 %v687_v47  ;;  %v517_v8 = vpop.xlane.xlu0 %516  ;;  %v561_v18 = vmul.f32 %v7456_v10, %v502_v59 }
  0xef   : > { %v566_v9 = vmul.f32 %v7456_v10, %v517_v8 }
  0xf0   : > { %v7599_v38 = vsub.f32 %v7407_v42, %v558_v36  ;;  %v623_v42 = vmul.f32 %v7602_v0, %v7602_v0  ;;  %v7649_v36 = vsub.f32 %v7410_v43, %v561_v18  ;;  %v6338_v18 = vld [vmem:[#allocation5] sm:$0xf] }
  0xf1   : > { %v7627_v14 = vsub.f32 %v7413_v44, %v566_v9 }
  0xf2   : > { %13766 = vst [vmem:[#allocation18_spill] sm:$0xff] %v7599_v38  ;;  %v622_v63 = vmul.f32 %v7599_v38, %v7599_v38  ;;  %v693_v23 = vsel %vm436_vm0, %v623_v42, 0.0  ;;  %v625_v43 = vmul.f32 %v7649_v36, %v7649_v36 }
  0xf3   : > { %v630_v44 = vmul.f32 %v7627_v14, %v7627_v14  ;;  %13770 = vst [vmem:[#allocation22_spill] sm:$0xff] %v7649_v36 }
  0xf4   : > { %v690_v3 = vsel %vm436_vm0, %v622_v63, 0.0 }
  0xf5   : > { %v520_v25 = vpop.xlane.xlu1 %519  ;;  %691 = vadd.xlane.f32.xlu1 %v690_v3  ;;  %685 = vadd.xlane.f32.xlu2 %v684_v1  ;;  %v508_v22 = vpop.xlane.xlu2 %507  ;;  %v714_v30 = vsel %vm436_vm0, %v630_v44, 0.0  ;;  %v6415_v44 = vld [vmem:[#allocation5 + $0x4] sm:$0xf0] }
  0xf6   : > { %v567_v5 = vmul.f32 %v7456_v10, %v520_v25  ;;  %709 = vadd.xlane.f32.xlu0 %v708_v26  ;;  %v523_v37 = vpop.xlane.xlu0 %522  ;;  %v563_v31 = vmul.f32 %v7456_v10, %v508_v22  ;;  %v699_v25 = vsel %vm436_vm0, %v625_v43, 0.0 }
  0xf7   : > { %v568_v24 = vmul.f32 %v7456_v10, %v523_v37 }
  0xf8   : > { %v7615_v11 = vsub.f32 %v7422_v48, %v567_v5  ;;  %v7643_v47 = vsub.f32 %v7425_v49, %v563_v31 }
  0xf9   : > { %v7624_v27 = vsub.f32 %v7428_v50, %v568_v24 }
  0xfa   : > { %v631_v13 = vmul.f32 %v7615_v11, %v7615_v11  ;;  %13769 = vst [vmem:[#allocation21_spill] sm:$0xff] %v7643_v47  ;;  %v627_v59 = vmul.f32 %v7643_v47, %v7643_v47 }
  0xfb   : > { %v632_v50 = vmul.f32 %v7624_v27, %v7624_v27 }
  0xfc   : > { %v717_v48 = vsel %vm436_vm0, %v631_v13, 0.0  ;;  %v705_v3 = vsel %vm436_vm0, %v627_v59, 0.0 }
  0xfd   : > { %v499_v34 = vpop.xlane.xlu1 %498  ;;  %718 = vadd.xlane.f32.xlu1 %v717_v48  ;;  %694 = vadd.xlane.f32.xlu2 %v693_v23  ;;  %v720_v7 = vsel %vm436_vm0, %v632_v50, 0.0  ;;  %v529_v52 = vpop.xlane.xlu2 %528  ;;  %v6417_v48 = vld [vmem:[#allocation5 + $0x14] sm:$0xf0]  ;;  %v6348_v50 = vld [vmem:[#allocation5 + $0x18] sm:$0xf0] }
  0xfe   : > { %v560_v32 = vmul.f32 %v7456_v10, %v499_v34  ;;  %531 = vadd.xlane.f32.xlu0 %v530_v29  ;;  %v570_v49 = vmul.f32 %v7456_v10, %v529_v52  ;;  %v6346_v29 = vld [vmem:[#allocation5 + $0x10] sm:$0xf]  ;;  %v6416_v34 = vld [vmem:[#allocation5 + $0x14] sm:$0xf]  ;;  %v6340_v52 = vld [vmem:[#allocation5 + $0x8] sm:$0xf0] }
  0xff   : > { %v6347_v31 = vor.u32 %v6417_v48, %v6346_v29 }
 0x100   : > { %v7640_v46 = vsub.f32 %v7437_v54, %v560_v32  ;;  %v7663_v1 = vsub.f32 %v7440_v55, %v570_v49 }
 0x101   : > { %1318 = vmatpush.bf16.msra.mxu0 %v6347_v31  ;;  %6421 = vmatpush.bf16.msra.mxu3 %v6347_v31 }
 0x102   : > { %13768 = vst [vmem:[#allocation20_spill] sm:$0xff] %v7640_v46  ;;  %v624_v19 = vmul.f32 %v7640_v46, %v7640_v46 }
 0x103   : > { %13771 = vst [vmem:[#allocation23_spill] sm:$0xff] %v7663_v1 }
 0x104   : > { %v696_v8 = vsel %vm436_vm0, %v624_v19, 0.0  ;;  %v6414_v19 = vld [vmem:[#allocation5 + $0x4] sm:$0xf] }
 0x105   : > { %v526_v56 = vpop.xlane.xlu1 %525  ;;  %697 = vadd.xlane.f32.xlu2 %v696_v8  ;;  %721 = vadd.xlane.f32.xlu1 %v720_v7 }
 0x106   : > { %v569_v54 = vmul.f32 %v7456_v10, %v526_v56  ;;  %715 = vadd.xlane.f32.xlu0 %v714_v30  ;;  %v6339_v30 = vor.u32 %v6415_v44, %v6338_v18 }
 0x108   : > { %v7660_v63 = vsub.f32 %v7447_v58, %v569_v54  ;;  %v634_v58 = vmul.f32 %v7663_v1, %v7663_v1  ;;  %v6343_v54 = vor.u32 %v6414_v19, %v6340_v52  ;;  %1319 = vmatpush.bf16.msra.mxu0 %v6339_v30  ;;  %6422 = vmatpush.bf16.msra.mxu3 %v6339_v30 }
 0x10a   : > { %v633_v26 = vmul.f32 %v7660_v63, %v7660_v63  ;;  %v726_v9 = vsel %vm436_vm0, %v634_v58, 0.0 }
 0x10c   : > { %v723_v5 = vsel %vm436_vm0, %v633_v26, 0.0 }
 0x10d   : > { %v505_v42 = vpop.xlane.xlu1 %504  ;;  %724 = vadd.xlane.f32.xlu2 %v723_v5  ;;  %706 = vadd.xlane.f32.xlu1 %v705_v3 }
 0x10e   : > { %v562_v37 = vmul.f32 %v7456_v10, %v505_v42  ;;  %700 = vadd.xlane.f32.xlu0 %v699_v25 }
 0x110   : > { %v7674_v55 = vsub.f32 %v7452_v60, %v562_v37  ;;  %v6351_v60 = vor.u32 %v6416_v34, %v6348_v50 }
 0x112   : > { %13772 = vst [vmem:[#allocation24_spill] sm:$0xff] %v7674_v55  ;;  %v626_v24 = vmul.f32 %v7674_v55, %v7674_v55  ;;  %1407 = vmatpush.bf16.msra.mxu1 %v6351_v60  ;;  %6423 = vmatpush.bf16.msrb.mxu3 %v6351_v60 }
 0x114   : > { %v702_v22 = vsel %vm436_vm0, %v626_v24, 0.0 }
 0x115   : > { %727 = vadd.xlane.f32.xlu2 %v726_v9 }
 0x116   : > { %703 = vadd.xlane.f32.xlu0 %v702_v22  ;;  %1408 = vmatpush.bf16.msra.mxu1 %v6343_v54 }
 0x117   : > { %6424 = vmatpush.bf16.msrb.mxu3 %v6343_v54 }
 0x131   : > { %v638_v13 = vpop.xlane.xlu0 %637 }
 0x132   : > { %v732_v23 = vmul.f32 %v638_v13, %v7456_v10 }
 0x134   : > { %v764_v32 = vadd.f32 1e-05, %v732_v23 }
 0x136   : > { %6521 = vrsqrt.f32 %v764_v32  ;;  %vm802_vm3 = vweird.f32 %v764_v32 }
 0x138   : > { %v647_v7 = vpop.xlane.xlu2 %646 }
 0x139   : > { %v641_v8 = vpop.xlane.xlu1 %640  ;;  %v653_v56 = vpop.xlane.xlu0 %652  ;;  %v735_v26 = vmul.f32 %v647_v7, %v7456_v10 }
 0x13a   : > { %v733_v49 = vmul.f32 %v641_v8, %v7456_v10  ;;  %v737_v19 = vmul.f32 %v653_v56, %v7456_v10 }
 0x13b   : > { %v7683_v37 = vadd.f32 1e-05, %v735_v26 }
 0x13c   : > { %v6522_v59 = vpop.eup %6521  ;;  %v765_v43 = vadd.f32 1e-05, %v733_v49 }
 0x13d   : > { %v797_v3 = vmul.f32 %v6522_v59, %v764_v32  ;;  %vm803_vm2 = vweird.f32 %v6522_v59  ;;  %vm832_vm8 = vweird.f32 %v7683_v37 }
 0x13e   : > { %6523 = vrsqrt.f32 %v765_v43  ;;  %vm804_vm4 = vmor %vm802_vm3, %vm803_vm2  ;;  %vm812_vm6 = vweird.f32 %v765_v43 }
 0x13f   : > { %v798_v9 = vmul.f32 %v6522_v59, %v797_v3  ;;  %6525 = vrsqrt.f32 %v7683_v37 }
 0x140   : > { %v650_v25 = vpop.xlane.xlu2 %649 }
 0x141   : > { %v644_v5 = vpop.xlane.xlu1 %643  ;;  %v656_v42 = vpop.xlane.xlu0 %655  ;;  %v799_v23 = vmul.f32 0.5, %v798_v9  ;;  %v736_v8 = vmul.f32 %v650_v25, %v7456_v10 }
 0x142   : > { %v734_v58 = vmul.f32 %v644_v5, %v7456_v10  ;;  %v7708_v5 = vadd.f32 1e-05, %v737_v19 }
 0x143   : > { %v800_v50 = vsub.f32 1.5, %v799_v23  ;;  %v7711_v9 = vadd.f32 1e-05, %v736_v8  ;;  %v7719_v23 = vld [vmem:[%s13346_s3] ss:$0 sm:$0xff] }
 0x144   : > { %v6524_v24 = vpop.eup %6523  ;;  %v7686_v22 = vadd.f32 1e-05, %v734_v58  ;;  %vm852_vm1 = vweird.f32 %v7708_v5 }
 0x145   : > { %v807_v13 = vmul.f32 %v6524_v24, %v765_v43  ;;  %v7694_v60 = vpop.eup %6525  ;;  %v801_v30 = vmul.f32 %v6522_v59, %v800_v50  ;;  %vm813_vm5 = vweird.f32 %v6524_v24  ;;  %vm842_vm3 = vweird.f32 %v7711_v9 }
 0x146   : > { %6527 = vrsqrt.f32 %v7686_v22  ;;  %v827_v52 = vmul.f32 %v7694_v60, %v7683_v37  ;;  %vm814_vm7 = vmor %vm812_vm6, %vm813_vm5  ;;  %vm833_vm9 = vweird.f32 %v7694_v60  ;;  %vm822_vm12 = vweird.f32 %v7686_v22 }
 0x147   : > { %v808_v29 = vmul.f32 %v6524_v24, %v807_v13  ;;  %v805_v56 = vsel %vm804_vm4, %v6522_v59, %v801_v30  ;;  %6529 = vrsqrt.f32 %v7708_v5  ;;  %vm834_vm11 = vmor %vm832_vm8, %vm833_vm9 }
 0x148   : > { %v7690_v48 = vpop.xlane.xlu2 %664  ;;  %v828_v58 = vmul.f32 %v7694_v60, %v827_v52  ;;  %v1116_v32 = vmul.f32 %v805_v56, %v7460_v21  ;;  %6531 = vrsqrt.f32 %v7711_v9  ;;  %v7731_v21 = vld [vmem:[%s13347_s4] ss:$0 sm:$0xff] }
 0x149   : > { %v7692_v34 = vpop.xlane.xlu0 %670  ;;  %v809_v31 = vmul.f32 0.5, %v808_v29  ;;  %v659_v7 = vpop.xlane.xlu1 %658 }
 0x14a   : > { %v829_v29 = vmul.f32 0.5, %v828_v58 }
 0x14b   : > { %v810_v44 = vsub.f32 1.5, %v809_v31 }
 0x14c   : > { %v7696_v18 = vpop.eup %6527  ;;  %v830_v19 = vsub.f32 1.5, %v829_v29 }
 0x14d   : > { %v817_v54 = vmul.f32 %v7696_v18, %v7686_v22  ;;  %v811_v3 = vmul.f32 %v6524_v24, %v810_v44  ;;  %v7734_v8 = vpop.eup %6529  ;;  %vm823_vm10 = vweird.f32 %v7696_v18 }
 0x14e   : > { %v831_v58 = vmul.f32 %v7694_v60, %v830_v19  ;;  %vm824_vm13 = vmor %vm822_vm12, %vm823_vm10  ;;  %vm853_vm14 = vweird.f32 %v7734_v8 }
 0x14f   : > { %v818_v25 = vmul.f32 %v7696_v18, %v817_v54  ;;  %v815_v13 = vsel %vm814_vm7, %v6524_v24, %v811_v3  ;;  %v1151_v24 = vmul.f32 %v7719_v23, %v1116_v32  ;;  %v738_v54 = vmul.f32 %v656_v42, %v7456_v10  ;;  %v7737_v3 = vpop.eup %6531  ;;  %vm7805_vm2 = vmor %vm852_vm1, %vm853_vm14 }
 0x150   : > { %v7704_v49 = vpop.xlane.xlu2 %667  ;;  %v1117_v43 = vmul.f32 %v815_v13, %v7477_v45  ;;  %v847_v13 = vmul.f32 %v7734_v8, %v7708_v5  ;;  %v837_v42 = vmul.f32 %v7737_v3, %v7711_v9  ;;  %v835_v19 = vsel %vm834_vm11, %v7694_v60, %v831_v58 }
 0x151   : > { %v7706_v26 = vpop.xlane.xlu0 %676  ;;  %v819_v59 = vmul.f32 0.5, %v818_v25  ;;  %v662_v31 = vpop.xlane.xlu1 %661  ;;  %v1186_v56 = vadd.f32 %v7731_v21, %v1151_v24  ;;  %v7750_v32 = vadd.f32 1e-05, %v738_v54  ;;  %vm843_vm15 = vweird.f32 %v7737_v3 }
 0x152   : > { %v1152_v52 = vmul.f32 %v7719_v23, %v1117_v43  ;;  %v739_v43 = vmul.f32 %v659_v7, %v7456_v10  ;;  %v838_v54 = vmul.f32 %v7737_v3, %v837_v42  ;;  %vm7816_vm4 = vmor %vm842_vm3, %vm843_vm15 }
 0x153   : > { %v820_v30 = vsub.f32 1.5, %v819_v59  ;;  %6533 = vrsqrt.f32 %v7750_v32  ;;  %vm862_vm6 = vweird.f32 %v7750_v32 }
 0x154   : > { %v1187_v45 = vadd.f32 %v7731_v21, %v1152_v52  ;;  %v848_v52 = vmul.f32 %v7734_v8, %v847_v13  ;;  %v839_v58 = vmul.f32 0.5, %v838_v54 }
 0x155   : > { %v821_v25 = vmul.f32 %v7696_v18, %v820_v30 }
 0x156   : > { %v1218_v29 = vpack.c.bf16 %v1187_v45, %v1186_v56  ;;  %v7766_v45 = vadd.f32 1e-05, %v739_v43  ;;  %v1119_v56 = vmul.f32 %v835_v19, %v7473_v40  ;;  %v849_v60 = vmul.f32 0.5, %v848_v52 }
 0x157   : > { %v825_v30 = vsel %vm824_vm13, %v7696_v18, %v821_v25  ;;  %v740_v19 = vmul.f32 %v662_v31, %v7456_v10 }
 0x158   : > { %v7722_v50 = vpop.xlane.xlu2 %673  ;;  %6352 = vmatmul.msk.bf16.vlgmr.msra.gmra.mxu0 %vm436_vm0, %v1218_v29  ;;  %6368 = vmatmul.msk.bf16.vlgmr.msra.gmra.mxu1 %vm436_vm0, %v1218_v29  ;;  %v1118_v7 = vmul.f32 %v825_v30, %v7491_v53  ;;  %v741_v29 = vmul.f32 %v7690_v48, %v7456_v10  ;;  %6535 = vrsqrt.f32 %v7766_v45  ;;  %v1154_v53 = vmul.f32 %v7719_v23, %v1119_v56 }
 0x159   : > { %v7725_v44 = vpop.xlane.xlu0 %682  ;;  %v7778_v42 = vpop.eup %6533  ;;  %v850_v43 = vsub.f32 1.5, %v849_v60  ;;  %v840_v48 = vsub.f32 1.5, %v839_v58  ;;  %v7799_v60 = vadd.f32 1e-05, %v740_v19  ;;  %vm872_vm11 = vweird.f32 %v7766_v45 }
 0x15a   : > { %v7783_v40 = vadd.f32 1e-05, %v741_v29  ;;  %v857_v54 = vmul.f32 %v7778_v42, %v7750_v32  ;;  %vm863_vm5 = vweird.f32 %v7778_v42 }
 0x15b   : > { %v851_v31 = vmul.f32 %v7734_v8, %v850_v43  ;;  %v841_v29 = vmul.f32 %v7737_v3, %v840_v48  ;;  %vm7885_vm7 = vmor %vm862_vm6, %vm863_vm5 }
 0x15c   : > { %vm892_vm1 = vweird.f32 %v7783_v40 }
 0x15d   : > { %v855_v9 = vsel %vm7805_vm2, %v7734_v8, %v851_v31 }
 0x15e   : > { %v7795_v56 = vpop.eup %6535 }
 0x15f   : > { %v867_v5 = vmul.f32 %v7795_v56, %v7766_v45  ;;  %vm873_vm8 = vweird.f32 %v7795_v56 }
 0x160   : > { %v713_v37 = vpop.xlane.xlu1 %712  ;;  %v7752_v59 = vpop.xlane.xlu2 %679  ;;  %vm7917_vm12 = vmor %vm872_vm11, %vm873_vm8 }
 0x161   : > { %v7758_v24 = vpop.xlane.xlu0 %688  ;;  %v757_v22 = vmul.f32 %v713_v37, %v7456_v10  ;;  %v1153_v37 = vmul.f32 %v7719_v23, %v1118_v7  ;;  %v868_v31 = vmul.f32 %v7795_v56, %v867_v5 }
 0x163   : > { %v7776_v13 = vadd.f32 1e-05, %v757_v22  ;;  %v1188_v30 = vadd.f32 %v7731_v21, %v1153_v37  ;;  %v1189_v22 = vadd.f32 %v7731_v21, %v1154_v53  ;;  %v858_v53 = vmul.f32 %v7778_v42, %v857_v54 }
 0x165   : > { %6537 = vrsqrt.f32 %v7776_v13  ;;  %v1219_v58 = vpack.c.bf16 %v1189_v22, %v1188_v30  ;;  %v859_v22 = vmul.f32 0.5, %v858_v53  ;;  %vm1052_vm9 = vweird.f32 %v7776_v13 }
 0x166   : > { %6539 = vrsqrt.f32 %v7783_v40 }
 0x167   : > { %6541 = vrsqrt.f32 %v7799_v60  ;;  %v860_v48 = vsub.f32 1.5, %v859_v22 }
 0x168   : > { %v7772_v18 = vpop.xlane.xlu1 %691  ;;  %v7774_v25 = vpop.xlane.xlu2 %685  ;;  %6353 = vmatmul.msk.bf16.gmra.mxu0 %vm436_vm0, %v1219_v58  ;;  %6369 = vmatmul.msk.bf16.gmra.mxu1 %vm436_vm0, %v1219_v58 }
 0x169   : > { %v710_v52 = vpop.xlane.xlu0 %709 }
 0x16a   : > { %v756_v7 = vmul.f32 %v710_v52, %v7456_v10  ;;  %v845_v52 = vsel %vm7816_vm4, %v7737_v3, %v841_v29  ;;  %v1121_v29 = vmul.f32 %v855_v9, %v7470_v2  ;;  %vm882_vm4 = vweird.f32 %v7799_v60 }
 0x16b   : > { %v7812_v43 = vpop.eup %6537  ;;  %v1120_v3 = vmul.f32 %v845_v52, %v7486_v6  ;;  %v869_v6 = vmul.f32 0.5, %v868_v31 }
 0x16c   : > { %v7822_v19 = vadd.f32 1e-05, %v756_v7  ;;  %v7832_v54 = vpop.eup %6539  ;;  %v743_v7 = vmul.f32 %v7692_v34, %v7456_v10  ;;  %v1047_v55 = vmul.f32 %v7812_v43, %v7776_v13  ;;  %vm1053_vm10 = vweird.f32 %v7812_v43 }
 0x16d   : > { %v887_v34 = vmul.f32 %v7832_v54, %v7783_v40  ;;  %v1155_v2 = vmul.f32 %v7719_v23, %v1120_v3  ;;  %v870_v17 = vsub.f32 1.5, %v869_v6  ;;  %vm7935_vm14 = vmor %vm1052_vm9, %vm1053_vm10  ;;  %vm893_vm2 = vweird.f32 %v7832_v54 }
 0x16e   : > { %6543 = vrsqrt.f32 %v7822_v19  ;;  %v1048_v47 = vmul.f32 %v7812_v43, %v1047_v55  ;;  %v7857_v52 = vadd.f32 1e-05, %v743_v7  ;;  %v861_v55 = vmul.f32 %v7778_v42, %v860_v48  ;;  %vm8009_vm10 = vmor %vm892_vm1, %vm893_vm2 }
 0x16f   : > { %v1190_v31 = vadd.f32 %v7731_v21, %v1155_v2  ;;  %vm1042_vm15 = vweird.f32 %v7822_v19 }
 0x170   : > { %v719_v37 = vpop.xlane.xlu1 %718  ;;  %v7801_v1 = vpop.xlane.xlu2 %694 }
 0x171   : > { %v759_v30 = vmul.f32 %v719_v37, %v7456_v10  ;;  %v532_v8 = vpop.xlane.xlu0 %531  ;;  %v742_v37 = vmul.f32 %v7704_v49, %v7456_v10  ;;  %v1156_v49 = vmul.f32 %v7719_v23, %v1121_v29  ;;  %v1049_v29 = vmul.f32 0.5, %v1048_v47 }
 0x172   : > { %v571_v5 = vmul.f32 %v7456_v10, %v532_v8  ;;  %v888_v8 = vmul.f32 %v7832_v54, %v887_v34 }
 0x173   : > { %v7835_v58 = vadd.f32 1e-05, %v759_v30  ;;  %v7851_v30 = vpop.eup %6541  ;;  %v7862_v9 = vadd.f32 1e-05, %v742_v37  ;;  %v1191_v0 = vadd.f32 %v7731_v21, %v1156_v49  ;;  %v1050_v32 = vsub.f32 1.5, %v1049_v29 }
 0x174   : > { %v7855_v46 = vpop.eup %6543  ;;  %v877_v7 = vmul.f32 %v7851_v30, %v7799_v60  ;;  %v7875_v37 = vsub.f32 %v7618_v15, %v571_v5  ;;  %v889_v5 = vmul.f32 0.5, %v888_v8  ;;  %vm883_vm5 = vweird.f32 %v7851_v30 }
 0x175   : > { %6545 = vrsqrt.f32 %v7835_v58  ;;  %v1037_v22 = vmul.f32 %v7855_v46, %v7822_v19  ;;  %v1220_v39 = vpack.c.bf16 %v1191_v0, %v1190_v31  ;;  %v865_v0 = vsel %vm7885_vm7, %v7778_v42, %v861_v55  ;;  %vm7989_vm8 = vmor %vm882_vm4, %vm883_vm5 }
 0x176   : > { %6547 = vrsqrt.f32 %v7857_v52  ;;  %v635_v49 = vmul.f32 %v7875_v37, %v7875_v37  ;;  %vm1043_vm13 = vweird.f32 %v7855_v46  ;;  %vm1072_vm6 = vweird.f32 %v7835_v58 }
 0x177   : > { %v1038_v38 = vmul.f32 %v7855_v46, %v1037_v22  ;;  %6549 = vrsqrt.f32 %v7862_v9  ;;  %v871_v22 = vmul.f32 %v7795_v56, %v870_v17  ;;  %vm7945_vm3 = vmor %vm1042_vm15, %vm1043_vm13  ;;  %vm902_vm15 = vweird.f32 %v7862_v9 }
 0x178   : > { %v7847_v53 = vpop.xlane.xlu2 %697  ;;  %v722_v3 = vpop.xlane.xlu1 %721  ;;  %6354 = vmatmul.msk.bf16.gmra.mxu0 %vm436_vm0, %v1220_v39  ;;  %6370 = vmatmul.msk.bf16.gmra.mxu1 %vm436_vm0, %v1220_v39  ;;  %v729_v31 = vsel %vm436_vm0, %v635_v49, 0.0 }
 0x179   : > { %13777 = vst [vmem:[#allocation25_spill] sm:$0xff] %v7847_v53  ;;  %v1039_v48 = vmul.f32 0.5, %v1038_v38  ;;  %v760_v2 = vmul.f32 %v722_v3, %v7456_v10  ;;  %v716_v47 = vpop.xlane.xlu0 %715  ;;  %v878_v38 = vmul.f32 %v7851_v30, %v877_v7  ;;  %730 = vadd.xlane.f32.xlu0 %v729_v31  ;;  %v875_v45 = vsel %vm7917_vm12, %v7795_v56, %v871_v22 }
 0x17a   : > { %v758_v8 = vmul.f32 %v716_v47, %v7456_v10  ;;  %v745_v47 = vmul.f32 %v7706_v26, %v7456_v10 }
 0x17b   : > { %v7866_v36 = vpop.eup %6545  ;;  %v1040_v6 = vsub.f32 1.5, %v1039_v48  ;;  %v7905_v55 = vadd.f32 1e-05, %v760_v2  ;;  %v879_v3 = vmul.f32 0.5, %v878_v38  ;;  %v1051_v48 = vmul.f32 %v7812_v43, %v1050_v32 }
 0x17c   : > { %v1067_v34 = vmul.f32 %v7866_v36, %v7835_v58  ;;  %v7908_v39 = vpop.eup %6547  ;;  %v7911_v17 = vadd.f32 1e-05, %v758_v8  ;;  %v1122_v38 = vmul.f32 %v865_v0, %v7497_v62  ;;  %v890_v32 = vsub.f32 1.5, %v889_v5 }
 0x17d   : > { %v7924_v2 = vpop.eup %6549  ;;  %v880_v26 = vsub.f32 1.5, %v879_v3  ;;  %v744_v62 = vmul.f32 %v7722_v50, %v7456_v10  ;;  %v1055_v56 = vsel %vm7935_vm14, %v7812_v43, %v1051_v48  ;;  %v1123_v5 = vmul.f32 %v875_v45, %v7512_v12 }
 0x17e   : > { %v1068_v42 = vmul.f32 %v7866_v36, %v1067_v34  ;;  %v1041_v34 = vmul.f32 %v7855_v46, %v1040_v6  ;;  %6551 = vrsqrt.f32 %v7911_v17  ;;  %v907_v0 = vmul.f32 %v7908_v39, %v7857_v52 }
 0x17f   : > { %6553 = vrsqrt.f32 %v7905_v55  ;;  %v7962_v49 = vadd.f32 1e-05, %v745_v47  ;;  %v1157_v22 = vmul.f32 %v7719_v23, %v1122_v38  ;;  %v891_v50 = vmul.f32 %v7832_v54, %v890_v32 }
 0x180   : > { %v725_v53 = vpop.xlane.xlu2 %724  ;;  %v1069_v6 = vmul.f32 0.5, %v1068_v42  ;;  %v1045_v19 = vsel %vm7945_vm3, %v7855_v46, %v1041_v34  ;;  %v897_v43 = vmul.f32 %v7924_v2, %v7862_v9  ;;  %v881_v12 = vmul.f32 %v7851_v30, %v880_v26 }
 0x181   : > { %v761_v7 = vmul.f32 %v725_v53, %v7456_v10  ;;  %v1140_v42 = vmul.f32 %v1045_v19, %v7589_v51  ;;  %v1141_v31 = vmul.f32 %v1055_v56, %v7579_v35  ;;  %v7975_v53 = vadd.f32 1e-05, %v744_v62 }
 0x182   : > { %v1070_v8 = vsub.f32 1.5, %v1069_v6  ;;  %vm1073_vm7 = vweird.f32 %v7866_v36  ;;  %v1192_v45 = vadd.f32 %v7731_v21, %v1157_v22  ;;  %v898_v15 = vmul.f32 %v7924_v2, %v897_v43 }
 0x183   : > { %v7913_v29 = vadd.f32 1e-05, %v761_v7  ;;  %v1158_v7 = vmul.f32 %v7719_v23, %v1123_v5  ;;  %v1175_v51 = vmul.f32 %v7719_v23, %v1140_v42  ;;  %v1176_v35 = vmul.f32 %v7719_v23, %v1141_v31  ;;  %vm7999_vm9 = vmor %vm1072_vm6, %vm1073_vm7 }
 0x184   : > { %v6552_v46 = vpop.eup %6551  ;;  %v1071_v38 = vmul.f32 %v7866_v36, %v1070_v8  ;;  %v885_v26 = vsel %vm7989_vm8, %v7851_v30, %v881_v12  ;;  %vm1062_vm11 = vweird.f32 %v7911_v17  ;;  %v895_v22 = vsel %vm8009_vm10, %v7832_v54, %v891_v50 }
 0x185   : > { %6555 = vrsqrt.f32 %v7913_v29  ;;  %v7973_v3 = vpop.eup %6553  ;;  %v1057_v48 = vmul.f32 %v6552_v46, %v7911_v17  ;;  %v1193_v47 = vadd.f32 %v7731_v21, %v1158_v7  ;;  %v1210_v60 = vadd.f32 %v7731_v21, %v1175_v51 }
 0x186   : > { %v1211_v56 = vadd.f32 %v7731_v21, %v1176_v35  ;;  %v1077_v30 = vmul.f32 %v7973_v3, %v7905_v55  ;;  %vm1063_vm12 = vweird.f32 %v6552_v46  ;;  %v908_v43 = vmul.f32 %v7908_v39, %v907_v0 }
 0x187   : > { %v1058_v32 = vmul.f32 %v6552_v46, %v1057_v48  ;;  %v1221_v62 = vpack.c.bf16 %v1193_v47, %v1192_v45  ;;  %6557 = vrsqrt.f32 %v7975_v53  ;;  %v1075_v8 = vsel %vm7999_vm9, %v7866_v36, %v1071_v38  ;;  %vm1064_vm13 = vmor %vm1062_vm11, %vm1063_vm12 }
 0x188   : > { %v8021_v40 = vpack.c.bf16 %v1211_v56, %v1210_v60  ;;  %v899_v12 = vmul.f32 0.5, %v898_v15  ;;  %v1124_v54 = vmul.f32 %v885_v26, %v7533_v41  ;;  %6559 = vrsqrt.f32 %v7962_v49 }
 0x189   : > { %v1059_v5 = vmul.f32 0.5, %v1058_v32  ;;  %6355 = vmatmul.msk.bf16.gmra.mxu0 %vm436_vm0, %v1221_v62  ;;  %6371 = vmatmul.msk.bf16.gmra.mxu1 %vm436_vm0, %v1221_v62  ;;  %v1078_v0 = vmul.f32 %v7973_v3, %v1077_v30  ;;  %v1125_v42 = vmul.f32 %v895_v22, %v7505_v4  ;;  %v1143_v31 = vmul.f32 %v1075_v8, %v7615_v11 }
 0x18a   : > { %6364 = vmatmul.msk.bf16.vlgmr.msra.gmra.mxu3 %vm436_vm0, %v8021_v40  ;;  %v909_v36 = vmul.f32 0.5, %v908_v43  ;;  %v900_v47 = vsub.f32 1.5, %v899_v12  ;;  %v1159_v51 = vmul.f32 %v7719_v23, %v1124_v54  ;;  %vm913_vm14 = vweird.f32 %v7908_v39 }
 0x18b   : > { %v7980_v34 = vpop.eup %6555  ;;  %v1060_v17 = vsub.f32 1.5, %v1059_v5  ;;  %v1079_v15 = vmul.f32 0.5, %v1078_v0  ;;  %v1160_v58 = vmul.f32 %v7719_v23, %v1125_v42  ;;  %v1178_v4 = vmul.f32 %v7719_v23, %v1143_v31 }
 0x18c   : > { %v1087_v6 = vmul.f32 %v7980_v34, %v7913_v29  ;;  %vm903_vm1 = vweird.f32 %v7924_v2  ;;  %v746_v26 = vmul.f32 %v7752_v59, %v7456_v10  ;;  %v1194_v13 = vadd.f32 %v7731_v21, %v1159_v51 }
 0x18d   : > { %v1061_v50 = vmul.f32 %v6552_v46, %v1060_v17  ;;  %v8037_v35 = vpop.eup %6557  ;;  %v1080_v62 = vsub.f32 1.5, %v1079_v15  ;;  %vm1092_vm2 = vweird.f32 %v7913_v29  ;;  %vm1093_vm3 = vweird.f32 %v7980_v34  ;;  %vm8068_vm4 = vmor %vm902_vm15, %vm903_vm1 }
 0x18e   : > { %v1088_v7 = vmul.f32 %v7980_v34, %v1087_v6  ;;  %v8044_v11 = vpop.eup %6559  ;;  %v901_v6 = vmul.f32 %v7924_v2, %v900_v47  ;;  %v747_v19 = vmul.f32 %v7725_v44, %v7456_v10  ;;  %v1195_v30 = vadd.f32 %v7731_v21, %v1160_v58  ;;  %vm8078_vm8 = vmor %vm1092_vm2, %vm1093_vm3 }
 0x18f   : > { %v1065_v48 = vsel %vm1064_vm13, %v6552_v46, %v1061_v50  ;;  %v910_v46 = vsub.f32 1.5, %v909_v36  ;;  %v927_v56 = vmul.f32 %v8044_v11, %v7962_v49  ;;  %v1213_v5 = vadd.f32 %v7731_v21, %v1178_v4 }
 0x190   : > { %v1089_v45 = vmul.f32 0.5, %v1088_v7  ;;  %v1142_v41 = vmul.f32 %v1065_v48, %v7627_v14  ;;  %v917_v14 = vmul.f32 %v8037_v35, %v7975_v53  ;;  %vm1082_vm5 = vweird.f32 %v7905_v55 }
 0x191   : > { %v911_v59 = vmul.f32 %v7908_v39, %v910_v46  ;;  %vm1083_vm6 = vweird.f32 %v7973_v3  ;;  %vm912_vm7 = vweird.f32 %v7857_v52  ;;  %v8076_v22 = vadd.f32 1e-05, %v746_v26 }
 0x192   : > { %v1090_v38 = vsub.f32 1.5, %v1089_v45  ;;  %v1177_v32 = vmul.f32 %v7719_v23, %v1142_v41  ;;  %v1222_v8 = vpack.c.bf16 %v1195_v30, %v1194_v13  ;;  %vm8086_vm9 = vmor %vm912_vm7, %vm913_vm14  ;;  %v905_v55 = vsel %vm8068_vm4, %v7924_v2, %v901_v6 }
 0x193   : > { %v918_v52 = vmul.f32 %v8037_v35, %v917_v14  ;;  %v1081_v7 = vmul.f32 %v7973_v3, %v1080_v62  ;;  %v8095_v12 = vadd.f32 1e-05, %v747_v19  ;;  %vm8097_vm10 = vmor %vm1082_vm5, %vm1083_vm6  ;;  %v915_v0 = vsel %vm8086_vm9, %v7908_v39, %v911_v59 }
 0x194   : > { %v1212_v60 = vadd.f32 %v7731_v21, %v1177_v32  ;;  %v1091_v44 = vmul.f32 %v7980_v34, %v1090_v38  ;;  %v928_v2 = vmul.f32 %v8044_v11, %v927_v56  ;;  %6561 = vrsqrt.f32 %v8076_v22 }
 0x195   : > { %v1126_v42 = vmul.f32 %v905_v55, %v7526_v33  ;;  %v919_v31 = vmul.f32 0.5, %v918_v52  ;;  %v1085_v36 = vsel %vm8097_vm10, %v7973_v3, %v1081_v7  ;;  %6563 = vrsqrt.f32 %v8095_v12 }
 0x196   : > { %v8082_v9 = vpack.c.bf16 %v1213_v5, %v1212_v60  ;;  %v1095_v50 = vsel %vm8078_vm8, %v7980_v34, %v1091_v44  ;;  %v1127_v39 = vmul.f32 %v915_v0, %v7520_v28  ;;  %v929_v45 = vmul.f32 0.5, %v928_v2 }
 0x197   : > { %v1145_v48 = vmul.f32 %v1095_v50, %v7660_v63  ;;  %v1161_v34 = vmul.f32 %v7719_v23, %v1126_v42  ;;  %v1144_v47 = vmul.f32 %v1085_v36, %v7624_v27  ;;  %v920_v51 = vsub.f32 1.5, %v919_v31 }
 0x198   : > { %v1162_v33 = vmul.f32 %v7719_v23, %v1127_v39  ;;  %v930_v58 = vsub.f32 1.5, %v929_v45  ;;  %v748_v28 = vmul.f32 %v7774_v25, %v7456_v10  ;;  %vm923_vm11 = vweird.f32 %v8037_v35 }
 0x199   : > { %6356 = vmatmul.msk.bf16.gmra.mxu0 %vm436_vm0, %v1222_v8  ;;  %6372 = vmatmul.msk.bf16.gmra.mxu1 %vm436_vm0, %v1222_v8  ;;  %v1180_v41 = vmul.f32 %v7719_v23, %v1145_v48  ;;  %v1196_v63 = vadd.f32 %v7731_v21, %v1161_v34  ;;  %v1179_v4 = vmul.f32 %v7719_v23, %v1144_v47  ;;  %vm933_vm12 = vweird.f32 %v8044_v11  ;;  %v701_v47 = vpop.xlane.xlu0 %700 }
 0x19a   : > { %6365 = vmatmul.msk.bf16.gmra.mxu3 %vm436_vm0, %v8082_v9  ;;  %v8122_v15 = vpop.eup %6561  ;;  %v921_v46 = vmul.f32 %v8037_v35, %v920_v51  ;;  %v749_v38 = vmul.f32 %v7758_v24, %v7456_v10  ;;  %v1197_v32 = vadd.f32 %v7731_v21, %v1162_v33  ;;  %v931_v25 = vmul.f32 %v8044_v11, %v930_v58 }
 0x19b   : > { %v8126_v3 = vpop.eup %6563  ;;  %v937_v27 = vmul.f32 %v8122_v15, %v8076_v22  ;;  %v1215_v6 = vadd.f32 %v7731_v21, %v1180_v41  ;;  %vm922_vm13 = vweird.f32 %v7975_v53  ;;  %v8149_v13 = vadd.f32 1e-05, %v748_v28 }
 0x19c   : > { %v947_v14 = vmul.f32 %v8126_v3, %v8095_v12  ;;  %vm8145_vm14 = vmor %vm922_vm13, %vm923_vm11  ;;  %v1223_v24 = vpack.c.bf16 %v1197_v32, %v1196_v63  ;;  %v1214_v62 = vadd.f32 %v7731_v21, %v1179_v4  ;;  %vm932_vm15 = vweird.f32 %v7962_v49 }
 0x19d   : > { %v925_v60 = vsel %vm8145_vm14, %v8037_v35, %v921_v46  ;;  %v938_v53 = vmul.f32 %v8122_v15, %v937_v27  ;;  %vm934_vm1 = vmor %vm932_vm15, %vm933_vm12  ;;  %v8157_v56 = vadd.f32 1e-05, %v749_v38  ;;  %6565 = vrsqrt.f32 %v8149_v13  ;;  %v707_v38 = vpop.xlane.xlu1 %706 }
 0x19e   : > { %v8160_v19 = vpack.c.bf16 %v1215_v6, %v1214_v62  ;;  %v935_v30 = vsel %vm934_vm1, %v8044_v11, %v931_v25  ;;  %v948_v5 = vmul.f32 %v8126_v3, %v947_v14  ;;  %v1128_v49 = vmul.f32 %v925_v60, %v7547_v57  ;;  %v13812_v14 = vld [vmem:[#allocation19_spill] sm:$0xff] }
 0x19f   : > { %v939_v35 = vmul.f32 0.5, %v938_v53  ;;  %6567 = vrsqrt.f32 %v8157_v56  ;;  %v1129_v59 = vmul.f32 %v935_v30, %v7542_v20  ;;  %v751_v52 = vmul.f32 %v7801_v1, %v7456_v10 }
 0x1a0   : > { %v949_v29 = vmul.f32 0.5, %v948_v5  ;;  %v1163_v44 = vmul.f32 %v7719_v23, %v1128_v49  ;;  %vm943_vm2 = vweird.f32 %v8122_v15  ;;  %v750_v20 = vmul.f32 %v7772_v18, %v7456_v10  ;;  %v13805_v49 = vld [vmem:[#allocation17_spill] sm:$0xff] }
 0x1a1   : > { %v940_v43 = vsub.f32 1.5, %v939_v35  ;;  %v1164_v11 = vmul.f32 %v7719_v23, %v1129_v59  ;;  %vm953_vm3 = vweird.f32 %v8126_v3  ;;  %vm942_vm4 = vweird.f32 %v8076_v22  ;;  %v704_v5 = vpop.xlane.xlu0 %703 }
 0x1a2   : > { %v950_v17 = vsub.f32 1.5, %v949_v29  ;;  %v1198_v57 = vadd.f32 %v7731_v21, %v1163_v44  ;;  %vm944_vm5 = vmor %vm942_vm4, %vm943_vm2  ;;  %v8192_v50 = vadd.f32 1e-05, %v751_v52  ;;  %vm952_vm6 = vweird.f32 %v8095_v12 }
 0x1a3   : > { %v8172_v8 = vpop.eup %6565  ;;  %v941_v7 = vmul.f32 %v8122_v15, %v940_v43  ;;  %v1199_v0 = vadd.f32 %v7731_v21, %v1164_v11  ;;  %v8196_v31 = vadd.f32 1e-05, %v750_v20  ;;  %vm954_vm7 = vmor %vm952_vm6, %vm953_vm3  ;;  %v753_v41 = vmul.f32 %v701_v47, %v7456_v10 }
 0x1a4   : > { %v957_v54 = vmul.f32 %v8172_v8, %v8149_v13  ;;  %v951_v2 = vmul.f32 %v8126_v3, %v950_v17  ;;  %6569 = vrsqrt.f32 %v8192_v50  ;;  %vm962_vm8 = vweird.f32 %v8149_v13 }
 0x1a5   : > { %v8175_v55 = vpop.eup %6567  ;;  %v1224_v42 = vpack.c.bf16 %v1199_v0, %v1198_v57  ;;  %v945_v18 = vsel %vm944_vm5, %v8122_v15, %v941_v7  ;;  %6571 = vrsqrt.f32 %v8196_v31  ;;  %vm963_vm9 = vweird.f32 %v8172_v8  ;;  %v1238_v57 = vld [vmem:[#allocation7] sm:$0x3] }
 0x1a6   : > { %v967_v1 = vmul.f32 %v8175_v55, %v8157_v56  ;;  %v958_v36 = vmul.f32 %v8172_v8, %v957_v54  ;;  %v955_v22 = vsel %vm954_vm7, %v8126_v3, %v951_v2  ;;  %v1130_v48 = vmul.f32 %v945_v18, %v7565_v16  ;;  %v13802_v16 = vld [vmem:[#allocation25_spill] sm:$0xff]  ;;  %vm8229_vm11 = vmor %vm962_vm8, %vm963_vm9 }
 0x1a7   : > { %v1131_v45 = vmul.f32 %v955_v22, %v7551_v61  ;;  %v752_v63 = vmul.f32 %v13802_v16, %v7456_v10  ;;  %v8224_v32 = vadd.f32 1e-05, %v753_v41  ;;  %vm973_vm10 = vweird.f32 %v8175_v55 }
 0x1a8   : > { %v968_v39 = vmul.f32 %v8175_v55, %v967_v1  ;;  %v959_v12 = vmul.f32 0.5, %v958_v36  ;;  %v1165_v51 = vmul.f32 %v7719_v23, %v1130_v48  ;;  %vm972_vm12 = vweird.f32 %v8157_v56  ;;  %v728_v56 = vpop.xlane.xlu2 %727 }
 0x1a9   : > { %6357 = vmatmul.msk.bf16.gmra.mxu0 %vm436_vm0, %v1223_v24  ;;  %6373 = vmatmul.msk.bf16.gmra.mxu1 %vm436_vm0, %v1223_v24  ;;  %v1166_v58 = vmul.f32 %v7719_v23, %v1131_v45  ;;  %v8233_v26 = vadd.f32 1e-05, %v752_v63  ;;  %v755_v60 = vmul.f32 %v707_v38, %v7456_v10  ;;  %vm974_vm13 = vmor %vm972_vm12, %vm973_vm10  ;;  %6573 = vrsqrt.f32 %v8224_v32  ;;  %v6516_v45 = vld [vmem:[%s13348_s5] ss:$0 sm:$0xff] }
 0x1aa   : > { %6366 = vmatmul.msk.bf16.gmra.mxu3 %vm436_vm0, %v8160_v19  ;;  %v969_v34 = vmul.f32 0.5, %v968_v39  ;;  %v960_v15 = vsub.f32 1.5, %v959_v12  ;;  %v8208_v33 = vpop.eup %6569  ;;  %v1200_v4 = vadd.f32 %v7731_v21, %v1165_v51  ;;  %v762_v43 = vmul.f32 %v728_v56, %v7456_v10  ;;  %v13813_v56 = vld [vmem:[#allocation18_spill] sm:$0xff]  ;;  %5718 = vrot.lane.b32.xlu1 %v6516_v45, %s7111_s22 }
 0x1ab   : > { %v8212_v3 = vpop.eup %6571  ;;  %v987_v46 = vmul.f32 %v8208_v33, %v8192_v50  ;;  %v1201_v6 = vadd.f32 %v7731_v21, %v1166_v58  ;;  %6575 = vrsqrt.f32 %v8233_v26  ;;  %v8248_v29 = vadd.f32 1e-05, %v755_v60 }
 0x1ac   : > { %v970_v28 = vsub.f32 1.5, %v969_v34  ;;  %v961_v61 = vmul.f32 %v8172_v8, %v960_v15  ;;  %v977_v27 = vmul.f32 %v8212_v3, %v8196_v31  ;;  %v754_v17 = vmul.f32 %v704_v5, %v7456_v10 }
 0x1ad   : > { %v1225_v13 = vpack.c.bf16 %v1201_v6, %v1200_v4  ;;  %v988_v62 = vmul.f32 %v8208_v33, %v987_v46  ;;  %vm992_vm14 = vweird.f32 %v8192_v50  ;;  %6577 = vrsqrt.f32 %v8248_v29 }
 0x1ae   : > { %v971_v25 = vmul.f32 %v8175_v55, %v970_v28  ;;  %v965_v24 = vsel %vm8229_vm11, %v8172_v8, %v961_v61  ;;  %v978_v53 = vmul.f32 %v8212_v3, %v977_v27  ;;  %v13806_v8 = vld [vmem:[#allocation16_spill] sm:$0xff]  ;;  %vm993_vm15 = vweird.f32 %v8208_v33 }
 0x1af   : > { %v1132_v35 = vmul.f32 %v965_v24, %v13805_v49  ;;  %v989_v59 = vmul.f32 0.5, %v988_v62  ;;  %v8253_v52 = vpop.eup %6573  ;;  %v8261_v0 = vadd.f32 1e-05, %v762_v43  ;;  %v8268_v18 = vperm.slane %v1238_v57, 0  ;;  %vm8281_vm3 = vmor %vm992_vm14, %vm993_vm15 }
 0x1b0   : > { %v975_v30 = vsel %vm974_vm13, %v8175_v55, %v971_v25  ;;  %v979_v44 = vmul.f32 0.5, %v978_v53  ;;  %v1007_v1 = vmul.f32 %v8253_v52, %v8224_v32  ;;  %v8270_v36 = vperm.slane %v1238_v57, 1 }
 0x1b1   : > { %v1133_v11 = vmul.f32 %v975_v30, %v13806_v8  ;;  %v1167_v55 = vmul.f32 %v7719_v23, %v1132_v35  ;;  %v990_v7 = vsub.f32 1.5, %v989_v59  ;;  %v8258_v20 = vpop.eup %6575  ;;  %vm982_vm1 = vweird.f32 %v8196_v31 }
 0x1b2   : > { %v980_v54 = vsub.f32 1.5, %v979_v44  ;;  %13807 = vst [vmem:[#allocation25_spill] sm:$0xff] %v8270_v36  ;;  %vm983_vm2 = vweird.f32 %v8212_v3  ;;  %v997_v48 = vmul.f32 %v8258_v20, %v8233_v26  ;;  %6579 = vrsqrt.f32 %v8261_v0 }
 0x1b3   : > { %v1168_v2 = vmul.f32 %v7719_v23, %v1133_v11  ;;  %v1202_v22 = vadd.f32 %v7731_v21, %v1167_v55  ;;  %v991_v39 = vmul.f32 %v8208_v33, %v990_v7  ;;  %v8287_v15 = vpop.eup %6577  ;;  %v1008_v41 = vmul.f32 %v8253_v52, %v1007_v1  ;;  %vm8297_vm4 = vmor %vm982_vm1, %vm983_vm2 }
 0x1b4   : > { %v981_v12 = vmul.f32 %v8212_v3, %v980_v54  ;;  %v998_v4 = vmul.f32 %v8258_v20, %v997_v48  ;;  %v1027_v27 = vmul.f32 %v8287_v15, %v8248_v29  ;;  %vm1012_vm5 = vweird.f32 %v8224_v32 }
 0x1b5   : > { %v1203_v51 = vadd.f32 %v7731_v21, %v1168_v2  ;;  %v995_v63 = vsel %vm8281_vm3, %v8208_v33, %v991_v39  ;;  %v1009_v38 = vmul.f32 0.5, %v1008_v41  ;;  %vm1013_vm6 = vweird.f32 %v8253_v52 }
 0x1b6   : > { %v985_v31 = vsel %vm8297_vm4, %v8212_v3, %v981_v12  ;;  %v999_v62 = vmul.f32 0.5, %v998_v4  ;;  %v1028_v60 = vmul.f32 %v8287_v15, %v1027_v27  ;;  %vm1002_vm7 = vweird.f32 %v8233_v26  ;;  %vm8343_vm10 = vmor %vm1012_vm5, %vm1013_vm6 }
 0x1b7   : > { %v1226_v16 = vpack.c.bf16 %v1203_v51, %v1202_v22  ;;  %v1134_v5 = vmul.f32 %v985_v31, %v13813_v56  ;;  %v1010_v3 = vsub.f32 1.5, %v1009_v38  ;;  %vm1003_vm8 = vweird.f32 %v8258_v20 }
 0x1b8   : > { %v8313_v33 = vpop.eup %6579  ;;  %v1000_v43 = vsub.f32 1.5, %v999_v62  ;;  %v1029_v11 = vmul.f32 0.5, %v1028_v60  ;;  %vm1032_vm9 = vweird.f32 %v8248_v29  ;;  %vm1033_vm11 = vweird.f32 %v8287_v15  ;;  %vm8362_vm12 = vmor %vm1002_vm7, %vm1003_vm8 }
 0x1b9   : > { %6358 = vmatmul.msk.bf16.gmra.mxu0 %vm436_vm0, %v1224_v42  ;;  %6374 = vmatmul.msk.bf16.gmra.mxu1 %vm436_vm0, %v1224_v42  ;;  %v8266_v42 = vadd.f32 1e-05, %v754_v17  ;;  %v1097_v49 = vmul.f32 %v8313_v33, %v8261_v0  ;;  %v1169_v17 = vmul.f32 %v7719_v23, %v1134_v5  ;;  %v1011_v55 = vmul.f32 %v8253_v52, %v1010_v3  ;;  %vm8389_vm13 = vmor %vm1032_vm9, %vm1033_vm11 }
 0x1ba   : > { %v1001_v48 = vmul.f32 %v8258_v20, %v1000_v43  ;;  %vm1102_vm14 = vweird.f32 %v8261_v0  ;;  %vm1103_vm1 = vweird.f32 %v8313_v33  ;;  %v8416_v43 = vld [vmem:[%s13346_s3] ss:$0 sm:$0xff] }
 0x1bb   : > { %6581 = vrsqrt.f32 %v8266_v42  ;;  %v1098_v7 = vmul.f32 %v8313_v33, %v1097_v49  ;;  %v1204_v41 = vadd.f32 %v7731_v21, %v1169_v17  ;;  %vm1022_vm15 = vweird.f32 %v8266_v42  ;;  %vm8462_vm11 = vmor %vm1102_vm14, %vm1103_vm1 }
 0x1bc   : > { %v1005_v27 = vsel %vm8362_vm12, %v8258_v20, %v1001_v48 }
 0x1bd   : > { %v1099_v28 = vmul.f32 0.5, %v1098_v7 }
 0x1bf   : > { %v1100_v38 = vsub.f32 1.5, %v1099_v28 }
 0x1c1   : > { %v8316_v24 = vpop.eup %6581 }
 0x1c2   : > { %v1017_v59 = vmul.f32 %v8316_v24, %v8266_v42  ;;  %vm1023_vm2 = vweird.f32 %v8316_v24 }
 0x1c3   : > { %vm8441_vm5 = vmor %vm1022_vm15, %vm1023_vm2 }
 0x1c4   : > { %v1018_v2 = vmul.f32 %v8316_v24, %v1017_v59 }
 0x1c6   : > { %v1019_v26 = vmul.f32 0.5, %v1018_v2 }
 0x1c8   : > { %v1020_v62 = vsub.f32 1.5, %v1019_v26 }
 0x1c9   : > { %6359 = vmatmul.msk.bf16.gmra.mxu0 %vm436_vm0, %v1225_v13  ;;  %6375 = vmatmul.msk.bf16.gmra.mxu1 %vm436_vm0, %v1225_v13  ;;  %v1135_v13 = vmul.f32 %v995_v63, %v13812_v14  ;;  %v13820_v14 = vld [vmem:[#allocation22_spill] sm:$0xff] }
 0x1cb   : > { %v1170_v44 = vmul.f32 %v7719_v23, %v1135_v13 }
 0x1cd   : > { %v1205_v39 = vadd.f32 %v7731_v21, %v1170_v44  ;;  %v1015_v21 = vsel %vm8343_vm10, %v8253_v52, %v1011_v55 }
 0x1ce   : > { %v1137_v20 = vmul.f32 %v1015_v21, %v13820_v14 }
 0x1cf   : > { %v1227_v4 = vpack.c.bf16 %v1205_v39, %v1204_v41 }
 0x1d5   : > { %v1321_v34 = vpop.f32.mrf.mxu0  ;;  %v1410_v47 = vpop.f32.mrf.mxu1 }
 0x1d6   : > { %v8292_v58 = vadd.f32 %v1321_v34, %v8268_v18  ;;  %v1411_v50 = vadd.f32 %v1410_v47, %v8270_v36  ;;  %v6517_v34 = vld [vmem:[%s13349_s6] ss:$0 sm:$0xff]  ;;  %v1030_v47 = vsub.f32 1.5, %v1029_v11  ;;  %v1021_v11 = vmul.f32 %v8316_v24, %v1020_v62 }
 0x1d7   : > { %5755 = vrot.lane.b32.xlu0 %v6517_v34, %s7111_s22 }
 0x1d8   : > { %v1490_v61 = vsub.f32 0.0, %v8292_v58  ;;  %v2258_v46 = vsub.f32 0.0, %v1411_v50  ;;  %v8381_v31 = vmul.f32 %v8287_v15, %v1030_v47  ;;  %v8434_v47 = vld [vmem:[%s13347_s4] ss:$0 sm:$0xff] }
 0x1d9   : > { %6360 = vmatmul.msk.bf16.gmra.mxu0 %vm436_vm0, %v1226_v16  ;;  %6376 = vmatmul.msk.bf16.gmra.mxu1 %vm436_vm0, %v1226_v16 }
 0x1da   : > { %v1522_v6 = vmul.f32 1.442695, %v1490_v61  ;;  %v2290_v25 = vmul.f32 1.442695, %v2258_v46  ;;  %v1035_v3 = vsel %vm8389_vm13, %v8287_v15, %v8381_v31 }
 0x1dc   : > { %6583 = vpow2.f32 %v1522_v6 }
 0x1dd   : > { %6585 = vpow2.f32 %v2290_v25  ;;  %v8319_v53 = vpop.f32.mrf.mxu0  ;;  %v1412_v30 = vpop.f32.mrf.mxu1 }
 0x1de   : > { %v1413_v35 = vadd.f32 %v1412_v30, %v8270_v36  ;;  %v13821_v30 = vld [vmem:[#allocation20_spill] sm:$0xff] }
 0x1df   : > { %v1136_v56 = vmul.f32 %v1005_v27, %v13821_v30 }
 0x1e0   : > { %v2259_v8 = vsub.f32 0.0, %v1413_v35  ;;  %v8409_v35 = vmul.f32 %v8313_v33, %v1100_v38 }
 0x1e1   : > { %v1171_v2 = vmul.f32 %v8416_v43, %v1136_v56  ;;  %v13827_v56 = vld [vmem:[#allocation24_spill] sm:$0xff] }
 0x1e2   : > { %v6584_v57 = vpop.eup %6583  ;;  %v2292_v22 = vmul.f32 1.442695, %v2259_v8  ;;  %v1172_v8 = vmul.f32 %v8416_v43, %v1137_v20 }
 0x1e3   : > { %v6586_v54 = vpop.eup %6585  ;;  %v8336_v1 = vadd.f32 1.0, %v6584_v57  ;;  %v1206_v42 = vadd.f32 %v8434_v47, %v1171_v2 }
 0x1e4   : > { %v8347_v12 = vadd.f32 1.0, %v6586_v54 }
 0x1e5   : > { %6587 = vrcp.f32 %v8336_v1  ;;  %v1326_v32 = vpop.f32.mrf.mxu0  ;;  %v1415_v51 = vpop.f32.mrf.mxu1  ;;  %v1627_v7 = vand.u32 2147483647, %v8336_v1  ;;  %v1629_v54 = vand.u32 2147483648, %v8336_v1  ;;  %vm1623_vm4 = vweird.f32 %v8336_v1 }
 0x1e6   : > { %6589 = vrcp.f32 %v8347_v12  ;;  %v8368_v16 = vadd.f32 %v1326_v32, %v8268_v18  ;;  %v1416_v63 = vadd.f32 %v1415_v51, %v8270_v36  ;;  %v2395_v45 = vand.u32 2147483647, %v8347_v12 }
 0x1e7   : > { %6591 = vpow2.f32 %v2292_v22  ;;  %v2397_v34 = vand.u32 2147483648, %v8347_v12  ;;  %v1207_v32 = vadd.f32 %v8434_v47, %v1172_v8  ;;  %v1630_v28 = vor.u32 1.1754944e-38, %v1629_v54 }
 0x1e8   : > { %v1492_v61 = vsub.f32 0.0, %v8368_v16  ;;  %v2260_v46 = vsub.f32 0.0, %v1416_v63  ;;  %vm2391_vm8 = vweird.f32 %v8347_v12  ;;  %vm1628_vm9 = vcmp.eq.f32.partialorder %v1627_v7, 8.507059e+37 }
 0x1e9   : > { %6361 = vmatmul.msk.bf16.gmra.mxu0 %vm436_vm0, %v1227_v4  ;;  %6377 = vmatmul.msk.bf16.gmra.mxu1 %vm436_vm0, %v1227_v4  ;;  %v2398_v27 = vor.u32 1.1754944e-38, %v2397_v34  ;;  %v1228_v38 = vpack.c.bf16 %v1207_v32, %v1206_v42  ;;  %vm2396_vm12 = vcmp.eq.f32.partialorder %v2395_v45, 8.507059e+37 }
 0x1ea   : > { %v1526_v6 = vmul.f32 1.442695, %v1492_v61  ;;  %v2294_v25 = vmul.f32 1.442695, %v2260_v46  ;;  %v1025_v61 = vsel %vm8441_vm5, %v8316_v24, %v1021_v11 }
 0x1eb   : > { %v6588_v13 = vpop.eup %6587 }
 0x1ec   : > { %v8394_v60 = vpop.eup %6589  ;;  %6593 = vpow2.f32 %v1526_v6  ;;  %v1619_v29 = vmul.f32 %v6588_v13, %v8336_v1  ;;  %v731_v44 = vpop.xlane.xlu0 %730  ;;  %vm1624_vm3 = vweird.f32 %v6588_v13  ;;  %v8468_v6 = vadd.f32 %v8319_v53, %v8268_v18  ;;  %v13826_v53 = vld [vmem:[#allocation21_spill] sm:$0xff] }
 0x1ed   : > { %v6592_v5 = vpop.eup %6591  ;;  %v2387_v49 = vmul.f32 %v8394_v60, %v8347_v12  ;;  %6595 = vpow2.f32 %v2294_v25  ;;  %v763_v17 = vmul.f32 %v731_v44, %v7456_v10  ;;  %vm2392_vm6 = vweird.f32 %v8394_v60  ;;  %vm1625_vm7 = vmor %vm1623_vm4, %vm1624_vm3  ;;  %v1328_v20 = vpop.f32.mrf.mxu0 }
 0x1ee   : > { %v8411_v59 = vadd.f32 1.0, %v6592_v5  ;;  %v1620_v57 = vsub.f32 1.0, %v1619_v29  ;;  %vm2393_vm10 = vmor %vm2391_vm8, %vm2392_vm6  ;;  %v1139_v62 = vmul.f32 %v1035_v3, %v13826_v53  ;;  %v1138_v5 = vmul.f32 %v1025_v61, %v13827_v56 }
 0x1ef   : > { %v2388_v55 = vsub.f32 1.0, %v2387_v49  ;;  %v8425_v22 = vadd.f32 1e-05, %v763_v17  ;;  %v1491_v52 = vsub.f32 0.0, %v8468_v6 }
 0x1f0   : > { %6597 = vrcp.f32 %v8411_v59  ;;  %v1621_v39 = vmul.f32 %v6588_v13, %v1620_v57  ;;  %v2412_v30 = vand.u32 2147483648, %v8411_v59  ;;  %v2410_v15 = vand.u32 2147483647, %v8411_v59 }
 0x1f1   : > { %v2389_v48 = vmul.f32 %v8394_v60, %v2388_v55  ;;  %6599 = vrsqrt.f32 %v8425_v22  ;;  %vm2406_vm13 = vweird.f32 %v8411_v59  ;;  %v1173_v57 = vmul.f32 %v8416_v43, %v1138_v5  ;;  %v13828_v55 = vld [vmem:[#allocation23_spill] sm:$0xff] }
 0x1f2   : > { %v6594_v23 = vpop.eup %6593  ;;  %v1622_v41 = vadd.f32 %v6588_v13, %v1621_v39  ;;  %v2413_v17 = vor.u32 1.1754944e-38, %v2412_v30  ;;  %v1524_v54 = vmul.f32 1.442695, %v1491_v52  ;;  %vm2411_vm1 = vcmp.eq.f32.partialorder %v2410_v15, 8.507059e+37 }
 0x1f3   : > { %v8445_v1 = vadd.f32 1.0, %v6594_v23  ;;  %v6596_v50 = vpop.eup %6595  ;;  %v2390_v63 = vadd.f32 %v8394_v60, %v2389_v48  ;;  %v1417_v23 = vpop.f32.mrf.mxu1  ;;  %vm1112_vm4 = vweird.f32 %v8425_v22 }
 0x1f4   : > { %v8453_v21 = vadd.f32 1.0, %v6596_v50  ;;  %v1626_v26 = vsel %vm1625_vm7, %v6588_v13, %v1622_v41 }
 0x1f5   : > { %6601 = vrcp.f32 %v8445_v1  ;;  %v1631_v46 = vsel %vm1628_vm9, %v1630_v28, %v1626_v26  ;;  %v2394_v24 = vsel %vm2393_vm10, %v8394_v60, %v2390_v63  ;;  %v1105_v60 = vsel %vm8462_vm11, %v8313_v33, %v8409_v35  ;;  %v1331_v50 = vpop.f32.mrf.mxu0 }
 0x1f6   : > { %v6598_v4 = vpop.eup %6597  ;;  %2130 = vrot.lane.b32.xlu1 %v1631_v46, %s7112_s1  ;;  %6603 = vrcp.f32 %v8453_v21  ;;  %v2399_v14 = vsel %vm2396_vm12, %v2398_v27, %v2394_v24  ;;  %v1174_v33 = vmul.f32 %v8416_v43, %v1139_v62  ;;  %v1146_v7 = vmul.f32 %v1105_v60, %v13828_v55 }
 0x1f7   : > { %v2402_v25 = vmul.f32 %v6598_v4, %v8411_v59  ;;  %v6600_v0 = vpop.eup %6599  ;;  %5822 = vrot.lane.b32.xlu0 %v2399_v14, %s7111_s22  ;;  %vm2407_vm14 = vweird.f32 %v6598_v4  ;;  %v1659_v59 = vand.u32 2147483648, %v8445_v1  ;;  %v1657_v32 = vand.u32 2147483647, %v8445_v1 }
 0x1f8   : > { %v1107_v29 = vmul.f32 %v6600_v0, %v8425_v22  ;;  %vm2408_vm15 = vmor %vm2406_vm13, %vm2407_vm14  ;;  %vm1113_vm2 = vweird.f32 %v6600_v0  ;;  %vm1653_vm6 = vweird.f32 %v8445_v1  ;;  %v1208_v63 = vadd.f32 %v8434_v47, %v1173_v57 }
 0x1f9   : > { %6362 = vmatmul.msk.bf16.gmra.mxu0 %vm436_vm0, %v1228_v38  ;;  %v2403_v13 = vsub.f32 1.0, %v2402_v25  ;;  %6378 = vmatmul.msk.bf16.gmra.mxu1 %vm436_vm0, %v1228_v38  ;;  %vm1114_vm5 = vmor %vm1112_vm4, %vm1113_vm2  ;;  %6605 = vpow2.f32 %v1524_v54  ;;  %v1209_v61 = vadd.f32 %v8434_v47, %v1174_v33  ;;  %vm1658_vm8 = vcmp.eq.f32.partialorder %v1657_v32, 8.507059e+37 }
 0x1fa   : > { %v1108_v31 = vmul.f32 %v6600_v0, %v1107_v29  ;;  %v1181_v22 = vmul.f32 %v8416_v43, %v1146_v7  ;;  %v8511_v38 = vadd.f32 %v1328_v20, %v8268_v18  ;;  %v1418_v24 = vadd.f32 %v1417_v23, %v8270_v36 }
 0x1fb   : > { %v6602_v49 = vpop.eup %6601  ;;  %v2404_v44 = vmul.f32 %v6598_v4, %v2403_v13  ;;  %v1229_v25 = vpack.c.bf16 %v1209_v61, %v1208_v63  ;;  %v1420_v60 = vpop.f32.mrf.mxu1  ;;  %vm2421_vm10 = vweird.f32 %v8453_v21  ;;  %v2425_v56 = vand.u32 2147483647, %v8453_v21 }
 0x1fc   : > { %v1649_v3 = vmul.f32 %v6602_v49, %v8445_v1  ;;  %v8495_v35 = vpop.eup %6603  ;;  %v1109_v11 = vmul.f32 0.5, %v1108_v31  ;;  %vm1654_vm3 = vweird.f32 %v6602_v49  ;;  %v1493_v62 = vsub.f32 0.0, %v8511_v38 }
 0x1fd   : > { %v2405_v8 = vadd.f32 %v6598_v4, %v2404_v44  ;;  %v2417_v51 = vmul.f32 %v8495_v35, %v8453_v21  ;;  %vm1655_vm7 = vmor %vm1653_vm6, %vm1654_vm3  ;;  %vm2422_vm9 = vweird.f32 %v8495_v35  ;;  %v2261_v29 = vsub.f32 0.0, %v1418_v24 }
 0x1fe   : > { %v1650_v39 = vsub.f32 1.0, %v1649_v3  ;;  %v1110_v48 = vsub.f32 1.5, %v1109_v11  ;;  %vm2423_vm11 = vmor %vm2421_vm10, %vm2422_vm9  ;;  %v1528_v44 = vmul.f32 1.442695, %v1493_v62  ;;  %v1421_v15 = vadd.f32 %v1420_v60, %v8270_v36 }
 0x1ff   : > { %v2409_v2 = vsel %vm2408_vm15, %v6598_v4, %v2405_v8  ;;  %v2418_v42 = vsub.f32 1.0, %v2417_v51  ;;  %v1660_v4 = vor.u32 1.1754944e-38, %v1659_v59  ;;  %v6606_v53 = vpop.eup %6605  ;;  %v2296_v8 = vmul.f32 1.442695, %v2261_v29 }
 0x200   : > { %v2414_v45 = vsel %vm2411_vm1, %v2413_v17, %v2409_v2  ;;  %v1651_v34 = vmul.f32 %v6602_v49, %v1650_v39  ;;  %v1111_v41 = vmul.f32 %v6600_v0, %v1110_v48  ;;  %v8533_v5 = vadd.f32 1.0, %v6606_v53 }
 0x201   : > { %5824 = vrot.lane.b32.xlu0 %v2414_v45, %s7111_s22  ;;  %v2419_v1 = vmul.f32 %v8495_v35, %v2418_v42  ;;  %vm2426_vm12 = vcmp.eq.f32.partialorder %v2425_v56, 8.507059e+37 }
 0x202   : > { %v1652_v28 = vadd.f32 %v6602_v49, %v1651_v34  ;;  %v1115_v26 = vsel %vm1114_vm5, %v6600_v0, %v1111_v41  ;;  %v8517_v0 = vadd.f32 %v1331_v50, %v8268_v18  ;;  %6607 = vrcp.f32 %v8533_v5 }
 0x203   : > { %v1147_v27 = vmul.f32 %v1115_v26, %v7875_v37  ;;  %v1216_v37 = vadd.f32 %v8434_v47, %v1181_v22  ;;  %v2420_v13 = vadd.f32 %v8495_v35, %v2419_v1  ;;  %6609 = vpow2.f32 %v1528_v44  ;;  %v1422_v55 = vpop.f32.mrf.mxu1 }
 0x204   : > { %v1656_v46 = vsel %vm1655_vm7, %v6602_v49, %v1652_v28  ;;  %v1333_v49 = vpop.f32.mrf.mxu0  ;;  %6611 = vpow2.f32 %v2296_v8  ;;  %v1423_v59 = vadd.f32 %v1422_v55, %v8270_v36  ;;  %vm1638_vm14 = vweird.f32 %v8533_v5 }
 0x205   : > { %v1661_v12 = vsel %vm1658_vm8, %v1660_v4, %v1656_v46  ;;  %v1182_v14 = vmul.f32 %v8416_v43, %v1147_v27  ;;  %v2427_v43 = vand.u32 2147483648, %v8453_v21  ;;  %v2424_v52 = vsel %vm2423_vm11, %v8495_v35, %v2420_v13 }
 0x206   : > { %v2262_v35 = vsub.f32 0.0, %v1421_v15  ;;  %v8548_v39 = vadd.f32 %v1333_v49, %v8268_v18  ;;  %v2263_v42 = vsub.f32 0.0, %v1423_v59 }
 0x207   : > { %v1217_v20 = vadd.f32 %v8434_v47, %v1182_v14  ;;  %v1494_v47 = vsub.f32 0.0, %v8517_v0  ;;  %v2428_v3 = vor.u32 1.1754944e-38, %v2427_v43 }
 0x208   : > { %v2298_v7 = vmul.f32 1.442695, %v2262_v35  ;;  %v8545_v2 = vpop.eup %6607  ;;  %v1495_v50 = vsub.f32 0.0, %v8548_v39 }
 0x209   : > { %2134 = vrot.lane.b32.xlu0 %v1661_v12, %s7112_s1  ;;  %6363 = vmatmul.msk.bf16.gmra.mxu0 %vm436_vm0, %v1229_v25  ;;  %v8528_v30 = vpack.c.bf16 %v1217_v20, %v1216_v37  ;;  %v1530_v21 = vmul.f32 1.442695, %v1494_v47  ;;  %v2429_v11 = vsel %vm2426_vm12, %v2428_v3, %v2424_v52  ;;  %v6610_v45 = vpop.eup %6609  ;;  %v1634_v61 = vmul.f32 %v8545_v2, %v8533_v5 }
 0x20a   : > { %6379 = vmatmul.msk.bf16.gmra.mxu1 %vm436_vm0, %v1229_v25  ;;  %v6612_v34 = vpop.eup %6611  ;;  %v8556_v63 = vadd.f32 1.0, %v6610_v45  ;;  %v1532_v1 = vmul.f32 1.442695, %v1495_v50  ;;  %v1642_v52 = vand.u32 2147483647, %v8533_v5  ;;  %vm1639_vm13 = vweird.f32 %v8545_v2 }
 0x20b   : > { %6367 = vmatmul.msk.bf16.gmra.mxu3 %vm436_vm0, %v8528_v30  ;;  %6613 = vpow2.f32 %v1530_v21  ;;  %v8560_v4 = vadd.f32 1.0, %v6612_v34  ;;  %v1425_v22 = vpop.f32.mrf.mxu1  ;;  %v1635_v20 = vsub.f32 1.0, %v1634_v61  ;;  %vm8632_vm3 = vmor %vm1638_vm14, %vm1639_vm13 }
 0x20c   : > { %v1336_v48 = vpop.f32.mrf.mxu0  ;;  %v8583_v29 = vadd.f32 %v1425_v22, %v8270_v36  ;;  %vm8608_vm15 = vcmp.eq.f32.partialorder %v1642_v52, 8.507059e+37  ;;  %vm1668_vm7 = vweird.f32 %v8556_v63 }
 0x20d   : > { %v1381_v31 = vpop.f32.mrf.mxu3  ;;  %v8569_v27 = vadd.f32 %v1336_v48, %v8268_v18  ;;  %v1636_v49 = vmul.f32 %v8545_v2, %v1635_v20 }
 0x20e   : > { %v8540_v33 = vadd.f32 %v1381_v31, %v8268_v18 }
 0x20f   : > { %v1496_v13 = vsub.f32 0.0, %v8569_v27  ;;  %v1637_v48 = vadd.f32 %v8545_v2, %v1636_v49 }
 0x210   : > { %v1514_v17 = vsub.f32 0.0, %v8540_v33 }
 0x211   : > { %5826 = vrot.lane.b32.xlu0 %v2429_v11, %s7111_s22  ;;  %v6614_v51 = vpop.eup %6613  ;;  %v1534_v15 = vmul.f32 1.442695, %v1496_v13  ;;  %v2264_v11 = vsub.f32 0.0, %v8583_v29 }
 0x212   : > { %v1570_v57 = vmul.f32 1.442695, %v1514_v17  ;;  %v8566_v46 = vadd.f32 1.0, %v6614_v51 }
 0x213   : > { %v1427_v17 = vpop.f32.mrf.mxu1 }
 0x214   : > { %6615 = vpow2.f32 %v1570_v57  ;;  %v1338_v14 = vpop.f32.mrf.mxu0  ;;  %v1644_v57 = vand.u32 2147483648, %v8533_v5  ;;  %v8619_v50 = vadd.f32 %v1427_v17, %v8270_v36  ;;  %v1641_v5 = vsel %vm8632_vm3, %v8545_v2, %v1637_v48 }
 0x215   : > { %v1383_v54 = vpop.f32.mrf.mxu3  ;;  %6617 = vpow2.f32 %v2298_v7  ;;  %v1674_v48 = vand.u32 2147483648, %v8556_v63  ;;  %vm1683_vm13 = vweird.f32 %v8566_v46 }
 0x216   : > { %v8551_v23 = vadd.f32 %v1383_v54, %v8268_v18 }
 0x218   : > { %v1515_v32 = vsub.f32 0.0, %v8551_v23 }
 0x21a   : > { %v6616_v41 = vpop.eup %6615  ;;  %v1572_v28 = vmul.f32 1.442695, %v1515_v32 }
 0x21b   : > { %v8558_v26 = vadd.f32 1.0, %v6616_v41  ;;  %6380 = vmatmul.msk.bf16.vlgmr.msrb.gmra.mxu3 %vm436_vm0, %v8021_v40  ;;  %v6618_v25 = vpop.eup %6617  ;;  %v2300_v40 = vmul.f32 1.442695, %v2263_v42  ;;  %v8616_v41 = vadd.f32 %v1338_v14, %v8268_v18 }
 0x21c   : > { %6619 = vpow2.f32 %v1572_v28  ;;  %v8580_v62 = vadd.f32 1.0, %v6618_v25  ;;  %v8621_v28 = vpop.f32.mrf.mxu0 }
 0x21d   : > { %6621 = vrcp.f32 %v8558_v26  ;;  %v1386_v12 = vpop.f32.mrf.mxu3  ;;  %v1989_v54 = vand.u32 2147483648, %v8558_v26  ;;  %v1987_v32 = vand.u32 2147483647, %v8558_v26  ;;  %vm1983_vm2 = vweird.f32 %v8558_v26 }
 0x21e   : > { %v8573_v24 = vadd.f32 %v1386_v12, %v8268_v18  ;;  %6623 = vrcp.f32 %v8556_v63 }
 0x21f   : > { %6625 = vrcp.f32 %v8560_v4  ;;  %vm1988_vm5 = vcmp.eq.f32.partialorder %v1987_v32, 8.507059e+37 }
 0x220   : > { %v1516_v37 = vsub.f32 0.0, %v8573_v24  ;;  %6627 = vrcp.f32 %v8566_v46 }
 0x221   : > { %6629 = vpow2.f32 %v1532_v1 }
 0x222   : > { %v6620_v53 = vpop.eup %6619  ;;  %v1574_v60 = vmul.f32 1.442695, %v1516_v37  ;;  %6631 = vpow2.f32 %v2300_v40 }
 0x223   : > { %v6622_v43 = vpop.eup %6621  ;;  %v8585_v56 = vadd.f32 1.0, %v6620_v53  ;;  %v1645_v53 = vor.u32 1.1754944e-38, %v1644_v57 }
 0x224   : > { %6633 = vpow2.f32 %v1574_v60  ;;  %v1979_v47 = vmul.f32 %v6622_v43, %v8558_v26  ;;  %v8590_v44 = vpop.eup %6623  ;;  %vm1984_vm1 = vweird.f32 %v6622_v43  ;;  %v1990_v26 = vor.u32 1.1754944e-38, %v1989_v54 }
 0x225   : > { %6635 = vrcp.f32 %v8585_v56  ;;  %v1388_v31 = vpop.f32.mrf.mxu3  ;;  %v8593_v3 = vpop.eup %6625  ;;  %v1664_v40 = vmul.f32 %v8590_v44, %v8556_v63  ;;  %vm1985_vm4 = vmor %vm1983_vm2, %vm1984_vm1  ;;  %v1497_v60 = vsub.f32 0.0, %v8616_v41  ;;  %v1646_v2 = vsel %vm8608_vm15, %v1645_v53, %v1641_v5 }
 0x226   : > { %6637 = vrcp.f32 %v8580_v62  ;;  %v8597_v8 = vadd.f32 %v1388_v31, %v8268_v18  ;;  %v8600_v21 = vpop.eup %6627  ;;  %v1980_v35 = vsub.f32 1.0, %v1979_v47  ;;  %v2004_v57 = vand.u32 2147483648, %v8585_v56 }
 0x227   : > { %v6630_v55 = vpop.eup %6629  ;;  %6639 = vpow2.f32 %v1534_v15  ;;  %v1679_v61 = vmul.f32 %v8600_v21, %v8566_v46  ;;  %v1665_v17 = vsub.f32 1.0, %v1664_v40  ;;  %v1536_v45 = vmul.f32 1.442695, %v1497_v60 }
 0x228   : > { %v1517_v7 = vsub.f32 0.0, %v8597_v8  ;;  %v8612_v59 = vpop.eup %6631  ;;  %v1981_v34 = vmul.f32 %v6622_v43, %v1980_v35  ;;  %v8652_v15 = vadd.f32 1.0, %v6630_v55  ;;  %v2002_v55 = vand.u32 2147483647, %v8585_v56 }
 0x229   : > { %v1680_v49 = vsub.f32 1.0, %v1679_v61  ;;  %vm1998_vm8 = vweird.f32 %v8585_v56  ;;  %v1666_v25 = vmul.f32 %v8590_v44, %v1665_v17  ;;  %vm1684_vm11 = vweird.f32 %v8600_v21 }
 0x22a   : > { %v6634_v51 = vpop.eup %6633  ;;  %v1576_v42 = vmul.f32 1.442695, %v1517_v7  ;;  %v1982_v1 = vadd.f32 %v6622_v43, %v1981_v34  ;;  %v1672_v7 = vand.u32 2147483647, %v8556_v63  ;;  %vm2003_vm10 = vcmp.eq.f32.partialorder %v2002_v55, 8.507059e+37  ;;  %vm8693_vm15 = vmor %vm1683_vm13, %vm1684_vm11 }
 0x22b   : > { %v6636_v22 = vpop.eup %6635  ;;  %v8625_v12 = vadd.f32 1.0, %v6634_v51  ;;  %6381 = vmatmul.msk.bf16.gmra.mxu3 %vm436_vm0, %v8082_v9  ;;  %v1681_v51 = vmul.f32 %v8600_v21, %v1680_v49  ;;  %vm1669_vm12 = vweird.f32 %v8590_v44  ;;  %v1675_v63 = vor.u32 1.1754944e-38, %v1674_v48 }
 0x22c   : > { %v8638_v14 = vpop.eup %6637  ;;  %6641 = vpow2.f32 %v1576_v42  ;;  %v1994_v37 = vmul.f32 %v6636_v22, %v8585_v56  ;;  %v1986_v13 = vsel %vm1985_vm4, %v6622_v43, %v1982_v1  ;;  %v2265_v43 = vsub.f32 0.0, %v8619_v50  ;;  %vm8705_vm2 = vmor %vm1668_vm7, %vm1669_vm12 }
 0x22d   : > { %6643 = vrcp.f32 %v8625_v12  ;;  %v1391_v20 = vpop.f32.mrf.mxu3  ;;  %v1991_v9 = vsel %vm1988_vm5, %v1990_v26, %v1986_v13  ;;  %v6640_v52 = vpop.eup %6639  ;;  %vm1999_vm6 = vweird.f32 %v6636_v22  ;;  %v2432_v50 = vmul.f32 %v8593_v3, %v8560_v4 }
 0x22e   : > { %v8650_v47 = vadd.f32 %v1391_v20, %v8268_v18  ;;  %2178 = vrot.lane.b32.xlu2 %v1991_v9, %s7112_s1  ;;  %v1995_v31 = vsub.f32 1.0, %v1994_v37  ;;  %v8671_v40 = vadd.f32 1.0, %v6640_v52  ;;  %v8673_v26 = vpop.f32.mrf.mxu0  ;;  %vm2000_vm9 = vmor %vm1998_vm8, %vm1999_vm6  ;;  %v2005_v37 = vor.u32 1.1754944e-38, %v2004_v57 }
 0x22f   : > { %v1689_v13 = vand.u32 2147483648, %v8566_v46  ;;  %v1682_v56 = vadd.f32 %v8600_v21, %v1681_v51  ;;  %v2433_v60 = vsub.f32 1.0, %v2432_v50  ;;  %v1667_v9 = vadd.f32 %v8590_v44, %v1666_v25 }
 0x230   : > { %v1518_v35 = vsub.f32 0.0, %v8650_v47  ;;  %v1996_v54 = vmul.f32 %v6636_v22, %v1995_v31  ;;  %vm8685_vm14 = vcmp.eq.f32.partialorder %v1672_v7, 8.507059e+37  ;;  %v1687_v52 = vand.u32 2147483647, %v8566_v46 }
 0x231   : > { %v2019_v31 = vand.u32 2147483648, %v8625_v12  ;;  %v2304_v7 = vmul.f32 1.442695, %v2265_v43  ;;  %v1690_v55 = vor.u32 1.1754944e-38, %v1689_v13  ;;  %v1671_v43 = vsel %vm8705_vm2, %v8590_v44, %v1667_v9 }
 0x232   : > { %v6642_v34 = vpop.eup %6641  ;;  %v1578_v32 = vmul.f32 1.442695, %v1518_v35  ;;  %v1997_v1 = vadd.f32 %v6636_v22, %v1996_v54  ;;  %v2017_v35 = vand.u32 2147483647, %v8625_v12  ;;  %v1686_v54 = vsel %vm8693_vm15, %v8600_v21, %v1682_v56 }
 0x233   : > { %v6644_v42 = vpop.eup %6643  ;;  %v8667_v61 = vadd.f32 1.0, %v6642_v34  ;;  %v2434_v34 = vmul.f32 %v8593_v3, %v2433_v60  ;;  %vm2013_vm3 = vweird.f32 %v8625_v12  ;;  %vm1688_vm4 = vcmp.eq.f32.partialorder %v1687_v52, 8.507059e+37  ;;  %v8736_v60 = vpop.f32.mrf.mxu1 }
 0x234   : > { %6645 = vpow2.f32 %v1578_v32  ;;  %v2009_v5 = vmul.f32 %v6644_v42, %v8625_v12  ;;  %v2001_v20 = vsel %vm2000_vm9, %v6636_v22, %v1997_v1  ;;  %vm2014_vm1 = vweird.f32 %v6644_v42 }
 0x235   : > { %6647 = vrcp.f32 %v8667_v61  ;;  %v2006_v53 = vsel %vm2003_vm10, %v2005_v37, %v2001_v20  ;;  %v1393_v51 = vpop.f32.mrf.mxu3  ;;  %vm2015_vm5 = vmor %vm2013_vm3, %vm2014_vm1  ;;  %v2020_v50 = vor.u32 1.1754944e-38, %v2019_v31  ;;  %v1691_v25 = vsel %vm1688_vm4, %v1690_v55, %v1686_v54 }
 0x236   : > { %2180 = vrot.lane.b32.xlu1 %v2006_v53, %s7112_s1  ;;  %2132 = vrot.lane.b32.xlu2 %v1646_v2, %s7112_s1  ;;  %v2010_v22 = vsub.f32 1.0, %v2009_v5  ;;  %6649 = vrcp.f32 %v8671_v40  ;;  %vm2018_vm6 = vcmp.eq.f32.partialorder %v2017_v35, 8.507059e+37  ;;  %v8723_v44 = vpop.f32.mrf.mxu0  ;;  %v8726_v12 = vadd.f32 %v1393_v51, %v8268_v18 }
 0x237   : > { %6651 = vpow2.f32 %v1536_v45  ;;  %v2435_v53 = vadd.f32 %v8593_v3, %v2434_v34  ;;  %vm2437_vm7 = vweird.f32 %v8593_v3  ;;  %v2440_v56 = vand.u32 2147483647, %v8560_v4 }
 0x238   : > { %v2011_v17 = vmul.f32 %v6644_v42, %v2010_v22  ;;  %v2032_v49 = vand.u32 2147483647, %v8667_v61  ;;  %v2442_v22 = vand.u32 2147483648, %v8560_v4  ;;  %v8743_v52 = vmul.f32 1.442695, %v2264_v11 }
 0x239   : > { %vm2436_vm9 = vweird.f32 %v8560_v4  ;;  %vm2028_vm10 = vweird.f32 %v8667_v61  ;;  %v8764_v46 = vadd.f32 %v8621_v28, %v8268_v18  ;;  %vm1713_vm2 = vweird.f32 %v8671_v40 }
 0x23a   : > { %v6646_v57 = vpop.eup %6645  ;;  %v2012_v21 = vadd.f32 %v6644_v42, %v2011_v17  ;;  %v1519_v17 = vsub.f32 0.0, %v8726_v12  ;;  %vm8754_vm11 = vmor %vm2436_vm9, %vm2437_vm7  ;;  %vm2033_vm13 = vcmp.eq.f32.partialorder %v2032_v49, 8.507059e+37  ;;  %v2443_v55 = vor.u32 1.1754944e-38, %v2442_v22 }
 0x23b   : > { %v6648_v45 = vpop.eup %6647  ;;  %v8710_v32 = vadd.f32 1.0, %v6646_v57  ;;  %6382 = vmatmul.msk.bf16.gmra.mxu3 %vm436_vm0, %v8160_v19  ;;  %v1676_v19 = vsel %vm8685_vm14, %v1675_v63, %v1671_v43  ;;  %v2439_v4 = vsel %vm8754_vm11, %v8593_v3, %v2435_v53  ;;  %vm2441_vm14 = vcmp.eq.f32.partialorder %v2440_v56, 8.507059e+37  ;;  %13841 = vst [vmem:[#allocation17_spill] sm:$0xff] %v8764_v46  ;;  %v1432_v53 = vpop.f32.mrf.mxu1 }
 0x23c   : > { %v2024_v1 = vmul.f32 %v6648_v45, %v8667_v61  ;;  %v2016_v37 = vsel %vm2015_vm5, %v6644_v42, %v2012_v21  ;;  %v8721_v5 = vpop.eup %6649  ;;  %v2034_v42 = vand.u32 2147483648, %v8667_v61  ;;  %vm2029_vm8 = vweird.f32 %v6648_v45 }
 0x23d   : > { %6653 = vrcp.f32 %v8710_v32  ;;  %v2021_v48 = vsel %vm2018_vm6, %v2020_v50, %v2016_v37  ;;  %v6652_v13 = vpop.eup %6651  ;;  %v1709_v31 = vmul.f32 %v8721_v5, %v8671_v40  ;;  %vm2030_vm12 = vmor %vm2028_vm10, %vm2029_vm8  ;;  %v2447_v43 = vmul.f32 %v8638_v14, %v8580_v62 }
 0x23e   : > { %v2025_v20 = vsub.f32 1.0, %v2024_v1  ;;  %2138 = vrot.lane.b32.xlu1 %v1691_v25, %s7112_s1  ;;  %2136 = vrot.lane.b32.xlu2 %v1676_v19, %s7112_s1  ;;  %6655 = vpow2.f32 %v2304_v7  ;;  %v8748_v2 = vadd.f32 1.0, %v6652_v13  ;;  %v2035_v11 = vor.u32 1.1754944e-38, %v2034_v42  ;;  %v8775_v25 = vpop.f32.mrf.mxu0 }
 0x23f   : > { %2182 = vrot.lane.b32.xlu0 %v2021_v48, %s7112_s1  ;;  %v1710_v7 = vsub.f32 1.0, %v1709_v31  ;;  %v1580_v3 = vmul.f32 1.442695, %v1519_v17  ;;  %v2444_v21 = vsel %vm2441_vm14, %v2443_v55, %v2439_v4  ;;  %v2047_v50 = vand.u32 2147483647, %v8710_v32 }
 0x240   : > { %v2026_v9 = vmul.f32 %v6648_v45, %v2025_v20  ;;  %6657 = vrcp.f32 %v8748_v2  ;;  %v2049_v1 = vand.u32 2147483648, %v8710_v32  ;;  %vm1714_vm15 = vweird.f32 %v8721_v5 }
 0x241   : > { %v1711_v51 = vmul.f32 %v8721_v5, %v1710_v7  ;;  %v1717_v19 = vand.u32 2147483647, %v8671_v40  ;;  %v1719_v48 = vand.u32 2147483648, %v8671_v40  ;;  %6659 = vrcp.f32 %v8652_v15  ;;  %vm8788_vm4 = vmor %vm1713_vm2, %vm1714_vm15 }
 0x242   : > { %v2027_v35 = vadd.f32 %v6648_v45, %v2026_v9  ;;  %v1498_v20 = vsub.f32 0.0, %v8764_v46  ;;  %v2448_v13 = vsub.f32 1.0, %v2447_v43  ;;  %6661 = vpow2.f32 %v1580_v3 }
 0x243   : > { %v6654_v29 = vpop.eup %6653  ;;  %v1712_v28 = vadd.f32 %v8721_v5, %v1711_v51  ;;  %vm2043_vm3 = vweird.f32 %v8710_v32  ;;  %v2050_v49 = vor.u32 1.1754944e-38, %v2049_v1  ;;  %vm2452_vm6 = vweird.f32 %v8638_v14 }
 0x244   : > { %v2031_v54 = vsel %vm2030_vm12, %v6648_v45, %v2027_v35  ;;  %v2039_v61 = vmul.f32 %v6654_v29, %v8710_v32  ;;  %v6656_v45 = vpop.eup %6655  ;;  %vm2044_vm1 = vweird.f32 %v6654_v29  ;;  %v2449_v22 = vmul.f32 %v8638_v14, %v2448_v13 }
 0x245   : > { %v2036_v34 = vsel %vm2033_vm13, %v2035_v11, %v2031_v54  ;;  %v8783_v42 = vadd.f32 1.0, %v6656_v45  ;;  %vm2045_vm5 = vmor %vm2043_vm3, %vm2044_vm1  ;;  %v1716_v40 = vsel %vm8788_vm4, %v8721_v5, %v1712_v28  ;;  %vm2048_vm7 = vcmp.eq.f32.partialorder %v2047_v50, 8.507059e+37  ;;  %v8829_v50 = vpop.f32.mrf.mxu1 }
 0x246   : > { %v2040_v63 = vsub.f32 1.0, %v2039_v61  ;;  %2184 = vrot.lane.b32.xlu2 %v2036_v34, %s7112_s1  ;;  %v6658_v31 = vpop.eup %6657  ;;  %vm1718_vm8 = vcmp.eq.f32.partialorder %v1717_v19, 8.507059e+37  ;;  %v1720_v17 = vor.u32 1.1754944e-38, %v1719_v48  ;;  %v2450_v57 = vadd.f32 %v8638_v14, %v2449_v22  ;;  %v8822_v3 = vpop.f32.mrf.mxu0 }
 0x247   : > { %5828 = vrot.lane.b32.xlu0 %v2444_v21, %s7111_s22  ;;  %vm2451_vm9 = vweird.f32 %v8580_v62  ;;  %v2455_v11 = vand.u32 2147483647, %v8580_v62  ;;  %v8803_v5 = vadd.f32 1.0, %v8612_v59  ;;  %v1724_v55 = vmul.f32 %v6658_v31, %v8748_v2 }
 0x248   : > { %v2041_v37 = vmul.f32 %v6654_v29, %v2040_v63  ;;  %v1721_v4 = vsel %vm1718_vm8, %v1720_v17, %v1716_v40  ;;  %vm8806_vm10 = vmor %vm2451_vm9, %vm2452_vm6  ;;  %6663 = vrcp.f32 %v8783_v42  ;;  %v1538_v61 = vmul.f32 1.442695, %v1498_v20 }
 0x249   : > { %v2454_v54 = vsel %vm8806_vm10, %v8638_v14, %v2450_v57  ;;  %v1431_v34 = vadd.f32 %v8736_v60, %v8270_v36  ;;  %6665 = vpow2.f32 %v8743_v52  ;;  %vm2456_vm11 = vcmp.eq.f32.partialorder %v2455_v11, 8.507059e+37 }
 0x24a   : > { %v2042_v56 = vadd.f32 %v6654_v29, %v2041_v37  ;;  %v1734_v43 = vand.u32 2147483648, %v8748_v2  ;;  %6667 = vrcp.f32 %v8803_v5  ;;  %vm1729_vm12 = vweird.f32 %v6658_v31 }
 0x24b   : > { %6383 = vmatmul.msk.bf16.gmra.mxu3 %vm436_vm0, %v8528_v30  ;;  %v2457_v30 = vand.u32 2147483648, %v8580_v62  ;;  %v1725_v62 = vsub.f32 1.0, %v1724_v55  ;;  %v1732_v60 = vand.u32 2147483647, %v8748_v2  ;;  %6669 = vpow2.f32 %v1538_v61 }
 0x24c   : > { %v2046_v32 = vsel %vm2045_vm5, %v6654_v29, %v2042_v56  ;;  %v6660_v29 = vpop.eup %6659  ;;  %v2266_v52 = vsub.f32 0.0, %v1431_v34  ;;  %v1433_v28 = vadd.f32 %v1432_v53, %v8270_v36  ;;  %vm1728_vm14 = vweird.f32 %v8748_v2 }
 0x24d   : > { %v2051_v35 = vsel %vm2048_vm7, %v2050_v49, %v2046_v32  ;;  %v6662_v59 = vpop.eup %6661  ;;  %v2458_v51 = vor.u32 1.1754944e-38, %v2457_v30  ;;  %v1694_v21 = vmul.f32 %v6660_v29, %v8652_v15  ;;  %v1726_v45 = vmul.f32 %v6658_v31, %v1725_v62  ;;  %vm1730_vm13 = vmor %vm1728_vm14, %vm1729_vm12  ;;  %v1437_v62 = vpop.f32.mrf.mxu1 }
 0x24e   : > { %2186 = vrot.lane.b32.xlu1 %v2051_v35, %s7112_s1  ;;  %2142 = vrot.lane.b32.xlu2 %v1721_v4, %s7112_s1  ;;  %v8825_v63 = vadd.f32 1.0, %v6662_v59  ;;  %v1735_v19 = vor.u32 1.1754944e-38, %v1734_v43  ;;  %v6664_v48 = vpop.eup %6663  ;;  %vm1699_vm15 = vweird.f32 %v6660_v29  ;;  %v1702_v13 = vand.u32 2147483647, %v8652_v15 }
 0x24f   : > { %v2459_v14 = vsel %vm2456_vm11, %v2458_v51, %v2454_v54  ;;  %v1695_v1 = vsub.f32 1.0, %v1694_v21  ;;  %v1727_v37 = vadd.f32 %v6658_v31, %v1726_v45  ;;  %v1704_v56 = vand.u32 2147483648, %v8652_v15  ;;  %v6666_v9 = vpop.eup %6665  ;;  %v8842_v54 = vpop.f32.mrf.mxu0 }
 0x250   : > { %5830 = vrot.lane.b32.xlu0 %v2459_v14, %s7111_s22  ;;  %6671 = vrcp.f32 %v8825_v63  ;;  %vm1733_vm1 = vcmp.eq.f32.partialorder %v1732_v60, 8.507059e+37  ;;  %v6668_v40 = vpop.eup %6667  ;;  %v2306_v22 = vmul.f32 1.442695, %v2266_v52  ;;  %vm1698_vm2 = vweird.f32 %v8652_v15 }
 0x251   : > { %v1696_v20 = vmul.f32 %v6660_v29, %v1695_v1  ;;  %v1731_v49 = vsel %vm1730_vm13, %v6658_v31, %v1727_v37  ;;  %vm1700_vm3 = vmor %vm1698_vm2, %vm1699_vm15  ;;  %v1705_v2 = vor.u32 1.1754944e-38, %v1704_v56  ;;  %v2492_v17 = vmul.f32 %v6664_v48, %v8783_v42  ;;  %v6670_v35 = vpop.eup %6669 }
 0x252   : > { %v1736_v53 = vsel %vm1733_vm1, %v1735_v19, %v1731_v49  ;;  %v8839_v57 = vadd.f32 1.0, %v6666_v9  ;;  %v2267_v11 = vsub.f32 0.0, %v1433_v28  ;;  %vm1703_vm4 = vcmp.eq.f32.partialorder %v1702_v13, 8.507059e+37 }
 0x253   : > { %v1697_v32 = vadd.f32 %v6660_v29, %v1696_v20  ;;  %v2493_v7 = vsub.f32 1.0, %v2492_v17  ;;  %v2502_v30 = vand.u32 2147483648, %v8783_v42  ;;  %6673 = vpow2.f32 %v2306_v22 }
 0x254   : > { %v2462_v15 = vmul.f32 %v6668_v40, %v8803_v5  ;;  %v8848_v59 = vadd.f32 1.0, %v6670_v35  ;;  %vm2497_vm5 = vweird.f32 %v6664_v48  ;;  %6675 = vrcp.f32 %v8839_v57 }
 0x255   : > { %v1701_v4 = vsel %vm1700_vm3, %v6660_v29, %v1697_v32  ;;  %v2494_v61 = vmul.f32 %v6664_v48, %v2493_v7  ;;  %v2500_v29 = vand.u32 2147483647, %v8783_v42  ;;  %v2308_v34 = vmul.f32 1.442695, %v2267_v11  ;;  %v1440_v11 = vpop.f32.mrf.mxu1 }
 0x256   : > { %2144 = vrot.lane.b32.xlu1 %v1736_v53, %s7112_s1  ;;  %v1706_v31 = vsel %vm1703_vm4, %v1705_v2, %v1701_v4  ;;  %v8846_v55 = vpop.eup %6671  ;;  %v8854_v51 = vadd.f32 %v8775_v25, %v8268_v18  ;;  %v2463_v43 = vsub.f32 1.0, %v2462_v15  ;;  %vm2496_vm6 = vweird.f32 %v8783_v42 }
 0x257   : > { %v2495_v14 = vadd.f32 %v6664_v48, %v2494_v61  ;;  %v2503_v21 = vor.u32 1.1754944e-38, %v2502_v30  ;;  %v2472_v45 = vand.u32 2147483648, %v8803_v5  ;;  %vm2498_vm7 = vmor %vm2496_vm6, %vm2497_vm5  ;;  %vm2467_vm8 = vweird.f32 %v6668_v40  ;;  %v8868_v53 = vpop.f32.mrf.mxu0 }
 0x258   : > { %2140 = vrot.lane.b32.xlu0 %v1706_v31, %s7112_s1  ;;  %13846 = vst [vmem:[#allocation16_spill] sm:$0xff] %v8854_v51  ;;  %v2464_v60 = vmul.f32 %v6668_v40, %v2463_v43  ;;  %v2470_v52 = vand.u32 2147483647, %v8803_v5  ;;  %v2054_v1 = vmul.f32 %v8846_v55, %v8825_v63  ;;  %6677 = vrcp.f32 %v8848_v59 }
 0x259   : > { %v2499_v25 = vsel %vm2498_vm7, %v6664_v48, %v2495_v14  ;;  %vm2501_vm9 = vcmp.eq.f32.partialorder %v2500_v29, 8.507059e+37  ;;  %v6674_v28 = vpop.eup %6673  ;;  %vm2466_vm10 = vweird.f32 %v8803_v5  ;;  %6679 = vpow2.f32 %v2308_v34 }
 0x25a   : > { %v2504_v37 = vsel %vm2501_vm9, %v2503_v21, %v2499_v25  ;;  %v2465_v19 = vadd.f32 %v6668_v40, %v2464_v60  ;;  %v2055_v42 = vsub.f32 1.0, %v2054_v1  ;;  %vm2468_vm11 = vmor %vm2466_vm10, %vm2467_vm8  ;;  %v2473_v20 = vor.u32 1.1754944e-38, %v2472_v45  ;;  %v6676_v13 = vpop.eup %6675 }
 0x25b   : > { %v1501_v56 = vsub.f32 0.0, %v8854_v51  ;;  %vm2471_vm12 = vcmp.eq.f32.partialorder %v2470_v52, 8.507059e+37  ;;  %v8866_v48 = vadd.f32 1.0, %v6674_v28  ;;  %vm2059_vm14 = vweird.f32 %v8846_v55 }
 0x25c   : > { %v2469_v9 = vsel %vm2468_vm11, %v6668_v40, %v2465_v19  ;;  %v2056_v49 = vmul.f32 %v8846_v55, %v2055_v42  ;;  %v2064_v2 = vand.u32 2147483648, %v8825_v63  ;;  %v2477_v40 = vmul.f32 %v6676_v13, %v8839_v57 }
 0x25d   : > { %v2474_v22 = vsel %vm2471_vm12, %v2473_v20, %v2469_v9  ;;  %v1544_v17 = vmul.f32 1.442695, %v1501_v56  ;;  %v1438_v35 = vadd.f32 %v1437_v62, %v8270_v36  ;;  %vm2058_vm13 = vweird.f32 %v8825_v63  ;;  %v1442_v28 = vpop.f32.mrf.mxu1 }
 0x25e   : > { %5836 = vrot.lane.b32.xlu1 %v2504_v37, %s7111_s22  ;;  %v2057_v5 = vadd.f32 %v8846_v55, %v2056_v49  ;;  %v8873_v32 = vpop.eup %6677  ;;  %v2062_v4 = vand.u32 2147483647, %v8825_v63  ;;  %6681 = vrcp.f32 %v8866_v48  ;;  %vm2060_vm15 = vmor %vm2058_vm13, %vm2059_vm14  ;;  %v2478_v7 = vsub.f32 1.0, %v2477_v40 }
 0x25f   : > { %v6680_v31 = vpop.eup %6679  ;;  %v1739_v15 = vmul.f32 %v8873_v32, %v8848_v59  ;;  %v2065_v61 = vor.u32 1.1754944e-38, %v2064_v2  ;;  %6683 = vpow2.f32 %v1544_v17  ;;  %v2269_v34 = vsub.f32 0.0, %v1438_v35  ;;  %v8891_v52 = vpop.f32.mrf.mxu0 }
 0x260   : > { %5832 = vrot.lane.b32.xlu0 %v2474_v22, %s7111_s22  ;;  %v2061_v30 = vsel %vm2060_vm15, %v8846_v55, %v2057_v5  ;;  %v2479_v29 = vmul.f32 %v6676_v13, %v2478_v7  ;;  %vm2063_vm1 = vcmp.eq.f32.partialorder %v2062_v4, 8.507059e+37  ;;  %v8884_v62 = vadd.f32 1.0, %v6680_v31 }
 0x261   : > { %v2066_v43 = vsel %vm2063_vm1, %v2065_v61, %v2061_v30  ;;  %vm2482_vm2 = vweird.f32 %v6676_v13  ;;  %v1740_v14 = vsub.f32 1.0, %v1739_v15  ;;  %v2487_v55 = vand.u32 2147483648, %v8839_v57 }
 0x262   : > { %v2480_v63 = vadd.f32 %v6676_v13, %v2479_v29  ;;  %v2312_v45 = vmul.f32 1.442695, %v2269_v34  ;;  %v1441_v60 = vadd.f32 %v1440_v11, %v8270_v36  ;;  %vm2481_vm3 = vweird.f32 %v8839_v57 }
 0x263   : > { %v2485_v1 = vand.u32 2147483647, %v8839_v57  ;;  %6685 = vrcp.f32 %v8884_v62  ;;  %vm2483_vm4 = vmor %vm2481_vm3, %vm2482_vm2  ;;  %v1741_v19 = vmul.f32 %v8873_v32, %v1740_v14  ;;  %v8901_v20 = vadd.f32 %v8673_v26, %v8268_v18 }
 0x264   : > { %v8887_v21 = vpop.eup %6681  ;;  %v2484_v37 = vsel %vm2483_vm4, %v6676_v13, %v2480_v63  ;;  %v2488_v56 = vor.u32 1.1754944e-38, %v2487_v55  ;;  %6687 = vpow2.f32 %v2312_v45  ;;  %v2270_v9 = vsub.f32 0.0, %v1441_v60 }
 0x265   : > { %v6684_v25 = vpop.eup %6683  ;;  %v2507_v42 = vmul.f32 %v8887_v21, %v8866_v48  ;;  %13847 = vst [vmem:[#allocation19_spill] sm:$0xff] %v8901_v20  ;;  %vm2486_vm5 = vcmp.eq.f32.partialorder %v2485_v1, 8.507059e+37  ;;  %v1742_v13 = vadd.f32 %v8873_v32, %v1741_v19  ;;  %vm1744_vm6 = vweird.f32 %v8873_v32  ;;  %v1445_v63 = vpop.f32.mrf.mxu1 }
 0x266   : > { %v8903_v57 = vadd.f32 1.0, %v6684_v25  ;;  %v2489_v49 = vsel %vm2486_vm5, %v2488_v56, %v2484_v37  ;;  %v1499_v2 = vsub.f32 0.0, %v8901_v20  ;;  %v1749_v26 = vand.u32 2147483648, %v8848_v59 }
 0x267   : > { %v2508_v22 = vsub.f32 1.0, %v2507_v42  ;;  %v2314_v40 = vmul.f32 1.442695, %v2270_v9  ;;  %v1443_v17 = vadd.f32 %v1442_v28, %v8270_v36  ;;  %vm1743_vm7 = vweird.f32 %v8848_v59  ;;  %v8920_v31 = vpop.f32.mrf.mxu0  ;;  %v8959_v9 = vpop.permute.xlu0 %5755 }
 0x268   : > { %2188 = vrot.lane.b32.xlu0 %v2066_v43, %s7112_s1  ;;  %v1747_v35 = vand.u32 2147483647, %v8848_v59  ;;  %6689 = vrcp.f32 %v8903_v57  ;;  %vm8916_vm8 = vmor %vm1743_vm7, %vm1744_vm6  ;;  %v1540_v61 = vmul.f32 1.442695, %v1499_v2  ;;  %v8930_v59 = vadd.f32 %v8723_v44, %v8268_v18  ;;  %13855 = vst [vmem:[#allocation21_spill] sm:$0xff] %v8959_v9 }
 0x269   : > { %v8908_v5 = vpop.eup %6685  ;;  %v1746_v7 = vsel %vm8916_vm8, %v8873_v32, %v1742_v13  ;;  %v2509_v30 = vmul.f32 %v8887_v21, %v2508_v22  ;;  %v1750_v29 = vor.u32 1.1754944e-38, %v1749_v26  ;;  %6691 = vpow2.f32 %v2314_v40 }
 0x26a   : > { %v6688_v4 = vpop.eup %6687  ;;  %v2522_v15 = vmul.f32 %v8908_v5, %v8884_v62  ;;  %13850 = vst [vmem:[#allocation18_spill] sm:$0xff] %v8930_v59  ;;  %v2271_v34 = vsub.f32 0.0, %v1443_v17  ;;  %v8934_v43 = vadd.f32 %v8868_v53, %v8268_v18  ;;  %vm1748_vm9 = vcmp.eq.f32.partialorder %v1747_v35, 8.507059e+37 }
 0x26b   : > { %v1436_v32 = vadd.f32 %v8829_v50, %v8270_v36  ;;  %v8938_v14 = vadd.f32 1.0, %v6688_v4  ;;  %v1751_v55 = vsel %vm1748_vm9, %v1750_v29, %v1746_v7  ;;  %v2510_v44 = vadd.f32 %v8887_v21, %v2509_v30 }
 0x26c   : > { %13851 = vst [vmem:[#allocation22_spill] sm:$0xff] %v8934_v43  ;;  %vm2512_vm10 = vweird.f32 %v8887_v21  ;;  %v2523_v45 = vsub.f32 1.0, %v2522_v15  ;;  %6693 = vpow2.f32 %v1540_v61  ;;  %v1500_v53 = vsub.f32 0.0, %v8930_v59 }
 0x26d   : > { %v2517_v1 = vand.u32 2147483648, %v8866_v48  ;;  %v2316_v25 = vmul.f32 1.442695, %v2271_v34  ;;  %v1504_v50 = vsub.f32 0.0, %v8934_v43  ;;  %vm2511_vm11 = vweird.f32 %v8866_v48  ;;  %v1447_v7 = vpop.f32.mrf.mxu1 }
 0x26e   : > { %v8943_v60 = vpop.eup %6689  ;;  %v2515_v28 = vand.u32 2147483647, %v8866_v48  ;;  %v2268_v37 = vsub.f32 0.0, %v1436_v32  ;;  %6695 = vrcp.f32 %v8938_v14  ;;  %vm8951_vm12 = vmor %vm2511_vm11, %vm2512_vm10  ;;  %v8957_v56 = vadd.f32 %v8822_v3, %v8268_v18 }
 0x26f   : > { %v6692_v42 = vpop.eup %6691  ;;  %v2524_v48 = vmul.f32 %v8908_v5, %v2523_v45  ;;  %v1784_v13 = vmul.f32 %v8943_v60, %v8903_v57  ;;  %v1542_v22 = vmul.f32 1.442695, %v1500_v53  ;;  %v8969_v2 = vadd.f32 %v8842_v54, %v8268_v18  ;;  %v8971_v40 = vpop.f32.mrf.mxu0 }
 0x270   : > { %5834 = vrot.lane.b32.xlu0 %v2489_v49, %s7111_s22  ;;  %13854 = vst [vmem:[#allocation20_spill] sm:$0xff] %v8957_v56  ;;  %v2514_v49 = vsel %vm8951_vm12, %v8887_v21, %v2510_v44  ;;  %v2518_v26 = vor.u32 1.1754944e-38, %v2517_v1  ;;  %6697 = vpow2.f32 %v2316_v25  ;;  %v1550_v3 = vmul.f32 1.442695, %v1504_v50 }
 0x271   : > { %13856 = vst [vmem:[#allocation24_spill] sm:$0xff] %v8969_v2  ;;  %vm2516_vm14 = vcmp.eq.f32.partialorder %v2515_v28, 8.507059e+37  ;;  %v2310_v35 = vmul.f32 1.442695, %v2268_v37  ;;  %v8973_v11 = vadd.f32 1.0, %v6692_v42  ;;  %v1502_v4 = vsub.f32 0.0, %v8957_v56 }
 0x272   : > { %v6694_v17 = vpop.eup %6693  ;;  %v2519_v21 = vsel %vm2516_vm14, %v2518_v26, %v2514_v49  ;;  %v2525_v30 = vadd.f32 %v8908_v5, %v2524_v48  ;;  %vm2527_vm13 = vweird.f32 %v8908_v5  ;;  %v1785_v54 = vsub.f32 1.0, %v1784_v13  ;;  %v9009_v49 = vpop.permute.xlu0 %5822 }
 0x273   : > { %6699 = vpow2.f32 %v1542_v22  ;;  %v1503_v61 = vsub.f32 0.0, %v8969_v2  ;;  %v1446_v29 = vadd.f32 %v1445_v63, %v8270_v36  ;;  %v2532_v34 = vand.u32 2147483648, %v8884_v62  ;;  %13861 = vst [vmem:[#allocation27_spill] sm:$0xff] %v9009_v49 }
 0x274   : > { %v8979_v15 = vpop.eup %6695  ;;  %6701 = vpow2.f32 %v1550_v3  ;;  %v8986_v32 = vadd.f32 %v8891_v52, %v8268_v18  ;;  %vm2526_vm15 = vweird.f32 %v8884_v62  ;;  %v8990_v44 = vadd.f32 1.0, %v6694_v17 }
 0x275   : > { %6703 = vrcp.f32 %v8973_v11  ;;  %v1448_v45 = vadd.f32 %v1447_v7, %v8270_v36  ;;  %vm8994_vm1 = vmor %vm2526_vm15, %vm2527_vm13  ;;  %v1546_v1 = vmul.f32 1.442695, %v1502_v4  ;;  %v1786_v25 = vmul.f32 %v8943_v60, %v1785_v54 }
 0x276   : > { %13857 = vst [vmem:[#allocation23_spill] sm:$0xff] %v8986_v32  ;;  %v6698_v63 = vpop.eup %6697  ;;  %v2529_v52 = vsel %vm8994_vm1, %v8908_v5, %v2525_v30  ;;  %v1548_v50 = vmul.f32 1.442695, %v1503_v61  ;;  %v2272_v28 = vsub.f32 0.0, %v1446_v29  ;;  %v9006_v37 = vadd.f32 %v8920_v31, %v8268_v18 }
 0x277   : > { %v2533_v19 = vor.u32 1.1754944e-38, %v2532_v34  ;;  %6705 = vpow2.f32 %v2310_v35  ;;  %v1505_v42 = vsub.f32 0.0, %v8986_v32  ;;  %v9012_v5 = vadd.f32 1.0, %v6698_v63  ;;  %v1366_v3 = vpop.f32.mrf.mxu0 }
 0x278   : > { %2146 = vrot.lane.b32.xlu0 %v1751_v55, %s7112_s1  ;;  %v2530_v55 = vand.u32 2147483647, %v8884_v62  ;;  %v2552_v62 = vmul.f32 %v8979_v15, %v8938_v14  ;;  %13860 = vst [vmem:[#allocation26_spill] sm:$0xff] %v9006_v37  ;;  %6707 = vrcp.f32 %v8990_v44  ;;  %v2273_v13 = vsub.f32 0.0, %v1448_v45 }
 0x279   : > { %v6700_v48 = vpop.eup %6699  ;;  %6709 = vpow2.f32 %v1546_v1  ;;  %v1787_v31 = vadd.f32 %v8943_v60, %v1786_v25  ;;  %vm1789_vm3 = vweird.f32 %v8943_v60  ;;  %v1506_v4 = vsub.f32 0.0, %v9006_v37 }
 0x27a   : > { %vm2531_vm2 = vcmp.eq.f32.partialorder %v2530_v55, 8.507059e+37  ;;  %v6702_v26 = vpop.eup %6701  ;;  %v2553_v17 = vsub.f32 1.0, %v2552_v62  ;;  %6711 = vpow2.f32 %v1548_v50  ;;  %v1794_v7 = vand.u32 2147483648, %v8903_v57 }
 0x27b   : > { %v2534_v22 = vsel %vm2531_vm2, %v2533_v19, %v2529_v52  ;;  %v9017_v35 = vpop.eup %6703  ;;  %v1552_v54 = vmul.f32 1.442695, %v1505_v42  ;;  %vm1788_vm4 = vweird.f32 %v8903_v57  ;;  %v1792_v61 = vand.u32 2147483647, %v8903_v57 }
 0x27c   : > { %6713 = vrcp.f32 %v9012_v5  ;;  %v9027_v34 = vadd.f32 1.0, %v6702_v26  ;;  %v2320_v55 = vmul.f32 1.442695, %v2273_v13  ;;  %vm9031_vm5 = vmor %vm1788_vm4, %vm1789_vm3  ;;  %v2554_v1 = vmul.f32 %v8979_v15, %v2553_v17 }
 0x27d   : > { %v6706_v53 = vpop.eup %6705  ;;  %v1791_v63 = vsel %vm9031_vm5, %v8943_v60, %v1787_v31  ;;  %v2567_v52 = vmul.f32 %v9017_v35, %v8973_v11  ;;  %v1554_v62 = vmul.f32 1.442695, %v1506_v4  ;;  %v9046_v50 = vadd.f32 %v8971_v40, %v8268_v18  ;;  %v9053_v31 = vpop.permute.xlu0 %5824 }
 0x27e   : > { %v9042_v25 = vpop.eup %6707  ;;  %vm1793_vm6 = vcmp.eq.f32.partialorder %v1792_v61, 8.507059e+37  ;;  %v9048_v13 = vadd.f32 1.0, %v6700_v48  ;;  %13866 = vst [vmem:[#allocation30_spill] sm:$0xff] %v9053_v31  ;;  %v2555_v40 = vadd.f32 %v8979_v15, %v2554_v1  ;;  %vm2557_vm7 = vweird.f32 %v8979_v15 }
 0x27f   : > { %13865 = vst [vmem:[#allocation29_spill] sm:$0xff] %v9046_v50  ;;  %v6710_v19 = vpop.eup %6709  ;;  %v2568_v17 = vsub.f32 1.0, %v2567_v52  ;;  %v1507_v48 = vsub.f32 0.0, %v9046_v50  ;;  %vm2556_vm8 = vweird.f32 %v8938_v14  ;;  %v2560_v61 = vand.u32 2147483647, %v8938_v14 }
 0x280   : > { %5838 = vrot.lane.b32.xlu0 %v2519_v21, %s7111_s22  ;;  %v2318_v21 = vmul.f32 1.442695, %v2272_v28  ;;  %v1795_v28 = vor.u32 1.1754944e-38, %v1794_v7  ;;  %v6712_v42 = vpop.eup %6711  ;;  %v9060_v4 = vadd.f32 1.0, %v6710_v19  ;;  %v2562_v7 = vand.u32 2147483648, %v8938_v14  ;;  %vm9079_vm9 = vmor %vm2556_vm8, %vm2557_vm7 }
 0x281   : > { %v2559_v14 = vsel %vm9079_vm9, %v8979_v15, %v2555_v40  ;;  %v1556_v19 = vmul.f32 1.442695, %v1507_v48  ;;  %vm2561_vm10 = vcmp.eq.f32.partialorder %v2560_v61, 8.507059e+37  ;;  %vm2572_vm11 = vweird.f32 %v9017_v35 }
 0x282   : > { %6715 = vpow2.f32 %v2318_v21  ;;  %v1796_v26 = vsel %vm1793_vm6, %v1795_v28, %v1791_v63  ;;  %v9058_v21 = vpop.eup %6713  ;;  %v9075_v63 = vadd.f32 %v1366_v3, %v8268_v18  ;;  %vm2571_vm12 = vweird.f32 %v8973_v11 }
 0x283   : > { %6717 = vpow2.f32 %v1552_v54  ;;  %v9064_v54 = vpop.f32.mrf.mxu0  ;;  %v2582_v28 = vmul.f32 %v9058_v21, %v9012_v5  ;;  %vm9123_vm14 = vmor %vm2571_vm12, %vm2572_vm11  ;;  %v1754_v36 = vmul.f32 %v9042_v25, %v8990_v44  ;;  %vm2587_vm15 = vweird.f32 %v9058_v21 }
 0x284   : > { %6719 = vrcp.f32 %v9027_v34  ;;  %13868 = vst [vmem:[#allocation32_spill] sm:$0xff] %v9075_v63  ;;  %v1508_v40 = vsub.f32 0.0, %v9075_v63  ;;  %vm2586_vm1 = vweird.f32 %v9012_v5  ;;  %vm1833_vm3 = vweird.f32 %v9027_v34 }
 0x285   : > { %6721 = vpow2.f32 %v2320_v55  ;;  %v1755_v50 = vsub.f32 1.0, %v1754_v36  ;;  %vm9166_vm2 = vmor %vm2586_vm1, %vm2587_vm15 }
 0x286   : > { %6723 = vpow2.f32 %v1554_v62  ;;  %v2569_v62 = vmul.f32 %v9017_v35, %v2568_v17 }
 0x288   : > { %5840 = vrot.lane.b32.xlu0 %v2534_v22, %s7111_s22  ;;  %v9050_v22 = vadd.f32 1.0, %v6706_v53  ;;  %v6716_v45 = vpop.eup %6715  ;;  %v9072_v53 = vadd.f32 1.0, %v6712_v42  ;;  %v2570_v48 = vadd.f32 %v9017_v35, %v2569_v62  ;;  %v2575_v62 = vand.u32 2147483647, %v8973_v11 }
 0x289   : > { %v6718_v1 = vpop.eup %6717  ;;  %v9095_v15 = vadd.f32 1.0, %v6716_v45  ;;  %v2577_v45 = vand.u32 2147483648, %v8973_v11  ;;  %v1558_v11 = vmul.f32 1.442695, %v1508_v40 }
 0x28a   : > { %v9090_v3 = vpop.eup %6719  ;;  %v9103_v61 = vadd.f32 1.0, %v6718_v1  ;;  %vm2576_vm13 = vcmp.eq.f32.partialorder %v2575_v62, 8.507059e+37 }
 0x28b   : > { %v6722_v42 = vpop.eup %6721  ;;  %v2578_v9 = vor.u32 1.1754944e-38, %v2577_v45  ;;  %vm1834_vm5 = vweird.f32 %v9090_v3 }
 0x28c   : > { %v9108_v31 = vadd.f32 1.0, %v6722_v42  ;;  %vm9200_vm7 = vmor %vm1833_vm3, %vm1834_vm5 }
 0x28e   : > { %v1396_v30 = vpop.f32.mrf.mxu3 }
 0x28f   : > { %v9024_v29 = vadd.f32 %v1396_v30, %v8268_v18 }
 0x290   : > { %2152 = vrot.lane.b32.xlu0 %v1796_v26, %s7112_s1 }
 0x291   : > { %13862 = vst [vmem:[#allocation28_spill] sm:$0xff] %v9024_v29  ;;  %v1520_v57 = vsub.f32 0.0, %v9024_v29 }
 0x293   : > { %v1582_v60 = vmul.f32 1.442695, %v1520_v57 }
 0x295   : > { %6725 = vpow2.f32 %v1582_v60  ;;  %v2563_v60 = vor.u32 1.1754944e-38, %v2562_v7  ;;  %v2583_v7 = vsub.f32 1.0, %v2582_v28  ;;  %v1829_v28 = vmul.f32 %v9090_v3, %v9027_v34 }
 0x296   : > { %v1398_v30 = vpop.f32.mrf.mxu3  ;;  %6727 = vrcp.f32 %v9048_v13 }
 0x297   : > { %v9069_v55 = vadd.f32 %v1398_v30, %v8268_v18  ;;  %6729 = vrcp.f32 %v9050_v22  ;;  %v6724_v30 = vpop.eup %6723  ;;  %v2564_v17 = vsel %vm2561_vm10, %v2563_v60, %v2559_v14  ;;  %v9110_v14 = vpop.permute.xlu0 %2134  ;;  %v1830_v40 = vsub.f32 1.0, %v1829_v28 }
 0x298   : > { %6731 = vrcp.f32 %v9060_v4  ;;  %5844 = vrot.lane.b32.xlu0 %v2564_v17, %s7111_s22  ;;  %v9118_v1 = vadd.f32 1.0, %v6724_v30  ;;  %v2574_v17 = vsel %vm9123_vm14, %v9017_v35, %v2570_v48  ;;  %v2584_v30 = vmul.f32 %v9058_v21, %v2583_v7 }
 0x299   : > { %13867 = vst [vmem:[#allocation31_spill] sm:$0xff] %v9069_v55  ;;  %v1521_v52 = vsub.f32 0.0, %v9069_v55  ;;  %6733 = vrcp.f32 %v9072_v53  ;;  %v2579_v7 = vsel %vm2576_vm13, %v2578_v9, %v2574_v17  ;;  %v2592_v28 = vand.u32 2147483648, %v9012_v5 }
 0x29a   : > { %v2585_v45 = vadd.f32 %v9058_v21, %v2584_v30  ;;  %v1831_v9 = vmul.f32 %v9090_v3, %v1830_v40  ;;  %v9163_v30 = vadd.f32 %v9064_v54, %v8268_v18  ;;  %v1756_v55 = vmul.f32 %v9042_v25, %v1755_v50 }
 0x29b   : > { %v1584_v26 = vmul.f32 1.442695, %v1521_v52  ;;  %v6726_v57 = vpop.eup %6725  ;;  %v2593_v59 = vor.u32 1.1754944e-38, %v2592_v28  ;;  %v1837_v28 = vand.u32 2147483647, %v9027_v34  ;;  %vm1759_vm10 = vweird.f32 %v9042_v25 }
 0x29c   : > { %v9101_v49 = vpop.eup %6727  ;;  %v9105_v52 = vadd.f32 1.0, %v6726_v57  ;;  %v2589_v54 = vsel %vm9166_vm2, %v9058_v21, %v2585_v45  ;;  %vm1758_vm13 = vweird.f32 %v8990_v44 }
 0x29d   : > { %6735 = vpow2.f32 %v1584_v26  ;;  %v9116_v60 = vpop.eup %6729  ;;  %v1371_v26 = vpop.f32.mrf.mxu0  ;;  %vm1838_vm14 = vcmp.eq.f32.partialorder %v1837_v28, 8.507059e+37  ;;  %vm9227_vm1 = vmor %vm1758_vm13, %vm1759_vm10  ;;  %vm1774_vm3 = vweird.f32 %v9101_v49  ;;  %vm2616_vm13 = vweird.f32 %v9108_v31 }
 0x29e   : > { %6737 = vpow2.f32 %v1556_v19  ;;  %v9127_v42 = vpop.eup %6731  ;;  %v9142_v35 = vadd.f32 %v1371_v26, %v8268_v18  ;;  %v2590_v19 = vand.u32 2147483647, %v9012_v5  ;;  %v2079_v32 = vand.u32 2147483648, %v9105_v52 }
 0x29f   : > { %6739 = vrcp.f32 %v9105_v52  ;;  %v9134_v57 = vpop.eup %6733  ;;  %v9175_v40 = vpop.permute.xlu0 %5826  ;;  %v2077_v21 = vand.u32 2147483647, %v9105_v52  ;;  %v1799_v51 = vmul.f32 %v9127_v42, %v9060_v4  ;;  %vm2073_vm8 = vweird.f32 %v9105_v52 }
 0x2a0   : > { %6741 = vrcp.f32 %v9095_v15  ;;  %5846 = vrot.lane.b32.xlu0 %v2579_v7, %s7111_s22  ;;  %13875 = vst [vmem:[#allocation33_spill] sm:$0xff] %v9175_v40  ;;  %vm2591_vm4 = vcmp.eq.f32.partialorder %v2590_v19, 8.507059e+37  ;;  %v1839_v7 = vand.u32 2147483648, %v9027_v34  ;;  %v1832_v40 = vadd.f32 %v9090_v3, %v1831_v9  ;;  %v9190_v19 = vpop.permute.xlu1 %5718 }
 0x2a1   : > { %6743 = vrcp.f32 %v9103_v61  ;;  %13876 = vst [vmem:[#allocation34_spill] sm:$0xff] %v9190_v19  ;;  %vm2078_vm11 = vcmp.eq.f32.partialorder %v2077_v21, 8.507059e+37  ;;  %v1800_v46 = vsub.f32 1.0, %v1799_v51 }
 0x2a2   : > { %6745 = vrcp.f32 %v9108_v31  ;;  %v1840_v50 = vor.u32 1.1754944e-38, %v1839_v7  ;;  %v1836_v34 = vsel %vm9200_vm7, %v9090_v3, %v1832_v40  ;;  %v2537_v40 = vmul.f32 %v9116_v60, %v9050_v22 }
 0x2a3   : > { %v6736_v10 = vpop.eup %6735  ;;  %6747 = vrcp.f32 %v9118_v1 }
 0x2a4   : > { %v6738_v37 = vpop.eup %6737  ;;  %v9144_v48 = vadd.f32 1.0, %v6736_v10  ;;  %6749 = vpow2.f32 %v1558_v11  ;;  %v1841_v51 = vsel %vm1838_vm14, %v1840_v50, %v1836_v34  ;;  %v2538_v34 = vsub.f32 1.0, %v2537_v40 }
 0x2a5   : > { %v6740_v62 = vpop.eup %6739  ;;  %v9154_v10 = vadd.f32 1.0, %v6738_v37  ;;  %v1769_v37 = vmul.f32 %v9101_v49, %v9048_v13  ;;  %v1809_v40 = vand.u32 2147483648, %v9060_v4  ;;  %vm2542_vm14 = vweird.f32 %v9116_v60 }
 0x2a6   : > { %6751 = vrcp.f32 %v9144_v48  ;;  %v9152_v26 = vpop.eup %6741  ;;  %v2069_v11 = vmul.f32 %v6740_v62, %v9105_v52  ;;  %vm2074_vm6 = vweird.f32 %v6740_v62  ;;  %v2094_v52 = vand.u32 2147483648, %v9144_v48 }
 0x2a7   : > { %v9159_v17 = vpop.eup %6743  ;;  %v1770_v36 = vsub.f32 1.0, %v1769_v37  ;;  %vm2075_vm9 = vmor %vm2073_vm8, %vm2074_vm6  ;;  %v2080_v37 = vor.u32 1.1754944e-38, %v2079_v32  ;;  %v2092_v29 = vand.u32 2147483647, %v9144_v48  ;;  %vm2088_vm15 = vweird.f32 %v9144_v48 }
 0x2a8   : > { %v9173_v5 = vpop.eup %6745  ;;  %v2070_v2 = vsub.f32 1.0, %v2069_v11  ;;  %v2594_v11 = vsel %vm2591_vm4, %v2593_v59, %v2589_v54  ;;  %v1757_v54 = vadd.f32 %v9042_v25, %v1756_v55  ;;  %v2095_v28 = vor.u32 1.1754944e-38, %v2094_v52 }
 0x2a9   : > { %v9181_v63 = vpop.eup %6747  ;;  %5848 = vrot.lane.b32.xlu0 %v2594_v11, %s7111_s22  ;;  %v1764_v11 = vand.u32 2147483648, %v8990_v44  ;;  %v1771_v20 = vmul.f32 %v9101_v49, %v1770_v36  ;;  %v2612_v3 = vmul.f32 %v9173_v5, %v9108_v31  ;;  %vm2093_vm4 = vcmp.eq.f32.partialorder %v2092_v29, 8.507059e+37 }
 0x2aa   : > { %v9186_v43 = vpop.eup %6749  ;;  %v2071_v56 = vmul.f32 %v6740_v62, %v2070_v2  ;;  %v1801_v2 = vmul.f32 %v9127_v42, %v1800_v46  ;;  %6753 = vrcp.f32 %v9154_v10  ;;  %vm1773_vm6 = vweird.f32 %v9048_v13 }
 0x2ab   : > { %v1765_v36 = vor.u32 1.1754944e-38, %v1764_v11  ;;  %v2613_v50 = vsub.f32 1.0, %v2612_v3  ;;  %v1779_v11 = vand.u32 2147483648, %v9048_v13  ;;  %v1777_v46 = vand.u32 2147483647, %v9048_v13  ;;  %vm9249_vm7 = vmor %vm1773_vm6, %vm1774_vm3 }
 0x2ac   : > { %v6752_v45 = vpop.eup %6751  ;;  %v2072_v9 = vadd.f32 %v6740_v62, %v2071_v56  ;;  %v13881_v29 = vsub.f32 0.0, %v9142_v35  ;;  %vm1804_vm8 = vweird.f32 %v9127_v42  ;;  %vm1848_vm6 = vweird.f32 %v9103_v61 }
 0x2ad   : > { %v2084_v59 = vmul.f32 %v6752_v45, %v9144_v48  ;;  %vm2089_vm12 = vweird.f32 %v6752_v45  ;;  %v2614_v13 = vmul.f32 %v9173_v5, %v2613_v50  ;;  %vm1778_vm10 = vcmp.eq.f32.partialorder %v1777_v46, 8.507059e+37 }
 0x2ae   : > { %v2076_v19 = vsel %vm2075_vm9, %v6740_v62, %v2072_v9  ;;  %v1762_v62 = vand.u32 2147483647, %v8990_v44  ;;  %vm2090_vm2 = vmor %vm2088_vm15, %vm2089_vm12  ;;  %v1761_v44 = vsel %vm9227_vm1, %v9042_v25, %v1757_v54  ;;  %v1772_v9 = vadd.f32 %v9101_v49, %v1771_v20 }
 0x2af   : > { %v2085_v7 = vsub.f32 1.0, %v2084_v59  ;;  %v2081_v56 = vsel %vm2078_vm11, %v2080_v37, %v2076_v19  ;;  %v2131_v59 = vpop.permute.xlu1 %2130  ;;  %v1562_v20 = vmul.f32 1.442695, %v13881_v29  ;;  %v1802_v54 = vadd.f32 %v9127_v42, %v1801_v2 }
 0x2b0   : > { %2190 = vrot.lane.b32.xlu2 %v2081_v56, %s7112_s1  ;;  %vm1763_vm5 = vcmp.eq.f32.partialorder %v1762_v62, 8.507059e+37  ;;  %v9256_v56 = vmul.f32 %v2131_v59, %v8292_v58  ;;  %v1776_v52 = vsel %vm9249_vm7, %v9101_v49, %v1772_v9  ;;  %v1780_v62 = vor.u32 1.1754944e-38, %v1779_v11 }
 0x2b1   : > { %v9214_v32 = vpop.permute.xlu0 %2182  ;;  %v2086_v55 = vmul.f32 %v6752_v45, %v2085_v7  ;;  %2158 = vrot.lane.b32.xlu0 %v1841_v51, %s7112_s1  ;;  %v1844_v7 = vmul.f32 %v9159_v17, %v9103_v61  ;;  %v1766_v25 = vsel %vm1763_vm5, %v1765_v36, %v1761_v44  ;;  %vm1803_vm9 = vweird.f32 %v9060_v4 }
 0x2b2   : > { %v2539_v51 = vmul.f32 %v9116_v60, %v2538_v34  ;;  %v1509_v58 = vsub.f32 0.0, %v9163_v30  ;;  %vm9269_vm11 = vmor %vm1803_vm9, %vm1804_vm8  ;;  %v1807_v19 = vand.u32 2147483647, %v9060_v4  ;;  %v1814_v49 = vmul.f32 %v9134_v57, %v9072_v53 }
 0x2b3   : > { %v2087_v21 = vadd.f32 %v6752_v45, %v2086_v55  ;;  %v1845_v55 = vsub.f32 1.0, %v1844_v7  ;;  %v9277_v36 = vadd.f32 1.0, %v9186_v43  ;;  %6755 = vpow2.f32 %v1562_v20  ;;  %v2179_v20 = vpop.permute.xlu2 %2178 }
 0x2b4   : > { %v1781_v44 = vsel %vm1778_vm10, %v1780_v62, %v1776_v52  ;;  %v1806_v2 = vsel %vm9269_vm11, %v9127_v42, %v1802_v54  ;;  %v2615_v4 = vadd.f32 %v9173_v5, %v2614_v13  ;;  %vm2617_vm12 = vweird.f32 %v9173_v5 }
 0x2b5   : > { %v2091_v48 = vsel %vm2090_vm2, %v6752_v45, %v2087_v21  ;;  %v1846_v43 = vmul.f32 %v9159_v17, %v1845_v55  ;;  %v2620_v50 = vand.u32 2147483647, %v9108_v31  ;;  %v2622_v9 = vand.u32 2147483648, %v9108_v31  ;;  %vm9298_vm1 = vmor %vm2616_vm13, %vm2617_vm12 }
 0x2b6   : > { %v2096_v37 = vsel %vm2093_vm4, %v2095_v28, %v2091_v48  ;;  %v1373_v28 = vpop.f32.mrf.mxu0  ;;  %v9282_v48 = vpop.eup %6753  ;;  %v1810_v59 = vor.u32 1.1754944e-38, %v1809_v40  ;;  %v2540_v42 = vadd.f32 %v9116_v60, %v2539_v51  ;;  %vm1808_vm15 = vcmp.eq.f32.partialorder %v1807_v19, 8.507059e+37 }
 0x2b7   : > { %2192 = vrot.lane.b32.xlu1 %v2096_v37, %s7112_s1  ;;  %v9294_v37 = vadd.f32 %v1373_v28, %v8268_v18  ;;  %v1815_v11 = vsub.f32 1.0, %v1814_v49  ;;  %vm2541_vm2 = vweird.f32 %v9050_v22  ;;  %v2545_v46 = vand.u32 2147483647, %v9050_v22 }
 0x2b8   : > { %2148 = vrot.lane.b32.xlu2 %v1766_v25, %s7112_s1  ;;  %v1811_v7 = vsel %vm1808_vm15, %v1810_v59, %v1806_v2  ;;  %v2547_v29 = vand.u32 2147483648, %v9050_v22  ;;  %v2619_v31 = vsel %vm9298_vm1, %v9173_v5, %v2615_v4  ;;  %vm9311_vm3 = vmor %vm2541_vm2, %vm2542_vm14  ;;  %v1847_v45 = vadd.f32 %v9159_v17, %v1846_v43 }
 0x2b9   : > { %v9263_v3 = vpop.permute.xlu0 %5828  ;;  %2914 = vrot.lane.b32.xlu0 %v9256_v56, %s7111_s22  ;;  %vm1849_vm4 = vweird.f32 %v9159_v17  ;;  %v1874_v22 = vmul.f32 %v9282_v48, %v9154_v10  ;;  %v6756_v54 = vpop.eup %6755  ;;  %vm2621_vm5 = vcmp.eq.f32.partialorder %v2620_v50, 8.507059e+37  ;;  %v2623_v13 = vor.u32 1.1754944e-38, %v2622_v9 }
 0x2ba   : > { %13884 = vst [vmem:[#allocation35_spill] sm:$0xff] %v9263_v3  ;;  %v2544_v5 = vsel %vm9311_vm3, %v9116_v60, %v2540_v42  ;;  %v1854_v52 = vand.u32 2147483648, %v9103_v61  ;;  %v1852_v55 = vand.u32 2147483647, %v9103_v61  ;;  %v1816_v62 = vmul.f32 %v9134_v57, %v1815_v11  ;;  %vm1850_vm7 = vmor %vm1848_vm6, %vm1849_vm4 }
 0x2bb   : > { %v2597_v40 = vmul.f32 %v9152_v26, %v9095_v15  ;;  %6757 = vrcp.f32 %v9277_v36  ;;  %v1511_v51 = vsub.f32 0.0, %v9294_v37  ;;  %v2624_v21 = vsel %vm2621_vm5, %v2623_v13, %v2619_v31 }
 0x2bc   : > { %v2548_v49 = vor.u32 1.1754944e-38, %v2547_v29  ;;  %vm2546_vm8 = vcmp.eq.f32.partialorder %v2545_v46, 8.507059e+37  ;;  %v1851_v61 = vsel %vm1850_vm7, %v9159_v17, %v1847_v45  ;;  %v1875_v60 = vsub.f32 1.0, %v1874_v22 }
 0x2bd   : > { %v1560_v28 = vmul.f32 1.442695, %v1509_v58  ;;  %v1855_v2 = vor.u32 1.1754944e-38, %v1854_v52  ;;  %vm1853_vm9 = vcmp.eq.f32.partialorder %v1852_v55, 8.507059e+37  ;;  %v1817_v4 = vadd.f32 %v9134_v57, %v1816_v62 }
 0x2be   : > { %vm1819_vm10 = vweird.f32 %v9134_v57  ;;  %v2598_v43 = vsub.f32 1.0, %v2597_v40  ;;  %v1564_v50 = vmul.f32 1.442695, %v1511_v51  ;;  %v1824_v59 = vand.u32 2147483648, %v9072_v53 }
 0x2bf   : > { %2150 = vrot.lane.b32.xlu1 %v1781_v44, %s7112_s1  ;;  %v2549_v44 = vsel %vm2546_vm8, %v2548_v49, %v2544_v5  ;;  %v1856_v9 = vsel %vm1853_vm9, %v1855_v2, %v1851_v61  ;;  %v1876_v17 = vmul.f32 %v9282_v48, %v1875_v60  ;;  %vm1818_vm11 = vweird.f32 %v9072_v53  ;;  %v1376_v61 = vpop.f32.mrf.mxu0 }
 0x2c0   : > { %2154 = vrot.lane.b32.xlu2 %v1811_v7, %s7112_s1  ;;  %v1822_v58 = vand.u32 2147483647, %v9072_v53  ;;  %6759 = vpow2.f32 %v1560_v28  ;;  %vm9346_vm12 = vmor %vm1818_vm11, %vm1819_vm10  ;;  %v9351_v34 = vmul.f32 %v2179_v20, %v8540_v33  ;;  %v2133_v7 = vpop.permute.xlu2 %2132  ;;  %v2599_v29 = vmul.f32 %v9152_v26, %v2598_v43 }
 0x2c1   : > { %5852 = vrot.lane.b32.xlu0 %v2624_v21, %s7111_s22  ;;  %v9344_v42 = vpop.eup %6757  ;;  %v1821_v46 = vsel %vm9346_vm12, %v9134_v57, %v1817_v4  ;;  %v1859_v53 = vmul.f32 %v9181_v63, %v9118_v1  ;;  %v9359_v31 = vadd.f32 1.0, %v6756_v54  ;;  %6761 = vpow2.f32 %v1564_v50 }
 0x2c2   : > { %v9330_v19 = vpop.permute.xlu0 %5830  ;;  %v1825_v25 = vor.u32 1.1754944e-38, %v1824_v59  ;;  %v1877_v33 = vadd.f32 %v9282_v48, %v1876_v17  ;;  %vm1879_vm14 = vweird.f32 %v9282_v48  ;;  %vm1823_vm13 = vcmp.eq.f32.partialorder %v1822_v58, 8.507059e+37 }
 0x2c3   : > { %13891 = vst [vmem:[#allocation36_spill] sm:$0xff] %v9330_v19  ;;  %v1889_v57 = vmul.f32 %v9344_v42, %v9277_v36  ;;  %v9370_v20 = vmul.f32 %v2133_v7, %v8468_v6  ;;  %vm1878_vm15 = vweird.f32 %v9154_v10  ;;  %v1884_v22 = vand.u32 2147483648, %v9154_v10 }
 0x2c4   : > { %v1826_v54 = vsel %vm1823_vm13, %v1825_v25, %v1821_v46  ;;  %v1882_v13 = vand.u32 2147483647, %v9154_v10  ;;  %v2600_v5 = vadd.f32 %v9152_v26, %v2599_v29  ;;  %vm2602_vm1 = vweird.f32 %v9152_v26  ;;  %vm9379_vm2 = vmor %vm1878_vm15, %vm1879_vm14 }
 0x2c5   : > { %13894 = vst [vmem:[#allocation37_spill] sm:$0xff] %v9370_v20  ;;  %v1860_v52 = vsub.f32 1.0, %v1859_v53  ;;  %6763 = vrcp.f32 %v9359_v31  ;;  %v2607_v62 = vand.u32 2147483648, %v9095_v15  ;;  %v1881_v10 = vsel %vm9379_vm2, %v9282_v48, %v1877_v33 }
 0x2c6   : > { %v6760_v55 = vpop.eup %6759  ;;  %vm2601_vm3 = vweird.f32 %v9095_v15  ;;  %v2605_v40 = vand.u32 2147483647, %v9095_v15  ;;  %v1890_v51 = vsub.f32 1.0, %v1889_v57  ;;  %v1885_v49 = vor.u32 1.1754944e-38, %v1884_v22 }
 0x2c7   : > { %5842 = vrot.lane.b32.xlu1 %v2549_v44, %s7111_s22  ;;  %v6762_v21 = vpop.eup %6761  ;;  %vm2603_vm4 = vmor %vm2601_vm3, %vm2602_vm1  ;;  %vm1883_vm5 = vcmp.eq.f32.partialorder %v1882_v13, 8.507059e+37  ;;  %v1861_v28 = vmul.f32 %v9181_v63, %v1860_v52  ;;  %v2181_v44 = vpop.permute.xlu1 %2180  ;;  %v2608_v48 = vor.u32 1.1754944e-38, %v2607_v62  ;;  %v9397_v15 = vadd.f32 1.0, %v6760_v55 }
 0x2c8   : > { %2160 = vrot.lane.b32.xlu2 %v1856_v9, %s7112_s1  ;;  %v2604_v60 = vsel %vm2603_vm4, %v9152_v26, %v2600_v5  ;;  %v1886_v2 = vsel %vm1883_vm5, %v1885_v49, %v1881_v10  ;;  %vm2606_vm6 = vcmp.eq.f32.partialorder %v2605_v40, 8.507059e+37  ;;  %v1891_v4 = vmul.f32 %v9344_v42, %v1890_v51  ;;  %v2137_v50 = vpop.permute.xlu2 %2136  ;;  %v1378_v5 = vpop.f32.mrf.mxu0 }
 0x2c9   : > { %4330 = vrot.lane.b32.xlu0 %v9351_v34, %s7111_s22  ;;  %v2609_v9 = vsel %vm2606_vm6, %v2608_v48, %v2604_v60  ;;  %v9400_v59 = vmul.f32 %v2181_v44, %v8551_v23  ;;  %v1862_v17 = vadd.f32 %v9181_v63, %v1861_v28  ;;  %vm1864_vm7 = vweird.f32 %v9181_v63 }
 0x2ca   : > { %v9363_v45 = vpop.permute.xlu0 %2140  ;;  %v9407_v58 = vadd.f32 1.0, %v6762_v21  ;;  %v9410_v11 = vadd.f32 %v1376_v61, %v8268_v18  ;;  %vm1863_vm8 = vweird.f32 %v9118_v1  ;;  %v1869_v7 = vand.u32 2147483648, %v9118_v1 }
 0x2cb   : > { %v9395_v43 = vpop.eup %6763  ;;  %13897 = vst [vmem:[#allocation38_spill] sm:$0xff] %v9400_v59  ;;  %v1867_v23 = vand.u32 2147483647, %v9118_v1  ;;  %v1892_v46 = vadd.f32 %v9344_v42, %v1891_v4  ;;  %vm1894_vm9 = vweird.f32 %v9344_v42  ;;  %6765 = vrcp.f32 %v9397_v15  ;;  %vm9422_vm10 = vmor %vm1863_vm8, %vm1864_vm7 }
 0x2cc   : > { %v1919_v29 = vmul.f32 %v9395_v43, %v9359_v31  ;;  %v1899_v25 = vand.u32 2147483648, %v9277_v36  ;;  %v9428_v33 = vmul.f32 %v2137_v50, %v8511_v38  ;;  %v1866_v1 = vsel %vm9422_vm10, %v9181_v63, %v1862_v17 }
 0x2cd   : > { %vm1893_vm11 = vweird.f32 %v9277_v36  ;;  %v1897_v57 = vand.u32 2147483647, %v9277_v36  ;;  %6767 = vrcp.f32 %v9407_v58  ;;  %v1870_v22 = vor.u32 1.1754944e-38, %v1869_v7 }
 0x2ce   : > { %13901 = vst [vmem:[#allocation40_spill] sm:$0xff] %v9428_v33  ;;  %vm9436_vm12 = vmor %vm1893_vm11, %vm1894_vm9  ;;  %v1512_v13 = vsub.f32 0.0, %v9410_v11  ;;  %vm1868_vm14 = vcmp.eq.f32.partialorder %v1867_v23, 8.507059e+37  ;;  %v1920_v63 = vsub.f32 1.0, %v1919_v29  ;;  %v1900_v52 = vor.u32 1.1754944e-38, %v1899_v25 }
 0x2cf   : > { %2156 = vrot.lane.b32.xlu1 %v1826_v54, %s7112_s1  ;;  %v1896_v38 = vsel %vm9436_vm12, %v9344_v42, %v1892_v46  ;;  %v1871_v36 = vsel %vm1868_vm14, %v1870_v22, %v1866_v1  ;;  %vm1898_vm13 = vcmp.eq.f32.partialorder %v1897_v57, 8.507059e+37  ;;  %v9452_v62 = vadd.f32 %v1378_v5, %v8268_v18  ;;  %v2139_v28 = vpop.permute.xlu1 %2138 }
 0x2d0   : > { %2916 = vrot.lane.b32.xlu2 %v9370_v20, %s7111_s22  ;;  %v2185_v10 = vpop.permute.xlu2 %2184  ;;  %v1901_v40 = vsel %vm1898_vm13, %v1900_v52, %v1896_v38  ;;  %v1566_v51 = vmul.f32 1.442695, %v1512_v13  ;;  %v1921_v42 = vmul.f32 %v9395_v43, %v1920_v63  ;;  %v9465_v60 = vmul.f32 %v9110_v14, %v8368_v16 }
 0x2d1   : > { %2164 = vrot.lane.b32.xlu0 %v1886_v2, %s7112_s1  ;;  %v9449_v6 = vpop.eup %6765  ;;  %v9459_v49 = vmul.f32 %v2185_v10, %v8597_v8  ;;  %v1513_v18 = vsub.f32 0.0, %v9452_v62  ;;  %vm1924_vm15 = vweird.f32 %v9395_v43  ;;  %v1929_v2 = vand.u32 2147483648, %v9359_v31 }
 0x2d2   : > { %v9402_v26 = vpop.permute.xlu0 %5832  ;;  %v1904_v61 = vmul.f32 %v9449_v6, %v9397_v15  ;;  %13905 = vst [vmem:[#allocation42_spill] sm:$0xff] %v9465_v60  ;;  %6769 = vpow2.f32 %v1566_v51  ;;  %v1922_v44 = vadd.f32 %v9395_v43, %v1921_v42  ;;  %v9476_v48 = vmul.f32 %v2139_v28, %v8517_v0 }
 0x2d3   : > { %13898 = vst [vmem:[#allocation39_spill] sm:$0xff] %v9402_v26  ;;  %v9456_v21 = vpop.eup %6767  ;;  %vm1923_vm1 = vweird.f32 %v9359_v31  ;;  %v1927_v14 = vand.u32 2147483647, %v9359_v31  ;;  %v1568_v50 = vmul.f32 1.442695, %v1513_v18  ;;  %v1930_v0 = vor.u32 1.1754944e-38, %v1929_v2 }
 0x2d4   : > { %13904 = vst [vmem:[#allocation41_spill] sm:$0xff] %v9459_v49  ;;  %v1934_v8 = vmul.f32 %v9456_v21, %v9407_v58  ;;  %v1905_v4 = vsub.f32 1.0, %v1904_v61  ;;  %vm1925_vm2 = vmor %vm1923_vm1, %vm1924_vm15  ;;  %v9490_v29 = vmul.f32 %v9214_v32, %v8573_v24  ;;  %vm1909_vm4 = vweird.f32 %v9449_v6 }
 0x2d5   : > { %13906 = vst [vmem:[#allocation43_spill] sm:$0xff] %v9476_v48  ;;  %vm1928_vm3 = vcmp.eq.f32.partialorder %v1927_v14, 8.507059e+37  ;;  %6771 = vpow2.f32 %v1568_v50  ;;  %v1914_v24 = vand.u32 2147483648, %v9397_v15  ;;  %vm1939_vm5 = vweird.f32 %v9456_v21 }
 0x2d6   : > { %v1935_v17 = vsub.f32 1.0, %v1934_v8  ;;  %v1906_v23 = vmul.f32 %v9449_v6, %v1905_v4  ;;  %13908 = vst [vmem:[#allocation45_spill] sm:$0xff] %v9490_v29  ;;  %vm1908_vm6 = vweird.f32 %v9397_v15  ;;  %v1944_v13 = vand.u32 2147483648, %v9407_v58 }
 0x2d7   : > { %5850 = vrot.lane.b32.xlu1 %v2609_v9, %s7111_s22  ;;  %v1926_v9 = vsel %vm1925_vm2, %v9395_v43, %v1922_v44  ;;  %v2187_v46 = vpop.permute.xlu1 %2186  ;;  %vm1910_vm7 = vmor %vm1908_vm6, %vm1909_vm4  ;;  %vm1938_vm8 = vweird.f32 %v9407_v58  ;;  %v1942_v38 = vand.u32 2147483647, %v9407_v58  ;;  %v9526_v61 = vmul.f32 %v9363_v45, %v8548_v39 }
 0x2d8   : > { %4332 = vrot.lane.b32.xlu2 %v9400_v59, %s7111_s22  ;;  %v6770_v7 = vpop.eup %6769  ;;  %v1931_v31 = vsel %vm1928_vm3, %v1930_v0, %v1926_v9  ;;  %v1936_v43 = vmul.f32 %v9456_v21, %v1935_v17  ;;  %v9495_v25 = vmul.f32 %v2187_v46, %v8650_v47  ;;  %v1907_v57 = vadd.f32 %v9449_v6, %v1906_v23  ;;  %v2143_v22 = vpop.permute.xlu2 %2142  ;;  %vm1940_vm9 = vmor %vm1938_vm8, %vm1939_vm5 }
 0x2d9   : > { %3034 = vrot.lane.b32.xlu0 %v9428_v33, %s7111_s22  ;;  %v1608_v53 = vadd.f32 1.0, %v6770_v7  ;;  %v1912_v47 = vand.u32 2147483647, %v9397_v15  ;;  %v9512_v5 = vmul.f32 %v2143_v22, %v8569_v27  ;;  %v1945_v10 = vor.u32 1.1754944e-38, %v1944_v13  ;;  %13912 = vst [vmem:[#allocation49_spill] sm:$0xff] %v9526_v61  ;;  %v13916_v7 = vld [vmem:[#allocation28_spill] sm:$0xff] }
 0x2da   : > { %v9446_v55 = vpop.permute.xlu0 %2188  ;;  %13909 = vst [vmem:[#allocation46_spill] sm:$0xff] %v9495_v25  ;;  %v1937_v32 = vadd.f32 %v9456_v21, %v1936_v43  ;;  %v1911_v63 = vsel %vm1910_vm7, %v9449_v6, %v1907_v57  ;;  %vm1943_vm11 = vcmp.eq.f32.partialorder %v1942_v38, 8.507059e+37  ;;  %v4287_v3 = vrot.slane %v9351_v34, 4 }
 0x2db   : > { %v6772_v54 = vpop.eup %6771  ;;  %6773 = vrcp.f32 %v1608_v53  ;;  %13910 = vst [vmem:[#allocation47_spill] sm:$0xff] %v9512_v5  ;;  %vm1913_vm10 = vcmp.eq.f32.partialorder %v1912_v47, 8.507059e+37  ;;  %v9539_v14 = vmul.f32 %v9446_v55, %v8726_v12  ;;  %v1959_v4 = vand.u32 2147483648, %v1608_v53 }
 0x2dc   : > { %v1609_v52 = vadd.f32 1.0, %v6772_v54  ;;  %v1941_v15 = vsel %vm1940_vm9, %v9456_v21, %v1937_v32  ;;  %vm1953_vm14 = vweird.f32 %v1608_v53  ;;  %v1957_v50 = vand.u32 2147483647, %v1608_v53  ;;  %v13919_v32 = vld [vmem:[#allocation17_spill] sm:$0xff] }
 0x2dd   : > { %v1946_v58 = vsel %vm1943_vm11, %v1945_v10, %v1941_v15  ;;  %13915 = vst [vmem:[#allocation52_spill] sm:$0xff] %v9539_v14  ;;  %v1960_v46 = vor.u32 1.1754944e-38, %v1959_v4 }
 0x2de   : > { %6775 = vrcp.f32 %v1609_v52  ;;  %vm1958_vm15 = vcmp.eq.f32.partialorder %v1957_v50, 8.507059e+37  ;;  %v1974_v43 = vand.u32 2147483648, %v1609_v52  ;;  %vm1968_vm2 = vweird.f32 %v1609_v52 }
 0x2df   : > { %2162 = vrot.lane.b32.xlu1 %v1871_v36, %s7112_s1  ;;  %v1915_v36 = vor.u32 1.1754944e-38, %v1914_v24  ;;  %v2145_v42 = vpop.permute.xlu1 %2144 }
 0x2e0   : > { %2166 = vrot.lane.b32.xlu2 %v1901_v40, %s7112_s1  ;;  %v9529_v18 = vmul.f32 %v2145_v42, %v8616_v41  ;;  %v1975_v24 = vor.u32 1.1754944e-38, %v1974_v43  ;;  %v13930_v42 = vld [vmem:[#allocation22_spill] sm:$0xff] }
 0x2e1   : > { %4450 = vrot.lane.b32.xlu0 %v9459_v49, %s7111_s22  ;;  %v1916_v40 = vsel %vm1913_vm10, %v1915_v36, %v1911_v63  ;;  %v6774_v27 = vpop.eup %6773  ;;  %v13922_v63 = vld [vmem:[#allocation19_spill] sm:$0xff] }
 0x2e2   : > { %v9478_v16 = vpop.permute.xlu0 %5834  ;;  %v1949_v6 = vmul.f32 %v6774_v27, %v1608_v53  ;;  %13913 = vst [vmem:[#allocation50_spill] sm:$0xff] %v9529_v18  ;;  %vm1954_vm12 = vweird.f32 %v6774_v27  ;;  %v1972_v53 = vand.u32 2147483647, %v1609_v52 }
 0x2e3   : > { %13907 = vst [vmem:[#allocation44_spill] sm:$0xff] %v9478_v16  ;;  %vm1955_vm13 = vmor %vm1953_vm14, %vm1954_vm12 }
 0x2e4   : > { %v6776_v21 = vpop.eup %6775  ;;  %v1950_v44 = vsub.f32 1.0, %v1949_v6  ;;  %vm1973_vm4 = vcmp.eq.f32.partialorder %v1972_v53, 8.507059e+37 }
 0x2e5   : > { %v1964_v8 = vmul.f32 %v6776_v21, %v1609_v52  ;;  %vm1969_vm1 = vweird.f32 %v6776_v21  ;;  %v13924_v52 = vld [vmem:[#allocation16_spill] sm:$0xff] }
 0x2e6   : > { %v1951_v2 = vmul.f32 %v6774_v27, %v1950_v44  ;;  %vm1970_vm3 = vmor %vm1968_vm2, %vm1969_vm1 }
 0x2e7   : > { %3032 = vrot.lane.b32.xlu1 %v9465_v60, %s7111_s22  ;;  %v1965_v39 = vsub.f32 1.0, %v1964_v8  ;;  %v9572_v10 = vpop.permute.xlu1 %5836  ;;  %v13932_v8 = vld [vmem:[#allocation31_spill] sm:$0xff] }
 0x2e8   : > { %3150 = vrot.lane.b32.xlu2 %v9476_v48, %s7111_s22  ;;  %v1952_v41 = vadd.f32 %v6774_v27, %v1951_v2  ;;  %13927 = vst [vmem:[#allocation56_spill] sm:$0xff] %v9572_v10 }
 0x2e9   : > { %2170 = vrot.lane.b32.xlu0 %v1931_v31, %s7112_s1  ;;  %v1966_v9 = vmul.f32 %v6776_v21, %v1965_v39 }
 0x2ea   : > { %v9497_v1 = vpop.permute.xlu0 %2146  ;;  %v1956_v0 = vsel %vm1955_vm13, %v6774_v27, %v1952_v41  ;;  %v13928_v27 = vld [vmem:[#allocation20_spill] sm:$0xff] }
 0x2eb   : > { %v1961_v12 = vsel %vm1958_vm15, %v1960_v46, %v1956_v0  ;;  %v1967_v55 = vadd.f32 %v6776_v21, %v1966_v9  ;;  %v9553_v47 = vmul.f32 %v9497_v1, %v13919_v32  ;;  %v13938_v9 = vld [vmem:[#allocation18_spill] sm:$0xff] }
 0x2ed   : > { %v1971_v57 = vsel %vm1970_vm3, %v6776_v21, %v1967_v55  ;;  %13920 = vst [vmem:[#allocation17_spill] sm:$0xff] %v9553_v47  ;;  %v13942_v55 = vld [vmem:[#allocation32_spill] sm:$0xff] }
 0x2ee   : > { %v1976_v54 = vsel %vm1973_vm4, %v1975_v24, %v1971_v57 }
 0x2ef   : > { %4448 = vrot.lane.b32.xlu1 %v9490_v29, %s7111_s22 }
 0x2f0   : > { %4566 = vrot.lane.b32.xlu2 %v9495_v25, %s7111_s22 }
 0x2f1   : > { %3268 = vrot.lane.b32.xlu0 %v9512_v5, %s7111_s22 }
 0x2f2   : > { %v9520_v51 = vpop.permute.xlu0 %5838 }
 0x2f3   : > { %13911 = vst [vmem:[#allocation48_spill] sm:$0xff] %v9520_v51  ;;  %v2990_v51 = vrot.slane %v9465_v60, 5 }
 0x2f7   : > { %2168 = vrot.lane.b32.xlu1 %v1916_v40, %s7112_s1 }
 0x2f8   : > { %2172 = vrot.lane.b32.xlu2 %v1946_v58, %s7112_s1 }
 0x2fa   : > { %v9531_v28 = vpop.permute.xlu0 %5840 }
 0x2fb   : > { %13914 = vst [vmem:[#allocation51_spill] sm:$0xff] %v9531_v28 }
 0x2ff   : > { %3152 = vrot.lane.b32.xlu1 %v9526_v61, %s7111_s22 }
 0x300   : > { %3270 = vrot.lane.b32.xlu2 %v9529_v18, %s7111_s22 }
 0x302   : > { %v2153_v45 = vpop.permute.xlu0 %2152 }
 0x303   : > { %v9564_v15 = vmul.f32 %v2153_v45, %v13924_v52  ;;  %v13935_v45 = vld [vmem:[#allocation23_spill] sm:$0xff] }
 0x305   : > { %13925 = vst [vmem:[#allocation16_spill] sm:$0xff] %v9564_v15 }
 0x307   : > { %4568 = vrot.lane.b32.xlu1 %v9539_v14, %s7111_s22 }
 0x30a   : > { %v2191_v17 = vpop.permute.xlu2 %2190  ;;  %v9548_v31 = vpop.permute.xlu0 %5844 }
 0x30b   : > { %v9544_v23 = vmul.f32 %v2191_v17, %v13916_v7  ;;  %13918 = vst [vmem:[#allocation53_spill] sm:$0xff] %v9548_v31 }
 0x30d   : > { %13917 = vst [vmem:[#allocation28_spill] sm:$0xff] %v9544_v23  ;;  %4684 = vrot.lane.b32.xlu0 %v9544_v23, %s7111_s22 }
 0x30f   : > { %2174 = vrot.lane.b32.xlu1 %v1961_v12, %s7112_s1 }
 0x312   : > { %v2149_v22 = vpop.permute.xlu2 %2148  ;;  %v9556_v13 = vpop.permute.xlu0 %5846 }
 0x313   : > { %13921 = vst [vmem:[#allocation54_spill] sm:$0xff] %v9556_v13  ;;  %v9561_v36 = vmul.f32 %v2149_v22, %v13922_v63  ;;  %v13945_v22 = vld [vmem:[#allocation24_spill] sm:$0xff] }
 0x315   : > { %2176 = vrot.lane.b32.xlu0 %v1976_v54, %s7112_s1  ;;  %13923 = vst [vmem:[#allocation19_spill] sm:$0xff] %v9561_v36 }
 0x317   : > { %3386 = vrot.lane.b32.xlu1 %v9553_v47, %s7111_s22 }
 0x31a   : > { %v2155_v38 = vpop.permute.xlu2 %2154 }
 0x31b   : > { %v9568_v1 = vpop.permute.xlu0 %5848  ;;  %v9575_v58 = vmul.f32 %v2155_v38, %v13928_v27  ;;  %v13948_v38 = vld [vmem:[#allocation29_spill] sm:$0xff] }
 0x31c   : > { %13926 = vst [vmem:[#allocation55_spill] sm:$0xff] %v9568_v1  ;;  %v9682_v1 = vperm.slane %v2990_v51, 0  ;;  %v4290_v51 = vrot.slane %v9351_v34, 7 }
 0x31d   : > { %3388 = vrot.lane.b32.xlu0 %v9561_v36, %s7111_s22  ;;  %13929 = vst [vmem:[#allocation20_spill] sm:$0xff] %v9575_v58 }
 0x31e   : > { %13967 = vst [vmem:[#allocation78_spill] sm:$0xff] %v9682_v1 }
 0x31f   : > { %3506 = vrot.lane.b32.xlu1 %v9564_v15, %s7111_s22 }
 0x322   : > { %v2161_v40 = vpop.permute.xlu2 %2160 }
 0x323   : > { %v2159_v6 = vpop.permute.xlu0 %2158  ;;  %v9590_v41 = vmul.f32 %v2161_v40, %v13935_v45 }
 0x324   : > { %v9580_v21 = vmul.f32 %v2159_v6, %v13930_v42  ;;  %v13953_v42 = vld [vmem:[#allocation26_spill] sm:$0xff] }
 0x325   : > { %3622 = vrot.lane.b32.xlu0 %v9575_v58, %s7111_s22  ;;  %13936 = vst [vmem:[#allocation23_spill] sm:$0xff] %v9590_v41 }
 0x326   : > { %13931 = vst [vmem:[#allocation22_spill] sm:$0xff] %v9580_v21 }
 0x327   : > { %3740 = vrot.lane.b32.xlu1 %v9580_v21, %s7111_s22 }
 0x329   : > { %v2193_v44 = vpop.permute.xlu1 %2192 }
 0x32a   : > { %v9585_v2 = vmul.f32 %v2193_v44, %v13932_v8  ;;  %v9587_v39 = vpop.permute.xlu2 %2916 }
 0x32b   : > { %13934 = vst [vmem:[#allocation57_spill] sm:$0xff] %v9587_v39  ;;  %v9596_v4 = vpop.permute.xlu0 %2914 }
 0x32c   : > { %13933 = vst [vmem:[#allocation31_spill] sm:$0xff] %v9585_v2  ;;  %4686 = vrot.lane.b32.xlu2 %v9585_v2, %s7111_s22 }
 0x32d   : > { %3742 = vrot.lane.b32.xlu0 %v9590_v41, %s7111_s22  ;;  %13937 = vst [vmem:[#allocation58_spill] sm:$0xff] %v9596_v4 }
 0x331   : > { %v2151_v50 = vpop.permute.xlu1 %2150 }
 0x332   : > { %v9599_v17 = vmul.f32 %v2151_v50, %v13938_v9  ;;  %v9601_v0 = vpop.permute.xlu2 %4332  ;;  %v2869_v9 = vrot.slane %v9256_v56, 2 }
 0x333   : > { %13939 = vst [vmem:[#allocation18_spill] sm:$0xff] %v9601_v0  ;;  %v9605_v7 = vpop.permute.xlu0 %5852  ;;  %v3225_v0 = vrot.slane %v9512_v5, 4 }
 0x334   : > { %3504 = vrot.lane.b32.xlu2 %v9599_v17, %s7111_s22  ;;  %13940 = vst [vmem:[#allocation59_spill] sm:$0xff] %v9605_v7  ;;  %v9659_v28 = vperm.slane %v2869_v9, 0  ;;  %v2989_v7 = vrot.slane %v9465_v60, 4  ;;  %v2992_v9 = vrot.slane %v9465_v60, 7 }
 0x336   : > { %13958 = vst [vmem:[#allocation69_spill] sm:$0xff] %v9659_v28 }
 0x339   : > { %v9607_v46 = vpop.permute.xlu1 %5842 }
 0x33a   : > { %13941 = vst [vmem:[#allocation60_spill] sm:$0xff] %v9607_v46  ;;  %v2167_v12 = vpop.permute.xlu2 %2166  ;;  %v2988_v46 = vrot.slane %v9465_v60, 3 }
 0x33b   : > { %v9610_v43 = vmul.f32 %v2167_v12, %v13942_v55  ;;  %v9614_v53 = vpop.permute.xlu0 %4330  ;;  %v2868_v12 = vrot.slane %v9256_v56, 1  ;;  %v2872_v55 = vrot.slane %v9256_v56, 5 }
 0x33c   : > { %13944 = vst [vmem:[#allocation61_spill] sm:$0xff] %v9614_v53 }
 0x33d   : > { %13943 = vst [vmem:[#allocation32_spill] sm:$0xff] %v9610_v43  ;;  %3976 = vrot.lane.b32.xlu0 %v9610_v43, %s7111_s22  ;;  %v9661_v16 = vperm.slane %v2868_v12, 0  ;;  %v9663_v10 = vperm.slane %v2872_v55, 0  ;;  %v4285_v55 = vrot.slane %v9351_v34, 2 }
 0x33f   : > { %13959 = vst [vmem:[#allocation70_spill] sm:$0xff] %v9661_v16 }
 0x340   : > { %13960 = vst [vmem:[#allocation71_spill] sm:$0xff] %v9663_v10 }
 0x341   : > { %v2157_v57 = vpop.permute.xlu1 %2156 }
 0x342   : > { %v9617_v24 = vmul.f32 %v2157_v57, %v13945_v22  ;;  %v9619_v32 = vpop.permute.xlu2 %3150  ;;  %v2871_v57 = vrot.slane %v9256_v56, 4  ;;  %v2870_v22 = vrot.slane %v9256_v56, 3 }
 0x343   : > { %13947 = vst [vmem:[#allocation62_spill] sm:$0xff] %v9619_v32  ;;  %v2165_v54 = vpop.permute.xlu0 %2164  ;;  %v2875_v32 = vrot.slane %v9370_v20, 1 }
 0x344   : > { %13946 = vst [vmem:[#allocation24_spill] sm:$0xff] %v9617_v24  ;;  %3624 = vrot.lane.b32.xlu2 %v9617_v24, %s7111_s22  ;;  %v9624_v63 = vmul.f32 %v2165_v54, %v13948_v38  ;;  %v2987_v38 = vrot.slane %v9465_v60, 2  ;;  %v9668_v31 = vperm.slane %v2870_v22, 0  ;;  %v2991_v22 = vrot.slane %v9465_v60, 6 }
 0x345   : > { %v3227_v24 = vrot.slane %v9512_v5, 6 }
 0x346   : > { %13949 = vst [vmem:[#allocation29_spill] sm:$0xff] %v9624_v63  ;;  %3860 = vrot.lane.b32.xlu1 %v9624_v63, %s7111_s22  ;;  %v9673_v19 = vperm.slane %v2987_v38, 0  ;;  %v4288_v38 = vrot.slane %v9351_v34, 5 }
 0x347   : > { %13962 = vst [vmem:[#allocation73_spill] sm:$0xff] %v9668_v31 }
 0x348   : > { %13964 = vst [vmem:[#allocation75_spill] sm:$0xff] %v9673_v19  ;;  %v4289_v19 = vrot.slane %v9351_v34, 6 }
 0x349   : > { %v9626_v52 = vpop.permute.xlu1 %5850 }
 0x34a   : > { %13950 = vst [vmem:[#allocation63_spill] sm:$0xff] %v9626_v52  ;;  %v9630_v40 = vpop.permute.xlu2 %4566  ;;  %v9665_v52 = vperm.slane %v2871_v57, 0 }
 0x34b   : > { %13951 = vst [vmem:[#allocation64_spill] sm:$0xff] %v9630_v40  ;;  %v9632_v27 = vpop.permute.xlu0 %3034  ;;  %v3226_v40 = vrot.slane %v9512_v5, 5 }
 0x34c   : > { %13952 = vst [vmem:[#allocation65_spill] sm:$0xff] %v9632_v27 }
 0x34d   : > { %13961 = vst [vmem:[#allocation72_spill] sm:$0xff] %v9665_v52 }
 0x351   : > { %v2163_v6 = vpop.permute.xlu1 %2162 }
 0x352   : > { %v9635_v44 = vmul.f32 %v2163_v6, %v13953_v42  ;;  %v2173_v8 = vpop.permute.xlu2 %2172  ;;  %v2873_v6 = vrot.slane %v9256_v56, 6  ;;  %v2986_v42 = vrot.slane %v9465_v60, 1 }
 0x353   : > { %v9638_v45 = vmul.f32 %v2173_v8, %v9294_v37  ;;  %v9644_v50 = vpop.permute.xlu0 %4450  ;;  %v2874_v37 = vrot.slane %v9256_v56, 7  ;;  %v4286_v8 = vrot.slane %v9351_v34, 3 }
 0x354   : > { %13954 = vst [vmem:[#allocation26_spill] sm:$0xff] %v9635_v44  ;;  %3858 = vrot.lane.b32.xlu2 %v9635_v44, %s7111_s22  ;;  %v9677_v12 = vperm.slane %v2873_v6, 0  ;;  %v9680_v57 = vperm.slane %v2986_v42, 0  ;;  %v9694_v42 = vperm.slane %v2988_v46, 0  ;;  %v9710_v46 = vperm.slane %v2991_v22, 0 }
 0x355   : > { %13955 = vst [vmem:[#allocation66_spill] sm:$0xff] %v9638_v45  ;;  %4096 = vrot.lane.b32.xlu0 %v9638_v45, %s7111_s22  ;;  %v9671_v26 = vperm.slane %v2874_v37, 0  ;;  %v4284_v37 = vrot.slane %v9351_v34, 1  ;;  %v2876_v45 = vrot.slane %v9370_v20, 2  ;;  %v9721_v44 = vperm.slane %v4290_v51, 0 }
 0x356   : > { %13956 = vst [vmem:[#allocation67_spill] sm:$0xff] %v9644_v50  ;;  %v9692_v50 = vperm.slane %v2989_v7, 0  ;;  %v2996_v7 = vrot.slane %v9428_v33, 4  ;;  %v9727_v22 = vperm.slane %v4289_v19, 0  ;;  %v4294_v19 = vrot.slane %v9400_v59, 4 }
 0x357   : > { %13963 = vst [vmem:[#allocation74_spill] sm:$0xff] %v9671_v26  ;;  %v3228_v51 = vrot.slane %v9512_v5, 7 }
 0x358   : > { %13965 = vst [vmem:[#allocation76_spill] sm:$0xff] %v9677_v12 }
 0x359   : > { %v9652_v54 = vpop.permute.xlu1 %3032  ;;  %13966 = vst [vmem:[#allocation77_spill] sm:$0xff] %v9680_v57  ;;  %v2878_v57 = vrot.slane %v9370_v20, 4 }
 0x35a   : > { %13957 = vst [vmem:[#allocation68_spill] sm:$0xff] %v9652_v54  ;;  %v9700_v54 = vperm.slane %v2992_v9, 0  ;;  %v9716_v9 = vperm.slane %v4287_v3, 0  ;;  %v3223_v3 = vrot.slane %v9512_v5, 2 }
 0x35b   : > { %v2171_v13 = vpop.permute.xlu0 %2170  ;;  %13969 = vst [vmem:[#allocation80_spill] sm:$0xff] %v9692_v50  ;;  %v4412_v50 = vrot.slane %v9459_v49, 4 }
 0x35c   : > { %v9690_v6 = vmul.f32 %v2171_v13, %v9142_v35  ;;  %13970 = vst [vmem:[#allocation81_spill] sm:$0xff] %v9694_v42  ;;  %v9706_v35 = vperm.slane %v4285_v55, 0  ;;  %v9714_v42 = vperm.slane %v4288_v38, 0  ;;  %v2994_v55 = vrot.slane %v9428_v33, 2 }
 0x35d   : > { %13972 = vst [vmem:[#allocation83_spill] sm:$0xff] %v9700_v54  ;;  %v9718_v54 = vperm.slane %v4286_v8, 0  ;;  %v4410_v13 = vrot.slane %v9459_v49, 2  ;;  %v9730_v38 = vperm.slane %v2876_v45, 0  ;;  %v3222_v8 = vrot.slane %v9512_v5, 1 }
 0x35e   : > { %13968 = vst [vmem:[#allocation79_spill] sm:$0xff] %v9690_v6  ;;  %4094 = vrot.lane.b32.xlu1 %v9690_v6, %s7111_s22  ;;  %v9725_v6 = vperm.slane %v2878_v57, 0  ;;  %v3224_v57 = vrot.slane %v9512_v5, 3  ;;  %v9741_v27 = vperm.slane %v4412_v50, 0  ;;  %v9755_v50 = vperm.slane %v3223_v3, 0 }
 0x35f   : > { %13973 = vst [vmem:[#allocation84_spill] sm:$0xff] %v9706_v35  ;;  %v9746_v60 = vperm.slane %v4410_v13, 0  ;;  %v9760_v13 = vperm.slane %v3226_v40, 0  ;;  %v9762_v45 = vperm.slane %v3225_v0, 0  ;;  %v4403_v3 = vrot.slane %v9490_v29, 2 }
 0x360   : > { %13974 = vst [vmem:[#allocation85_spill] sm:$0xff] %v9710_v46  ;;  %v9734_v46 = vperm.slane %v2996_v7, 0  ;;  %v3108_v40 = vrot.slane %v9476_v48, 5  ;;  %v9777_v0 = vperm.slane %v3227_v24, 0  ;;  %v4404_v5 = vrot.slane %v9490_v29, 3 }
 0x361   : > { %v9697_v1 = vpop.permute.xlu1 %4448  ;;  %13976 = vst [vmem:[#allocation87_spill] sm:$0xff] %v9714_v42 }
 0x362   : > { %13971 = vst [vmem:[#allocation82_spill] sm:$0xff] %v9697_v1  ;;  %v9712_v1 = vperm.slane %v4284_v37, 0  ;;  %v9744_v37 = vperm.slane %v2994_v55, 0  ;;  %v4292_v55 = vrot.slane %v9400_v59, 2 }
 0x363   : > { %13977 = vst [vmem:[#allocation88_spill] sm:$0xff] %v9716_v9 }
 0x364   : > { %13975 = vst [vmem:[#allocation86_spill] sm:$0xff] %v9712_v1 }
 0x365   : > { %13978 = vst [vmem:[#allocation89_spill] sm:$0xff] %v9718_v54 }
 0x366   : > { %13979 = vst [vmem:[#allocation90_spill] sm:$0xff] %v9721_v44 }
 0x367   : > { %13980 = vst [vmem:[#allocation91_spill] sm:$0xff] %v9725_v6 }
 0x368   : > { %13981 = vst [vmem:[#allocation92_spill] sm:$0xff] %v9727_v22 }
 0x369   : > { %13982 = vst [vmem:[#allocation93_spill] sm:$0xff] %v9730_v38  ;;  %v2169_v7 = vpop.permute.xlu1 %2168 }
 0x36a   : > { %13983 = vst [vmem:[#allocation94_spill] sm:$0xff] %v9734_v46  ;;  %v9753_v63 = vmul.f32 %v2169_v7, %v9163_v30  ;;  %v9764_v46 = vperm.slane %v3224_v57, 0  ;;  %v3105_v30 = vrot.slane %v9476_v48, 2  ;;  %v4402_v7 = vrot.slane %v9490_v29, 1 }
 0x36b   : > { %13984 = vst [vmem:[#allocation95_spill] sm:$0xff] %v9741_v27  ;;  %v9757_v27 = vperm.slane %v3222_v8, 0  ;;  %v3104_v8 = vrot.slane %v9476_v48, 1 }
 0x36c   : > { %13985 = vst [vmem:[#allocation96_spill] sm:$0xff] %v9744_v37  ;;  %3978 = vrot.lane.b32.xlu2 %v9753_v63, %s7111_s22  ;;  %v9775_v37 = vperm.slane %v3228_v51, 0  ;;  %v4405_v51 = vrot.slane %v9490_v29, 4  ;;  %v9790_v24 = vperm.slane %v3105_v30, 0  ;;  %v4408_v30 = vrot.slane %v9490_v29, 7 }
 0x36d   : > { %13986 = vst [vmem:[#allocation97_spill] sm:$0xff] %v9746_v60  ;;  %v9766_v60 = vperm.slane %v4294_v19, 0  ;;  %v4406_v19 = vrot.slane %v9490_v29, 5  ;;  %v9794_v57 = vperm.slane %v3104_v8, 0  ;;  %v4407_v8 = vrot.slane %v9490_v29, 6 }
 0x36e   : > { %13987 = vst [vmem:[#allocation98_spill] sm:$0xff] %v9753_v63  ;;  %v9783_v63 = vperm.slane %v2875_v32, 0 }
 0x36f   : > { %13988 = vst [vmem:[#allocation99_spill] sm:$0xff] %v9755_v50  ;;  %v3110_v50 = vrot.slane %v9476_v48, 7 }
 0x370   : > { %13989 = vst [vmem:[#allocation100_spill] sm:$0xff] %v9757_v27  ;;  %v3107_v27 = vrot.slane %v9476_v48, 4 }
 0x371   : > { %13990 = vst [vmem:[#allocation101_spill] sm:$0xff] %v9760_v13  ;;  %v9798_v32 = vpop.permute.xlu1 %3152  ;;  %v3106_v13 = vrot.slane %v9476_v48, 3  ;;  %v9824_v29 = vperm.slane %v3110_v50, 0  ;;  %v9841_v50 = vpop.permute.xlu0 %3268 }
 0x372   : > { %13991 = vst [vmem:[#allocation102_spill] sm:$0xff] %v9762_v45  ;;  %v2993_v45 = vrot.slane %v9428_v33, 1 }
 0x373   : > { %13992 = vst [vmem:[#allocation103_spill] sm:$0xff] %v9764_v46  ;;  %v9781_v46 = vperm.slane %v4292_v55, 0  ;;  %v9796_v55 = vperm.slane %v4402_v7, 0  ;;  %v4521_v7 = vrot.slane %v9495_v25, 2 }
 0x374   : > { %13993 = vst [vmem:[#allocation104_spill] sm:$0xff] %v9766_v60 }
 0x375   : > { %13994 = vst [vmem:[#allocation105_spill] sm:$0xff] %v9775_v37  ;;  %v9800_v37 = vperm.slane %v3108_v40, 0  ;;  %v9812_v40 = vperm.slane %v3107_v27, 0  ;;  %v9827_v27 = vperm.slane %v4408_v30, 0 }
 0x376   : > { %13995 = vst [vmem:[#allocation106_spill] sm:$0xff] %v9777_v0  ;;  %v9792_v0 = vperm.slane %v4403_v3, 0  ;;  %v3109_v3 = vrot.slane %v9476_v48, 6  ;;  %v9822_v48 = vperm.slane %v4404_v5, 0  ;;  %v3114_v5 = vrot.slane %v9526_v61, 4 }
 0x377   : > { %13996 = vst [vmem:[#allocation107_spill] sm:$0xff] %v9781_v46  ;;  %v9835_v46 = vperm.slane %v4521_v7, 0  ;;  %v3232_v7 = vrot.slane %v9529_v18, 4 }
 0x378   : > { %13997 = vst [vmem:[#allocation108_spill] sm:$0xff] %v9783_v63  ;;  %v9805_v63 = vperm.slane %v4406_v19, 0  ;;  %v4522_v19 = vrot.slane %v9495_v25, 3 }
 0x379   : > { %13998 = vst [vmem:[#allocation109_spill] sm:$0xff] %v9790_v24  ;;  %v4525_v24 = vrot.slane %v9495_v25, 6 }
 0x37a   : > { %13999 = vst [vmem:[#allocation110_spill] sm:$0xff] %v9792_v0  ;;  %v4524_v0 = vrot.slane %v9495_v25, 5 }
 0x37b   : > { %14000 = vst [vmem:[#allocation111_spill] sm:$0xff] %v9794_v57  ;;  %v9820_v57 = vperm.slane %v3106_v13, 0  ;;  %v3344_v13 = vrot.slane %v9553_v47, 5 }
 0x37c   : > { %14001 = vst [vmem:[#allocation112_spill] sm:$0xff] %v9796_v55  ;;  %v9814_v55 = vperm.slane %v4405_v51, 0  ;;  %v9829_v51 = vperm.slane %v3109_v3, 0  ;;  %v9847_v3 = vperm.slane %v4522_v19, 0  ;;  %v4528_v19 = vrot.slane %v9539_v14, 2 }
 0x37d   : > { %14002 = vst [vmem:[#allocation113_spill] sm:$0xff] %v9798_v32  ;;  %v4520_v32 = vrot.slane %v9495_v25, 1 }
 0x37e   : > { %14003 = vst [vmem:[#allocation114_spill] sm:$0xff] %v9800_v37  ;;  %v4523_v37 = vrot.slane %v9495_v25, 4 }
 0x37f   : > { %14004 = vst [vmem:[#allocation115_spill] sm:$0xff] %v9805_v63  ;;  %v4526_v63 = vrot.slane %v9495_v25, 7  ;;  %v9837_v22 = vperm.slane %v4520_v32, 0  ;;  %v9854_v32 = vperm.slane %v4525_v24, 0  ;;  %v3111_v24 = vrot.slane %v9526_v61, 1 }
 0x380   : > { %14005 = vst [vmem:[#allocation116_spill] sm:$0xff] %v9812_v40  ;;  %v9833_v40 = vperm.slane %v2993_v45, 0  ;;  %v9845_v30 = vperm.slane %v4523_v37, 0  ;;  %v9851_v45 = vpop.permute.xlu1 %4568  ;;  %v3230_v37 = vrot.slane %v9529_v18, 2 }
 0x381   : > { %14006 = vst [vmem:[#allocation117_spill] sm:$0xff] %v9814_v55  ;;  %v9831_v55 = vperm.slane %v4407_v8, 0  ;;  %v9849_v8 = vperm.slane %v4526_v63, 0  ;;  %v3341_v63 = vrot.slane %v9553_v47, 2 }
 0x382   : > { %14007 = vst [vmem:[#allocation118_spill] sm:$0xff] %v9820_v57 }
 0x383   : > { %14008 = vst [vmem:[#allocation119_spill] sm:$0xff] %v9822_v48  ;;  %v9843_v48 = vperm.slane %v4524_v0, 0  ;;  %v3346_v0 = vrot.slane %v9553_v47, 7 }
 0x384   : > { %14009 = vst [vmem:[#allocation120_spill] sm:$0xff] %v9824_v29 }
 0x385   : > { %14010 = vst [vmem:[#allocation121_spill] sm:$0xff] %v9827_v27  ;;  %v9864_v27 = vperm.slane %v3114_v5, 0 }
 0x386   : > { %14011 = vst [vmem:[#allocation122_spill] sm:$0xff] %v9829_v51  ;;  %v9884_v51 = vperm.slane %v3341_v63, 0  ;;  %v3468_v63 = vrot.slane %v9564_v15, 4 }
 0x387   : > { %14012 = vst [vmem:[#allocation123_spill] sm:$0xff] %v9831_v55  ;;  %v4530_v55 = vrot.slane %v9539_v14, 4 }
 0x388   : > { %14013 = vst [vmem:[#allocation124_spill] sm:$0xff] %v9833_v40  ;;  %v3112_v40 = vrot.slane %v9526_v61, 2 }
 0x389   : > { %14014 = vst [vmem:[#allocation125_spill] sm:$0xff] %v9835_v46  ;;  %v9877_v5 = vperm.slane %v4530_v55, 0  ;;  %v9882_v46 = vperm.slane %v4528_v19, 0  ;;  %v2175_v19 = vpop.permute.xlu1 %2174 }
 0x38a   : > { %14015 = vst [vmem:[#allocation126_spill] sm:$0xff] %v9837_v22  ;;  %v9880_v22 = vperm.slane %v3230_v37, 0  ;;  %v9899_v37 = vperm.slane %v3346_v0, 0  ;;  %v4638_v0 = vrot.slane %v9544_v23, 1 }
 0x38b   : > { %14016 = vst [vmem:[#allocation127_spill] sm:$0xff] %v9841_v50  ;;  %v3343_v50 = vrot.slane %v9553_v47, 4 }
 0x38c   : > { %14017 = vst [vmem:[#allocation128_spill] sm:$0xff] %v9843_v48  ;;  %v3229_v48 = vrot.slane %v9529_v18, 1 }
 0x38d   : > { %14018 = vst [vmem:[#allocation129_spill] sm:$0xff] %v9845_v30  ;;  %v9874_v30 = vperm.slane %v3112_v40, 0  ;;  %v9891_v40 = vpop.permute.xlu0 %4684  ;;  %v9895_v55 = vperm.slane %v3343_v50, 0  ;;  %v2995_v50 = vrot.slane %v9428_v33, 3 }
 0x38e   : > { %14019 = vst [vmem:[#allocation130_spill] sm:$0xff] %v9847_v3  ;;  %v3345_v3 = vrot.slane %v9553_v47, 6 }
 0x38f   : > { %14020 = vst [vmem:[#allocation131_spill] sm:$0xff] %v9849_v8  ;;  %v9871_v8 = vperm.slane %v3232_v7, 0  ;;  %v9908_v7 = vmul.f32 %v2175_v19, %v9410_v11  ;;  %v4644_v11 = vrot.slane %v9544_v23, 7  ;;  %v4643_v19 = vrot.slane %v9544_v23, 6 }
 0x390   : > { %14021 = vst [vmem:[#allocation132_spill] sm:$0xff] %v9851_v45  ;;  %v3340_v45 = vrot.slane %v9553_v47, 1  ;;  %v9902_v25 = vperm.slane %v3345_v3, 0  ;;  %v4641_v3 = vrot.slane %v9544_v23, 4 }
 0x391   : > { %14022 = vst [vmem:[#allocation133_spill] sm:$0xff] %v9854_v32  ;;  %v3342_v32 = vrot.slane %v9553_v47, 3  ;;  %4212 = vrot.lane.b32.xlu2 %v9908_v7, %s7111_s22 }
 0x392   : > { %14023 = vst [vmem:[#allocation134_spill] sm:$0xff] %v9864_v27  ;;  %v9886_v29 = vperm.slane %v3340_v45, 0  ;;  %v9904_v45 = vperm.slane %v3229_v48, 0  ;;  %v4640_v48 = vrot.slane %v9544_v23, 3  ;;  %v9939_v33 = vperm.slane %v4641_v3, 0 }
 0x393   : > { %14024 = vst [vmem:[#allocation135_spill] sm:$0xff] %v9871_v8  ;;  %v9889_v8 = vperm.slane %v3111_v24, 0  ;;  %v2877_v24 = vrot.slane %v9370_v20, 3 }
 0x394   : > { %14025 = vst [vmem:[#allocation136_spill] sm:$0xff] %v9874_v30  ;;  %v9893_v30 = vperm.slane %v3344_v13, 0  ;;  %v4639_v13 = vrot.slane %v9544_v23, 2 }
 0x395   : > { %14026 = vst [vmem:[#allocation137_spill] sm:$0xff] %v9877_v5  ;;  %v9897_v5 = vperm.slane %v3342_v32, 0  ;;  %v3466_v32 = vrot.slane %v9564_v15, 2 }
 0x396   : > { %14027 = vst [vmem:[#allocation138_spill] sm:$0xff] %v9880_v22  ;;  %v9929_v47 = vperm.slane %v4639_v13, 0 }
 0x397   : > { %14028 = vst [vmem:[#allocation139_spill] sm:$0xff] %v9882_v46  ;;  %v9933_v22 = vperm.slane %v3466_v32, 0 }
 0x398   : > { %14029 = vst [vmem:[#allocation140_spill] sm:$0xff] %v9884_v51  ;;  %v9943_v51 = vperm.slane %v4644_v11, 0  ;;  %v3576_v11 = vrot.slane %v9575_v58, 1 }
 0x399   : > { %14030 = vst [vmem:[#allocation141_spill] sm:$0xff] %v9886_v29  ;;  %v9949_v29 = vperm.slane %v2995_v50, 0  ;;  %v3694_v50 = vrot.slane %v9580_v21, 1 }
 0x39a   : > { %14031 = vst [vmem:[#allocation142_spill] sm:$0xff] %v9889_v8 }
 0x39b   : > { %14032 = vst [vmem:[#allocation143_spill] sm:$0xff] %v9891_v40  ;;  %v3348_v40 = vrot.slane %v9561_v36, 2 }
 0x39c   : > { %14033 = vst [vmem:[#allocation144_spill] sm:$0xff] %v9893_v30  ;;  %v9927_v30 = vperm.slane %v2877_v24, 0  ;;  %v9945_v24 = vperm.slane %v4643_v19, 0  ;;  %v3580_v19 = vrot.slane %v9575_v58, 5 }
 0x39d   : > { %14034 = vst [vmem:[#allocation145_spill] sm:$0xff] %v9895_v55  ;;  %v4291_v55 = vrot.slane %v9400_v59, 1 }
 0x39e   : > { %14035 = vst [vmem:[#allocation146_spill] sm:$0xff] %v9897_v5  ;;  %v9924_v5 = vperm.slane %v3468_v63, 0  ;;  %v9941_v63 = vperm.slane %v4640_v48, 0  ;;  %v3577_v48 = vrot.slane %v9575_v58, 2 }
 0x39f   : > { %14036 = vst [vmem:[#allocation147_spill] sm:$0xff] %v9899_v37  ;;  %v4642_v37 = vrot.slane %v9544_v23, 5  ;;  %v9957_v3 = vperm.slane %v4291_v55, 0  ;;  %v3581_v55 = vrot.slane %v9575_v58, 6 }
 0x3a0   : > { %14037 = vst [vmem:[#allocation148_spill] sm:$0xff] %v9902_v25  ;;  %v3350_v25 = vrot.slane %v9561_v36, 4 }
 0x3a1   : > { %14038 = vst [vmem:[#allocation149_spill] sm:$0xff] %v9904_v45  ;;  %v4409_v45 = vrot.slane %v9459_v49, 1  ;;  %v9937_v49 = vperm.slane %v4642_v37, 0 }
 0x3a2   : > { %14039 = vst [vmem:[#allocation150_spill] sm:$0xff] %v9908_v7  ;;  %v9935_v7 = vperm.slane %v4638_v0, 0  ;;  %v9954_v0 = vperm.slane %v3350_v25, 0  ;;  %v3578_v25 = vrot.slane %v9575_v58, 3 }
 0x3a3   : > { %14040 = vst [vmem:[#allocation151_spill] sm:$0xff] %v9924_v5  ;;  %v2177_v5 = vpop.permute.xlu0 %2176  ;;  %v9947_v13 = vperm.slane %v4409_v45, 0  ;;  %v3695_v45 = vrot.slane %v9580_v21, 2 }
 0x3a4   : > { %14041 = vst [vmem:[#allocation152_spill] sm:$0xff] %v9927_v30  ;;  %v9952_v32 = vmul.f32 %v2177_v5, %v9452_v62  ;;  %v9962_v30 = vperm.slane %v3348_v40, 0  ;;  %v3579_v62 = vrot.slane %v9575_v58, 4  ;;  %v3582_v5 = vrot.slane %v9575_v58, 7 }
 0x3a5   : > { %14042 = vst [vmem:[#allocation153_spill] sm:$0xff] %v9929_v47  ;;  %v3698_v40 = vrot.slane %v9580_v21, 5  ;;  %v9987_v37 = vperm.slane %v3578_v25, 0  ;;  %v9993_v23 = vperm.slane %v3695_v45, 0 }
 0x3a6   : > { %14043 = vst [vmem:[#allocation154_spill] sm:$0xff] %v9933_v22  ;;  %4214 = vrot.lane.b32.xlu1 %v9952_v32, %s7111_s22  ;;  %v3699_v22 = vrot.slane %v9580_v21, 6 }
 0x3a7   : > { %14044 = vst [vmem:[#allocation155_spill] sm:$0xff] %v9935_v7 }
 0x3a8   : > { %14045 = vst [vmem:[#allocation156_spill] sm:$0xff] %v9937_v49  ;;  %v9991_v49 = vperm.slane %v3581_v55, 0  ;;  %v10006_v25 = vperm.slane %v3699_v22, 0  ;;  %v10014_v55 = vmul.f32 %v9596_v4, %v9661_v16  ;;  %v4648_v22 = vrot.slane %v9585_v2, 4 }
 0x3a9   : > { %14046 = vst [vmem:[#allocation157_spill] sm:$0xff] %v9939_v33  ;;  %v9985_v33 = vperm.slane %v3579_v62, 0  ;;  %v10047_v16 = vmul.f32 %v9596_v4, %v9671_v26  ;;  %v3461_v26 = vrot.slane %v9599_v17, 4 }
 0x3aa   : > { %14047 = vst [vmem:[#allocation158_spill] sm:$0xff] %v9941_v63  ;;  %v3704_v63 = vrot.slane %v9590_v41, 4 }
 0x3ab   : > { %14048 = vst [vmem:[#allocation159_spill] sm:$0xff] %v9943_v51  ;;  %v9982_v51 = vperm.slane %v3580_v19, 0 }
 0x3ac   : > { %14049 = vst [vmem:[#allocation160_spill] sm:$0xff] %v9945_v24  ;;  %v9980_v24 = vperm.slane %v3576_v11, 0  ;;  %v9998_v11 = vperm.slane %v3698_v40, 0  ;;  %v10016_v45 = vperm.slane %v3704_v63, 0  ;;  %v3702_v40 = vrot.slane %v9590_v41, 2 }
 0x3ad   : > { %14050 = vst [vmem:[#allocation161_spill] sm:$0xff] %v9947_v13  ;;  %v3697_v13 = vrot.slane %v9580_v21, 4  ;;  %v10036_v63 = vmul.f32 %v9596_v4, %v9668_v31  ;;  %v3462_v31 = vrot.slane %v9599_v17, 5  ;;  %v10061_v41 = vmul.f32 %v9596_v4, %v9730_v38 }
 0x3ae   : > { %14051 = vst [vmem:[#allocation162_spill] sm:$0xff] %v9949_v29  ;;  %v3700_v29 = vrot.slane %v9580_v21, 7 }
 0x3af   : > { %14052 = vst [vmem:[#allocation163_spill] sm:$0xff] %v9952_v32  ;;  %v9989_v32 = vperm.slane %v3582_v5, 0  ;;  %v10000_v19 = vperm.slane %v3697_v13, 0  ;;  %v10010_v5 = vmul.f32 %v9596_v4, %v9659_v28  ;;  %v14071_v13 = vperm.slane %v9256_v56, 0 }
 0x3b0   : > { %14053 = vst [vmem:[#allocation164_spill] sm:$0xff] %v9954_v0  ;;  %v9995_v0 = vperm.slane %v3694_v50, 0  ;;  %v10004_v62 = vperm.slane %v3700_v29, 0  ;;  %v10026_v29 = vmul.f32 %v9596_v4, %v9663_v10  ;;  %v4646_v50 = vrot.slane %v9585_v2, 2 }
 0x3b1   : > { %14054 = vst [vmem:[#allocation165_spill] sm:$0xff] %v9957_v3  ;;  %v3696_v3 = vrot.slane %v9580_v21, 3  ;;  %v3459_v10 = vrot.slane %v9599_v17, 2  ;;  %v3458_v28 = vrot.slane %v9599_v17, 1  ;;  %v10128_v2 = vmul.f32 %v9614_v53, %v9766_v60  ;;  %v14099_v60 = vld [vmem:[#allocation107_spill] sm:$0xff] }
 0x3b2   : > { %14055 = vst [vmem:[#allocation166_spill] sm:$0xff] %v9962_v30  ;;  %v9978_v30 = vperm.slane %v3577_v48, 0  ;;  %v10032_v48 = vmul.f32 %v9596_v4, %v9665_v52  ;;  %v10051_v52 = vmul.f32 %v9596_v4, %v9677_v12  ;;  %v10087_v12 = vmul.f32 %v9614_v53, %v9706_v35 }
 0x3b3   : > { %14057 = vst [vmem:[#allocation168_spill] sm:$0xff] %v9980_v24  ;;  %v10110_v35 = vmul.f32 %v9614_v53, %v9716_v9  ;;  %v3936_v9 = vrot.slane %v9610_v43, 7  ;;  %v14160_v21 = vperm.slane %v9539_v14, 0 }
 0x3b4   : > { %14056 = vst [vmem:[#allocation167_spill] sm:$0xff] %v9978_v30 }
 0x3b5   : > { %14058 = vst [vmem:[#allocation169_spill] sm:$0xff] %v9982_v51  ;;  %v10002_v51 = vperm.slane %v3696_v3, 0  ;;  %v10022_v3 = vmul.f32 %v9596_v4, %v14071_v13  ;;  %v10040_v13 = vmul.f32 %v9596_v4, %v9725_v6 }
 0x3b6   : > { %14059 = vst [vmem:[#allocation170_spill] sm:$0xff] %v9985_v33 }
 0x3b7   : > { %14060 = vst [vmem:[#allocation171_spill] sm:$0xff] %v9987_v37  ;;  %v10081_v37 = vperm.slane %v3458_v28, 0 }
 0x3b8   : > { %14061 = vst [vmem:[#allocation172_spill] sm:$0xff] %v9989_v32  ;;  %v10068_v32 = vperm.slane %v3702_v40, 0  ;;  %v3463_v40 = vrot.slane %v9599_v17, 6 }
 0x3b9   : > { %14062 = vst [vmem:[#allocation173_spill] sm:$0xff] %v9991_v49  ;;  %v3465_v49 = vrot.slane %v9564_v15, 1  ;;  %v10079_v15 = vperm.slane %v3459_v10, 0  ;;  %v14083_v10 = vperm.slane %v9351_v34, 0 }
 0x3ba   : > { %14063 = vst [vmem:[#allocation174_spill] sm:$0xff] %v9993_v23 }
 0x3bb   : > { %14064 = vst [vmem:[#allocation175_spill] sm:$0xff] %v9995_v0  ;;  %v10100_v28 = vmul.f32 %v9614_v53, %v14083_v10  ;;  %v10117_v10 = vpop.permute.xlu2 %3270 }
 0x3bc   : > { %14065 = vst [vmem:[#allocation176_spill] sm:$0xff] %v9998_v11  ;;  %v14130_v11 = vld [vmem:[#allocation136_spill] sm:$0xff] }
 0x3bd   : > { %14066 = vst [vmem:[#allocation177_spill] sm:$0xff] %v10000_v19 }
 0x3be   : > { %14067 = vst [vmem:[#allocation178_spill] sm:$0xff] %v10002_v51  ;;  %v14076_v51 = vperm.slane %v9256_v56, 0  ;;  %v10093_v56 = vperm.slane %v3462_v31, 0  ;;  %v3931_v31 = vrot.slane %v9610_v43, 2 }
 0x3bf   : > { %14068 = vst [vmem:[#allocation179_spill] sm:$0xff] %v10004_v62  ;;  %v10065_v62 = vperm.slane %v4648_v22, 0  ;;  %v3464_v22 = vrot.slane %v9599_v17, 7 }
 0x3c0   : > { %14069 = vst [vmem:[#allocation180_spill] sm:$0xff] %v10006_v25  ;;  %v14072_v25 = vperm.slane %v9370_v20, 0  ;;  %v3460_v20 = vrot.slane %v9599_v17, 3  ;;  %v10077_v38 = vmul.f32 %v9587_v39, %v14076_v51  ;;  %v10095_v51 = vperm.slane %v3465_v49, 0 }
 0x3c1   : > { %14070 = vst [vmem:[#allocation181_spill] sm:$0xff] %v10016_v45  ;;  %v10104_v45 = vmul.f32 %v9614_v53, %v9714_v42  ;;  %v10106_v39 = vperm.slane %v3461_v26, 0  ;;  %v3930_v49 = vrot.slane %v9610_v43, 1  ;;  %v3932_v42 = vrot.slane %v9610_v43, 3 }
 0x3c2   : > { %v10057_v6 = vmul.f32 %v9596_v4, %v14072_v25  ;;  %14073 = vst [vmem:[#allocation182_spill] sm:$0xff] %v10065_v62  ;;  %v10072_v25 = vperm.slane %v4646_v50, 0  ;;  %v10091_v50 = vmul.f32 %v9614_v53, %v9712_v1  ;;  %v3934_v1 = vrot.slane %v9610_v43, 5 }
 0x3c3   : > { %14074 = vst [vmem:[#allocation183_spill] sm:$0xff] %v10068_v32  ;;  %v10123_v26 = vmul.f32 %v9614_v53, %v9718_v54  ;;  %v10130_v32 = vperm.slane %v3464_v22, 0  ;;  %v3935_v62 = vrot.slane %v9610_v43, 6  ;;  %v10150_v22 = vmul.f32 %v9614_v53, %v14099_v60  ;;  %v14108_v60 = vld [vmem:[#allocation29_spill] sm:$0xff] }
 0x3c4   : > { %14075 = vst [vmem:[#allocation184_spill] sm:$0xff] %v10072_v25  ;;  %v10115_v25 = vperm.slane %v3460_v20, 0  ;;  %v10134_v20 = vmul.f32 %v9614_v53, %v9721_v44  ;;  %v10154_v44 = vperm.slane %v3930_v49, 0  ;;  %v3113_v49 = vrot.slane %v9526_v61, 3 }
 0x3c5   : > { %14077 = vst [vmem:[#allocation185_spill] sm:$0xff] %v10079_v15 }
 0x3c6   : > { %14078 = vst [vmem:[#allocation186_spill] sm:$0xff] %v10081_v37 }
 0x3c7   : > { %14079 = vst [vmem:[#allocation187_spill] sm:$0xff] %v10087_v12 }
 0x3c8   : > { %14080 = vst [vmem:[#allocation188_spill] sm:$0xff] %v10091_v50 }
 0x3c9   : > { %14081 = vst [vmem:[#allocation189_spill] sm:$0xff] %v10093_v56 }
 0x3ca   : > { %14082 = vst [vmem:[#allocation190_spill] sm:$0xff] %v10095_v51  ;;  %v3933_v51 = vrot.slane %v9610_v43, 4  ;;  %v14133_v43 = vperm.slane %v9351_v34, 0  ;;  %v14146_v34 = vld [vmem:[#allocation128_spill] sm:$0xff] }
 0x3cb   : > { %14084 = vst [vmem:[#allocation191_spill] sm:$0xff] %v10100_v28 }
 0x3cc   : > { %14085 = vst [vmem:[#allocation192_spill] sm:$0xff] %v10104_v45  ;;  %v14095_v45 = vld [vmem:[#allocation92_spill] sm:$0xff] }
 0x3cd   : > { %14086 = vst [vmem:[#allocation193_spill] sm:$0xff] %v10106_v39  ;;  %v10141_v54 = vmul.f32 %v9614_v53, %v14095_v45  ;;  %v10161_v45 = vperm.slane %v3932_v42, 0  ;;  %v14112_v42 = vld [vmem:[#allocation111_spill] sm:$0xff]  ;;  %v14126_v39 = vld [vmem:[#allocation65_spill] sm:$0xff] }
 0x3ce   : > { %14087 = vst [vmem:[#allocation194_spill] sm:$0xff] %v10110_v35  ;;  %v10137_v35 = vperm.slane %v3463_v40, 0  ;;  %v3231_v40 = vrot.slane %v9529_v18, 3 }
 0x3cf   : > { %14088 = vst [vmem:[#allocation195_spill] sm:$0xff] %v10115_v25 }
 0x3d0   : > { %14089 = vst [vmem:[#allocation196_spill] sm:$0xff] %v10117_v10 }
 0x3d1   : > { %14090 = vst [vmem:[#allocation197_spill] sm:$0xff] %v10123_v26  ;;  %v14097_v26 = vperm.slane %v9400_v59, 0  ;;  %v10163_v59 = vperm.slane %v3936_v9, 0 }
 0x3d2   : > { %14091 = vst [vmem:[#allocation198_spill] sm:$0xff] %v10128_v2  ;;  %v10152_v2 = vperm.slane %v3931_v31, 0  ;;  %v10170_v31 = vperm.slane %v3935_v62, 0 }
 0x3d3   : > { %14092 = vst [vmem:[#allocation199_spill] sm:$0xff] %v10130_v32  ;;  %v10146_v28 = vmul.f32 %v9614_v53, %v14097_v26  ;;  %v14107_v26 = vld [vmem:[#allocation108_spill] sm:$0xff]  ;;  %v3822_v53 = vrot.slane %v14108_v60, 4 }
 0x3d4   : > { %14093 = vst [vmem:[#allocation200_spill] sm:$0xff] %v10134_v20  ;;  %v10157_v20 = vperm.slane %v3934_v1, 0  ;;  %v14110_v1 = vld [vmem:[#allocation109_spill] sm:$0xff]  ;;  %v14116_v32 = vld [vmem:[#allocation116_spill] sm:$0xff] }
 0x3d5   : > { %14094 = vst [vmem:[#allocation201_spill] sm:$0xff] %v10137_v35  ;;  %v10159_v35 = vperm.slane %v3933_v51, 0  ;;  %v10212_v25 = vperm.slane %v3822_v53, 0 }
 0x3d6   : > { %14096 = vst [vmem:[#allocation202_spill] sm:$0xff] %v10141_v54  ;;  %v14113_v54 = vld [vmem:[#allocation43_spill] sm:$0xff] }
 0x3d7   : > { %14098 = vst [vmem:[#allocation203_spill] sm:$0xff] %v10146_v28  ;;  %v10167_v28 = vmul.f32 %v9596_v4, %v14107_v26  ;;  %v14115_v4 = vld [vmem:[#allocation114_spill] sm:$0xff] }
 0x3d8   : > { %14100 = vst [vmem:[#allocation204_spill] sm:$0xff] %v10150_v22  ;;  %v14111_v22 = vld [vmem:[#allocation62_spill] sm:$0xff] }
 0x3d9   : > { %14101 = vst [vmem:[#allocation205_spill] sm:$0xff] %v10152_v2  ;;  %v10176_v51 = vmul.f32 %v14111_v22, %v14110_v1  ;;  %v10180_v9 = vmul.f32 %v14111_v22, %v14112_v42  ;;  %v10194_v50 = vmul.f32 %v14111_v22, %v14116_v32  ;;  %v14117_v1 = vld [vmem:[#allocation24_spill] sm:$0xff]  ;;  %v3820_v42 = vrot.slane %v14108_v60, 2 }
 0x3da   : > { %14102 = vst [vmem:[#allocation206_spill] sm:$0xff] %v10154_v44  ;;  %v3586_v12 = vrot.slane %v14117_v1, 4  ;;  %v10208_v62 = vmul.f32 %v14111_v22, %v9864_v27  ;;  %v4527_v32 = vrot.slane %v9539_v14, 1 }
 0x3db   : > { %14103 = vst [vmem:[#allocation207_spill] sm:$0xff] %v10157_v20  ;;  %v10233_v20 = vperm.slane %v3231_v40, 0 }
 0x3dc   : > { %14104 = vst [vmem:[#allocation208_spill] sm:$0xff] %v10159_v35  ;;  %v14121_v35 = vld [vmem:[#allocation120_spill] sm:$0xff] }
 0x3dd   : > { %14105 = vst [vmem:[#allocation209_spill] sm:$0xff] %v10161_v45  ;;  %v10198_v45 = vpop.permute.xlu2 %4686  ;;  %v10216_v60 = vmul.f32 %v14111_v22, %v14121_v35  ;;  %v10235_v35 = vperm.slane %v3586_v12, 0  ;;  %v10254_v12 = vperm.slane %v4527_v32, 0  ;;  %v14148_v32 = vld [vmem:[#allocation26_spill] sm:$0xff] }
 0x3de   : > { %14106 = vst [vmem:[#allocation210_spill] sm:$0xff] %v10163_v59  ;;  %v14114_v59 = vperm.slane %v14113_v54, 0  ;;  %v10200_v54 = vpop.permute.xlu0 %3388  ;;  %v3817_v56 = vrot.slane %v14148_v32, 6 }
 0x3df   : > { %14109 = vst [vmem:[#allocation211_spill] sm:$0xff] %v10170_v31  ;;  %v10190_v31 = vmul.f32 %v14111_v22, %v14115_v4  ;;  %v3347_v4 = vrot.slane %v9561_v36, 1  ;;  %v14124_v36 = vld [vmem:[#allocation42_spill] sm:$0xff] }
 0x3e0   : > { %v10185_v26 = vmul.f32 %v14111_v22, %v14114_v59  ;;  %14118 = vst [vmem:[#allocation212_spill] sm:$0xff] %v10198_v45  ;;  %v10204_v59 = vmul.f32 %v14111_v22, %v9820_v57  ;;  %v14122_v45 = vld [vmem:[#allocation122_spill] sm:$0xff]  ;;  %v14123_v57 = vperm.slane %v9526_v61, 0  ;;  %v14125_v33 = vperm.slane %v14124_v36, 0 }
 0x3e1   : > { %14119 = vst [vmem:[#allocation213_spill] sm:$0xff] %v10200_v54  ;;  %v10220_v54 = vmul.f32 %v14111_v22, %v14122_v45  ;;  %v10239_v45 = vmul.f32 %v14111_v22, %v14130_v11  ;;  %v3584_v61 = vrot.slane %v14117_v1, 2  ;;  %v10252_v40 = vperm.slane %v3347_v4, 0  ;;  %v10273_v4 = vpop.permute.xlu1 %3386  ;;  %v14152_v1 = vld [vmem:[#allocation130_spill] sm:$0xff] }
 0x3e2   : > { %14120 = vst [vmem:[#allocation214_spill] sm:$0xff] %v10212_v25  ;;  %v10225_v19 = vmul.f32 %v14111_v22, %v14123_v57  ;;  %v3039_v53 = vmul.f32 %v14126_v39, %v14125_v33  ;;  %v10231_v25 = vperm.slane %v3113_v49, 0  ;;  %v10242_v57 = vperm.slane %v3820_v42, 0  ;;  %v14134_v33 = vld [vmem:[#allocation18_spill] sm:$0xff]  ;;  %v14138_v39 = vld [vmem:[#allocation125_spill] sm:$0xff] }
 0x3e3   : > { %14128 = vst [vmem:[#allocation215_spill] sm:$0xff] %v10233_v20  ;;  %v10250_v49 = vmul.f32 %v14134_v33, %v14133_v43  ;;  %v14139_v20 = vld [vmem:[#allocation64_spill] sm:$0xff]  ;;  %v3813_v33 = vrot.slane %v14148_v32, 2 }
 0x3e4   : > { %14127 = vst [vmem:[#allocation42_spill] sm:$0xff] %v10231_v25  ;;  %v10245_v27 = vadd.f32 %v3039_v53, %v10077_v38  ;;  %v10258_v11 = vmul.f32 %v14139_v20, %v14138_v39  ;;  %v14141_v25 = vld [vmem:[#allocation126_spill] sm:$0xff]  ;;  %v10271_v43 = vmul.f32 %v14139_v20, %v14146_v34  ;;  %v3812_v39 = vrot.slane %v14148_v32, 1 }
 0x3e5   : > { %14129 = vst [vmem:[#allocation216_spill] sm:$0xff] %v10235_v35  ;;  %v10262_v42 = vmul.f32 %v14139_v20, %v14141_v25  ;;  %v3818_v34 = vrot.slane %v14148_v32, 7  ;;  %v10306_v58 = vmul.f32 %v14139_v20, %v14160_v21 }
 0x3e6   : > { %14131 = vst [vmem:[#allocation217_spill] sm:$0xff] %v10242_v57  ;;  %v14143_v57 = vld [vmem:[#allocation46_spill] sm:$0xff] }
 0x3e7   : > { %14132 = vst [vmem:[#allocation218_spill] sm:$0xff] %v10245_v27  ;;  %v14144_v38 = vperm.slane %v14143_v57, 0  ;;  %v3815_v57 = vrot.slane %v14148_v32, 4 }
 0x3e8   : > { %14135 = vst [vmem:[#allocation219_spill] sm:$0xff] %v10250_v49  ;;  %v14149_v49 = vld [vmem:[#allocation129_spill] sm:$0xff] }
 0x3e9   : > { %14136 = vst [vmem:[#allocation220_spill] sm:$0xff] %v10252_v40  ;;  %v10267_v53 = vmul.f32 %v14139_v20, %v14144_v38  ;;  %v10280_v25 = vmul.f32 %v14139_v20, %v14149_v49  ;;  %v3814_v38 = vrot.slane %v14148_v32, 3  ;;  %v14151_v40 = vld [vmem:[#allocation66_spill] sm:$0xff]  ;;  %v10325_v21 = vperm.slane %v3815_v57, 0 }
 0x3ea   : > { %14137 = vst [vmem:[#allocation221_spill] sm:$0xff] %v10254_v12  ;;  %v3816_v12 = vrot.slane %v14148_v32, 5  ;;  %v4058_v27 = vrot.slane %v14151_v40, 4  ;;  %v14179_v32 = vld [vmem:[#allocation81_spill] sm:$0xff] }
 0x3eb   : > { %14140 = vst [vmem:[#allocation222_spill] sm:$0xff] %v10258_v11  ;;  %v14156_v11 = vld [vmem:[#allocation131_spill] sm:$0xff] }
 0x3ec   : > { %14142 = vst [vmem:[#allocation223_spill] sm:$0xff] %v10262_v42  ;;  %v10296_v49 = vmul.f32 %v14139_v20, %v14156_v11  ;;  %v10316_v11 = vpop.permute.xlu0 %3622  ;;  %v10323_v14 = vperm.slane %v3816_v12, 0  ;;  %v14175_v12 = vld [vmem:[#allocation78_spill] sm:$0xff] }
 0x3ed   : > { %14145 = vst [vmem:[#allocation224_spill] sm:$0xff] %v10267_v53  ;;  %v14154_v53 = vld [vmem:[#allocation137_spill] sm:$0xff] }
 0x3ee   : > { %14147 = vst [vmem:[#allocation225_spill] sm:$0xff] %v10271_v43  ;;  %v10288_v43 = vmul.f32 %v14139_v20, %v14152_v1  ;;  %v10292_v42 = vmul.f32 %v14139_v20, %v14154_v53  ;;  %v10308_v1 = vperm.slane %v3584_v61, 0  ;;  %v10312_v53 = vmul.f32 %v14139_v20, %v9882_v46 }
 0x3ef   : > { %14150 = vst [vmem:[#allocation226_spill] sm:$0xff] %v10280_v25  ;;  %v14158_v25 = vld [vmem:[#allocation133_spill] sm:$0xff]  ;;  %v10327_v61 = vperm.slane %v3814_v38, 0  ;;  %v10331_v46 = vperm.slane %v3818_v34, 0 }
 0x3f0   : > { %14153 = vst [vmem:[#allocation66_spill] sm:$0xff] %v10288_v43  ;;  %v10300_v35 = vmul.f32 %v14139_v20, %v14158_v25  ;;  %v10320_v25 = vperm.slane %v3812_v39, 0  ;;  %v14171_v20 = vld [vmem:[#allocation75_spill] sm:$0xff]  ;;  %v14173_v43 = vld [vmem:[#allocation77_spill] sm:$0xff]  ;;  %v14174_v39 = vperm.slane %v14124_v36, 0 }
 0x3f1   : > { %14155 = vst [vmem:[#allocation227_spill] sm:$0xff] %v10292_v42  ;;  %v10314_v42 = vpop.permute.xlu2 %3504 }
 0x3f2   : > { %14157 = vst [vmem:[#allocation228_spill] sm:$0xff] %v10296_v49  ;;  %v10318_v49 = vperm.slane %v3813_v33, 0 }
 0x3f3   : > { %14159 = vst [vmem:[#allocation229_spill] sm:$0xff] %v10300_v35 }
 0x3f4   : > { %14161 = vst [vmem:[#allocation230_spill] sm:$0xff] %v10306_v58  ;;  %v10329_v58 = vperm.slane %v4058_v27, 0 }
 0x3f5   : > { %14162 = vst [vmem:[#allocation231_spill] sm:$0xff] %v10308_v1 }
 0x3f6   : > { %14163 = vst [vmem:[#allocation232_spill] sm:$0xff] %v10312_v53  ;;  %v14172_v53 = vld [vmem:[#allocation68_spill] sm:$0xff] }
 0x3f7   : > { %14164 = vst [vmem:[#allocation233_spill] sm:$0xff] %v10318_v49  ;;  %v3042_v1 = vmul.f32 %v14172_v53, %v14171_v20  ;;  %v3040_v33 = vmul.f32 %v14172_v53, %v14173_v43  ;;  %v3038_v35 = vmul.f32 %v14172_v53, %v14174_v39  ;;  %v3048_v57 = vmul.f32 %v14172_v53, %v14175_v12 }
 0x3f8   : > { %14165 = vst [vmem:[#allocation234_spill] sm:$0xff] %v10320_v25  ;;  %v3044_v7 = vmul.f32 %v14172_v53, %v14179_v32 }
 0x3f9   : > { %14166 = vst [vmem:[#allocation235_spill] sm:$0xff] %v10323_v14  ;;  %v3074_v20 = vadd.f32 %v3042_v1, %v10010_v5  ;;  %v3072_v43 = vadd.f32 %v3040_v33, %v10014_v55  ;;  %v3070_v36 = vadd.f32 %v3038_v35, %v10022_v3  ;;  %v3080_v39 = vadd.f32 %v3048_v57, %v10026_v29  ;;  %v14181_v3 = vld [vmem:[#allocation99_spill] sm:$0xff]  ;;  %v14183_v33 = vld [vmem:[#allocation100_spill] sm:$0xff] }
 0x3fa   : > { %14167 = vst [vmem:[#allocation236_spill] sm:$0xff] %v10325_v21  ;;  %v14176_v21 = vld [vmem:[#allocation79_spill] sm:$0xff] }
 0x3fb   : > { %14168 = vst [vmem:[#allocation237_spill] sm:$0xff] %v10327_v61  ;;  %v4049_v38 = vrot.slane %v14176_v21, 2  ;;  %v4048_v27 = vrot.slane %v14176_v21, 1  ;;  %v4052_v61 = vrot.slane %v14176_v21, 5  ;;  %v4051_v14 = vrot.slane %v14176_v21, 4  ;;  %v14182_v29 = vld [vmem:[#allocation127_spill] sm:$0xff] }
 0x3fc   : > { %14169 = vst [vmem:[#allocation238_spill] sm:$0xff] %v10329_v58  ;;  %v14177_v58 = vld [vmem:[#allocation80_spill] sm:$0xff]  ;;  %v3190_v5 = vadd.f32 %v10180_v9, %v3072_v43  ;;  %v3188_v55 = vadd.f32 %v10185_v26, %v3070_v36  ;;  %v3198_v35 = vadd.f32 %v10190_v31, %v3080_v39  ;;  %v3278_v1 = vmul.f32 %v14182_v29, %v14181_v3  ;;  %v14184_v57 = vld [vmem:[#allocation47_spill] sm:$0xff] }
 0x3fd   : > { %14170 = vst [vmem:[#allocation239_spill] sm:$0xff] %v10331_v46  ;;  %v3046_v34 = vmul.f32 %v14172_v53, %v14177_v58  ;;  %v10346_v46 = vperm.slane %v3817_v56, 0  ;;  %v10357_v58 = vpop.permute.xlu1 %3506  ;;  %v3192_v56 = vadd.f32 %v10176_v51, %v3074_v20  ;;  %v10372_v20 = vpop.permute.xlu2 %3624  ;;  %v3076_v51 = vadd.f32 %v3044_v7, %v10036_v63  ;;  %v14193_v63 = vld [vmem:[#allocation102_spill] sm:$0xff] }
 0x3fe   : > { %14180 = vst [vmem:[#allocation240_spill] sm:$0xff] %v10357_v58  ;;  %v10379_v9 = vmul.f32 %v14111_v22, %v9889_v8  ;;  %v10381_v43 = vperm.slane %v4049_v38, 0  ;;  %v10383_v36 = vperm.slane %v4048_v27, 0  ;;  %v10390_v3 = vperm.slane %v4052_v61, 0  ;;  %v14198_v22 = vld [vmem:[#allocation103_spill] sm:$0xff] }
 0x3ff   : > { %14178 = vst [vmem:[#allocation79_spill] sm:$0xff] %v10346_v46  ;;  %v3078_v12 = vadd.f32 %v3046_v34, %v10032_v48  ;;  %v3276_v48 = vmul.f32 %v14182_v29, %v14183_v33  ;;  %v14185_v34 = vperm.slane %v14184_v57, 0  ;;  %v14186_v46 = vld [vmem:[#allocation101_spill] sm:$0xff]  ;;  %v3282_v26 = vmul.f32 %v14182_v29, %v14193_v63 }
 0x400   : > { %v3284_v58 = vmul.f32 %v14182_v29, %v14186_v46  ;;  %14187 = vst [vmem:[#allocation47_spill] sm:$0xff] %v10372_v20  ;;  %v10388_v46 = vpop.permute.xlu0 %3742  ;;  %v4050_v31 = vrot.slane %v14176_v21, 3  ;;  %v3310_v8 = vadd.f32 %v3278_v1, %v3192_v56  ;;  %v3194_v61 = vadd.f32 %v10204_v59, %v3076_v51  ;;  %v14207_v59 = vld [vmem:[#allocation83_spill] sm:$0xff] }
 0x401   : > { %v3274_v32 = vmul.f32 %v14182_v29, %v14185_v34  ;;  %14188 = vst [vmem:[#allocation241_spill] sm:$0xff] %v10379_v9  ;;  %v3196_v7 = vadd.f32 %v10194_v50, %v3078_v12  ;;  %v10396_v38 = vadd.f32 %v3276_v48, %v3190_v5  ;;  %v14196_v34 = vld [vmem:[#allocation82_spill] sm:$0xff]  ;;  %v3280_v50 = vmul.f32 %v14182_v29, %v14198_v22  ;;  %v14200_v9 = vld [vmem:[#allocation112_spill] sm:$0xff]  ;;  %v14210_v22 = vld [vmem:[#allocation85_spill] sm:$0xff] }
 0x402   : > { %14189 = vst [vmem:[#allocation242_spill] sm:$0xff] %v10381_v43  ;;  %v10398_v27 = vadd.f32 %v3284_v58, %v3198_v35  ;;  %v14199_v12 = vld [vmem:[#allocation94_spill] sm:$0xff]  ;;  %v10413_v56 = vmul.f32 %v14196_v34, %v14200_v9  ;;  %v14202_v58 = vld [vmem:[#allocation45_spill] sm:$0xff]  ;;  %v14205_v35 = vld [vmem:[#allocation115_spill] sm:$0xff]  ;;  %v3052_v48 = vmul.f32 %v14172_v53, %v14207_v59 }
 0x403   : > { %14190 = vst [vmem:[#allocation243_spill] sm:$0xff] %v10383_v36  ;;  %v10385_v39 = vadd.f32 %v3274_v32, %v3188_v55  ;;  %v10400_v32 = vperm.slane %v4051_v14, 0  ;;  %v14195_v55 = vld [vmem:[#allocation110_spill] sm:$0xff]  ;;  %v3062_v63 = vmul.f32 %v14172_v53, %v14199_v12  ;;  %v14203_v5 = vperm.slane %v14202_v58, 0  ;;  %v14213_v59 = vld [vmem:[#allocation119_spill] sm:$0xff] }
 0x404   : > { %14191 = vst [vmem:[#allocation244_spill] sm:$0xff] %v10388_v46  ;;  %v10404_v33 = vmul.f32 %v14196_v34, %v14195_v55  ;;  %v10422_v1 = vmul.f32 %v14196_v34, %v14205_v35  ;;  %v10426_v51 = vadd.f32 %v3282_v26, %v3196_v7  ;;  %v14208_v55 = vld [vmem:[#allocation117_spill] sm:$0xff]  ;;  %v3050_v46 = vmul.f32 %v14172_v53, %v14210_v22  ;;  %v14217_v22 = vld [vmem:[#allocation135_spill] sm:$0xff] }
 0x405   : > { %14192 = vst [vmem:[#allocation245_spill] sm:$0xff] %v10390_v3  ;;  %v10418_v14 = vmul.f32 %v14196_v34, %v14203_v5  ;;  %v10430_v12 = vmul.f32 %v14196_v34, %v14208_v55  ;;  %v3094_v9 = vadd.f32 %v3062_v63, %v10040_v13  ;;  %v14211_v5 = vld [vmem:[#allocation140_spill] sm:$0xff]  ;;  %v3514_v35 = vmul.f32 %v10314_v42, %v10079_v15  ;;  %v10445_v7 = vpop.permute.xlu1 %3740  ;;  %v10447_v55 = vpop.permute.xlu2 %3858 }
 0x406   : > { %14194 = vst [vmem:[#allocation246_spill] sm:$0xff] %v10400_v32  ;;  %v3396_v20 = vmul.f32 %v10273_v4, %v14211_v5  ;;  %v10443_v26 = vmul.f32 %v14196_v34, %v14213_v59  ;;  %v3632_v13 = vmul.f32 %v10316_v11, %v9978_v30  ;;  %v10451_v63 = vadd.f32 %v3280_v50, %v3194_v61  ;;  %v14221_v50 = vld [vmem:[#allocation105_spill] sm:$0xff] }
 0x407   : > { %14197 = vst [vmem:[#allocation247_spill] sm:$0xff] %v10404_v33  ;;  %v3298_v5 = vmul.f32 %v14182_v29, %v14217_v22  ;;  %v4054_v15 = vrot.slane %v14176_v21, 7  ;;  %v3084_v59 = vadd.f32 %v3052_v48, %v10047_v16  ;;  %v3212_v33 = vadd.f32 %v10208_v62, %v3094_v9  ;;  %v14222_v22 = vld [vmem:[#allocation121_spill] sm:$0xff]  ;;  %v14224_v48 = vld [vmem:[#allocation106_spill] sm:$0xff] }
 0x408   : > { %14201 = vst [vmem:[#allocation248_spill] sm:$0xff] %v10413_v56  ;;  %v10459_v56 = vpop.permute.xlu0 %3976  ;;  %v3288_v30 = vmul.f32 %v14182_v29, %v14221_v50  ;;  %v3750_v16 = vmul.f32 %v10445_v7, %v9993_v23  ;;  %v3286_v50 = vmul.f32 %v14182_v29, %v14224_v48 }
 0x409   : > { %14204 = vst [vmem:[#allocation45_spill] sm:$0xff] %v10418_v14  ;;  %v3202_v62 = vadd.f32 %v10216_v60, %v3084_v59  ;;  %v14229_v60 = vld [vmem:[#allocation98_spill] sm:$0xff] }
 0x40a   : > { %14206 = vst [vmem:[#allocation249_spill] sm:$0xff] %v10422_v1  ;;  %v10439_v1 = vperm.slane %v4050_v31, 0  ;;  %v3428_v31 = vadd.f32 %v3396_v20, %v3310_v8  ;;  %v10470_v8 = vmul.f32 %v14196_v34, %v14222_v22  ;;  %v3940_v59 = vrot.slane %v14229_v60, 4 }
 0x40b   : > { %14209 = vst [vmem:[#allocation250_spill] sm:$0xff] %v10430_v12  ;;  %v14218_v12 = vld [vmem:[#allocation150_spill] sm:$0xff] }
 0x40c   : > { %14212 = vst [vmem:[#allocation251_spill] sm:$0xff] %v10439_v1  ;;  %v4167_v14 = vrot.slane %v14218_v12, 2  ;;  %v14219_v1 = vld [vmem:[#allocation95_spill] sm:$0xff]  ;;  %v3546_v20 = vadd.f32 %v3514_v35, %v3428_v31  ;;  %v3986_v31 = vmul.f32 %v10459_v56, %v10152_v2  ;;  %v10515_v2 = vperm.slane %v3940_v59, 0 }
 0x40d   : > { %14214 = vst [vmem:[#allocation252_spill] sm:$0xff] %v10443_v26  ;;  %v3082_v26 = vadd.f32 %v3050_v46, %v10051_v52  ;;  %v10464_v61 = vmul.f32 %v14196_v34, %v14219_v1  ;;  %v3868_v52 = vmul.f32 %v10447_v55, %v10318_v49  ;;  %v4053_v46 = vrot.slane %v14176_v21, 6  ;;  %v14225_v1 = vld [vmem:[#allocation40_spill] sm:$0xff] }
 0x40e   : > { %14215 = vst [vmem:[#allocation253_spill] sm:$0xff] %v10445_v7  ;;  %v3664_v35 = vadd.f32 %v3632_v13, %v3546_v20  ;;  %v10486_v23 = vperm.slane %v4167_v14, 0  ;;  %v10488_v49 = vperm.slane %v4054_v15, 0  ;;  %v14232_v13 = vld [vmem:[#allocation123_spill] sm:$0xff]  ;;  %v14233_v14 = vperm.slane %v9529_v18, 0 }
 0x40f   : > { %14216 = vst [vmem:[#allocation254_spill] sm:$0xff] %v10451_v63  ;;  %v3200_v9 = vadd.f32 %v10220_v54, %v3082_v26  ;;  %v14230_v26 = vld [vmem:[#allocation96_spill] sm:$0xff]  ;;  %v10496_v63 = vperm.slane %v4053_v46, 0  ;;  %v3938_v46 = vrot.slane %v14229_v60, 2  ;;  %v14245_v59 = vperm.slane %v14184_v57, 0  ;;  %v10557_v57 = vpop.permute.xlu1 %3860 }
 0x410   : > { %14220 = vst [vmem:[#allocation150_spill] sm:$0xff] %v10464_v61  ;;  %v14226_v61 = vperm.slane %v14225_v1, 0  ;;  %v3058_v48 = vmul.f32 %v14172_v53, %v14230_v26  ;;  %v3782_v1 = vadd.f32 %v3750_v16, %v3664_v35  ;;  %v3290_v15 = vmul.f32 %v14182_v29, %v14233_v14  ;;  %v14234_v35 = vld [vmem:[#allocation124_spill] sm:$0xff]  ;;  %v14247_v16 = vld [vmem:[#allocation67_spill] sm:$0xff] }
 0x411   : > { %14223 = vst [vmem:[#allocation255_spill] sm:$0xff] %v10470_v8  ;;  %v10490_v8 = vadd.f32 %v3298_v5, %v3212_v33  ;;  %v10505_v33 = vadd.f32 %v3288_v30, %v3202_v62  ;;  %v10507_v5 = vadd.f32 %v3286_v50, %v3200_v9  ;;  %v3056_v26 = vmul.f32 %v14172_v53, %v14234_v35  ;;  %v14239_v50 = vld [vmem:[#allocation138_spill] sm:$0xff]  ;;  %v14243_v9 = vld [vmem:[#allocation97_spill] sm:$0xff] }
 0x412   : > { %v3054_v22 = vmul.f32 %v14172_v53, %v14226_v61  ;;  %14227 = vst [vmem:[#allocation256_spill] sm:$0xff] %v10486_v23  ;;  %v10500_v61 = vmul.f32 %v14196_v34, %v14232_v13  ;;  %v3900_v20 = vadd.f32 %v3868_v52, %v3782_v1  ;;  %v14236_v13 = vld [vmem:[#allocation41_spill] sm:$0xff]  ;;  %v14242_v52 = vld [vmem:[#allocation143_spill] sm:$0xff] }
 0x413   : > { %14228 = vst [vmem:[#allocation257_spill] sm:$0xff] %v10488_v49  ;;  %v14237_v14 = vperm.slane %v14236_v13, 0  ;;  %v10532_v62 = vmul.f32 %v14242_v52, %v9929_v47  ;;  %v3512_v47 = vmul.f32 %v10314_v42, %v10081_v37  ;;  %v3630_v37 = vmul.f32 %v10316_v11, %v9980_v24 }
 0x414   : > { %v3086_v54 = vadd.f32 %v3054_v22, %v10057_v6  ;;  %14231 = vst [vmem:[#allocation98_spill] sm:$0xff] %v10496_v63  ;;  %v3090_v22 = vadd.f32 %v3058_v48, %v10061_v41  ;;  %v14240_v41 = vrot.slane %v14151_v40, 2  ;;  %v10536_v48 = vmul.f32 %v14196_v34, %v14243_v9 }
 0x415   : > { %14235 = vst [vmem:[#allocation258_spill] sm:$0xff] %v10515_v2  ;;  %v10520_v30 = vmul.f32 %v14196_v34, %v14237_v14  ;;  %v14246_v14 = vperm.slane %v14202_v58, 0  ;;  %v10560_v58 = vperm.slane %v3938_v46, 0 }
 0x416   : > { %v3204_v6 = vadd.f32 %v10225_v19, %v3086_v54  ;;  %v10524_v19 = vmul.f32 %v14182_v29, %v14239_v50  ;;  %v10528_v1 = vperm.slane %v14240_v41, 0  ;;  %14244 = vst [vmem:[#allocation261_spill] sm:$0xff] %v10536_v48  ;;  %v10541_v54 = vmul.f32 %v10117_v10, %v14245_v59  ;;  %v14249_v41 = vld [vmem:[#allocation141_spill] sm:$0xff]  ;;  %v14264_v48 = vld [vmem:[#allocation144_spill] sm:$0xff] }
 0x417   : > { %14238 = vst [vmem:[#allocation259_spill] sm:$0xff] %v10520_v30  ;;  %v10546_v35 = vmul.f32 %v14247_v16, %v14246_v14  ;;  %v3394_v50 = vmul.f32 %v10273_v4, %v14249_v41  ;;  %v10555_v9 = vadd.f32 %v10239_v45, %v3090_v22  ;;  %v4018_v59 = vadd.f32 %v3986_v31, %v3900_v20  ;;  %v14258_v16 = vld [vmem:[#allocation20_spill] sm:$0xff] }
 0x418   : > { %14241 = vst [vmem:[#allocation260_spill] sm:$0xff] %v10528_v1  ;;  %v10552_v18 = vadd.f32 %v3290_v15, %v3204_v6  ;;  %v4166_v10 = vrot.slane %v14218_v12, 1  ;;  %v10563_v14 = vadd.f32 %v3056_v26, %v10167_v28  ;;  %v14253_v15 = vld [vmem:[#allocation17_spill] sm:$0xff]  ;;  %v14255_v22 = vperm.slane %v9599_v17, 0  ;;  %v14256_v26 = vld [vmem:[#allocation155_spill] sm:$0xff] }
 0x419   : > { %14248 = vst [vmem:[#allocation262_spill] sm:$0xff] %v10546_v35  ;;  %v3426_v41 = vadd.f32 %v3394_v50, %v10396_v38  ;;  %v14254_v6 = vperm.slane %v14253_v15, 0  ;;  %v3748_v20 = vmul.f32 %v10445_v7, %v9995_v0  ;;  %v3866_v28 = vmul.f32 %v10447_v55, %v10320_v25  ;;  %v14260_v0 = vld [vmem:[#allocation22_spill] sm:$0xff] }
 0x41a   : > { %14250 = vst [vmem:[#allocation263_spill] sm:$0xff] %v10557_v57  ;;  %v3510_v31 = vmul.f32 %v10314_v42, %v14255_v22  ;;  %v3984_v38 = vmul.f32 %v10459_v56, %v10154_v44  ;;  %v10582_v46 = vmul.f32 %v14242_v52, %v14256_v26  ;;  %v10584_v24 = vperm.slane %v4166_v10, 0  ;;  %v14262_v35 = vld [vmem:[#allocation26_spill] sm:$0xff] }
 0x41b   : > { %14251 = vst [vmem:[#allocation264_spill] sm:$0xff] %v10560_v58  ;;  %v3392_v45 = vmul.f32 %v10273_v4, %v14254_v6  ;;  %v3544_v50 = vadd.f32 %v3512_v47, %v3426_v41  ;;  %v14259_v22 = vperm.slane %v14258_v16, 0  ;;  %v14261_v34 = vperm.slane %v14260_v0, 0  ;;  %v14265_v47 = vld [vmem:[#allocation189_spill] sm:$0xff] }
 0x41c   : > { %14252 = vst [vmem:[#allocation265_spill] sm:$0xff] %v10563_v14  ;;  %v14263_v53 = vperm.slane %v14262_v35, 0  ;;  %v3402_v26 = vmul.f32 %v10273_v4, %v14264_v48  ;;  %v3520_v10 = vmul.f32 %v10314_v42, %v14265_v47  ;;  %v14268_v14 = vld [vmem:[#allocation169_spill] sm:$0xff]  ;;  %v4170_v48 = vrot.slane %v14218_v12, 5 }
 0x41d   : > { %14257 = vst [vmem:[#allocation17_spill] sm:$0xff] %v10584_v24  ;;  %v3424_v6 = vadd.f32 %v3392_v45, %v10385_v39  ;;  %v3628_v13 = vmul.f32 %v10316_v11, %v14259_v22  ;;  %v3746_v25 = vmul.f32 %v10445_v7, %v14261_v34  ;;  %v3662_v41 = vadd.f32 %v3630_v37, %v3544_v50  ;;  %v14266_v45 = vld [vmem:[#allocation32_spill] sm:$0xff]  ;;  %v14270_v37 = vld [vmem:[#allocation235_spill] sm:$0xff]  ;;  %v14271_v50 = vld [vmem:[#allocation145_spill] sm:$0xff] }
 0x41e   : > { %v3864_v44 = vmul.f32 %v10447_v55, %v14263_v53  ;;  %v14267_v30 = vperm.slane %v14266_v45, 0  ;;  %v3434_v34 = vadd.f32 %v3402_v26, %v10398_v27  ;;  %v3638_v57 = vmul.f32 %v10316_v11, %v14268_v14  ;;  %v14269_v53 = vld [vmem:[#allocation176_spill] sm:$0xff]  ;;  %v14272_v27 = vld [vmem:[#allocation207_spill] sm:$0xff]  ;;  %v14274_v45 = vld [vmem:[#allocation193_spill] sm:$0xff] }
 0x41f   : > { %v3542_v39 = vadd.f32 %v3510_v31, %v3424_v6  ;;  %v3756_v35 = vmul.f32 %v10445_v7, %v14269_v53  ;;  %v3780_v0 = vadd.f32 %v3748_v20, %v3662_v41  ;;  %v3874_v31 = vmul.f32 %v10447_v55, %v14270_v37  ;;  %v10614_v6 = vpop.permute.xlu1 %4094 }
 0x420   : > { %v3982_v22 = vmul.f32 %v10459_v56, %v14267_v30  ;;  %v3400_v30 = vmul.f32 %v10273_v4, %v14271_v50  ;;  %v3552_v29 = vadd.f32 %v3520_v10, %v3434_v34  ;;  %v3992_v26 = vmul.f32 %v10459_v56, %v14272_v27  ;;  %v10626_v50 = vpop.permute.xlu2 %3978  ;;  %v14277_v27 = vld [vmem:[#allocation177_spill] sm:$0xff] }
 0x421   : > { %v3660_v47 = vadd.f32 %v3628_v13, %v3542_v39  ;;  %v10618_v14 = vperm.slane %v4170_v48, 0  ;;  %v3518_v53 = vmul.f32 %v10314_v42, %v14274_v45  ;;  %v4104_v13 = vmul.f32 %v10614_v6, %v10381_v43  ;;  %v14275_v39 = vld [vmem:[#allocation170_spill] sm:$0xff]  ;;  %14276 = vst [vmem:[#allocation267_spill] sm:$0xff] %v10626_v50  ;;  %v14279_v50 = vld [vmem:[#allocation236_spill] sm:$0xff] }
 0x422   : > { %v3898_v20 = vadd.f32 %v3866_v28, %v3780_v0  ;;  %v3636_v37 = vmul.f32 %v10316_v11, %v14275_v39  ;;  %v4102_v10 = vmul.f32 %v10614_v6, %v10383_v36  ;;  %v3670_v34 = vadd.f32 %v3638_v57, %v3552_v29 }
 0x423   : > { %14273 = vst [vmem:[#allocation266_spill] sm:$0xff] %v10618_v14  ;;  %v3778_v41 = vadd.f32 %v3746_v25, %v3660_v47  ;;  %v3432_v48 = vadd.f32 %v3400_v30, %v10426_v51  ;;  %v3754_v16 = vmul.f32 %v10445_v7, %v14277_v27  ;;  %v4136_v45 = vadd.f32 %v4104_v13, %v4018_v59  ;;  %v14280_v51 = vld [vmem:[#allocation208_spill] sm:$0xff]  ;;  %v14286_v27 = vld [vmem:[#allocation178_spill] sm:$0xff] }
 0x424   : > { %v14278_v43 = vperm.slane %v14176_v21, 0  ;;  %v4110_v25 = vmul.f32 %v10614_v6, %v10390_v3  ;;  %v4016_v28 = vadd.f32 %v3984_v38, %v3898_v20  ;;  %v3788_v47 = vadd.f32 %v3756_v35, %v3670_v34  ;;  %v14282_v38 = vld [vmem:[#allocation195_spill] sm:$0xff] }
 0x425   : > { %v3896_v1 = vadd.f32 %v3864_v44, %v3778_v41  ;;  %v3550_v39 = vadd.f32 %v3518_v53, %v3432_v48  ;;  %v3872_v29 = vmul.f32 %v10447_v55, %v14279_v50  ;;  %v3990_v30 = vmul.f32 %v10459_v56, %v14280_v51  ;;  %v14281_v41 = vld [vmem:[#allocation146_spill] sm:$0xff] }
 0x426   : > { %v4100_v0 = vmul.f32 %v10614_v6, %v14278_v43  ;;  %v4108_v44 = vmul.f32 %v10614_v6, %v10400_v32  ;;  %v4169_v59 = vrot.slane %v14218_v12, 4  ;;  %v3906_v13 = vadd.f32 %v3874_v31, %v3788_v47  ;;  %v14285_v32 = vld [vmem:[#allocation254_spill] sm:$0xff]  ;;  %v14287_v31 = vld [vmem:[#allocation237_spill] sm:$0xff] }
 0x427   : > { %v4014_v57 = vadd.f32 %v3982_v22, %v3896_v1  ;;  %v3668_v43 = vadd.f32 %v3636_v37, %v3550_v39  ;;  %v3398_v3 = vmul.f32 %v10273_v4, %v14281_v41  ;;  %v3516_v35 = vmul.f32 %v10314_v42, %v14282_v38  ;;  %v14284_v1 = vld [vmem:[#allocation171_spill] sm:$0xff]  ;;  %v14288_v47 = vld [vmem:[#allocation209_spill] sm:$0xff] }
 0x428   : > { %v4134_v53 = vadd.f32 %v4102_v10, %v4016_v28  ;;  %v10649_v34 = vperm.slane %v4169_v59, 0  ;;  %v3634_v22 = vmul.f32 %v10316_v11, %v14284_v1  ;;  %v4024_v48 = vadd.f32 %v3992_v26, %v3906_v13  ;;  %v14289_v10 = vld [vmem:[#allocation251_spill] sm:$0xff] }
 0x429   : > { %v4132_v20 = vadd.f32 %v4100_v0, %v4014_v57  ;;  %v3786_v51 = vadd.f32 %v3754_v16, %v3668_v43  ;;  %v3430_v50 = vadd.f32 %v3398_v3, %v14285_v32  ;;  %v3752_v37 = vmul.f32 %v10445_v7, %v14286_v27  ;;  %v10663_v57 = vpop.permute.xlu2 %4212  ;;  %v14291_v3 = vld [vmem:[#allocation164_spill] sm:$0xff]  ;;  %v14293_v38 = vld [vmem:[#allocation187_spill] sm:$0xff] }
 0x42a   : > { %14283 = vst [vmem:[#allocation268_spill] sm:$0xff] %v10649_v34  ;;  %v3870_v39 = vmul.f32 %v10447_v55, %v14287_v31  ;;  %v3988_v36 = vmul.f32 %v10459_v56, %v14288_v47  ;;  %v4106_v0 = vmul.f32 %v10614_v6, %v14289_v10  ;;  %v4168_v28 = vrot.slane %v14218_v12, 3  ;;  %v14295_v41 = vld [vmem:[#allocation191_spill] sm:$0xff] }
 0x42b   : > { %14290 = vst [vmem:[#allocation254_spill] sm:$0xff] %v10663_v57  ;;  %v4142_v26 = vadd.f32 %v4110_v25, %v4024_v48  ;;  %v3904_v16 = vadd.f32 %v3872_v29, %v3786_v51  ;;  %v3548_v59 = vadd.f32 %v3516_v35, %v3430_v50  ;;  %v3416_v32 = vmul.f32 %v10273_v4, %v14291_v3 }
 0x42c   : > { %v4222_v13 = vmul.f32 %v10663_v57, %v10486_v23  ;;  %v4220_v43 = vmul.f32 %v10663_v57, %v10584_v24  ;;  %v14292_v47 = vperm.slane %v14218_v12, 0  ;;  %v4228_v31 = vmul.f32 %v10663_v57, %v10618_v14 }
 0x42d   : > { %v4022_v27 = vadd.f32 %v3990_v30, %v3904_v16  ;;  %v4226_v50 = vmul.f32 %v10663_v57, %v10649_v34  ;;  %v3666_v25 = vadd.f32 %v3634_v22, %v3548_v59  ;;  %v10678_v29 = vperm.slane %v4168_v28, 0  ;;  %v14294_v30 = vld [vmem:[#allocation188_spill] sm:$0xff] }
 0x42e   : > { %v4218_v10 = vmul.f32 %v10663_v57, %v14292_v47  ;;  %v4254_v51 = vadd.f32 %v4222_v13, %v4136_v45  ;;  %v4252_v35 = vadd.f32 %v4220_v43, %v4134_v53  ;;  %v4260_v23 = vadd.f32 %v4228_v31, %v4142_v26  ;;  %v14296_v22 = vld [vmem:[#allocation192_spill] sm:$0xff]  ;;  %v14297_v53 = vld [vmem:[#allocation151_spill] sm:$0xff]  ;;  %v14301_v26 = vld [vmem:[#allocation45_spill] sm:$0xff] }
 0x42f   : > { %v4140_v3 = vadd.f32 %v4108_v44, %v4022_v27  ;;  %v3784_v24 = vadd.f32 %v3752_v37, %v3666_v25  ;;  %v4224_v1 = vmul.f32 %v10663_v57, %v10678_v29  ;;  %v3448_v47 = vadd.f32 %v3416_v32, %v10490_v8  ;;  %v14298_v27 = vld [vmem:[#allocation216_spill] sm:$0xff]  ;;  %v14299_v37 = vld [vmem:[#allocation247_spill] sm:$0xff]  ;;  %v14302_v32 = vld [vmem:[#allocation249_spill] sm:$0xff] }
 0x430   : > { %v4250_v48 = vadd.f32 %v4218_v10, %v4132_v20  ;;  %v4372_v14 = vadd.f32 %v14293_v38, %v4254_v51  ;;  %v4370_v16 = vadd.f32 %v14294_v30, %v4252_v35  ;;  %v4378_v28 = vadd.f32 %v14296_v22, %v4260_v23  ;;  %v14300_v10 = vld [vmem:[#allocation248_spill] sm:$0xff]  ;;  %v14303_v43 = vld [vmem:[#allocation194_spill] sm:$0xff]  ;;  %v14306_v51 = vld [vmem:[#allocation223_spill] sm:$0xff] }
 0x431   : > { %v4258_v59 = vadd.f32 %v4226_v50, %v4140_v3  ;;  %v3902_v45 = vadd.f32 %v3870_v39, %v3784_v24  ;;  %v3534_v20 = vmul.f32 %v10314_v42, %v14297_v53  ;;  %v3652_v44 = vmul.f32 %v10316_v11, %v14298_v27  ;;  %v14304_v3 = vld [vmem:[#allocation181_spill] sm:$0xff]  ;;  %v14305_v39 = vld [vmem:[#allocation222_spill] sm:$0xff] }
 0x432   : > { %v4368_v34 = vadd.f32 %v14295_v41, %v4250_v48  ;;  %v4490_v31 = vadd.f32 %v14299_v37, %v4372_v14  ;;  %v4488_v8 = vadd.f32 %v14300_v10, %v4370_v16  ;;  %v4496_v13 = vadd.f32 %v14302_v32, %v4378_v28  ;;  %v14307_v48 = vld [vmem:[#allocation224_spill] sm:$0xff] }
 0x433   : > { %v4376_v41 = vadd.f32 %v14303_v43, %v4258_v59  ;;  %v4020_v25 = vadd.f32 %v3988_v36, %v3902_v45  ;;  %v3566_v23 = vadd.f32 %v3534_v20, %v3448_v47  ;;  %v3770_v24 = vmul.f32 %v10445_v7, %v14304_v3  ;;  %v14308_v14 = vld [vmem:[#allocation28_spill] sm:$0xff]  ;;  %v14311_v59 = vld [vmem:[#allocation214_spill] sm:$0xff]  ;;  %v14359_v3 = vld [vmem:[#allocation29_spill] sm:$0xff] }
 0x434   : > { %v4486_v38 = vadd.f32 %v14301_v26, %v4368_v34  ;;  %v4608_v50 = vadd.f32 %v14305_v39, %v4490_v31  ;;  %v4606_v35 = vadd.f32 %v14306_v51, %v4488_v8  ;;  %v14309_v22 = vperm.slane %v14308_v14, 0  ;;  %v14310_v34 = vld [vmem:[#allocation250_spill] sm:$0xff]  ;;  %v14315_v31 = vld [vmem:[#allocation156_spill] sm:$0xff]  ;;  %v14316_v26 = vld [vmem:[#allocation225_spill] sm:$0xff] }
 0x435   : > { %v4494_v37 = vadd.f32 %v14310_v34, %v4376_v41  ;;  %v4138_v28 = vadd.f32 %v4106_v0, %v4020_v25  ;;  %v3684_v10 = vadd.f32 %v3652_v44, %v3566_v23  ;;  %v3888_v36 = vmul.f32 %v10447_v55, %v14311_v59  ;;  %v14318_v41 = vld [vmem:[#allocation163_spill] sm:$0xff] }
 0x436   : > { %v4604_v30 = vadd.f32 %v14307_v48, %v4486_v38  ;;  %v4690_v16 = vmul.f32 %v14242_v52, %v14309_v22  ;;  %v10708_v47 = vadd.f32 %v10532_v62, %v4608_v50  ;;  %v10711_v45 = vadd.f32 %v10582_v46, %v4606_v35  ;;  %v14317_v62 = vld [vmem:[#allocation226_spill] sm:$0xff]  ;;  %v14322_v50 = vld [vmem:[#allocation199_spill] sm:$0xff]  ;;  %v14323_v35 = vld [vmem:[#allocation157_spill] sm:$0xff] }
 0x437   : > { %v4700_v8 = vmul.f32 %v14242_v52, %v14315_v31  ;;  %v4614_v38 = vadd.f32 %v14316_v26, %v4496_v13  ;;  %v4256_v32 = vadd.f32 %v4224_v1, %v4138_v28  ;;  %v3802_v43 = vadd.f32 %v3770_v24, %v3684_v10  ;;  %v14319_v1 = vld [vmem:[#allocation147_spill] sm:$0xff]  ;;  %v14321_v24 = vld [vmem:[#allocation238_spill] sm:$0xff]  ;;  %v14327_v28 = vld [vmem:[#allocation252_spill] sm:$0xff] }
 0x438   : > { %14312 = vst [vmem:[#allocation187_spill] sm:$0xff] %v10708_v47  ;;  %v10713_v20 = vadd.f32 %v4690_v16, %v4604_v30  ;;  %v10720_v0 = vadd.f32 %v10524_v19, %v10555_v9  ;;  %4796 = vrot.lane.b32.xlu0 %v10708_v47, %s7113_s15  ;;  %4792 = vrot.lane.b32.xlu2 %v10711_v45, %s7113_s15  ;;  %v4176_v13 = vrot.slane %v14318_v41, 4  ;;  %v14320_v19 = vld [vmem:[#allocation197_spill] sm:$0xff]  ;;  %v14325_v16 = vld [vmem:[#allocation172_spill] sm:$0xff]  ;;  %v4172_v31 = vrot.slane %v14218_v12, 7 }
 0x439   : > { %14313 = vst [vmem:[#allocation188_spill] sm:$0xff] %v10711_v45  ;;  %v4612_v46 = vadd.f32 %v14317_v62, %v4494_v37  ;;  %v4006_v44 = vmul.f32 %v10459_v56, %v10515_v2  ;;  %v3406_v25 = vmul.f32 %v10273_v4, %v14319_v1  ;;  %v4374_v9 = vadd.f32 %v14320_v19, %v4256_v32  ;;  %v14329_v62 = vld [vmem:[#allocation182_spill] sm:$0xff]  ;;  %v14330_v45 = vld [vmem:[#allocation179_spill] sm:$0xff]  ;;  %v14357_v2 = vld [vmem:[#allocation160_spill] sm:$0xff] }
 0x43a   : > { %14314 = vst [vmem:[#allocation191_spill] sm:$0xff] %v10713_v20  ;;  %4788 = vrot.lane.b32.xlu1 %v10713_v20, %s7113_s15  ;;  %v3920_v23 = vadd.f32 %v3888_v36, %v3802_v43  ;;  %v4124_v39 = vmul.f32 %v10614_v6, %v14321_v24  ;;  %v3524_v51 = vmul.f32 %v10314_v42, %v14322_v50  ;;  %v10741_v30 = vperm.slane %v4176_v13, 0  ;;  %v14328_v36 = vld [vmem:[#allocation158_spill] sm:$0xff] }
 0x43b   : > { %v4698_v48 = vmul.f32 %v14242_v52, %v14323_v35  ;;  %v3438_v22 = vadd.f32 %v3406_v25, %v10505_v33  ;;  %v3642_v34 = vmul.f32 %v10316_v11, %v14325_v16  ;;  %v10746_v37 = vadd.f32 %v4700_v8, %v4614_v38  ;;  %v14332_v8 = vld [vmem:[#allocation66_spill] sm:$0xff]  ;;  %v14335_v16 = vld [vmem:[#allocation201_spill] sm:$0xff] }
 0x43c   : > { %14324 = vst [vmem:[#allocation192_spill] sm:$0xff] %v10741_v30  ;;  %v4492_v10 = vadd.f32 %v14327_v28, %v4374_v9  ;;  %v4696_v26 = vmul.f32 %v14242_v52, %v14328_v36  ;;  %v4038_v32 = vadd.f32 %v4006_v44, %v3920_v23  ;;  %v4242_v43 = vmul.f32 %v10663_v57, %v10741_v30  ;;  %v14333_v9 = vld [vmem:[#allocation148_spill] sm:$0xff]  ;;  %v14334_v44 = vld [vmem:[#allocation239_spill] sm:$0xff]  ;;  %v14346_v50 = vld [vmem:[#allocation150_spill] sm:$0xff] }
 0x43d   : > { %14326 = vst [vmem:[#allocation247_spill] sm:$0xff] %v10746_v37  ;;  %v4714_v13 = vmul.f32 %v14242_v52, %v14329_v62  ;;  %v3556_v19 = vadd.f32 %v3524_v51, %v3438_v22  ;;  %v3760_v33 = vmul.f32 %v10445_v7, %v14330_v45  ;;  %v10757_v25 = vadd.f32 %v4698_v48, %v4612_v46  ;;  %v14337_v48 = vld [vmem:[#allocation173_spill] sm:$0xff]  ;;  %v14352_v30 = vld [vmem:[#allocation227_spill] sm:$0xff] }
 0x43e   : > { %v4610_v38 = vadd.f32 %v14332_v8, %v4492_v10  ;;  %v4156_v20 = vadd.f32 %v4124_v39, %v4038_v32  ;;  %v3404_v28 = vmul.f32 %v10273_v4, %v14333_v9  ;;  %v3878_v23 = vmul.f32 %v10447_v55, %v14334_v44  ;;  %v14338_v10 = vld [vmem:[#allocation210_spill] sm:$0xff]  ;;  %v14341_v8 = vld [vmem:[#allocation159_spill] sm:$0xff]  ;;  %v14455_v9 = vld [vmem:[#allocation57_spill] sm:$0xff] }
 0x43f   : > { %14331 = vst [vmem:[#allocation248_spill] sm:$0xff] %v10757_v25  ;;  %v3674_v47 = vadd.f32 %v3642_v34, %v3556_v19  ;;  %v3522_v51 = vmul.f32 %v10314_v42, %v14335_v16  ;;  %v3640_v39 = vmul.f32 %v10316_v11, %v14337_v48  ;;  %v3996_v32 = vmul.f32 %v10459_v56, %v14338_v10  ;;  %v14339_v19 = vld [vmem:[#allocation23_spill] sm:$0xff]  ;;  %v14454_v16 = vld [vmem:[#allocation73_spill] sm:$0xff] }
 0x440   : > { %v10767_v22 = vadd.f32 %v4696_v26, %v4610_v38  ;;  %v4274_v45 = vadd.f32 %v4242_v43, %v4156_v20  ;;  %v3436_v46 = vadd.f32 %v3404_v28, %v10507_v5  ;;  %4808 = vrot.lane.b32.xlu0 %v10746_v37, %s7113_s15  ;;  %4804 = vrot.lane.b32.xlu2 %v10757_v25, %s7113_s15  ;;  %v14340_v5 = vld [vmem:[#allocation198_spill] sm:$0xff]  ;;  %v14342_v37 = vld [vmem:[#allocation180_spill] sm:$0xff]  ;;  %v10788_v25 = vperm.slane %v4172_v31, 0 }
 0x441   : > { %v3792_v34 = vadd.f32 %v3760_v33, %v3674_v47  ;;  %v4114_v26 = vmul.f32 %v10614_v6, %v10488_v49  ;;  %v4704_v38 = vmul.f32 %v14242_v52, %v14341_v8  ;;  %v3758_v47 = vmul.f32 %v10445_v7, %v14342_v37  ;;  %v14344_v49 = vld [vmem:[#allocation19_spill] sm:$0xff]  ;;  %v14348_v8 = vld [vmem:[#allocation16_spill] sm:$0xff] }
 0x442   : > { %14336 = vst [vmem:[#allocation45_spill] sm:$0xff] %v10767_v22  ;;  %4800 = vrot.lane.b32.xlu1 %v10767_v22, %s7113_s15  ;;  %v4392_v43 = vadd.f32 %v14340_v5, %v4274_v45  ;;  %v3554_v28 = vadd.f32 %v3522_v51, %v3436_v46  ;;  %v4171_v10 = vrot.slane %v14218_v12, 6  ;;  %v14345_v44 = vperm.slane %v14344_v49, 0  ;;  %v14347_v45 = vld [vmem:[#allocation79_spill] sm:$0xff] }
 0x443   : > { %v3910_v33 = vadd.f32 %v3878_v23, %v3792_v34  ;;  %14343 = vst [vmem:[#allocation249_spill] sm:$0xff] %v10788_v25  ;;  %v3876_v5 = vmul.f32 %v10447_v55, %v14347_v45  ;;  %v14349_v51 = vperm.slane %v14348_v8, 0  ;;  %v4232_v31 = vmul.f32 %v10663_v57, %v10788_v25  ;;  %v14350_v34 = vld [vmem:[#allocation24_spill] sm:$0xff] }
 0x444   : > { %v3408_v20 = vmul.f32 %v10273_v4, %v14345_v44  ;;  %v4510_v22 = vadd.f32 %v14346_v50, %v4392_v43  ;;  %v3672_v35 = vadd.f32 %v3640_v39, %v3554_v28  ;;  %v14351_v62 = vperm.slane %v14350_v34, 0  ;;  %v14353_v43 = vld [vmem:[#allocation211_spill] sm:$0xff] }
 0x445   : > { %v3526_v46 = vmul.f32 %v10314_v42, %v14349_v51  ;;  %v4028_v1 = vadd.f32 %v3996_v32, %v3910_v33  ;;  %v3994_v28 = vmul.f32 %v10459_v56, %v14353_v43  ;;  %v4112_v24 = vmul.f32 %v10614_v6, %v10496_v63 }
 0x446   : > { %v3440_v23 = vadd.f32 %v3408_v20, %v10552_v18  ;;  %v3644_v44 = vmul.f32 %v10316_v11, %v14351_v62  ;;  %v4628_v50 = vadd.f32 %v14352_v30, %v4510_v22  ;;  %v3790_v39 = vadd.f32 %v3758_v47, %v3672_v35  ;;  %v14358_v30 = vld [vmem:[#allocation166_spill] sm:$0xff] }
 0x447   : > { %v4146_v51 = vadd.f32 %v4114_v26, %v4028_v1  ;;  %v10811_v32 = vperm.slane %v4171_v10, 0  ;;  %v14355_v25 = vperm.slane %v14339_v19, 0  ;;  %v4702_v35 = vmul.f32 %v14242_v52, %v14357_v2  ;;  %v14361_v26 = vld [vmem:[#allocation154_spill] sm:$0xff]  ;;  %v14375_v2 = vld [vmem:[#allocation213_spill] sm:$0xff] }
 0x448   : > { %v3558_v33 = vadd.f32 %v3526_v46, %v3440_v23  ;;  %v10816_v20 = vadd.f32 %v4714_v13, %v4628_v50  ;;  %v3908_v62 = vadd.f32 %v3876_v5, %v3790_v39  ;;  %v3412_v22 = vmul.f32 %v10273_v4, %v14358_v30  ;;  %v14362_v23 = vld [vmem:[#allocation231_spill] sm:$0xff] }
 0x449   : > { %14354 = vst [vmem:[#allocation194_spill] sm:$0xff] %v10811_v32  ;;  %v3762_v18 = vmul.f32 %v10445_v7, %v14355_v25  ;;  %v4264_v47 = vadd.f32 %v4232_v31, %v4146_v51  ;;  %v14360_v1 = vperm.slane %v14359_v3, 0  ;;  %v3530_v46 = vmul.f32 %v10314_v42, %v14361_v26 }
 0x44a   : > { %14356 = vst [vmem:[#allocation222_spill] sm:$0xff] %v10816_v20  ;;  %v3676_v59 = vadd.f32 %v3644_v44, %v3558_v33  ;;  %4836 = vrot.lane.b32.xlu0 %v10816_v20, %s7113_s15  ;;  %v4026_v13 = vadd.f32 %v3994_v28, %v3908_v62  ;;  %v4230_v25 = vmul.f32 %v10663_v57, %v10811_v32  ;;  %v14363_v44 = vld [vmem:[#allocation200_spill] sm:$0xff]  ;;  %v14364_v51 = vperm.slane %v14229_v60, 0  ;;  %v14365_v28 = vld [vmem:[#allocation183_spill] sm:$0xff]  ;;  %v14376_v32 = vld [vmem:[#allocation202_spill] sm:$0xff] }
 0x44b   : > { %v3880_v10 = vmul.f32 %v10447_v55, %v14360_v1  ;;  %v3444_v5 = vadd.f32 %v3412_v22, %v10720_v0  ;;  %v3648_v31 = vmul.f32 %v10316_v11, %v14362_v23  ;;  %v4382_v50 = vadd.f32 %v14363_v44, %v4264_v47  ;;  %v14366_v0 = vld [vmem:[#allocation255_spill] sm:$0xff]  ;;  %v14370_v44 = vld [vmem:[#allocation113_spill] sm:$0xff] }
 0x44c   : > { %v3794_v39 = vadd.f32 %v3762_v18, %v3676_v59  ;;  %v3998_v33 = vmul.f32 %v10459_v56, %v14364_v51  ;;  %v13636_v1 = vperm.slane %v14318_v41, 0  ;;  %v4144_v26 = vadd.f32 %v4112_v24, %v4026_v13  ;;  %v14368_v18 = vld [vmem:[#allocation43_spill] sm:$0xff]  ;;  %v14371_v13 = vld [vmem:[#allocation217_spill] sm:$0xff] }
 0x44d   : > { %v3562_v20 = vadd.f32 %v3530_v46, %v3444_v5  ;;  %v3766_v62 = vmul.f32 %v10445_v7, %v14365_v28  ;;  %v4174_v30 = vrot.slane %v14318_v41, 2  ;;  %v4500_v22 = vadd.f32 %v14366_v0, %v4382_v50  ;;  %v14372_v28 = vld [vmem:[#allocation228_spill] sm:$0xff] }
 0x44e   : > { %v3912_v27 = vadd.f32 %v3880_v10, %v3794_v39  ;;  %v14367_v23 = vperm.slane %v14151_v40, 0  ;;  %v14369_v47 = vperm.slane %v14368_v18, 0  ;;  %v4262_v53 = vadd.f32 %v4230_v25, %v4144_v26  ;;  %v14373_v39 = vld [vmem:[#allocation218_spill] sm:$0xff]  ;;  %v14377_v26 = vld [vmem:[#allocation31_spill] sm:$0xff] }
 0x44f   : > { %v4234_v24 = vmul.f32 %v10663_v57, %v13636_v1  ;;  %v3680_v46 = vadd.f32 %v3648_v31, %v3562_v20  ;;  %v3884_v5 = vmul.f32 %v10447_v55, %v14371_v13  ;;  %v4618_v50 = vadd.f32 %v14372_v28, %v4500_v22  ;;  %v14382_v28 = vld [vmem:[#allocation240_spill] sm:$0xff] }
 0x450   : > { %v4116_v59 = vmul.f32 %v10614_v6, %v14367_v23  ;;  %v3157_v51 = vmul.f32 %v14370_v44, %v14369_v47  ;;  %v4030_v10 = vadd.f32 %v3998_v33, %v3912_v27  ;;  %v14374_v23 = vperm.slane %v14253_v15, 0 }
 0x451   : > { %v4380_v47 = vadd.f32 %v14376_v32, %v4262_v53  ;;  %v14378_v25 = vperm.slane %v14377_v26, 0  ;;  %v3798_v1 = vadd.f32 %v3766_v62, %v3680_v46  ;;  %v10863_v20 = vperm.slane %v4174_v30, 0  ;;  %v14383_v32 = vld [vmem:[#allocation260_spill] sm:$0xff]  ;;  %v14386_v46 = vld [vmem:[#allocation47_spill] sm:$0xff] }
 0x452   : > { %v3189_v0 = vadd.f32 %v3157_v51, %v14373_v39  ;;  %v3393_v18 = vmul.f32 %v14375_v2, %v14374_v23  ;;  %v10865_v31 = vadd.f32 %v4704_v38, %v4618_v50  ;;  %v4148_v13 = vadd.f32 %v4116_v59, %v4030_v10  ;;  %v14388_v10 = vld [vmem:[#allocation22_spill] sm:$0xff] }
 0x453   : > { %v4706_v63 = vmul.f32 %v14242_v52, %v14378_v25  ;;  %14379 = vst [vmem:[#allocation223_spill] sm:$0xff] %v10863_v20  ;;  %v14381_v33 = vperm.slane %v9599_v17, 0  ;;  %v4498_v22 = vadd.f32 %v10500_v61, %v4380_v47  ;;  %v3916_v51 = vadd.f32 %v3884_v5, %v3798_v1  ;;  %v14384_v17 = vld [vmem:[#allocation20_spill] sm:$0xff]  ;;  %v14387_v61 = vld [vmem:[#allocation229_spill] sm:$0xff]  ;;  %v14391_v47 = vld [vmem:[#allocation26_spill] sm:$0xff] }
 0x454   : > { %14380 = vst [vmem:[#allocation224_spill] sm:$0xff] %v10865_v31  ;;  %v3307_v27 = vadd.f32 %v10541_v54, %v3189_v0  ;;  %v4002_v53 = vmul.f32 %v10459_v56, %v10560_v58  ;;  %v4120_v62 = vmul.f32 %v10614_v6, %v14383_v32  ;;  %4816 = vrot.lane.b32.xlu2 %v10865_v31, %s7113_s15  ;;  %v14385_v59 = vperm.slane %v14384_v17, 0  ;;  %v14390_v0 = vld [vmem:[#allocation244_spill] sm:$0xff]  ;;  %v14397_v17 = vld [vmem:[#allocation149_spill] sm:$0xff]  ;;  %v14398_v58 = vld [vmem:[#allocation127_spill] sm:$0xff] }
 0x455   : > { %v3511_v15 = vmul.f32 %v14382_v28, %v14381_v33  ;;  %v4266_v38 = vadd.f32 %v4234_v24, %v4148_v13  ;;  %v4238_v54 = vmul.f32 %v10663_v57, %v10863_v20  ;;  %v4616_v1 = vadd.f32 %v14387_v61, %v4498_v22  ;;  %v14393_v33 = vld [vmem:[#allocation263_spill] sm:$0xff]  ;;  %v14395_v20 = vld [vmem:[#allocation265_spill] sm:$0xff]  ;;  %v14401_v61 = vld [vmem:[#allocation190_spill] sm:$0xff] }
 0x456   : > { %v3425_v30 = vadd.f32 %v3393_v18, %v3307_v27  ;;  %v3629_v50 = vmul.f32 %v14386_v46, %v14385_v59  ;;  %v4034_v5 = vadd.f32 %v4002_v53, %v3916_v51  ;;  %v14389_v39 = vperm.slane %v14388_v10, 0  ;;  %v14394_v24 = vld [vmem:[#allocation203_spill] sm:$0xff]  ;;  %v14396_v18 = vld [vmem:[#allocation241_spill] sm:$0xff]  ;;  %v14400_v51 = vld [vmem:[#allocation220_spill] sm:$0xff] }
 0x457   : > { %v14392_v25 = vperm.slane %v14391_v47, 0  ;;  %v4384_v13 = vadd.f32 %v14394_v24, %v4266_v38  ;;  %v3206_v27 = vadd.f32 %v14396_v18, %v14395_v20  ;;  %v3292_v59 = vmul.f32 %v14398_v58, %v14397_v17 }
 0x458   : > { %v3747_v23 = vmul.f32 %v14390_v0, %v14389_v39  ;;  %v3543_v32 = vadd.f32 %v3511_v15, %v3425_v30  ;;  %v10895_v43 = vadd.f32 %v4702_v35, %v4616_v1  ;;  %v4152_v22 = vadd.f32 %v4120_v62, %v4034_v5  ;;  %v14402_v39 = vld [vmem:[#allocation259_spill] sm:$0xff]  ;;  %v14403_v30 = vld [vmem:[#allocation32_spill] sm:$0xff] }
 0x459   : > { %v3865_v31 = vmul.f32 %v14393_v33, %v14392_v25  ;;  %v3410_v53 = vmul.f32 %v10273_v4, %v14400_v51  ;;  %v3528_v10 = vmul.f32 %v10314_v42, %v14401_v61  ;;  %v4502_v47 = vadd.f32 %v14402_v39, %v4384_v13  ;;  %v14405_v1 = vld [vmem:[#allocation267_spill] sm:$0xff]  ;;  %v10913_v61 = vpop.permute.xlu0 %4096 }
 0x45a   : > { %14399 = vst [vmem:[#allocation28_spill] sm:$0xff] %v10895_v43  ;;  %v3661_v25 = vadd.f32 %v3629_v50, %v3543_v32  ;;  %v3324_v38 = vadd.f32 %v3292_v59, %v3206_v27  ;;  %v3583_v15 = vrot.slane %v14350_v34, 1  ;;  %4812 = vrot.lane.b32.xlu1 %v10895_v43, %s7113_s15  ;;  %v4270_v20 = vadd.f32 %v4238_v54, %v4152_v22  ;;  %v10915_v32 = vpop.permute.xlu1 %4214  ;;  %v14408_v50 = vld [vmem:[#allocation230_spill] sm:$0xff]  ;;  %v14410_v54 = vld [vmem:[#allocation204_spill] sm:$0xff] }
 0x45b   : > { %v14404_v35 = vperm.slane %v14403_v30, 0  ;;  %v14406_v5 = vrot.slane %v14339_v19, 1  ;;  %v3819_v18 = vrot.slane %v14359_v3, 1  ;;  %v4620_v13 = vadd.f32 %v14408_v50, %v4502_v47 }
 0x45c   : > { %v3779_v27 = vadd.f32 %v3747_v23, %v3661_v25  ;;  %v3442_v59 = vadd.f32 %v3410_v53, %v3324_v38  ;;  %v10918_v39 = vperm.slane %v3583_v15, 0  ;;  %v4388_v22 = vadd.f32 %v14410_v54, %v4270_v20  ;;  %v14413_v23 = vld [vmem:[#allocation261_spill] sm:$0xff] }
 0x45d   : > { %v3983_v62 = vmul.f32 %v14405_v1, %v14404_v35  ;;  %v10910_v24 = vperm.slane %v14406_v5, 0  ;;  %v10923_v35 = vperm.slane %v3819_v18, 0  ;;  %v3937_v5 = vrot.slane %v14229_v60, 1 }
 0x45e   : > { %14409 = vst [vmem:[#allocation225_spill] sm:$0xff] %v10918_v39  ;;  %v10926_v43 = vadd.f32 %v4706_v63, %v4620_v13  ;;  %v3897_v51 = vadd.f32 %v3865_v31, %v3779_v27  ;;  %v3560_v17 = vadd.f32 %v3528_v10, %v3442_v59  ;;  %v3646_v47 = vmul.f32 %v10316_v11, %v10918_v39  ;;  %v14416_v13 = vld [vmem:[#allocation232_spill] sm:$0xff] }
 0x45f   : > { %14407 = vst [vmem:[#allocation250_spill] sm:$0xff] %v10910_v24  ;;  %v3764_v30 = vmul.f32 %v10445_v7, %v10910_v24  ;;  %v4506_v53 = vadd.f32 %v14413_v23, %v4388_v22  ;;  %v14414_v25 = vperm.slane %v14176_v21, 0  ;;  %v14415_v15 = vperm.slane %v14218_v12, 0  ;;  %v14417_v27 = vld [vmem:[#allocation184_spill] sm:$0xff]  ;;  %v14418_v12 = vld [vmem:[#allocation46_spill] sm:$0xff] }
 0x460   : > { %14411 = vst [vmem:[#allocation226_spill] sm:$0xff] %v10923_v35  ;;  %v4055_v18 = vrot.slane %v14151_v40, 1  ;;  %4820 = vrot.lane.b32.xlu2 %v10926_v43, %s7113_s15  ;;  %v4015_v63 = vadd.f32 %v3983_v62, %v3897_v51  ;;  %v3678_v31 = vadd.f32 %v3646_v47, %v3560_v17  ;;  %v3882_v10 = vmul.f32 %v10447_v55, %v10923_v35  ;;  %v14420_v22 = vld [vmem:[#allocation132_spill] sm:$0xff]  ;;  %v14428_v24 = vld [vmem:[#allocation162_spill] sm:$0xff] }
 0x461   : > { %14412 = vst [vmem:[#allocation163_spill] sm:$0xff] %v10926_v43  ;;  %v4101_v38 = vmul.f32 %v10913_v61, %v14414_v25  ;;  %v4219_v20 = vmul.f32 %v10915_v32, %v14415_v15  ;;  %v4173_v50 = vrot.slane %v14318_v41, 1  ;;  %v4624_v21 = vadd.f32 %v14416_v13, %v4506_v53  ;;  %v14423_v17 = vld [vmem:[#allocation212_spill] sm:$0xff] }
 0x462   : > { %v4710_v59 = vmul.f32 %v14242_v52, %v14417_v27  ;;  %v14419_v54 = vperm.slane %v14418_v12, 0  ;;  %v10949_v25 = vperm.slane %v3937_v5, 0  ;;  %v14422_v51 = vperm.slane %v14308_v14, 0  ;;  %v14426_v13 = vld [vmem:[#allocation152_spill] sm:$0xff]  ;;  %v14427_v27 = vld [vmem:[#allocation58_spill] sm:$0xff] }
 0x463   : > { %v4133_v15 = vadd.f32 %v4101_v38, %v4015_v63  ;;  %v3796_v47 = vadd.f32 %v3764_v30, %v3678_v31  ;;  %v10954_v43 = vperm.slane %v4055_v18, 0  ;;  %v2942_v12 = vmul.f32 %v14427_v27, %v14426_v13  ;;  %v14431_v18 = vld [vmem:[#allocation42_spill] sm:$0xff] }
 0x464   : > { %v4573_v23 = vmul.f32 %v14420_v22, %v14419_v54  ;;  %14421 = vst [vmem:[#allocation197_spill] sm:$0xff] %v10949_v25  ;;  %v4691_v62 = vmul.f32 %v14423_v17, %v14422_v51  ;;  %v10956_v35 = vadd.f32 %v4710_v59, %v4624_v21  ;;  %v4000_v53 = vmul.f32 %v10459_v56, %v10949_v25  ;;  %v14429_v54 = vld [vmem:[#allocation68_spill] sm:$0xff]  ;;  %v14432_v31 = vld [vmem:[#allocation62_spill] sm:$0xff]  ;;  %v14433_v59 = vld [vmem:[#allocation215_spill] sm:$0xff] }
 0x465   : > { %14424 = vst [vmem:[#allocation252_spill] sm:$0xff] %v10954_v43  ;;  %v3060_v5 = vmul.f32 %v14429_v54, %v14428_v24  ;;  %v4251_v39 = vadd.f32 %v4219_v20, %v4133_v15  ;;  %v3914_v38 = vadd.f32 %v3882_v10, %v3796_v47  ;;  %v4118_v14 = vmul.f32 %v10614_v6, %v10954_v43  ;;  %v14434_v24 = vld [vmem:[#allocation219_spill] sm:$0xff] }
 0x466   : > { %14425 = vst [vmem:[#allocation158_spill] sm:$0xff] %v10956_v35  ;;  %v10966_v63 = vperm.slane %v4173_v50, 0  ;;  %4828 = vrot.lane.b32.xlu1 %v10956_v35, %s7113_s15  ;;  %v3178_v21 = vmul.f32 %v14432_v31, %v14431_v18  ;;  %v3296_v51 = vmul.f32 %v14398_v58, %v14433_v59  ;;  %v3349_v25 = vrot.slane %v14344_v49, 3  ;;  %v14436_v35 = vld [vmem:[#allocation262_spill] sm:$0xff] }
 0x467   : > { %v3092_v30 = vadd.f32 %v3060_v5, %v2942_v12  ;;  %v4369_v20 = vadd.f32 %v14434_v24, %v4251_v39  ;;  %v4032_v10 = vadd.f32 %v4000_v53, %v3914_v38  ;;  %v3467_v50 = vrot.slane %v14348_v8, 3 }
 0x468   : > { %14430 = vst [vmem:[#allocation66_spill] sm:$0xff] %v10966_v63  ;;  %v4236_v15 = vmul.f32 %v10663_v57, %v10966_v63  ;;  %v10979_v43 = vperm.slane %v3349_v25, 0  ;;  %v3585_v12 = vrot.slane %v14350_v34, 3  ;;  %v3703_v5 = vrot.slane %v14339_v19, 3  ;;  %v14440_v63 = vld [vmem:[#allocation61_spill] sm:$0xff] }
 0x469   : > { %v3210_v47 = vadd.f32 %v3178_v21, %v3092_v30  ;;  %v4487_v18 = vadd.f32 %v14436_v35, %v4369_v20  ;;  %v4150_v59 = vadd.f32 %v4118_v14, %v4032_v10  ;;  %v4645_v13 = vrot.slane %v14377_v26, 1  ;;  %v14439_v21 = vld [vmem:[#allocation165_spill] sm:$0xff]  ;;  %v14442_v20 = vld [vmem:[#allocation82_spill] sm:$0xff] }
 0x46a   : > { %14435 = vst [vmem:[#allocation23_spill] sm:$0xff] %v10979_v43  ;;  %v10985_v45 = vperm.slane %v3467_v50, 0  ;;  %v3414_v39 = vmul.f32 %v10273_v4, %v10979_v43  ;;  %v10989_v53 = vperm.slane %v3585_v12, 0  ;;  %v3821_v25 = vrot.slane %v14359_v3, 3  ;;  %v14441_v14 = vld [vmem:[#allocation161_spill] sm:$0xff] }
 0x46b   : > { %v3328_v24 = vadd.f32 %v3296_v51, %v3210_v47  ;;  %v4605_v38 = vadd.f32 %v4573_v23, %v4487_v18  ;;  %v4268_v30 = vadd.f32 %v4236_v15, %v4150_v59  ;;  %v4354_v37 = vmul.f32 %v14440_v63, %v14439_v21 }
 0x46c   : > { %14437 = vst [vmem:[#allocation198_spill] sm:$0xff] %v10985_v45  ;;  %v3532_v35 = vmul.f32 %v10314_v42, %v10985_v45  ;;  %v4472_v10 = vmul.f32 %v14442_v20, %v14441_v14  ;;  %v3650_v51 = vmul.f32 %v10316_v11, %v10989_v53  ;;  %v11000_v47 = vperm.slane %v3703_v5, 0  ;;  %v14450_v14 = vld [vmem:[#allocation38_spill] sm:$0xff] }
 0x46d   : > { %14438 = vst [vmem:[#allocation150_spill] sm:$0xff] %v10989_v53  ;;  %v3446_v50 = vadd.f32 %v3414_v39, %v3328_v24  ;;  %v11002_v12 = vadd.f32 %v4691_v62, %v4605_v38  ;;  %v4386_v43 = vadd.f32 %v4354_v37, %v4268_v30  ;;  %v11004_v23 = vperm.slane %v4645_v13, 0  ;;  %v14447_v39 = vld [vmem:[#allocation221_spill] sm:$0xff]  ;;  %v14448_v62 = vld [vmem:[#allocation64_spill] sm:$0xff] }
 0x46e   : > { %14443 = vst [vmem:[#allocation16_spill] sm:$0xff] %v11000_v47  ;;  %v3939_v18 = vrot.slane %v14229_v60, 3  ;;  %v3768_v15 = vmul.f32 %v10445_v7, %v11000_v47  ;;  %v11009_v21 = vperm.slane %v3821_v25, 0  ;;  %v4057_v24 = vrot.slane %v14151_v40, 3  ;;  %v14449_v13 = vld [vmem:[#allocation41_spill] sm:$0xff] }
 0x46f   : > { %14444 = vst [vmem:[#allocation24_spill] sm:$0xff] %v11002_v12  ;;  %v3564_v59 = vadd.f32 %v3532_v35, %v3446_v50  ;;  %4790 = vrot.lane.b32.xlu0 %v11002_v12, %s7113_s15  ;;  %v4504_v5 = vadd.f32 %v4472_v10, %v4386_v43  ;;  %v4590_v38 = vmul.f32 %v14448_v62, %v14447_v39  ;;  %v4175_v37 = vrot.slane %v14318_v41, 3  ;;  %v14452_v43 = vld [vmem:[#allocation52_spill] sm:$0xff] }
 0x470   : > { %14445 = vst [vmem:[#allocation227_spill] sm:$0xff] %v11004_v23  ;;  %v4411_v30 = vrot.slane %v14449_v13, 3  ;;  %v4708_v35 = vmul.f32 %v14242_v52, %v11004_v23  ;;  %v3886_v25 = vmul.f32 %v10447_v55, %v11009_v21  ;;  %v4293_v47 = vrot.slane %v14450_v14, 3  ;;  %v14456_v23 = vld [vmem:[#allocation81_spill] sm:$0xff] }
 0x471   : > { %14446 = vst [vmem:[#allocation29_spill] sm:$0xff] %v11009_v21  ;;  %v3682_v50 = vadd.f32 %v3650_v51, %v3564_v59  ;;  %v4622_v53 = vadd.f32 %v4590_v38, %v4504_v5  ;;  %v11023_v45 = vperm.slane %v3939_v18, 0  ;;  %v4529_v10 = vrot.slane %v14452_v43, 3  ;;  %v14457_v51 = vld [vmem:[#allocation65_spill] sm:$0xff]  ;;  %v14461_v18 = vld [vmem:[#allocation118_spill] sm:$0xff] }
 0x472   : > { %v4647_v12 = vrot.slane %v14377_v26, 3  ;;  %v11027_v48 = vperm.slane %v4057_v24, 0  ;;  %v2927_v13 = vmul.f32 %v14455_v9, %v14454_v16  ;;  %v3045_v59 = vmul.f32 %v14457_v51, %v14456_v23  ;;  %v14474_v9 = vld [vmem:[#allocation178_spill] sm:$0xff] }
 0x473   : > { %14451 = vst [vmem:[#allocation200_spill] sm:$0xff] %v11023_v45  ;;  %v3800_v39 = vadd.f32 %v3768_v15, %v3682_v50  ;;  %v11033_v7 = vadd.f32 %v4708_v35, %v4622_v53  ;;  %v11035_v21 = vperm.slane %v4175_v37, 0  ;;  %v11037_v5 = vperm.slane %v4411_v30, 0  ;;  %v14465_v50 = vld [vmem:[#allocation103_spill] sm:$0xff] }
 0x474   : > { %14453 = vst [vmem:[#allocation255_spill] sm:$0xff] %v11027_v48  ;;  %v3163_v38 = vmul.f32 %v14370_v44, %v14461_v18  ;;  %v4004_v15 = vmul.f32 %v10459_v56, %v11023_v45  ;;  %v4122_v24 = vmul.f32 %v10614_v6, %v11027_v48  ;;  %v3077_v16 = vadd.f32 %v3045_v59, %v2927_v13  ;;  %v14467_v45 = vld [vmem:[#allocation146_spill] sm:$0xff] }
 0x475   : > { %14458 = vst [vmem:[#allocation43_spill] sm:$0xff] %v11033_v7  ;;  %v3918_v43 = vadd.f32 %v3886_v25, %v3800_v39  ;;  %4824 = vrot.lane.b32.xlu2 %v11033_v7, %s7113_s15  ;;  %v4240_v53 = vmul.f32 %v10663_v57, %v11035_v21  ;;  %v11049_v23 = vperm.slane %v4293_v47, 0  ;;  %v11051_v37 = vperm.slane %v4529_v10, 0  ;;  %v14466_v25 = vld [vmem:[#allocation196_spill] sm:$0xff]  ;;  %v14468_v10 = vld [vmem:[#allocation37_spill] sm:$0xff] }
 0x476   : > { %14459 = vst [vmem:[#allocation228_spill] sm:$0xff] %v11035_v21  ;;  %v11053_v30 = vperm.slane %v4647_v12, 0  ;;  %v3195_v35 = vadd.f32 %v3163_v38, %v3077_v16  ;;  %v3281_v18 = vmul.f32 %v14466_v25, %v14465_v50  ;;  %v3399_v13 = vmul.f32 %v14375_v2, %v14467_v45  ;;  %v14470_v45 = vld [vmem:[#allocation171_spill] sm:$0xff]  ;;  %v14472_v2 = vld [vmem:[#allocation49_spill] sm:$0xff]  ;;  %v14473_v25 = vld [vmem:[#allocation50_spill] sm:$0xff] }
 0x477   : > { %14460 = vst [vmem:[#allocation218_spill] sm:$0xff] %v11037_v5  ;;  %v4036_v39 = vadd.f32 %v4004_v15, %v3918_v43  ;;  %v4358_v59 = vmul.f32 %v14440_v63, %v11049_v23  ;;  %v4476_v7 = vmul.f32 %v14442_v20, %v11037_v5  ;;  %v4594_v47 = vmul.f32 %v14448_v62, %v11051_v37  ;;  %v14469_v15 = vld [vmem:[#allocation195_spill] sm:$0xff] }
 0x478   : > { %14462 = vst [vmem:[#allocation202_spill] sm:$0xff] %v11049_v23  ;;  %v2879_v12 = vrot.slane %v14468_v10, 5  ;;  %v4712_v43 = vmul.f32 %v14242_v52, %v11053_v30  ;;  %v3313_v38 = vadd.f32 %v3281_v18, %v3195_v35  ;;  %v3517_v16 = vmul.f32 %v14382_v28, %v14469_v15  ;;  %v14471_v23 = vld [vmem:[#allocation40_spill] sm:$0xff]  ;;  %v14475_v35 = vld [vmem:[#allocation237_spill] sm:$0xff]  ;;  %v14479_v62 = vld [vmem:[#allocation251_spill] sm:$0xff] }
 0x479   : > { %14463 = vst [vmem:[#allocation20_spill] sm:$0xff] %v11051_v37  ;;  %v4154_v21 = vadd.f32 %v4122_v24, %v4036_v39  ;;  %v3635_v50 = vmul.f32 %v14386_v46, %v14470_v45  ;;  %v2997_v48 = vrot.slane %v14471_v23, 5  ;;  %v3115_v5 = vrot.slane %v14472_v2, 5  ;;  %v14476_v15 = vld [vmem:[#allocation209_spill] sm:$0xff] }
 0x47a   : > { %14464 = vst [vmem:[#allocation229_spill] sm:$0xff] %v11053_v30  ;;  %v3233_v44 = vrot.slane %v14473_v25, 5  ;;  %v3431_v51 = vadd.f32 %v3399_v13, %v3313_v38  ;;  %v3753_v24 = vmul.f32 %v14390_v0, %v14474_v9  ;;  %v3351_v39 = vrot.slane %v14344_v49, 5 }
 0x47b   : > { %v4272_v37 = vadd.f32 %v4240_v53, %v4154_v21  ;;  %v3871_v18 = vmul.f32 %v14393_v33, %v14475_v35  ;;  %v3989_v30 = vmul.f32 %v14405_v1, %v14476_v15  ;;  %v11082_v45 = vperm.slane %v2879_v12, 0 }
 0x47c   : > { %v11084_v46 = vperm.slane %v2997_v48, 0  ;;  %v3549_v52 = vadd.f32 %v3517_v16, %v3431_v51  ;;  %v4107_v21 = vmul.f32 %v10913_v61, %v14479_v62  ;;  %v3469_v53 = vrot.slane %v14348_v8, 5 }
 0x47d   : > { %14477 = vst [vmem:[#allocation22_spill] sm:$0xff] %v11082_v45  ;;  %v4390_v28 = vadd.f32 %v4358_v59, %v4272_v37  ;;  %v2946_v9 = vmul.f32 %v14427_v27, %v11082_v45  ;;  %v11093_v38 = vperm.slane %v3115_v5, 0  ;;  %v11095_v35 = vperm.slane %v3233_v44, 0 }
 0x47e   : > { %14478 = vst [vmem:[#allocation244_spill] sm:$0xff] %v11084_v46  ;;  %v3064_v13 = vmul.f32 %v14429_v54, %v11084_v46  ;;  %v3667_v48 = vadd.f32 %v3635_v50, %v3549_v52  ;;  %v11097_v15 = vperm.slane %v3351_v39, 0  ;;  %v3587_v51 = vrot.slane %v14350_v34, 5 }
 0x47f   : > { %14480 = vst [vmem:[#allocation26_spill] sm:$0xff] %v11093_v38  ;;  %v4508_v12 = vadd.f32 %v4476_v7, %v4390_v28  ;;  %v4225_v62 = vmul.f32 %v10915_v32, %v10678_v29  ;;  %v3182_v59 = vmul.f32 %v14432_v31, %v11093_v38  ;;  %v3300_v16 = vmul.f32 %v14398_v58, %v11095_v35 }
 0x480   : > { %14481 = vst [vmem:[#allocation263_spill] sm:$0xff] %v11095_v35  ;;  %v3096_v37 = vadd.f32 %v3064_v13, %v2946_v9  ;;  %v3785_v46 = vadd.f32 %v3753_v24, %v3667_v48  ;;  %v3418_v7 = vmul.f32 %v10273_v4, %v11097_v15  ;;  %v11108_v52 = vperm.slane %v3469_v53, 0  ;;  %v14486_v24 = vld [vmem:[#allocation89_spill] sm:$0xff]  ;;  %v14489_v53 = vld [vmem:[#allocation67_spill] sm:$0xff] }
 0x481   : > { %14482 = vst [vmem:[#allocation203_spill] sm:$0xff] %v11097_v15  ;;  %v4626_v5 = vadd.f32 %v4594_v47, %v4508_v12  ;;  %v3705_v28 = vrot.slane %v14339_v19, 5  ;;  %v3823_v50 = vrot.slane %v14359_v3, 5  ;;  %v3941_v29 = vrot.slane %v14229_v60, 5  ;;  %v14487_v12 = vld [vmem:[#allocation18_spill] sm:$0xff]  ;;  %v14488_v15 = vld [vmem:[#allocation119_spill] sm:$0xff] }
 0x482   : > { %14483 = vst [vmem:[#allocation265_spill] sm:$0xff] %v11108_v52  ;;  %v3214_v44 = vadd.f32 %v3182_v59, %v3096_v37  ;;  %v3903_v9 = vadd.f32 %v3871_v18, %v3785_v46  ;;  %v11115_v13 = vperm.slane %v3587_v51, 0  ;;  %v4059_v47 = vrot.slane %v14151_v40, 5 }
 0x483   : > { %v11113_v39 = vadd.f32 %v4712_v43, %v4626_v5  ;;  %v4343_v48 = vmul.f32 %v14487_v12, %v14486_v24  ;;  %v4461_v35 = vmul.f32 %v14489_v53, %v14488_v15  ;;  %v3536_v59 = vmul.f32 %v10314_v42, %v11108_v52  ;;  %v14490_v5 = vld [vmem:[#allocation130_spill] sm:$0xff] }
 0x484   : > { %14485 = vst [vmem:[#allocation127_spill] sm:$0xff] %v11115_v13  ;;  %v3332_v37 = vadd.f32 %v3300_v16, %v3214_v44  ;;  %v4021_v43 = vadd.f32 %v3989_v30, %v3903_v9  ;;  %v4579_v46 = vmul.f32 %v14420_v22, %v14490_v5  ;;  %v3654_v18 = vmul.f32 %v10316_v11, %v11115_v13  ;;  %v14495_v13 = vld [vmem:[#allocation253_spill] sm:$0xff] }
 0x485   : > { %14484 = vst [vmem:[#allocation241_spill] sm:$0xff] %v11113_v39  ;;  %4832 = vrot.lane.b32.xlu1 %v11113_v39, %s7113_s15  ;;  %v4177_v51 = vrot.slane %v14318_v41, 5  ;;  %v11131_v38 = vperm.slane %v3705_v28, 0  ;;  %v11133_v15 = vperm.slane %v3823_v50, 0  ;;  %v11135_v16 = vperm.slane %v3941_v29, 0 }
 0x486   : > { %v3450_v24 = vadd.f32 %v3418_v7, %v3332_v37  ;;  %v4139_v44 = vadd.f32 %v4107_v21, %v4021_v43  ;;  %v4697_v39 = vmul.f32 %v14423_v17, %v14328_v36  ;;  %v11139_v30 = vperm.slane %v4059_v47, 0 }
 0x487   : > { %14491 = vst [vmem:[#allocation259_spill] sm:$0xff] %v11131_v38  ;;  %v2881_v9 = vrot.slane %v14468_v10, 7  ;;  %v3772_v52 = vmul.f32 %v14495_v13, %v11131_v38  ;;  %v3890_v7 = vmul.f32 %v10447_v55, %v11133_v15  ;;  %v4008_v28 = vmul.f32 %v10459_v56, %v11135_v16 }
 0x488   : > { %14492 = vst [vmem:[#allocation32_spill] sm:$0xff] %v11133_v15  ;;  %v3568_v5 = vadd.f32 %v3536_v59, %v3450_v24  ;;  %v4257_v50 = vadd.f32 %v4225_v62, %v4139_v44  ;;  %v4126_v21 = vmul.f32 %v10614_v6, %v11139_v30  ;;  %v11150_v29 = vperm.slane %v4177_v51, 0  ;;  %v14497_v59 = vld [vmem:[#allocation41_spill] sm:$0xff]  ;;  %v14498_v24 = vld [vmem:[#allocation52_spill] sm:$0xff] }
 0x489   : > { %14493 = vst [vmem:[#allocation267_spill] sm:$0xff] %v11135_v16  ;;  %v2999_v36 = vrot.slane %v14471_v23, 7  ;;  %v4295_v37 = vrot.slane %v14450_v14, 5  ;;  %v4413_v43 = vrot.slane %v14497_v59, 5  ;;  %v4531_v38 = vrot.slane %v14498_v24, 5 }
 0x48a   : > { %14494 = vst [vmem:[#allocation230_spill] sm:$0xff] %v11139_v30  ;;  %v3686_v47 = vadd.f32 %v3654_v18, %v3568_v5  ;;  %v4375_v45 = vadd.f32 %v4343_v48, %v4257_v50  ;;  %v11156_v15 = vperm.slane %v2881_v9, 0  ;;  %v3117_v62 = vrot.slane %v14472_v2, 7 }
 0x48b   : > { %14496 = vst [vmem:[#allocation204_spill] sm:$0xff] %v11150_v29  ;;  %v11158_v17 = vperm.slane %v2999_v36, 0  ;;  %v3235_v51 = vrot.slane %v14473_v25, 7  ;;  %v3353_v30 = vrot.slane %v14344_v49, 7  ;;  %v3471_v18 = vrot.slane %v14348_v8, 7 }
 0x48c   : > { %14499 = vst [vmem:[#allocation261_spill] sm:$0xff] %v11156_v15  ;;  %v3804_v44 = vadd.f32 %v3772_v52, %v3686_v47  ;;  %v4493_v5 = vadd.f32 %v4461_v35, %v4375_v45  ;;  %v2950_v16 = vmul.f32 %v14427_v27, %v11156_v15  ;;  %v11168_v9 = vperm.slane %v3117_v62, 0 }
 0x48d   : > { %14500 = vst [vmem:[#allocation232_spill] sm:$0xff] %v11158_v17  ;;  %v3068_v48 = vmul.f32 %v14429_v54, %v11158_v17  ;;  %v4649_v36 = vrot.slane %v14377_v26, 5  ;;  %v11171_v22 = vperm.slane %v3235_v51, 0  ;;  %v3589_v52 = vrot.slane %v14350_v34, 7 }
 0x48e   : > { %14501 = vst [vmem:[#allocation46_spill] sm:$0xff] %v11168_v9  ;;  %v3922_v50 = vadd.f32 %v3890_v7, %v3804_v44  ;;  %v4611_v47 = vadd.f32 %v4579_v46, %v4493_v5  ;;  %v3186_v45 = vmul.f32 %v14432_v31, %v11168_v9  ;;  %v11176_v35 = vperm.slane %v3353_v30, 0  ;;  %v14517_v9 = vld [vmem:[#allocation57_spill] sm:$0xff] }
 0x48f   : > { %14502 = vst [vmem:[#allocation58_spill] sm:$0xff] %v11171_v22  ;;  %v3100_v53 = vadd.f32 %v3068_v48, %v2950_v16  ;;  %v4244_v17 = vmul.f32 %v10663_v57, %v11150_v29  ;;  %v3304_v7 = vmul.f32 %v14398_v58, %v11171_v22  ;;  %v11182_v62 = vperm.slane %v3471_v18, 0  ;;  %v14516_v22 = vld [vmem:[#allocation76_spill] sm:$0xff] }
 0x490   : > { %14503 = vst [vmem:[#allocation68_spill] sm:$0xff] %v11176_v35  ;;  %v4040_v15 = vadd.f32 %v4008_v28, %v3922_v50  ;;  %v11184_v44 = vadd.f32 %v4697_v39, %v4611_v47  ;;  %v3422_v46 = vmul.f32 %v10273_v4, %v11176_v35  ;;  %v3707_v16 = vrot.slane %v14339_v19, 7 }
 0x491   : > { %14504 = vst [vmem:[#allocation62_spill] sm:$0xff] %v11182_v62  ;;  %v3218_v51 = vadd.f32 %v3186_v45, %v3100_v53  ;;  %v11189_v30 = vperm.slane %v4295_v37, 0  ;;  %v11191_v28 = vperm.slane %v4413_v43, 0  ;;  %v3825_v48 = vrot.slane %v14359_v3, 7 }
 0x492   : > { %14505 = vst [vmem:[#allocation219_spill] sm:$0xff] %v11184_v44  ;;  %v4158_v5 = vadd.f32 %v4126_v21, %v4040_v15  ;;  %4802 = vrot.lane.b32.xlu0 %v11184_v44, %s7113_s15  ;;  %v11196_v18 = vperm.slane %v4531_v38, 0  ;;  %v3540_v53 = vmul.f32 %v10314_v42, %v11182_v62  ;;  %v11200_v50 = vperm.slane %v3589_v52, 0 }
 0x493   : > { %14506 = vst [vmem:[#allocation262_spill] sm:$0xff] %v11189_v30  ;;  %v3336_v39 = vadd.f32 %v3304_v7, %v3218_v51  ;;  %v4362_v15 = vmul.f32 %v14440_v63, %v11189_v30  ;;  %v11204_v21 = vperm.slane %v4649_v36, 0  ;;  %v3943_v37 = vrot.slane %v14229_v60, 7  ;;  %v14513_v36 = vld [vmem:[#allocation64_spill] sm:$0xff]  ;;  %v14520_v30 = vld [vmem:[#allocation122_spill] sm:$0xff] }
 0x494   : > { %14507 = vst [vmem:[#allocation61_spill] sm:$0xff] %v11191_v28  ;;  %v4276_v47 = vadd.f32 %v4244_v17, %v4158_v5  ;;  %v4480_v43 = vmul.f32 %v14442_v20, %v11191_v28  ;;  %v3658_v38 = vmul.f32 %v10316_v11, %v11200_v50  ;;  %v11211_v7 = vperm.slane %v3707_v16, 0  ;;  %v14514_v16 = vld [vmem:[#allocation143_spill] sm:$0xff] }
 0x495   : > { %14508 = vst [vmem:[#allocation82_spill] sm:$0xff] %v11196_v18  ;;  %v3454_v45 = vadd.f32 %v3422_v46, %v3336_v39  ;;  %v11213_v52 = vperm.slane %v3825_v48, 0  ;;  %v4061_v17 = vrot.slane %v14151_v40, 7  ;;  %v4179_v5 = vrot.slane %v14318_v41, 7 }
 0x496   : > { %14509 = vst [vmem:[#allocation73_spill] sm:$0xff] %v11200_v50  ;;  %v4394_v51 = vadd.f32 %v4362_v15, %v4276_v47  ;;  %v4598_v44 = vmul.f32 %v14513_v36, %v11196_v18  ;;  %v3776_v35 = vmul.f32 %v14495_v13, %v11211_v7  ;;  %v4297_v46 = vrot.slane %v14450_v14, 7  ;;  %v14518_v18 = vld [vmem:[#allocation85_spill] sm:$0xff] }
 0x497   : > { %14510 = vst [vmem:[#allocation81_spill] sm:$0xff] %v11204_v21  ;;  %v3572_v62 = vadd.f32 %v3540_v53, %v3454_v45  ;;  %v4716_v50 = vmul.f32 %v14514_v16, %v11204_v21  ;;  %v3894_v48 = vmul.f32 %v10447_v55, %v11213_v52  ;;  %v11226_v47 = vperm.slane %v3943_v37, 0  ;;  %v14519_v53 = vld [vmem:[#allocation65_spill] sm:$0xff] }
 0x498   : > { %14511 = vst [vmem:[#allocation118_spill] sm:$0xff] %v11211_v7  ;;  %v4512_v39 = vadd.f32 %v4480_v43, %v4394_v51  ;;  %v2933_v28 = vmul.f32 %v14517_v9, %v14516_v22  ;;  %v3051_v45 = vmul.f32 %v14519_v53, %v14518_v18  ;;  %v14521_v7 = vld [vmem:[#allocation113_spill] sm:$0xff]  ;;  %v11234_v43 = vperm.slane %v4061_v17, 0 }
 0x499   : > { %14512 = vst [vmem:[#allocation103_spill] sm:$0xff] %v11213_v52  ;;  %v3690_v15 = vadd.f32 %v3658_v38, %v3572_v62  ;;  %v3169_v29 = vmul.f32 %v14521_v7, %v14520_v30  ;;  %v11236_v51 = vperm.slane %v4179_v5, 0  ;;  %v4415_v21 = vrot.slane %v14497_v59, 7  ;;  %v14527_v59 = vld [vmem:[#allocation196_spill] sm:$0xff] }
 0x49a   : > { %14515 = vst [vmem:[#allocation146_spill] sm:$0xff] %v11226_v47  ;;  %v4630_v14 = vadd.f32 %v4598_v44, %v4512_v39  ;;  %v11239_v37 = vperm.slane %v4297_v46, 0  ;;  %v4533_v62 = vrot.slane %v14498_v24, 7  ;;  %v3083_v38 = vadd.f32 %v3051_v45, %v2933_v28  ;;  %v14526_v39 = vld [vmem:[#allocation106_spill] sm:$0xff]  ;;  %v14528_v46 = vld [vmem:[#allocation148_spill] sm:$0xff] }
 0x49b   : > { %14522 = vst [vmem:[#allocation37_spill] sm:$0xff] %v11234_v43  ;;  %v3808_v52 = vadd.f32 %v3776_v35, %v3690_v15  ;;  %v4012_v18 = vmul.f32 %v10459_v56, %v11226_v47  ;;  %v4130_v44 = vmul.f32 %v10614_v6, %v11234_v43  ;;  %v4651_v30 = vrot.slane %v14377_v26, 7  ;;  %v14529_v15 = vld [vmem:[#allocation213_spill] sm:$0xff]  ;;  %v14536_v47 = vld [vmem:[#allocation47_spill] sm:$0xff] }
 0x49c   : > { %14523 = vst [vmem:[#allocation195_spill] sm:$0xff] %v11236_v51  ;;  %v11242_v22 = vadd.f32 %v4716_v50, %v4630_v14  ;;  %v3201_v5 = vadd.f32 %v3169_v29, %v3083_v38  ;;  %v3287_v35 = vmul.f32 %v14527_v59, %v14526_v39  ;;  %v3405_v7 = vmul.f32 %v14529_v15, %v14528_v46  ;;  %v14533_v38 = vld [vmem:[#allocation240_spill] sm:$0xff]  ;;  %v14535_v46 = vld [vmem:[#allocation173_spill] sm:$0xff] }
 0x49d   : > { %14524 = vst [vmem:[#allocation171_spill] sm:$0xff] %v11239_v37  ;;  %v3926_v17 = vadd.f32 %v3894_v48, %v3808_v52  ;;  %v4248_v14 = vmul.f32 %v10663_v57, %v11236_v51  ;;  %v4366_v28 = vmul.f32 %v14440_v63, %v11239_v37  ;;  %v11259_v50 = vperm.slane %v4415_v21, 0  ;;  %v14532_v48 = vld [vmem:[#allocation201_spill] sm:$0xff] }
 0x49e   : > { %14525 = vst [vmem:[#allocation49_spill] sm:$0xff] %v11242_v22  ;;  %4840 = vrot.lane.b32.xlu2 %v11242_v22, %s7113_s15  ;;  %v11261_v52 = vperm.slane %v4533_v62, 0  ;;  %v3319_v29 = vadd.f32 %v3287_v35, %v3201_v5  ;;  %v3523_v39 = vmul.f32 %v14533_v38, %v14532_v48  ;;  %v11265_v43 = vperm.slane %v4651_v30, 0 }
 0x49f   : > { %14530 = vst [vmem:[#allocation50_spill] sm:$0xff] %v11259_v50  ;;  %v4044_v45 = vadd.f32 %v4012_v18, %v3926_v17  ;;  %v3641_v22 = vmul.f32 %v14536_v47, %v14535_v46  ;;  %v2880_v26 = vrot.slane %v14468_v10, 6  ;;  %v2998_v51 = vrot.slane %v14471_v23, 6  ;;  %v14537_v46 = vld [vmem:[#allocation180_spill] sm:$0xff] }
 0x4a0   : > { %14531 = vst [vmem:[#allocation178_spill] sm:$0xff] %v11261_v52  ;;  %v3437_v37 = vadd.f32 %v3405_v7, %v3319_v29  ;;  %v3116_v21 = vrot.slane %v14472_v2, 6  ;;  %v3234_v62 = vrot.slane %v14473_v25, 6  ;;  %v4484_v18 = vmul.f32 %v14442_v20, %v11259_v50 }
 0x4a1   : > { %14534 = vst [vmem:[#allocation237_spill] sm:$0xff] %v11265_v43  ;;  %v4162_v57 = vadd.f32 %v4130_v44, %v4044_v45  ;;  %v11275_v17 = vperm.slane %v2880_v26, 0  ;;  %v11277_v30 = vperm.slane %v2998_v51, 0  ;;  %v3352_v5 = vrot.slane %v14344_v49, 6  ;;  %v14540_v49 = vld [vmem:[#allocation79_spill] sm:$0xff] }
 0x4a2   : > { %v3555_v48 = vadd.f32 %v3523_v39, %v3437_v37  ;;  %v3759_v23 = vmul.f32 %v14390_v0, %v14537_v46  ;;  %v3470_v7 = vrot.slane %v14348_v8, 6  ;;  %v11287_v29 = vperm.slane %v3116_v21, 0 }
 0x4a3   : > { %v4280_v35 = vadd.f32 %v4248_v14, %v4162_v57  ;;  %v2948_v44 = vmul.f32 %v14427_v27, %v11275_v17  ;;  %v3066_v45 = vmul.f32 %v14429_v54, %v11277_v30  ;;  %v11289_v26 = vperm.slane %v3234_v62, 0 }
 0x4a4   : > { %14538 = vst [vmem:[#allocation209_spill] sm:$0xff] %v11287_v29  ;;  %v3673_v50 = vadd.f32 %v3641_v22, %v3555_v48  ;;  %v3877_v57 = vmul.f32 %v14393_v33, %v14540_v49  ;;  %v11293_v37 = vperm.slane %v3352_v5, 0  ;;  %v3184_v39 = vmul.f32 %v14432_v31, %v11287_v29  ;;  %v14542_v22 = vld [vmem:[#allocation211_spill] sm:$0xff]  ;;  %v14612_v29 = vld [vmem:[#allocation145_spill] sm:$0xff] }
 0x4a5   : > { %14539 = vst [vmem:[#allocation251_spill] sm:$0xff] %v11289_v26  ;;  %v4398_v51 = vadd.f32 %v4366_v28, %v4280_v35  ;;  %v3098_v14 = vadd.f32 %v3066_v45, %v2948_v44  ;;  %v3302_v27 = vmul.f32 %v14398_v58, %v11289_v26  ;;  %v3588_v54 = vrot.slane %v14350_v34, 6  ;;  %v14544_v44 = vld [vmem:[#allocation98_spill] sm:$0xff] }
 0x4a6   : > { %14541 = vst [vmem:[#allocation89_spill] sm:$0xff] %v11293_v37  ;;  %v4602_v62 = vmul.f32 %v14513_v36, %v11261_v52  ;;  %v3791_v28 = vadd.f32 %v3759_v23, %v3673_v50  ;;  %v3995_v35 = vmul.f32 %v14405_v1, %v14542_v22  ;;  %v3420_v5 = vmul.f32 %v10273_v4, %v11293_v37  ;;  %v14549_v22 = vld [vmem:[#allocation92_spill] sm:$0xff]  ;;  %v14574_v37 = vld [vmem:[#allocation91_spill] sm:$0xff] }
 0x4a7   : > { %v4516_v21 = vadd.f32 %v4484_v18, %v4398_v51  ;;  %v3216_v49 = vadd.f32 %v3184_v39, %v3098_v14  ;;  %v11306_v48 = vperm.slane %v3470_v7, 0  ;;  %v3706_v31 = vrot.slane %v14339_v19, 6  ;;  %v14547_v39 = vld [vmem:[#allocation194_spill] sm:$0xff] }
 0x4a8   : > { %v4720_v58 = vmul.f32 %v14514_v16, %v11265_v43  ;;  %v3909_v18 = vadd.f32 %v3877_v57, %v3791_v28  ;;  %v4113_v45 = vmul.f32 %v10913_v61, %v14544_v44  ;;  %v11315_v51 = vperm.slane %v3588_v54, 0 }
 0x4a9   : > { %14543 = vst [vmem:[#allocation18_spill] sm:$0xff] %v11306_v48  ;;  %v4634_v46 = vadd.f32 %v4602_v62, %v4516_v21  ;;  %v3334_v23 = vadd.f32 %v3302_v27, %v3216_v49  ;;  %v3538_v50 = vmul.f32 %v10314_v42, %v11306_v48  ;;  %v3824_v4 = vrot.slane %v14359_v3, 6 }
 0x4aa   : > { %14545 = vst [vmem:[#allocation119_spill] sm:$0xff] %v11315_v51  ;;  %v4027_v14 = vadd.f32 %v3995_v35, %v3909_v18  ;;  %v4231_v21 = vmul.f32 %v10915_v32, %v14547_v39  ;;  %v3942_v62 = vrot.slane %v14229_v60, 6  ;;  %v3656_v28 = vmul.f32 %v10316_v11, %v11315_v51  ;;  %v14551_v18 = vld [vmem:[#allocation123_spill] sm:$0xff]  ;;  %v14554_v39 = vld [vmem:[#allocation70_spill] sm:$0xff] }
 0x4ab   : > { %v11318_v7 = vadd.f32 %v4720_v58, %v4634_v46  ;;  %v3452_v57 = vadd.f32 %v3420_v5, %v3334_v23  ;;  %v11325_v27 = vperm.slane %v3706_v31, 0  ;;  %v4060_v54 = vrot.slane %v14151_v40, 6  ;;  %v14552_v11 = vld [vmem:[#allocation67_spill] sm:$0xff] }
 0x4ac   : > { %v4145_v42 = vadd.f32 %v4113_v45, %v4027_v14  ;;  %v4349_v35 = vmul.f32 %v14487_v12, %v14549_v22  ;;  %v11334_v58 = vperm.slane %v3824_v4, 0  ;;  %v4467_v31 = vmul.f32 %v14552_v11, %v14551_v18  ;;  %v14556_v22 = vld [vmem:[#allocation133_spill] sm:$0xff]  ;;  %v14559_v18 = vld [vmem:[#allocation212_spill] sm:$0xff] }
 0x4ad   : > { %14546 = vst [vmem:[#allocation130_spill] sm:$0xff] %v11318_v7  ;;  %4848 = vrot.lane.b32.xlu1 %v11318_v7, %s7113_s15  ;;  %v3570_v49 = vadd.f32 %v3538_v50, %v3452_v57  ;;  %v3774_v46 = vmul.f32 %v14495_v13, %v11325_v27  ;;  %v11338_v44 = vperm.slane %v3942_v62, 0  ;;  %v4178_v23 = vrot.slane %v14318_v41, 6  ;;  %v14555_v57 = vld [vmem:[#allocation77_spill] sm:$0xff]  ;;  %v14558_v7 = vld [vmem:[#allocation160_spill] sm:$0xff] }
 0x4ae   : > { %14548 = vst [vmem:[#allocation253_spill] sm:$0xff] %v11325_v27  ;;  %v4263_v5 = vadd.f32 %v4231_v21, %v4145_v42  ;;  %v3892_v14 = vmul.f32 %v10447_v55, %v11334_v58  ;;  %v2923_v50 = vmul.f32 %v14517_v9, %v14554_v39  ;;  %v3041_v13 = vmul.f32 %v14519_v53, %v14555_v57  ;;  %v14557_v21 = vld [vmem:[#allocation132_spill] sm:$0xff]  ;;  %v14564_v57 = vld [vmem:[#allocation38_spill] sm:$0xff] }
 0x4af   : > { %14550 = vst [vmem:[#allocation52_spill] sm:$0xff] %v11334_v58  ;;  %v3688_v45 = vadd.f32 %v3656_v28, %v3570_v49  ;;  %v4585_v42 = vmul.f32 %v14557_v21, %v14556_v22  ;;  %v4703_v62 = vmul.f32 %v14559_v18, %v14558_v7  ;;  %v11351_v43 = vperm.slane %v4060_v54, 0  ;;  %v14561_v49 = vld [vmem:[#allocation111_spill] sm:$0xff]  ;;  %v14562_v58 = vld [vmem:[#allocation113_spill] sm:$0xff]  ;;  %v14565_v54 = vld [vmem:[#allocation100_spill] sm:$0xff] }
 0x4b0   : > { %14553 = vst [vmem:[#allocation64_spill] sm:$0xff] %v11338_v44  ;;  %v4381_v4 = vadd.f32 %v4349_v35, %v4263_v5  ;;  %v4010_v28 = vmul.f32 %v10459_v56, %v11338_v44  ;;  %v3073_v55 = vadd.f32 %v3041_v13, %v2923_v50  ;;  %v3159_v39 = vmul.f32 %v14562_v58, %v14561_v49  ;;  %v14567_v13 = vld [vmem:[#allocation41_spill] sm:$0xff] }
 0x4b1   : > { %14560 = vst [vmem:[#allocation143_spill] sm:$0xff] %v11351_v43  ;;  %v3806_v52 = vadd.f32 %v3774_v46, %v3688_v45  ;;  %v4128_v35 = vmul.f32 %v10614_v6, %v11351_v43  ;;  %v11359_v5 = vperm.slane %v4178_v23, 0  ;;  %v4296_v22 = vrot.slane %v14564_v57, 6  ;;  %v14566_v45 = vld [vmem:[#allocation141_spill] sm:$0xff]  ;;  %v14569_v23 = vld [vmem:[#allocation254_spill] sm:$0xff] }
 0x4b2   : > { %v4499_v27 = vadd.f32 %v4467_v31, %v4381_v4  ;;  %v3191_v7 = vadd.f32 %v3159_v39, %v3073_v55  ;;  %v3277_v46 = vmul.f32 %v14527_v59, %v14565_v54  ;;  %v3395_v56 = vmul.f32 %v14529_v15, %v14566_v45  ;;  %v14568_v4 = vld [vmem:[#allocation31_spill] sm:$0xff]  ;;  %v14573_v54 = vld [vmem:[#allocation168_spill] sm:$0xff] }
 0x4b3   : > { %14563 = vst [vmem:[#allocation76_spill] sm:$0xff] %v11359_v5  ;;  %v3924_v51 = vadd.f32 %v3892_v14, %v3806_v52  ;;  %v4414_v44 = vrot.slane %v14567_v13, 6  ;;  %v4532_v31 = vrot.slane %v14498_v24, 6  ;;  %v4650_v49 = vrot.slane %v14568_v4, 6  ;;  %v14570_v52 = vld [vmem:[#allocation186_spill] sm:$0xff] }
 0x4b4   : > { %v4617_v50 = vadd.f32 %v4585_v42, %v4499_v27  ;;  %v4246_v43 = vmul.f32 %v14569_v23, %v11359_v5  ;;  %v3309_v48 = vadd.f32 %v3277_v46, %v3191_v7  ;;  %v3513_v14 = vmul.f32 %v14533_v38, %v14570_v52  ;;  %v14579_v46 = vld [vmem:[#allocation134_spill] sm:$0xff]  ;;  %v14580_v23 = vld [vmem:[#allocation175_spill] sm:$0xff]  ;;  %v14609_v5 = vld [vmem:[#allocation104_spill] sm:$0xff] }
 0x4b5   : > { %v4042_v6 = vadd.f32 %v4010_v28, %v3924_v51  ;;  %v11375_v39 = vperm.slane %v4296_v22, 0  ;;  %v3631_v27 = vmul.f32 %v14536_v47, %v14573_v54  ;;  %v2945_v26 = vmul.f32 %v14517_v9, %v14574_v37  ;;  %v14575_v51 = vld [vmem:[#allocation94_spill] sm:$0xff] }
 0x4b6   : > { %v11373_v55 = vadd.f32 %v4703_v62, %v4617_v50  ;;  %v3427_v45 = vadd.f32 %v3395_v56, %v3309_v48  ;;  %v3063_v28 = vmul.f32 %v14519_v53, %v14575_v51  ;;  %v11385_v7 = vperm.slane %v4414_v44, 0  ;;  %v14581_v52 = vld [vmem:[#allocation234_spill] sm:$0xff] }
 0x4b7   : > { %14572 = vst [vmem:[#allocation85_spill] sm:$0xff] %v11375_v39  ;;  %v4160_v42 = vadd.f32 %v4128_v35, %v4042_v6  ;;  %v11387_v62 = vperm.slane %v4532_v31, 0  ;;  %v11389_v22 = vperm.slane %v4650_v49, 0  ;;  %v3181_v50 = vmul.f32 %v14562_v58, %v14579_v46  ;;  %v14582_v49 = vld [vmem:[#allocation135_spill] sm:$0xff] }
 0x4b8   : > { %14571 = vst [vmem:[#allocation57_spill] sm:$0xff] %v11373_v55  ;;  %4814 = vrot.lane.b32.xlu0 %v11373_v55, %s7113_s15  ;;  %v4364_v48 = vmul.f32 %v14440_v63, %v11375_v39  ;;  %v3545_v37 = vadd.f32 %v3513_v14, %v3427_v45  ;;  %v3095_v56 = vadd.f32 %v3063_v28, %v2945_v26  ;;  %v14584_v14 = vld [vmem:[#allocation206_spill] sm:$0xff]  ;;  %v14585_v28 = vld [vmem:[#allocation243_spill] sm:$0xff]  ;;  %v14590_v55 = vld [vmem:[#allocation109_spill] sm:$0xff] }
 0x4b9   : > { %14576 = vst [vmem:[#allocation65_spill] sm:$0xff] %v11385_v7  ;;  %v4278_v35 = vadd.f32 %v4246_v43, %v4160_v42  ;;  %v4482_v6 = vmul.f32 %v14442_v20, %v11385_v7  ;;  %v3749_v44 = vmul.f32 %v14390_v0, %v14580_v23  ;;  %v3867_v31 = vmul.f32 %v14393_v33, %v14581_v52  ;;  %v14583_v42 = vld [vmem:[#allocation164_spill] sm:$0xff] }
 0x4ba   : > { %14577 = vst [vmem:[#allocation122_spill] sm:$0xff] %v11387_v62  ;;  %v3299_v54 = vmul.f32 %v14527_v59, %v14582_v49  ;;  %v3663_v46 = vadd.f32 %v3631_v27, %v3545_v37  ;;  %v3213_v43 = vadd.f32 %v3181_v50, %v3095_v56  ;;  %v3417_v63 = vmul.f32 %v14529_v15, %v14583_v42  ;;  %v14586_v27 = vld [vmem:[#allocation151_spill] sm:$0xff]  ;;  %v14588_v56 = vld [vmem:[#allocation69_spill] sm:$0xff] }
 0x4bb   : > { %14578 = vst [vmem:[#allocation106_spill] sm:$0xff] %v11389_v22  ;;  %v4396_v51 = vadd.f32 %v4364_v48, %v4278_v35  ;;  %v4600_v26 = vmul.f32 %v14513_v36, %v11387_v62  ;;  %v4718_v20 = vmul.f32 %v14514_v16, %v11389_v22  ;;  %v3985_v45 = vmul.f32 %v14405_v1, %v14584_v14  ;;  %v14587_v48 = vld [vmem:[#allocation17_spill] sm:$0xff]  ;;  %v14589_v42 = vld [vmem:[#allocation75_spill] sm:$0xff] }
 0x4bc   : > { %v4103_v23 = vmul.f32 %v10913_v61, %v14585_v28  ;;  %v3781_v49 = vadd.f32 %v3749_v44, %v3663_v46  ;;  %v3331_v35 = vadd.f32 %v3299_v54, %v3213_v43  ;;  %v3535_v50 = vmul.f32 %v14533_v38, %v14586_v27  ;;  %v14591_v44 = vld [vmem:[#allocation216_spill] sm:$0xff] }
 0x4bd   : > { %v4514_v52 = vadd.f32 %v4482_v6, %v4396_v51  ;;  %v4221_v37 = vmul.f32 %v10915_v32, %v14587_v48  ;;  %v2925_v36 = vmul.f32 %v14517_v9, %v14588_v56  ;;  %v3043_v16 = vmul.f32 %v14519_v53, %v14589_v42  ;;  %v14592_v51 = vld [vmem:[#allocation86_spill] sm:$0xff]  ;;  %v14593_v43 = vld [vmem:[#allocation112_spill] sm:$0xff] }
 0x4be   : > { %v3161_v14 = vmul.f32 %v14562_v58, %v14590_v55  ;;  %v3899_v28 = vadd.f32 %v3867_v31, %v3781_v49  ;;  %v3449_v6 = vadd.f32 %v3417_v63, %v3331_v35  ;;  %v3653_v54 = vmul.f32 %v14536_v47, %v14591_v44  ;;  %v14594_v48 = vld [vmem:[#allocation126_spill] sm:$0xff]  ;;  %v14596_v55 = vld [vmem:[#allocation155_spill] sm:$0xff] }
 0x4bf   : > { %v4632_v22 = vadd.f32 %v4600_v26, %v4514_v52  ;;  %v4339_v46 = vmul.f32 %v14487_v12, %v14592_v51  ;;  %v4457_v27 = vmul.f32 %v14552_v11, %v14593_v43  ;;  %v4575_v56 = vmul.f32 %v14557_v21, %v14594_v48  ;;  %v14597_v26 = vld [vmem:[#allocation181_spill] sm:$0xff]  ;;  %v14598_v35 = vld [vmem:[#allocation99_spill] sm:$0xff]  ;;  %v14599_v51 = vld [vmem:[#allocation140_spill] sm:$0xff] }
 0x4c0   : > { %v3075_v62 = vadd.f32 %v3043_v16, %v2925_v36  ;;  %v4017_v7 = vadd.f32 %v3985_v45, %v3899_v28  ;;  %v4693_v31 = vmul.f32 %v14559_v18, %v14596_v55  ;;  %v3567_v63 = vadd.f32 %v3535_v50, %v3449_v6  ;;  %v14600_v45 = vld [vmem:[#allocation214_spill] sm:$0xff]  ;;  %v14602_v6 = vld [vmem:[#allocation185_spill] sm:$0xff]  ;;  %v14604_v55 = vld [vmem:[#allocation80_spill] sm:$0xff] }
 0x4c1   : > { %v11431_v42 = vadd.f32 %v4718_v20, %v4632_v22  ;;  %v3771_v52 = vmul.f32 %v14390_v0, %v14597_v26  ;;  %v3279_v44 = vmul.f32 %v14527_v59, %v14598_v35  ;;  %v3397_v43 = vmul.f32 %v14529_v15, %v14599_v51  ;;  %v14601_v16 = vld [vmem:[#allocation258_spill] sm:$0xff] }
 0x4c2   : > { %v3193_v49 = vadd.f32 %v3161_v14, %v3075_v62  ;;  %v4135_v22 = vadd.f32 %v4103_v23, %v4017_v7  ;;  %v3685_v20 = vadd.f32 %v3653_v54, %v3567_v63  ;;  %v3889_v36 = vmul.f32 %v14393_v33, %v14600_v45  ;;  %v14603_v14 = vld [vmem:[#allocation72_spill] sm:$0xff]  ;;  %v14605_v7 = vld [vmem:[#allocation238_spill] sm:$0xff] }
 0x4c3   : > { %14595 = vst [vmem:[#allocation196_spill] sm:$0xff] %v11431_v42  ;;  %4844 = vrot.lane.b32.xlu2 %v11431_v42, %s7113_s15  ;;  %v4007_v50 = vmul.f32 %v14405_v1, %v14601_v16  ;;  %v3515_v62 = vmul.f32 %v14533_v38, %v14602_v6  ;;  %v2929_v48 = vmul.f32 %v14517_v9, %v14603_v14  ;;  %v14606_v54 = vld [vmem:[#allocation116_spill] sm:$0xff]  ;;  %v14608_v16 = vld [vmem:[#allocation167_spill] sm:$0xff] }
 0x4c4   : > { %v3311_v28 = vadd.f32 %v3279_v44, %v3193_v49  ;;  %v3047_v26 = vmul.f32 %v14519_v53, %v14604_v55  ;;  %v4253_v35 = vadd.f32 %v4221_v37, %v4135_v22  ;;  %v3803_v51 = vadd.f32 %v3771_v52, %v3685_v20  ;;  %v14607_v45 = vld [vmem:[#allocation192_spill] sm:$0xff]  ;;  %v14610_v52 = vld [vmem:[#allocation95_spill] sm:$0xff] }
 0x4c5   : > { %v4125_v23 = vmul.f32 %v10913_v61, %v14605_v7  ;;  %v3165_v63 = vmul.f32 %v14562_v58, %v14606_v54  ;;  %v4243_v49 = vmul.f32 %v10915_v32, %v14607_v45  ;;  %v3633_v6 = vmul.f32 %v14536_v47, %v14608_v16  ;;  %v14611_v7 = vld [vmem:[#allocation102_spill] sm:$0xff]  ;;  %v14613_v16 = vld [vmem:[#allocation137_spill] sm:$0xff] }
 0x4c6   : > { %v3429_v44 = vadd.f32 %v3397_v43, %v3311_v28  ;;  %v3079_v42 = vadd.f32 %v3047_v26, %v2929_v48  ;;  %v4371_v14 = vadd.f32 %v4339_v46, %v4253_v35  ;;  %v3921_v39 = vadd.f32 %v3889_v36, %v3803_v51  ;;  %v14614_v36 = vld [vmem:[#allocation174_spill] sm:$0xff]  ;;  %v14615_v26 = vld [vmem:[#allocation233_spill] sm:$0xff] }
 0x4c7   : > { %v4361_v37 = vmul.f32 %v14487_v12, %v14609_v5  ;;  %v4479_v22 = vmul.f32 %v14552_v11, %v14610_v52  ;;  %v3283_v54 = vmul.f32 %v14527_v59, %v14611_v7  ;;  %v3401_v43 = vmul.f32 %v14529_v15, %v14612_v29  ;;  %v14617_v52 = vld [vmem:[#allocation205_spill] sm:$0xff]  ;;  %v14619_v7 = vld [vmem:[#allocation71_spill] sm:$0xff] }
 0x4c8   : > { %v3547_v20 = vadd.f32 %v3515_v62, %v3429_v44  ;;  %v3197_v55 = vadd.f32 %v3165_v63, %v3079_v42  ;;  %v4489_v28 = vadd.f32 %v4457_v27, %v4371_v14  ;;  %v4039_v45 = vadd.f32 %v4007_v50, %v3921_v39  ;;  %v14616_v42 = vld [vmem:[#allocation193_spill] sm:$0xff]  ;;  %v14618_v39 = vld [vmem:[#allocation170_spill] sm:$0xff] }
 0x4c9   : > { %v4597_v46 = vmul.f32 %v14557_v21, %v14613_v16  ;;  %v3751_v48 = vmul.f32 %v14390_v0, %v14614_v36  ;;  %v3869_v35 = vmul.f32 %v14393_v33, %v14615_v26  ;;  %v3519_v51 = vmul.f32 %v14533_v38, %v14616_v42  ;;  %v14621_v36 = vld [vmem:[#allocation242_spill] sm:$0xff]  ;;  %v14623_v26 = vld [vmem:[#allocation256_spill] sm:$0xff]  ;;  %v14624_v42 = vld [vmem:[#allocation177_spill] sm:$0xff] }
 0x4ca   : > { %v3665_v5 = vadd.f32 %v3633_v6, %v3547_v20  ;;  %v3315_v62 = vadd.f32 %v3283_v54, %v3197_v55  ;;  %v4607_v63 = vadd.f32 %v4575_v56, %v4489_v28  ;;  %v4157_v44 = vadd.f32 %v4125_v23, %v4039_v45  ;;  %v14620_v20 = vld [vmem:[#allocation78_spill] sm:$0xff] }
 0x4cb   : > { %v3987_v29 = vmul.f32 %v14405_v1, %v14617_v52  ;;  %v3637_v27 = vmul.f32 %v14536_v47, %v14618_v39  ;;  %v2931_v6 = vmul.f32 %v14517_v9, %v14619_v7  ;;  %v3049_v16 = vmul.f32 %v14519_v53, %v14620_v20  ;;  %v14622_v23 = vld [vmem:[#allocation114_spill] sm:$0xff]  ;;  %v14627_v7 = vld [vmem:[#allocation144_spill] sm:$0xff] }
 0x4cc   : > { %v3783_v50 = vadd.f32 %v3751_v48, %v3665_v5  ;;  %v3433_v14 = vadd.f32 %v3401_v43, %v3315_v62  ;;  %v11485_v55 = vadd.f32 %v4693_v31, %v4607_v63  ;;  %v4275_v54 = vadd.f32 %v4243_v49, %v4157_v44  ;;  %v14625_v49 = vld [vmem:[#allocation236_spill] sm:$0xff]  ;;  %v14626_v44 = vld [vmem:[#allocation101_spill] sm:$0xff] }
 0x4cd   : > { %v4105_v56 = vmul.f32 %v10913_v61, %v14621_v36  ;;  %v3167_v28 = vmul.f32 %v14562_v58, %v14622_v23  ;;  %v4223_v48 = vmul.f32 %v10915_v32, %v14623_v26  ;;  %v3081_v5 = vadd.f32 %v3049_v16, %v2931_v6  ;;  %v14628_v6 = vld [vmem:[#allocation182_spill] sm:$0xff] }
 0x4ce   : > { %v3901_v45 = vadd.f32 %v3869_v35, %v3783_v50  ;;  %v3551_v43 = vadd.f32 %v3519_v51, %v3433_v14  ;;  %4794 = vrot.lane.b32.xlu1 %v11485_v55, %s7113_s15  ;;  %v4393_v62 = vadd.f32 %v4361_v37, %v4275_v54  ;;  %v3755_v31 = vmul.f32 %v14390_v0, %v14624_v42  ;;  %v14629_v37 = vld [vmem:[#allocation84_spill] sm:$0xff] }
 0x4cf   : > { %v3873_v63 = vmul.f32 %v14393_v33, %v14625_v49  ;;  %v3285_v52 = vmul.f32 %v14527_v59, %v14626_v44  ;;  %v3199_v50 = vadd.f32 %v3167_v28, %v3081_v5  ;;  %v3403_v51 = vmul.f32 %v14529_v15, %v14627_v7  ;;  %v14630_v54 = vld [vmem:[#allocation208_spill] sm:$0xff]  ;;  %v14631_v49 = vld [vmem:[#allocation189_spill] sm:$0xff]  ;;  %v14632_v28 = vld [vmem:[#allocation110_spill] sm:$0xff] }
 0x4d0   : > { %v4019_v39 = vadd.f32 %v3987_v29, %v3901_v45  ;;  %v3669_v35 = vadd.f32 %v3637_v27, %v3551_v43  ;;  %v4511_v14 = vadd.f32 %v4479_v22, %v4393_v62  ;;  %v4715_v20 = vmul.f32 %v14559_v18, %v14628_v6  ;;  %v14633_v22 = vld [vmem:[#allocation125_spill] sm:$0xff]  ;;  %v14634_v5 = vld [vmem:[#allocation246_spill] sm:$0xff] }
 0x4d1   : > { %v4341_v16 = vmul.f32 %v14487_v12, %v14629_v37  ;;  %v3991_v36 = vmul.f32 %v14405_v1, %v14630_v54  ;;  %v3317_v42 = vadd.f32 %v3285_v52, %v3199_v50  ;;  %v3521_v29 = vmul.f32 %v14533_v38, %v14631_v49  ;;  %v14635_v37 = vld [vmem:[#allocation169_spill] sm:$0xff]  ;;  %v14637_v52 = vld [vmem:[#allocation74_spill] sm:$0xff]  ;;  %v14639_v50 = vld [vmem:[#allocation120_spill] sm:$0xff] }
 0x4d2   : > { %v4137_v23 = vadd.f32 %v4105_v56, %v4019_v39  ;;  %v3787_v26 = vadd.f32 %v3755_v31, %v3669_v35  ;;  %v4629_v27 = vadd.f32 %v4597_v46, %v4511_v14  ;;  %v4459_v45 = vmul.f32 %v14552_v11, %v14632_v28  ;;  %v14638_v39 = vld [vmem:[#allocation83_spill] sm:$0xff]  ;;  %v14640_v28 = vld [vmem:[#allocation268_spill] sm:$0xff] }
 0x4d3   : > { %v4577_v43 = vmul.f32 %v14557_v21, %v14633_v22  ;;  %v4109_v62 = vmul.f32 %v10913_v61, %v14634_v5  ;;  %v3435_v6 = vadd.f32 %v3403_v51, %v3317_v42  ;;  %v3639_v56 = vmul.f32 %v14536_v47, %v14635_v37  ;;  %v14641_v51 = vld [vmem:[#allocation153_spill] sm:$0xff]  ;;  %v14643_v42 = vld [vmem:[#allocation176_spill] sm:$0xff] }
 0x4d4   : > { %v4255_v44 = vadd.f32 %v4223_v48, %v4137_v23  ;;  %v3905_v7 = vadd.f32 %v3873_v63, %v3787_v26  ;;  %v11519_v31 = vadd.f32 %v4715_v20, %v4629_v27  ;;  %v2935_v46 = vmul.f32 %v14517_v9, %v14637_v52  ;;  %v14642_v23 = vld [vmem:[#allocation88_spill] sm:$0xff]  ;;  %v14646_v52 = vld [vmem:[#allocation105_spill] sm:$0xff] }
 0x4d5   : > { %v3053_v35 = vmul.f32 %v14519_v53, %v14638_v39  ;;  %v3171_v14 = vmul.f32 %v14562_v58, %v14639_v50  ;;  %v4227_v48 = vmul.f32 %v10915_v32, %v14640_v28  ;;  %v3553_v63 = vadd.f32 %v3521_v29, %v3435_v6  ;;  %v14645_v29 = vld [vmem:[#allocation117_spill] sm:$0xff]  ;;  %v14647_v50 = vld [vmem:[#allocation147_spill] sm:$0xff] }
 0x4d6   : > { %14636 = vst [vmem:[#allocation148_spill] sm:$0xff] %v11519_v31  ;;  %v4373_v54 = vadd.f32 %v4341_v16, %v4255_v44  ;;  %v4023_v49 = vadd.f32 %v3991_v36, %v3905_v7  ;;  %4838 = vrot.lane.b32.xlu0 %v11519_v31, %s7113_s15  ;;  %v4695_v20 = vmul.f32 %v14559_v18, %v14641_v51  ;;  %v14644_v44 = vld [vmem:[#allocation235_spill] sm:$0xff] }
 0x4d7   : > { %v4345_v26 = vmul.f32 %v14487_v12, %v14642_v23  ;;  %v3757_v27 = vmul.f32 %v14390_v0, %v14643_v42  ;;  %v3085_v22 = vadd.f32 %v3053_v35, %v2935_v46  ;;  %v3671_v36 = vadd.f32 %v3639_v56, %v3553_v63  ;;  %v14648_v46 = vld [vmem:[#allocation207_spill] sm:$0xff]  ;;  %v14650_v35 = vld [vmem:[#allocation157_spill] sm:$0xff] }
 0x4d8   : > { %v4491_v5 = vadd.f32 %v4459_v45, %v4373_v54  ;;  %v4141_v16 = vadd.f32 %v4109_v62, %v4023_v49  ;;  %v3875_v7 = vmul.f32 %v14393_v33, %v14644_v44  ;;  %v4463_v6 = vmul.f32 %v14552_v11, %v14645_v29  ;;  %v14649_v62 = vld [vmem:[#allocation129_spill] sm:$0xff] }
 0x4d9   : > { %v3203_v37 = vadd.f32 %v3171_v14, %v3085_v22  ;;  %v3289_v39 = vmul.f32 %v14527_v59, %v14646_v52  ;;  %v3407_v28 = vmul.f32 %v14529_v15, %v14647_v50  ;;  %v3789_v42 = vadd.f32 %v3757_v27, %v3671_v36  ;;  %v14651_v14 = vld [vmem:[#allocation199_spill] sm:$0xff]  ;;  %v14654_v36 = vld [vmem:[#allocation244_spill] sm:$0xff]  ;;  %v14655_v50 = vld [vmem:[#allocation26_spill] sm:$0xff] }
 0x4da   : > { %v4609_v51 = vadd.f32 %v4577_v43, %v4491_v5  ;;  %v4259_v23 = vadd.f32 %v4227_v48, %v4141_v16  ;;  %v3993_v45 = vmul.f32 %v14405_v1, %v14648_v46  ;;  %v4581_v56 = vmul.f32 %v14557_v21, %v14649_v62  ;;  %v14652_v43 = vld [vmem:[#allocation172_spill] sm:$0xff]  ;;  %v14653_v5 = vld [vmem:[#allocation22_spill] sm:$0xff]  ;;  %v14659_v46 = vld [vmem:[#allocation115_spill] sm:$0xff] }
 0x4db   : > { %v4699_v54 = vmul.f32 %v14559_v18, %v14650_v35  ;;  %v3321_v49 = vadd.f32 %v3289_v39, %v3203_v37  ;;  %v3525_v63 = vmul.f32 %v14533_v38, %v14651_v14  ;;  %v3907_v29 = vadd.f32 %v3875_v7, %v3789_v42 }
 0x4dc   : > { %v11553_v22 = vadd.f32 %v4695_v20, %v4609_v51  ;;  %v4377_v44 = vadd.f32 %v4345_v26, %v4259_v23  ;;  %v3643_v48 = vmul.f32 %v14536_v47, %v14652_v43  ;;  %v2947_v16 = vmul.f32 %v14517_v9, %v14653_v5  ;;  %v14656_v26 = vld [vmem:[#allocation245_spill] sm:$0xff]  ;;  %v14657_v51 = vld [vmem:[#allocation266_spill] sm:$0xff]  ;;  %v14658_v23 = vld [vmem:[#allocation87_spill] sm:$0xff] }
 0x4dd   : > { %v3439_v27 = vadd.f32 %v3407_v28, %v3321_v49  ;;  %v3065_v52 = vmul.f32 %v14519_v53, %v14654_v36  ;;  %v3183_v37 = vmul.f32 %v14562_v58, %v14655_v50  ;;  %v4025_v39 = vadd.f32 %v3993_v45, %v3907_v29  ;;  %v14660_v5 = vld [vmem:[#allocation179_spill] sm:$0xff] }
 0x4de   : > { %4798 = vrot.lane.b32.xlu2 %v11553_v22, %s7113_s15  ;;  %v4495_v20 = vadd.f32 %v4463_v6, %v4377_v44  ;;  %v4111_v7 = vmul.f32 %v10913_v61, %v14656_v26  ;;  %v4229_v28 = vmul.f32 %v10915_v32, %v14657_v51  ;;  %v4347_v42 = vmul.f32 %v14487_v12, %v14658_v23  ;;  %v14661_v45 = vld [vmem:[#allocation239_spill] sm:$0xff] }
 0x4df   : > { %v4465_v62 = vmul.f32 %v14552_v11, %v14659_v46  ;;  %v3557_v35 = vadd.f32 %v3525_v63, %v3439_v27  ;;  %v3097_v49 = vadd.f32 %v3065_v52, %v2947_v16  ;;  %v3761_v6 = vmul.f32 %v14390_v0, %v14660_v5  ;;  %v14662_v50 = vld [vmem:[#allocation263_spill] sm:$0xff]  ;;  %v14664_v27 = vld [vmem:[#allocation128_spill] sm:$0xff] }
 0x4e0   : > { %v4613_v14 = vadd.f32 %v4581_v56, %v4495_v20  ;;  %v4143_v43 = vadd.f32 %v4111_v7, %v4025_v39  ;;  %v3879_v44 = vmul.f32 %v14393_v33, %v14661_v45  ;;  %v3301_v26 = vmul.f32 %v14527_v59, %v14662_v50  ;;  %v14663_v51 = vld [vmem:[#allocation203_spill] sm:$0xff]  ;;  %v14665_v16 = vld [vmem:[#allocation156_spill] sm:$0xff]  ;;  %v14666_v39 = vld [vmem:[#allocation210_spill] sm:$0xff] }
 0x4e1   : > { %v3675_v29 = vadd.f32 %v3643_v48, %v3557_v35  ;;  %v3215_v36 = vadd.f32 %v3183_v37, %v3097_v49  ;;  %v3419_v23 = vmul.f32 %v14529_v15, %v14663_v51  ;;  %v4583_v56 = vmul.f32 %v14557_v21, %v14664_v27  ;;  %v14667_v7 = vld [vmem:[#allocation265_spill] sm:$0xff]  ;;  %v14669_v49 = vld [vmem:[#allocation40_spill] sm:$0xff]  ;;  %v14675_v27 = vld [vmem:[#allocation90_spill] sm:$0xff] }
 0x4e2   : > { %v11581_v31 = vadd.f32 %v4699_v54, %v4613_v14  ;;  %v4261_v63 = vadd.f32 %v4229_v28, %v4143_v43  ;;  %v4701_v52 = vmul.f32 %v14559_v18, %v14665_v16  ;;  %v3997_v48 = vmul.f32 %v14405_v1, %v14666_v39 }
 0x4e3   : > { %v3793_v20 = vadd.f32 %v3761_v6, %v3675_v29  ;;  %v3333_v37 = vadd.f32 %v3301_v26, %v3215_v36  ;;  %v3537_v46 = vmul.f32 %v14533_v38, %v14667_v7  ;;  %v14668_v28 = vperm.slane %v14468_v10, 0  ;;  %v14672_v29 = vld [vmem:[#allocation257_spill] sm:$0xff]  ;;  %v14673_v26 = vld [vmem:[#allocation127_spill] sm:$0xff] }
 0x4e4   : > { %4806 = vrot.lane.b32.xlu1 %v11581_v31, %s7113_s15  ;;  %v4379_v54 = vadd.f32 %v4347_v42, %v4261_v63  ;;  %v14670_v14 = vperm.slane %v14669_v49, 0  ;;  %v14671_v5 = vperm.slane %v14472_v2, 0  ;;  %v4115_v36 = vmul.f32 %v10913_v61, %v14672_v29  ;;  %v14674_v10 = vld [vmem:[#allocation249_spill] sm:$0xff] }
 0x4e5   : > { %v2937_v35 = vmul.f32 %v14517_v9, %v14668_v28  ;;  %v3911_v45 = vadd.f32 %v3879_v44, %v3793_v20  ;;  %v3451_v50 = vadd.f32 %v3419_v23, %v3333_v37  ;;  %v3655_v42 = vmul.f32 %v14536_v47, %v14673_v26  ;;  %v14676_v2 = vld [vmem:[#allocation121_spill] sm:$0xff]  ;;  %v14677_v44 = vld [vmem:[#allocation131_spill] sm:$0xff] }
 0x4e6   : > { %v3055_v43 = vmul.f32 %v14519_v53, %v14670_v14  ;;  %v3173_v6 = vmul.f32 %v14562_v58, %v14671_v5  ;;  %v4497_v51 = vadd.f32 %v4465_v62, %v4379_v54  ;;  %v4233_v63 = vmul.f32 %v10915_v32, %v14674_v10  ;;  %v14679_v54 = vld [vmem:[#allocation19_spill] sm:$0xff] }
 0x4e7   : > { %v4351_v16 = vmul.f32 %v14487_v12, %v14675_v27  ;;  %v4029_v7 = vadd.f32 %v3997_v48, %v3911_v45  ;;  %v4469_v28 = vmul.f32 %v14552_v11, %v14676_v2  ;;  %v4587_v20 = vmul.f32 %v14557_v21, %v14677_v44  ;;  %v14681_v48 = vld [vmem:[#allocation259_spill] sm:$0xff]  ;;  %v14682_v45 = vld [vmem:[#allocation32_spill] sm:$0xff]  ;;  %v14687_v44 = vld [vmem:[#allocation93_spill] sm:$0xff] }
 0x4e8   : > { %v3087_v39 = vadd.f32 %v3055_v43, %v2937_v35  ;;  %v3569_v49 = vadd.f32 %v3537_v46, %v3451_v50  ;;  %v4615_v23 = vadd.f32 %v4583_v56, %v4497_v51  ;;  %v14678_v14 = vperm.slane %v14473_v25, 0  ;;  %v14683_v56 = vld [vmem:[#allocation159_spill] sm:$0xff] }
 0x4e9   : > { %v14680_v5 = vperm.slane %v14679_v54, 0  ;;  %v4147_v26 = vadd.f32 %v4115_v36, %v4029_v7  ;;  %v3773_v43 = vmul.f32 %v14390_v0, %v14681_v48  ;;  %v3891_v10 = vmul.f32 %v14393_v33, %v14682_v45  ;;  %v14685_v36 = vld [vmem:[#allocation267_spill] sm:$0xff]  ;;  %v14690_v54 = vld [vmem:[#allocation230_spill] sm:$0xff]  ;;  %v14693_v48 = vld [vmem:[#allocation61_spill] sm:$0xff] }
 0x4ea   : > { %v3205_v37 = vadd.f32 %v3173_v6, %v3087_v39  ;;  %v3291_v62 = vmul.f32 %v14527_v59, %v14678_v14  ;;  %v3687_v35 = vadd.f32 %v3655_v42, %v3569_v49  ;;  %v11624_v27 = vadd.f32 %v4701_v52, %v4615_v23  ;;  %v14688_v23 = vld [vmem:[#allocation96_spill] sm:$0xff] }
 0x4eb   : > { %v3409_v29 = vmul.f32 %v14529_v15, %v14680_v5  ;;  %v4705_v46 = vmul.f32 %v14559_v18, %v14683_v56  ;;  %v14684_v6 = vperm.slane %v14348_v8, 0  ;;  %v4265_v51 = vadd.f32 %v4233_v63, %v4147_v26  ;;  %v14691_v5 = vld [vmem:[#allocation204_spill] sm:$0xff] }
 0x4ec   : > { %v3323_v25 = vadd.f32 %v3291_v62, %v3205_v37  ;;  %v3805_v39 = vadd.f32 %v3773_v43, %v3687_v35  ;;  %v4009_v42 = vmul.f32 %v14405_v1, %v14685_v36  ;;  %v14686_v7 = vperm.slane %v14350_v34, 0  ;;  %4810 = vrot.lane.b32.xlu2 %v11624_v27, %s7113_s15  ;;  %v14689_v37 = vld [vmem:[#allocation136_spill] sm:$0xff]  ;;  %v14692_v35 = vld [vmem:[#allocation262_spill] sm:$0xff] }
 0x4ed   : > { %v3527_v50 = vmul.f32 %v14533_v38, %v14684_v6  ;;  %v2941_v49 = vmul.f32 %v14517_v9, %v14687_v44  ;;  %v3059_v8 = vmul.f32 %v14519_v53, %v14688_v23  ;;  %v3177_v63 = vmul.f32 %v14562_v58, %v14689_v37  ;;  %v14696_v44 = vld [vmem:[#allocation138_spill] sm:$0xff] }
 0x4ee   : > { %v3645_v2 = vmul.f32 %v14536_v47, %v14686_v7  ;;  %v3441_v52 = vadd.f32 %v3409_v29, %v3323_v25  ;;  %v4383_v14 = vadd.f32 %v4351_v16, %v4265_v51  ;;  %v3923_v62 = vadd.f32 %v3891_v10, %v3805_v39  ;;  %v14697_v37 = vld [vmem:[#allocation166_spill] sm:$0xff] }
 0x4ef   : > { %v4127_v34 = vmul.f32 %v10913_v61, %v14690_v54  ;;  %v4245_v26 = vmul.f32 %v10915_v32, %v14691_v5  ;;  %v4363_v29 = vmul.f32 %v14487_v12, %v14692_v35  ;;  %v4481_v43 = vmul.f32 %v14552_v11, %v14693_v48  ;;  %v14703_v48 = vld [vmem:[#allocation124_spill] sm:$0xff] }
 0x4f0   : > { %v3559_v45 = vadd.f32 %v3527_v50, %v3441_v52  ;;  %v3091_v56 = vadd.f32 %v3059_v8, %v2941_v49  ;;  %v4501_v25 = vadd.f32 %v4469_v28, %v4383_v14  ;;  %v4041_v6 = vadd.f32 %v4009_v42, %v3923_v62  ;;  %v14698_v28 = vld [vmem:[#allocation82_spill] sm:$0xff] }
 0x4f1   : > { %v14694_v36 = vperm.slane %v14339_v19, 0  ;;  %v14695_v10 = vperm.slane %v14359_v3, 0  ;;  %v3295_v23 = vmul.f32 %v14527_v59, %v14696_v44  ;;  %v3413_v54 = vmul.f32 %v14529_v15, %v14697_v37  ;;  %v14699_v19 = vld [vmem:[#allocation81_spill] sm:$0xff]  ;;  %v14701_v14 = vld [vmem:[#allocation154_spill] sm:$0xff] }
 0x4f2   : > { %v3677_v39 = vadd.f32 %v3645_v2, %v3559_v45  ;;  %v3209_v7 = vadd.f32 %v3177_v63, %v3091_v56  ;;  %v4619_v50 = vadd.f32 %v4587_v20, %v4501_v25  ;;  %v4159_v52 = vadd.f32 %v4127_v34, %v4041_v6  ;;  %v14702_v20 = vld [vmem:[#allocation108_spill] sm:$0xff]  ;;  %v14704_v6 = vld [vmem:[#allocation231_spill] sm:$0xff] }
 0x4f3   : > { %v3763_v16 = vmul.f32 %v14390_v0, %v14694_v36  ;;  %v3881_v51 = vmul.f32 %v14393_v33, %v14695_v10  ;;  %v4599_v42 = vmul.f32 %v14557_v21, %v14698_v28  ;;  %v4717_v49 = vmul.f32 %v14559_v18, %v14699_v19  ;;  %v14705_v36 = vld [vmem:[#allocation142_spill] sm:$0xff] }
 0x4f4   : > { %v14700_v3 = vperm.slane %v14229_v60, 0  ;;  %v3327_v63 = vadd.f32 %v3295_v23, %v3209_v7  ;;  %v3531_v62 = vmul.f32 %v14533_v38, %v14701_v14  ;;  %v11671_v5 = vadd.f32 %v4705_v46, %v4619_v50  ;;  %v14713_v14 = vld [vmem:[#allocation217_spill] sm:$0xff] }
 0x4f5   : > { %v3795_v8 = vadd.f32 %v3763_v16, %v3677_v39  ;;  %v4277_v35 = vadd.f32 %v4245_v26, %v4159_v52  ;;  %v2939_v34 = vmul.f32 %v14517_v9, %v14702_v20  ;;  %v3057_v45 = vmul.f32 %v14519_v53, %v14703_v48 }
 0x4f6   : > { %v3999_v2 = vmul.f32 %v14405_v1, %v14700_v3  ;;  %v3445_v25 = vadd.f32 %v3413_v54, %v3327_v63  ;;  %v3649_v60 = vmul.f32 %v14536_v47, %v14704_v6  ;;  %v3175_v16 = vmul.f32 %v14562_v58, %v14705_v36  ;;  %4818 = vrot.lane.b32.xlu1 %v11671_v5, %s7113_s15 }
 0x4f7   : > { %v3913_v56 = vadd.f32 %v3881_v51, %v3795_v8  ;;  %v4395_v46 = vadd.f32 %v4363_v29, %v4277_v35  ;;  %v14706_v26 = vperm.slane %v14151_v40, 0  ;;  %v14707_v39 = vperm.slane %v14318_v41, 0  ;;  %v14710_v40 = vld [vmem:[#allocation149_spill] sm:$0xff]  ;;  %v14711_v8 = vld [vmem:[#allocation220_spill] sm:$0xff] }
 0x4f8   : > { %v3089_v51 = vadd.f32 %v3057_v45, %v2939_v34  ;;  %v14708_v23 = vperm.slane %v14564_v57, 0  ;;  %v14709_v54 = vperm.slane %v14567_v13, 0  ;;  %v3563_v52 = vadd.f32 %v3531_v62, %v3445_v25  ;;  %v14715_v34 = vld [vmem:[#allocation190_spill] sm:$0xff]  ;;  %v14716_v25 = vld [vmem:[#allocation264_spill] sm:$0xff] }
 0x4f9   : > { %v4117_v10 = vmul.f32 %v10913_v61, %v14706_v26  ;;  %v4235_v7 = vmul.f32 %v10915_v32, %v14707_v39  ;;  %v4031_v44 = vadd.f32 %v3999_v2, %v3913_v56  ;;  %v4513_v29 = vadd.f32 %v4481_v43, %v4395_v46  ;;  %v14712_v2 = vld [vmem:[#allocation183_spill] sm:$0xff]  ;;  %v14719_v26 = vld [vmem:[#allocation162_spill] sm:$0xff] }
 0x4fa   : > { %v4353_v37 = vmul.f32 %v14487_v12, %v14708_v23  ;;  %v4471_v50 = vmul.f32 %v14552_v11, %v14709_v54  ;;  %v3207_v28 = vadd.f32 %v3175_v16, %v3089_v51  ;;  %v3293_v19 = vmul.f32 %v14527_v59, %v14710_v40  ;;  %v14721_v23 = vld [vmem:[#allocation42_spill] sm:$0xff] }
 0x4fb   : > { %v3411_v41 = vmul.f32 %v14529_v15, %v14711_v8  ;;  %v4149_v3 = vadd.f32 %v4117_v10, %v4031_v44  ;;  %v3681_v63 = vadd.f32 %v3649_v60, %v3563_v52  ;;  %v3767_v57 = vmul.f32 %v14390_v0, %v14712_v2  ;;  %v14717_v60 = vld [vmem:[#allocation225_spill] sm:$0xff] }
 0x4fc   : > { %v3885_v35 = vmul.f32 %v14393_v33, %v14713_v14  ;;  %v4631_v13 = vadd.f32 %v4599_v42, %v4513_v29  ;;  %v14714_v20 = vperm.slane %v14498_v24, 0  ;;  %v3325_v62 = vadd.f32 %v3293_v19, %v3207_v28  ;;  %v14718_v42 = vld [vmem:[#allocation152_spill] sm:$0xff]  ;;  %v14723_v29 = vld [vmem:[#allocation223_spill] sm:$0xff] }
 0x4fd   : > { %v3529_v48 = vmul.f32 %v14533_v38, %v14715_v34  ;;  %v4267_v45 = vadd.f32 %v4235_v7, %v4149_v3  ;;  %v3799_v56 = vadd.f32 %v3767_v57, %v3681_v63  ;;  %v4003_v6 = vmul.f32 %v14405_v1, %v14716_v25  ;;  %v14725_v3 = vld [vmem:[#allocation226_spill] sm:$0xff]  ;;  %v14726_v14 = vld [vmem:[#allocation215_spill] sm:$0xff] }
 0x4fe   : > { %v4589_v43 = vmul.f32 %v14557_v21, %v14714_v20  ;;  %v3647_v36 = vmul.f32 %v14536_v47, %v14717_v60  ;;  %v11712_v16 = vadd.f32 %v4717_v49, %v4631_v13  ;;  %v3443_v46 = vadd.f32 %v3411_v41, %v3325_v62  ;;  %v14722_v49 = vld [vmem:[#allocation260_spill] sm:$0xff]  ;;  %v14727_v13 = vld [vmem:[#allocation23_spill] sm:$0xff] }
 0x4ff   : > { %v2943_v24 = vmul.f32 %v14517_v9, %v14718_v42  ;;  %v3061_v10 = vmul.f32 %v14519_v53, %v14719_v26  ;;  %v4385_v39 = vadd.f32 %v4353_v37, %v4267_v45  ;;  %v14720_v51 = vperm.slane %v14568_v4, 0  ;;  %v14724_v4 = vld [vmem:[#allocation250_spill] sm:$0xff]  ;;  %v14729_v45 = vld [vmem:[#allocation97_spill] sm:$0xff] }
 0x500   : > { %v3917_v44 = vadd.f32 %v3885_v35, %v3799_v56  ;;  %v3179_v54 = vmul.f32 %v14562_v58, %v14721_v23  ;;  %4842 = vrot.lane.b32.xlu2 %v11712_v16, %s7113_s15  ;;  %v4121_v52 = vmul.f32 %v10913_v61, %v14722_v49  ;;  %v4239_v28 = vmul.f32 %v10915_v32, %v14723_v29 }
 0x501   : > { %v4707_v7 = vmul.f32 %v14559_v18, %v14720_v51  ;;  %v3561_v40 = vadd.f32 %v3529_v48, %v3443_v46  ;;  %v3093_v19 = vadd.f32 %v3061_v10, %v2943_v24  ;;  %v4503_v37 = vadd.f32 %v4471_v50, %v4385_v39  ;;  %v14728_v48 = vld [vmem:[#allocation107_spill] sm:$0xff]  ;;  %v14731_v46 = vld [vmem:[#allocation198_spill] sm:$0xff] }
 0x502   : > { %v4035_v8 = vadd.f32 %v4003_v6, %v3917_v44  ;;  %v3765_v41 = vmul.f32 %v14390_v0, %v14724_v4  ;;  %v3883_v63 = vmul.f32 %v14393_v33, %v14725_v3  ;;  %v3297_v35 = vmul.f32 %v14527_v59, %v14726_v14  ;;  %v14730_v6 = vld [vmem:[#allocation197_spill] sm:$0xff]  ;;  %v14732_v10 = vld [vmem:[#allocation139_spill] sm:$0xff]  ;;  %v14733_v39 = vld [vmem:[#allocation150_spill] sm:$0xff] }
 0x503   : > { %v3679_v2 = vadd.f32 %v3647_v36, %v3561_v40  ;;  %v3211_v57 = vadd.f32 %v3179_v54, %v3093_v19  ;;  %v3415_v20 = vmul.f32 %v14529_v15, %v14727_v13  ;;  %v4621_v62 = vadd.f32 %v4589_v43, %v4503_v37  ;;  %v14736_v19 = vld [vmem:[#allocation209_spill] sm:$0xff]  ;;  %v14737_v4 = vld [vmem:[#allocation66_spill] sm:$0xff] }
 0x504   : > { %v4153_v34 = vadd.f32 %v4121_v52, %v4035_v8  ;;  %v4357_v50 = vmul.f32 %v14487_v12, %v14728_v48  ;;  %v4475_v56 = vmul.f32 %v14552_v11, %v14729_v45  ;;  %v4001_v60 = vmul.f32 %v14405_v1, %v14730_v6  ;;  %v14734_v52 = vld [vmem:[#allocation184_spill] sm:$0xff]  ;;  %v14742_v6 = vld [vmem:[#allocation165_spill] sm:$0xff] }
 0x505   : > { %v3797_v25 = vadd.f32 %v3765_v41, %v3679_v2  ;;  %v3329_v36 = vadd.f32 %v3297_v35, %v3211_v57  ;;  %v3533_v42 = vmul.f32 %v14533_v38, %v14731_v46  ;;  %v11745_v24 = vadd.f32 %v4707_v7, %v4621_v62  ;;  %v14739_v57 = vld [vmem:[#allocation29_spill] sm:$0xff]  ;;  %v14740_v35 = vld [vmem:[#allocation251_spill] sm:$0xff]  ;;  %v14744_v46 = vld [vmem:[#allocation200_spill] sm:$0xff] }
 0x506   : > { %v4271_v26 = vadd.f32 %v4239_v28, %v4153_v34  ;;  %v4593_v43 = vmul.f32 %v14557_v21, %v14732_v10  ;;  %v3651_v51 = vmul.f32 %v14536_v47, %v14733_v39  ;;  %v2949_v54 = vmul.f32 %v14517_v9, %v11275_v17  ;;  %v14735_v28 = vld [vmem:[#allocation252_spill] sm:$0xff] }
 0x507   : > { %v3915_v44 = vadd.f32 %v3883_v63, %v3797_v25  ;;  %v3447_v23 = vadd.f32 %v3415_v20, %v3329_v36  ;;  %v3067_v49 = vmul.f32 %v14519_v53, %v11277_v30  ;;  %4822 = vrot.lane.b32.xlu1 %v11745_v24, %s7113_s15  ;;  %v4711_v29 = vmul.f32 %v14559_v18, %v14734_v52  ;;  %v14738_v63 = vld [vmem:[#allocation16_spill] sm:$0xff]  ;;  %v11771_v20 = vpop.permute.xlu2 %4792  ;;  %v14748_v52 = vld [vmem:[#allocation261_spill] sm:$0xff] }
 0x508   : > { %v4389_v7 = vadd.f32 %v4357_v50, %v4271_v26  ;;  %v4119_v40 = vmul.f32 %v10913_v61, %v14735_v28  ;;  %v3185_v37 = vmul.f32 %v14562_v58, %v14736_v19  ;;  %v4237_v17 = vmul.f32 %v10915_v32, %v14737_v4  ;;  %v14741_v50 = vld [vmem:[#allocation89_spill] sm:$0xff] }
 0x509   : > { %v4033_v8 = vadd.f32 %v4001_v60, %v3915_v44  ;;  %v3565_v41 = vadd.f32 %v3533_v42, %v3447_v23  ;;  %v3099_v3 = vadd.f32 %v3067_v49, %v2949_v54  ;;  %v3769_v2 = vmul.f32 %v14390_v0, %v14738_v63  ;;  %v14743_v60 = vld [vmem:[#allocation161_spill] sm:$0xff]  ;;  %v14745_v44 = vld [vmem:[#allocation18_spill] sm:$0xff]  ;;  %v14747_v49 = vld [vmem:[#allocation119_spill] sm:$0xff] }
 0x50a   : > { %v4507_v30 = vadd.f32 %v4475_v56, %v4389_v7  ;;  %v3887_v14 = vmul.f32 %v14393_v33, %v14739_v57  ;;  %v3303_v13 = vmul.f32 %v14527_v59, %v14740_v35  ;;  %v3421_v45 = vmul.f32 %v14529_v15, %v14741_v50  ;;  %v14746_v54 = vld [vmem:[#allocation221_spill] sm:$0xff]  ;;  %v14756_v50 = vld [vmem:[#allocation58_spill] sm:$0xff] }
 0x50b   : > { %v4151_v62 = vadd.f32 %v4119_v40, %v4033_v8  ;;  %v3683_v34 = vadd.f32 %v3651_v51, %v3565_v41  ;;  %v3217_v48 = vadd.f32 %v3185_v37, %v3099_v3  ;;  %v4355_v56 = vmul.f32 %v14487_v12, %v14742_v6  ;;  %v14749_v8 = vld [vmem:[#allocation232_spill] sm:$0xff]  ;;  %v14751_v41 = vld [vmem:[#allocation255_spill] sm:$0xff] }
 0x50c   : > { %v4625_v25 = vadd.f32 %v4593_v43, %v4507_v30  ;;  %v4473_v36 = vmul.f32 %v14552_v11, %v14743_v60  ;;  %v4005_v42 = vmul.f32 %v14405_v1, %v14744_v46  ;;  %v3539_v51 = vmul.f32 %v14533_v38, %v14745_v44  ;;  %v14752_v30 = vld [vmem:[#allocation228_spill] sm:$0xff]  ;;  %v14760_v44 = vld [vmem:[#allocation62_spill] sm:$0xff] }
 0x50d   : > { %v4269_v26 = vadd.f32 %v4237_v17, %v4151_v62  ;;  %v3801_v10 = vadd.f32 %v3769_v2, %v3683_v34  ;;  %v3335_v39 = vadd.f32 %v3303_v13, %v3217_v48  ;;  %v4591_v43 = vmul.f32 %v14557_v21, %v14746_v54  ;;  %v14753_v2 = vld [vmem:[#allocation46_spill] sm:$0xff]  ;;  %v14755_v34 = vld [vmem:[#allocation52_spill] sm:$0xff] }
 0x50e   : > { %v11783_v23 = vadd.f32 %v4711_v29, %v4625_v25  ;;  %v3657_v7 = vmul.f32 %v14536_v47, %v14747_v49  ;;  %v2951_v28 = vmul.f32 %v14517_v9, %v14748_v52  ;;  %v3069_v4 = vmul.f32 %v14519_v53, %v14749_v8  ;;  %v14750_v29 = vld [vmem:[#allocation227_spill] sm:$0xff]  ;;  %v14754_v53 = vld [vmem:[#allocation253_spill] sm:$0xff]  ;;  %v14757_v25 = vld [vmem:[#allocation68_spill] sm:$0xff] }
 0x50f   : > { %v4387_v40 = vadd.f32 %v4355_v56, %v4269_v26  ;;  %v3919_v19 = vadd.f32 %v3887_v14, %v3801_v10  ;;  %v3453_v37 = vadd.f32 %v3421_v45, %v3335_v39  ;;  %v4709_v17 = vmul.f32 %v14559_v18, %v14750_v29  ;;  %v14759_v10 = vld [vmem:[#allocation64_spill] sm:$0xff]  ;;  %v4805_v54 = vpop.permute.xlu2 %4804 }
 0x510   : > { %4830 = vrot.lane.b32.xlu2 %v11783_v23, %s7113_s15  ;;  %v4123_v3 = vmul.f32 %v10913_v61, %v14751_v41  ;;  %v4241_v63 = vmul.f32 %v10915_v32, %v14752_v30  ;;  %v3187_v9 = vmul.f32 %v14562_v58, %v14753_v2  ;;  %v3101_v13 = vadd.f32 %v3069_v4, %v2951_v28  ;;  %v14762_v28 = vld [vmem:[#allocation73_spill] sm:$0xff]  ;;  %v14763_v4 = vld [vmem:[#allocation20_spill] sm:$0xff] }
 0x511   : > { %v4505_v57 = vadd.f32 %v4473_v36, %v4387_v40  ;;  %v4037_v14 = vadd.f32 %v4005_v42, %v3919_v19  ;;  %v3571_v35 = vadd.f32 %v3539_v51, %v3453_v37  ;;  %v3775_v62 = vmul.f32 %v14390_v0, %v14754_v53  ;;  %v4789_v36 = vpop.permute.xlu1 %4788  ;;  %v14758_v42 = vld [vmem:[#allocation202_spill] sm:$0xff] }
 0x512   : > { %v3893_v48 = vmul.f32 %v14393_v33, %v14755_v34  ;;  %v3305_v45 = vmul.f32 %v14527_v59, %v14756_v50  ;;  %v3423_v6 = vmul.f32 %v14529_v15, %v14757_v25  ;;  %v3219_v58 = vadd.f32 %v3187_v9, %v3101_v13  ;;  %v14766_v9 = vld [vmem:[#allocation229_spill] sm:$0xff]  ;;  %v14768_v34 = vld [vmem:[#allocation103_spill] sm:$0xff]  ;;  %v4797_v50 = vpop.permute.xlu0 %4796 }
 0x513   : > { %v4623_v56 = vadd.f32 %v4591_v43, %v4505_v57  ;;  %v4155_v60 = vadd.f32 %v4123_v3, %v4037_v14  ;;  %v3689_v46 = vadd.f32 %v3657_v7, %v3571_v35  ;;  %v4359_v26 = vmul.f32 %v14487_v12, %v14758_v42  ;;  %v14761_v43 = vld [vmem:[#allocation218_spill] sm:$0xff] }
 0x514   : > { %v4011_v39 = vmul.f32 %v14405_v1, %v14759_v10  ;;  %v3541_v51 = vmul.f32 %v14533_v38, %v14760_v44  ;;  %v3337_v15 = vadd.f32 %v3305_v45, %v3219_v58  ;;  %v4477_v7 = vmul.f32 %v14552_v11, %v14761_v43  ;;  %v14767_v14 = vld [vmem:[#allocation118_spill] sm:$0xff]  ;;  %v14769_v45 = vld [vmem:[#allocation85_spill] sm:$0xff] }
 0x515   : > { %v11817_v49 = vadd.f32 %v4709_v17, %v4623_v56  ;;  %v4273_v59 = vadd.f32 %v4241_v63, %v4155_v60  ;;  %v3807_v52 = vadd.f32 %v3775_v62, %v3689_v46  ;;  %v3659_v40 = vmul.f32 %v14536_v47, %v14762_v28  ;;  %v14764_v17 = vld [vmem:[#allocation143_spill] sm:$0xff]  ;;  %v14765_v63 = vld [vmem:[#allocation76_spill] sm:$0xff]  ;;  %v14770_v46 = vld [vmem:[#allocation146_spill] sm:$0xff] }
 0x516   : > { %v4884_v19 = vsel %vm436_vm0, %v4789_v36, 0.0  ;;  %v3455_v38 = vadd.f32 %v3423_v6, %v3337_v15  ;;  %v4595_v29 = vmul.f32 %v14557_v21, %v14763_v4  ;;  %v4129_v41 = vmul.f32 %v10913_v61, %v14764_v17  ;;  %v14774_v15 = vld [vmem:[#allocation195_spill] sm:$0xff]  ;;  %v14775_v28 = vld [vmem:[#allocation106_spill] sm:$0xff] }
 0x517   : > { %4826 = vrot.lane.b32.xlu1 %v11817_v49, %s7113_s15  ;;  %v4391_v37 = vadd.f32 %v4359_v26, %v4273_v59  ;;  %v3925_v8 = vadd.f32 %v3893_v48, %v3807_v52  ;;  %4885 = vadd.xlane.f32.xlu0 %v4884_v19  ;;  %v4247_v47 = vmul.f32 %v10915_v32, %v14765_v63  ;;  %v4817_v36 = vpop.permute.xlu2 %4816  ;;  %v14771_v26 = vld [vmem:[#allocation65_spill] sm:$0xff]  ;;  %v14776_v4 = vld [vmem:[#allocation171_spill] sm:$0xff] }
 0x518   : > { %v3573_v2 = vadd.f32 %v3541_v51, %v3455_v38  ;;  %v4713_v57 = vmul.f32 %v14559_v18, %v14766_v9  ;;  %v3777_v35 = vmul.f32 %v14390_v0, %v14767_v14  ;;  %v3895_v48 = vmul.f32 %v14393_v33, %v14768_v34  ;;  %v14773_v52 = vld [vmem:[#allocation37_spill] sm:$0xff] }
 0x519   : > { %v4509_v3 = vadd.f32 %v4477_v7, %v4391_v37  ;;  %v4043_v30 = vadd.f32 %v4011_v39, %v3925_v8  ;;  %v4365_v25 = vmul.f32 %v14487_v12, %v14769_v45  ;;  %v4013_v58 = vmul.f32 %v14405_v1, %v14770_v46  ;;  %v14772_v39 = vld [vmem:[#allocation122_spill] sm:$0xff]  ;;  %v4801_v37 = vpop.permute.xlu1 %4800 }
 0x51a   : > { %v3691_v62 = vadd.f32 %v3659_v40, %v3573_v2  ;;  %v4896_v0 = vsel %vm436_vm0, %v4797_v50, 0.0  ;;  %v4483_v33 = vmul.f32 %v14552_v11, %v14771_v26  ;;  %v4601_v44 = vmul.f32 %v14557_v21, %v14772_v39  ;;  %v14779_v2 = vld [vmem:[#allocation237_spill] sm:$0xff] }
 0x51b   : > { %v4627_v13 = vadd.f32 %v4595_v29, %v4509_v3  ;;  %v4161_v53 = vadd.f32 %v4129_v41, %v4043_v30  ;;  %v4131_v1 = vmul.f32 %v10913_v61, %v14773_v52  ;;  %v4249_v43 = vmul.f32 %v10915_v32, %v14774_v15  ;;  %v14777_v61 = vld [vmem:[#allocation50_spill] sm:$0xff] }
 0x51c   : > { %v3809_v60 = vadd.f32 %v3777_v35, %v3691_v62  ;;  %v4719_v40 = vmul.f32 %v14559_v18, %v14775_v28  ;;  %v4367_v29 = vmul.f32 %v14487_v12, %v14776_v4  ;;  %v4485_v41 = vmul.f32 %v14552_v11, %v14777_v61  ;;  %v14778_v30 = vld [vmem:[#allocation178_spill] sm:$0xff] }
 0x51d   : > { %v11840_v6 = vadd.f32 %v4713_v57, %v4627_v13  ;;  %v4279_v56 = vadd.f32 %v4247_v47, %v4161_v53  ;;  %v4603_v63 = vmul.f32 %v14557_v21, %v14778_v30  ;;  %v4721_v9 = vmul.f32 %v14559_v18, %v14779_v2  ;;  %v4809_v21 = vpop.permute.xlu0 %4808 }
 0x51e   : > { %v3927_v10 = vadd.f32 %v3895_v48, %v3809_v60  ;;  %v4908_v12 = vsel %vm436_vm0, %v4805_v54, 0.0  ;;  %v4890_v54 = vsel %vm436_vm0, %v11771_v20, 0.0  ;;  %v4926_v20 = vsel %vm436_vm0, %v4817_v36, 0.0 }
 0x51f   : > { %4834 = vrot.lane.b32.xlu2 %v11840_v6, %s7113_s15  ;;  %v4397_v42 = vadd.f32 %v4365_v25, %v4279_v56  ;;  %4897 = vadd.xlane.f32.xlu0 %v4896_v0  ;;  %v4821_v32 = vpop.permute.xlu2 %4820  ;;  %v4902_v0 = vsel %vm436_vm0, %v4801_v37, 0.0 }
 0x520   : > { %v4045_v59 = vadd.f32 %v4013_v58, %v3927_v10  ;;  %v4932_v13 = vsel %vm436_vm0, %v4821_v32, 0.0  ;;  %v4914_v58 = vsel %vm436_vm0, %v4809_v21, 0.0 }
 0x521   : > { %v4515_v51 = vadd.f32 %v4483_v33, %v4397_v42  ;;  %v4813_v14 = vpop.permute.xlu1 %4812 }
 0x522   : > { %v4163_v19 = vadd.f32 %v4131_v1, %v4045_v59  ;;  %v4920_v10 = vsel %vm436_vm0, %v4813_v14, 0.0 }
 0x523   : > { %v4633_v7 = vadd.f32 %v4601_v44, %v4515_v51 }
 0x524   : > { %v4281_v38 = vadd.f32 %v4249_v43, %v4163_v19 }
 0x525   : > { %v11857_v8 = vadd.f32 %v4719_v40, %v4633_v7  ;;  %v4837_v48 = vpop.permute.xlu0 %4836 }
 0x526   : > { %v4399_v17 = vadd.f32 %v4367_v29, %v4281_v38  ;;  %v4956_v59 = vsel %vm436_vm0, %v4837_v48, 0.0 }
 0x527   : > { %4846 = vrot.lane.b32.xlu1 %v11857_v8, %s7113_s15  ;;  %v4825_v35 = vpop.permute.xlu2 %4824  ;;  %4909 = vadd.xlane.f32.xlu0 %v4908_v12  ;;  %v14780_v12 = vld [vmem:[#allocation15_spill] sm:$0xff] }
 0x528   : > { %v4517_v3 = vadd.f32 %v4485_v41, %v4399_v17  ;;  %v4938_v34 = vsel %vm436_vm0, %v4825_v35, 0.0 }
 0x529   : > { %v4829_v11 = vpop.permute.xlu1 %4828 }
 0x52a   : > { %v4635_v47 = vadd.f32 %v4603_v63, %v4517_v3  ;;  %v4944_v43 = vsel %vm436_vm0, %v4829_v11, 0.0 }
 0x52c   : > { %v11869_v57 = vadd.f32 %v4721_v9, %v4635_v47 }
 0x52d   : > { %v4791_v25 = vpop.permute.xlu0 %4790 }
 0x52e   : > { %4850 = vrot.lane.b32.xlu2 %v11869_v57, %s7113_s15  ;;  %v4887_v40 = vsel %vm436_vm0, %v4791_v25, 0.0 }
 0x52f   : > { %4933 = vadd.xlane.f32.xlu0 %v4932_v13  ;;  %v4841_v53 = vpop.permute.xlu2 %4840  ;;  %v14781_v13 = vld [vmem:[#allocation187_spill] sm:$0xff] }
 0x530   : > { %v4962_v51 = vsel %vm436_vm0, %v4841_v53, 0.0 }
 0x531   : > { %v4833_v62 = vpop.permute.xlu1 %4832 }
 0x532   : > { %v4950_v36 = vsel %vm436_vm0, %v4833_v62, 0.0 }
 0x535   : > { %v4803_v26 = vpop.permute.xlu0 %4802 }
 0x536   : > { %v4905_v4 = vsel %vm436_vm0, %v4803_v26, 0.0 }
 0x537   : > { %4939 = vadd.xlane.f32.xlu0 %v4938_v34  ;;  %v4845_v18 = vpop.permute.xlu2 %4844 }
 0x538   : > { %v4968_v45 = vsel %vm436_vm0, %v4845_v18, 0.0 }
 0x539   : > { %v4849_v50 = vpop.permute.xlu1 %4848 }
 0x53a   : > { %v4974_v37 = vsel %vm436_vm0, %v4849_v50, 0.0 }
 0x53d   : > { %v4815_v44 = vpop.permute.xlu0 %4814 }
 0x53e   : > { %v4923_v52 = vsel %vm436_vm0, %v4815_v44, 0.0  ;;  %v14784_v44 = vld [vmem:[#allocation45_spill] sm:$0xff] }
 0x53f   : > { %4969 = vadd.xlane.f32.xlu0 %v4968_v45  ;;  %v4799_v46 = vpop.permute.xlu2 %4798 }
 0x540   : > { %v4899_v42 = vsel %vm436_vm0, %v4799_v46, 0.0 }
 0x541   : > { %v4795_v56 = vpop.permute.xlu1 %4794 }
 0x542   : > { %v4893_v60 = vsel %vm436_vm0, %v4795_v56, 0.0 }
 0x547   : > { %4894 = vadd.xlane.f32.xlu0 %v4893_v60  ;;  %v4811_v33 = vpop.permute.xlu2 %4810 }
 0x548   : > { %v4917_v39 = vsel %vm436_vm0, %v4811_v33, 0.0  ;;  %v4839_v15 = vpop.permute.xlu0 %4838 }
 0x549   : > { %v4959_v7 = vsel %vm436_vm0, %v4839_v15, 0.0 }
 0x54f   : > { %4900 = vadd.xlane.f32.xlu0 %v4899_v42 }
 0x551   : > { %4891 = vadd.xlane.f32.xlu1 %v4890_v54  ;;  %v14782_v54 = vld [vmem:[#allocation191_spill] sm:$0xff] }
 0x556   : > { %v4807_v1 = vpop.permute.xlu1 %4806 }
 0x557   : > { %4915 = vadd.xlane.f32.xlu2 %v4914_v58  ;;  %4918 = vadd.xlane.f32.xlu0 %v4917_v39  ;;  %v4911_v29 = vsel %vm436_vm0, %v4807_v1, 0.0 }
 0x559   : > { %4903 = vadd.xlane.f32.xlu1 %v4902_v0  ;;  %v14783_v0 = vld [vmem:[#allocation188_spill] sm:$0xff] }
 0x55a   : > { %v4843_v28 = vpop.permute.xlu2 %4842 }
 0x55b   : > { %v4965_v38 = vsel %vm436_vm0, %v4843_v28, 0.0 }
 0x55f   : > { %4927 = vadd.xlane.f32.xlu2 %v4926_v20  ;;  %4924 = vadd.xlane.f32.xlu0 %v4923_v52 }
 0x561   : > { %4921 = vadd.xlane.f32.xlu1 %v4920_v10 }
 0x567   : > { %4963 = vadd.xlane.f32.xlu2 %v4962_v51  ;;  %4960 = vadd.xlane.f32.xlu0 %v4959_v7 }
 0x568   : > { %v4819_v19 = vpop.permute.xlu1 %4818 }
 0x569   : > { %4957 = vadd.xlane.f32.xlu1 %v4956_v59  ;;  %v4929_v41 = vsel %vm436_vm0, %v4819_v19, 0.0 }
 0x56a   : > { %v4831_v3 = vpop.permute.xlu2 %4830 }
 0x56b   : > { %v4947_v63 = vsel %vm436_vm0, %v4831_v3, 0.0 }
 0x56f   : > { %4951 = vadd.xlane.f32.xlu2 %v4950_v36  ;;  %4966 = vadd.xlane.f32.xlu0 %v4965_v38 }
 0x571   : > { %4945 = vadd.xlane.f32.xlu1 %v4944_v43  ;;  %v14785_v43 = vld [vmem:[#allocation248_spill] sm:$0xff] }
 0x577   : > { %4888 = vadd.xlane.f32.xlu2 %v4887_v40  ;;  %v14786_v40 = vld [vmem:[#allocation28_spill] sm:$0xff] }
 0x579   : > { %4975 = vadd.xlane.f32.xlu1 %v4974_v37  ;;  %v4823_v17 = vpop.permute.xlu1 %4822  ;;  %v4835_v11 = vpop.permute.xlu2 %4834 }
 0x57a   : > { %v4935_v61 = vsel %vm436_vm0, %v4823_v17, 0.0  ;;  %v4953_v21 = vsel %vm436_vm0, %v4835_v11, 0.0 }
 0x57f   : > { %4906 = vadd.xlane.f32.xlu2 %v4905_v4 }
 0x581   : > { %4912 = vadd.xlane.f32.xlu1 %v4911_v29 }
 0x587   : > { %4936 = vadd.xlane.f32.xlu2 %v4935_v61 }
 0x588   : > { %v4851_v34 = vpop.permute.xlu2 %4850 }
 0x589   : > { %4930 = vadd.xlane.f32.xlu1 %v4929_v41  ;;  %v4827_v32 = vpop.permute.xlu1 %4826  ;;  %v4977_v18 = vsel %vm436_vm0, %v4851_v34, 0.0  ;;  %v14787_v41 = vld [vmem:[#allocation247_spill] sm:$0xff] }
 0x58a   : > { %v4941_v30 = vsel %vm436_vm0, %v4827_v32, 0.0  ;;  %v4886_v47 = vpop.xlane.xlu0 %4885  ;;  %v14791_v34 = vld [vmem:[#allocation43_spill] sm:$0xff] }
 0x58b   : > { %v4980_v45 = vmul.f32 %v4886_v47, %v14780_v12 }
 0x58d   : > { %v11913_v25 = vsub.f32 %v14782_v54, %v4980_v45  ;;  %v14793_v45 = vld [vmem:[#allocation158_spill] sm:$0xff] }
 0x58f   : > { %4948 = vadd.xlane.f32.xlu2 %v4947_v63  ;;  %v5044_v56 = vmul.f32 %v11913_v25, %v11913_v25 }
 0x591   : > { %4942 = vadd.xlane.f32.xlu1 %v4941_v30  ;;  %v14788_v30 = vld [vmem:[#allocation222_spill] sm:$0xff] }
 0x592   : > { %v4898_v9 = vpop.xlane.xlu0 %4897 }
 0x593   : > { %v4984_v35 = vmul.f32 %v4898_v9, %v14780_v12 }
 0x595   : > { %v11904_v53 = vsub.f32 %v14781_v13, %v4984_v35  ;;  %v14790_v13 = vld [vmem:[#allocation224_spill] sm:$0xff] }
 0x597   : > { %v5048_v62 = vmul.f32 %v11904_v53, %v11904_v53 }
 0x599   : > { %v4847_v2 = vpop.permute.xlu1 %4846 }
 0x59a   : > { %v4971_v14 = vsel %vm436_vm0, %v4847_v2, 0.0  ;;  %v4910_v48 = vpop.xlane.xlu0 %4909 }
 0x59b   : > { %4972 = vadd.xlane.f32.xlu0 %v4971_v14  ;;  %v4988_v59 = vmul.f32 %v4910_v48, %v14780_v12 }
 0x59d   : > { %v11934_v7 = vsub.f32 %v14785_v43, %v4988_v59  ;;  %v14798_v59 = vld [vmem:[#allocation130_spill] sm:$0xff] }
 0x59f   : > { %v5052_v37 = vmul.f32 %v11934_v7, %v11934_v7 }
 0x5a2   : > { %v4934_v50 = vpop.xlane.xlu0 %4933 }
 0x5a3   : > { %4954 = vadd.xlane.f32.xlu0 %v4953_v21 }
 0x5a7   : > { %5116 = vrot.lane.b32.xlu2 %v5048_v62, %s7113_s15 }
 0x5aa   : > { %v4940_v60 = vpop.xlane.xlu0 %4939 }
 0x5ab   : > { %4978 = vadd.xlane.f32.xlu0 %v4977_v18  ;;  %v4998_v14 = vmul.f32 %v4940_v60, %v14780_v12 }
 0x5ad   : > { %v11967_v18 = vsub.f32 %v14791_v34, %v4998_v14 }
 0x5af   : > { %14792 = vst [vmem:[#allocation201_spill] sm:$0xff] %v11967_v18 }
 0x5b2   : > { %v4970_v26 = vpop.xlane.xlu0 %4969 }
 0x5ba   : > { %v4895_v1 = vpop.xlane.xlu0 %4894 }
 0x5bf   : > { %5108 = vrot.lane.b32.xlu0 %v5044_v56, %s7113_s15  ;;  %v4996_v56 = vmul.f32 %v4934_v50, %v14780_v12 }
 0x5c2   : > { %v4901_v61 = vpop.xlane.xlu0 %4900 }
 0x5c4   : > { %v4892_v46 = vpop.xlane.xlu1 %4891 }
 0x5c5   : > { %v4982_v58 = vmul.f32 %v4892_v46, %v14780_v12  ;;  %v5008_v46 = vmul.f32 %v4970_v26, %v14780_v12 }
 0x5c7   : > { %v11920_v42 = vsub.f32 %v14783_v0, %v4982_v58  ;;  %v5062_v0 = vmul.f32 %v11967_v18, %v11967_v18 }
 0x5c9   : > { %v5046_v33 = vmul.f32 %v11920_v42, %v11920_v42 }
 0x5ca   : > { %v4916_v20 = vpop.xlane.xlu2 %4915  ;;  %v4919_v48 = vpop.xlane.xlu0 %4918 }
 0x5cb   : > { %5112 = vrot.lane.b32.xlu0 %v5046_v33, %s7113_s15  ;;  %v4990_v38 = vmul.f32 %v4916_v20, %v14780_v12  ;;  %v14795_v20 = vld [vmem:[#allocation163_spill] sm:$0xff] }
 0x5cc   : > { %v4904_v10 = vpop.xlane.xlu1 %4903 }
 0x5cd   : > { %v4986_v39 = vmul.f32 %v4904_v10, %v14780_v12  ;;  %v11948_v32 = vsub.f32 %v14787_v41, %v4990_v38  ;;  %v11983_v10 = vsub.f32 %v14795_v20, %v4996_v56  ;;  %v4985_v38 = vmul.f32 %v4901_v61, %v14780_v12  ;;  %v14805_v20 = vld [vmem:[#allocation24_spill] sm:$0xff] }
 0x5cf   : > { %v11927_v51 = vsub.f32 %v14784_v44, %v4986_v39  ;;  %v5054_v47 = vmul.f32 %v11948_v32, %v11948_v32  ;;  %v14796_v39 = vld [vmem:[#allocation196_spill] sm:$0xff] }
 0x5d0   : > { %v11987_v44 = vsub.f32 %v14796_v39, %v5008_v46 }
 0x5d1   : > { %v5050_v52 = vmul.f32 %v11927_v51, %v11927_v51 }
 0x5d2   : > { %v4928_v15 = vpop.xlane.xlu2 %4927  ;;  %14797 = vst [vmem:[#allocation173_spill] sm:$0xff] %v11987_v44 }
 0x5d3   : > { %5120 = vrot.lane.b32.xlu2 %v5050_v52, %s7113_s15  ;;  %v4994_v2 = vmul.f32 %v4928_v15, %v14780_v12  ;;  %v5060_v15 = vmul.f32 %v11983_v10, %v11983_v10 }
 0x5d4   : > { %v4922_v36 = vpop.xlane.xlu1 %4921 }
 0x5d5   : > { %v4992_v28 = vmul.f32 %v4922_v36, %v14780_v12  ;;  %v11963_v21 = vsub.f32 %v14790_v13, %v4994_v2  ;;  %v4925_v36 = vpop.xlane.xlu0 %4924  ;;  %v14804_v13 = vld [vmem:[#allocation219_spill] sm:$0xff] }
 0x5d7   : > { %v11938_v19 = vsub.f32 %v14786_v40, %v4992_v28  ;;  %v5058_v60 = vmul.f32 %v11963_v21, %v11963_v21  ;;  %v5072_v28 = vmul.f32 %v11987_v44, %v11987_v44  ;;  %v4983_v40 = vmul.f32 %v4895_v1, %v14780_v12 }
 0x5d8   : > { %v12012_v1 = vsub.f32 %v11553_v22, %v4985_v38 }
 0x5d9   : > { %v5056_v4 = vmul.f32 %v11938_v19, %v11938_v19 }
 0x5da   : > { %v4964_v29 = vpop.xlane.xlu2 %4963 }
 0x5db   : > { %5132 = vrot.lane.b32.xlu1 %v5056_v4, %s7113_s15  ;;  %5124 = vrot.lane.b32.xlu2 %v5052_v37, %s7113_s15  ;;  %v5006_v43 = vmul.f32 %v4964_v29, %v14780_v12  ;;  %v12009_v29 = vsub.f32 %v11485_v55, %v4983_v40  ;;  %v4991_v55 = vmul.f32 %v4919_v48, %v14780_v12 }
 0x5dc   : > { %v4958_v17 = vpop.xlane.xlu1 %4957 }
 0x5dd   : > { %v5004_v3 = vmul.f32 %v4958_v17, %v14780_v12  ;;  %v14800_v17 = vld [vmem:[#allocation49_spill] sm:$0xff]  ;;  %v4961_v14 = vpop.xlane.xlu0 %4960  ;;  %v12033_v34 = vsub.f32 %v11624_v27, %v4991_v55 }
 0x5de   : > { %v12006_v41 = vsub.f32 %v14800_v17, %v5006_v43  ;;  %v4993_v43 = vmul.f32 %v4925_v36, %v14780_v12 }
 0x5df   : > { %v11952_v63 = vsub.f32 %v14788_v30, %v5004_v3 }
 0x5e0   : > { %14801 = vst [vmem:[#allocation180_spill] sm:$0xff] %v12006_v41  ;;  %v5070_v61 = vmul.f32 %v12006_v41, %v12006_v41 }
 0x5e1   : > { %14789 = vst [vmem:[#allocation213_spill] sm:$0xff] %v11952_v63  ;;  %v5068_v9 = vmul.f32 %v11952_v63, %v11952_v63 }
 0x5e2   : > { %v4952_v35 = vpop.xlane.xlu2 %4951 }
 0x5e3   : > { %5156 = vrot.lane.b32.xlu1 %v5068_v9, %s7113_s15  ;;  %5128 = vrot.lane.b32.xlu2 %v5054_v47, %s7113_s15  ;;  %v5002_v30 = vmul.f32 %v4952_v35, %v14780_v12  ;;  %v5047_v47 = vmul.f32 %v12009_v29, %v12009_v29  ;;  %v5049_v9 = vmul.f32 %v12012_v1, %v12012_v1 }
 0x5e4   : > { %v4946_v11 = vpop.xlane.xlu1 %4945 }
 0x5e5   : > { %v5000_v62 = vmul.f32 %v4946_v11, %v14780_v12  ;;  %v14802_v11 = vld [vmem:[#allocation241_spill] sm:$0xff]  ;;  %v4967_v27 = vpop.xlane.xlu0 %4966 }
 0x5e6   : > { %v12027_v35 = vsub.f32 %v14802_v11, %v5002_v30 }
 0x5e7   : > { %v11970_v54 = vsub.f32 %v14793_v45, %v5000_v62 }
 0x5e8   : > { %14803 = vst [vmem:[#allocation79_spill] sm:$0xff] %v12027_v35  ;;  %v5066_v48 = vmul.f32 %v12027_v35, %v12027_v35 }
 0x5e9   : > { %14794 = vst [vmem:[#allocation240_spill] sm:$0xff] %v11970_v54  ;;  %v5064_v58 = vmul.f32 %v11970_v54, %v11970_v54 }
 0x5ea   : > { %v4889_v33 = vpop.xlane.xlu2 %4888 }
 0x5eb   : > { %5148 = vrot.lane.b32.xlu0 %v5064_v58, %s7113_s15  ;;  %5136 = vrot.lane.b32.xlu2 %v5058_v60, %s7113_s15  ;;  %v4981_v56 = vmul.f32 %v4889_v33, %v14780_v12  ;;  %v5055_v58 = vmul.f32 %v12033_v34, %v12033_v34 }
 0x5ec   : > { %5144 = vrot.lane.b32.xlu1 %v5062_v0, %s7113_s15  ;;  %v4976_v50 = vpop.xlane.xlu1 %4975 }
 0x5ed   : > { %v5010_v26 = vmul.f32 %v4976_v50, %v14780_v12  ;;  %v12048_v50 = vsub.f32 %v14805_v20, %v4981_v56 }
 0x5ef   : > { %v11991_v52 = vsub.f32 %v14798_v59, %v5010_v26  ;;  %v5045_v59 = vmul.f32 %v12048_v50, %v12048_v50 }
 0x5f1   : > { %14799 = vst [vmem:[#allocation47_spill] sm:$0xff] %v11991_v52  ;;  %v5074_v37 = vmul.f32 %v11991_v52, %v11991_v52 }
 0x5f2   : > { %v4907_v4 = vpop.xlane.xlu2 %4906 }
 0x5f3   : > { %5140 = vrot.lane.b32.xlu2 %v5060_v15, %s7113_s15  ;;  %5164 = vrot.lane.b32.xlu0 %v5072_v28, %s7113_s15  ;;  %v4987_v2 = vmul.f32 %v4907_v4, %v14780_v12 }
 0x5f4   : > { %5168 = vrot.lane.b32.xlu1 %v5074_v37, %s7113_s15  ;;  %v4913_v3 = vpop.xlane.xlu1 %4912 }
 0x5f5   : > { %v12030_v62 = vsub.f32 %v14804_v13, %v4987_v2  ;;  %v4989_v46 = vmul.f32 %v4913_v3, %v14780_v12 }
 0x5f7   : > { %v5051_v60 = vmul.f32 %v12030_v62, %v12030_v62  ;;  %v12051_v33 = vsub.f32 %v11581_v31, %v4989_v46 }
 0x5f9   : > { %v5053_v15 = vmul.f32 %v12051_v33, %v12051_v33 }
 0x5fa   : > { %v4937_v22 = vpop.xlane.xlu2 %4936 }
 0x5fb   : > { %5160 = vrot.lane.b32.xlu2 %v5070_v61, %s7113_s15  ;;  %5114 = vrot.lane.b32.xlu0 %v5047_v47, %s7113_s15  ;;  %v4997_v31 = vmul.f32 %v4937_v22, %v14780_v12  ;;  %v5005_v61 = vmul.f32 %v4961_v14, %v14780_v12  ;;  %v5007_v47 = vmul.f32 %v4967_v27, %v14780_v12 }
 0x5fc   : > { %5118 = vrot.lane.b32.xlu1 %v5049_v9, %s7113_s15  ;;  %v4931_v45 = vpop.xlane.xlu1 %4930 }
 0x5fd   : > { %v4995_v0 = vmul.f32 %v4931_v45, %v14780_v12  ;;  %v12075_v36 = vsub.f32 %v11745_v24, %v4997_v31  ;;  %v14808_v24 = vld [vmem:[#allocation148_spill] sm:$0xff]  ;;  %v12092_v9 = vsub.f32 %v11712_v16, %v5007_v47 }
 0x5ff   : > { %v12054_v39 = vsub.f32 %v11671_v5, %v4995_v0  ;;  %v14806_v5 = vld [vmem:[#allocation57_spill] sm:$0xff]  ;;  %v5061_v30 = vmul.f32 %v12075_v36, %v12075_v36  ;;  %14810 = vst [vmem:[#allocation194_spill] sm:$0xff] %v12092_v9  ;;  %v5071_v45 = vmul.f32 %v12092_v9, %v12092_v9 }
 0x600   : > { %v12069_v37 = vsub.f32 %v14806_v5, %v4993_v43 }
 0x601   : > { %v5059_v40 = vmul.f32 %v12054_v39, %v12054_v39 }
 0x602   : > { %v4949_v26 = vpop.xlane.xlu2 %4948  ;;  %v5057_v17 = vmul.f32 %v12069_v37, %v12069_v37 }
 0x603   : > { %5152 = vrot.lane.b32.xlu2 %v5066_v48, %s7113_s15  ;;  %5122 = vrot.lane.b32.xlu0 %v5051_v60, %s7113_s15  ;;  %v5001_v28 = vmul.f32 %v4949_v26, %v14780_v12 }
 0x604   : > { %5130 = vrot.lane.b32.xlu1 %v5055_v58, %s7113_s15  ;;  %v4943_v2 = vpop.xlane.xlu1 %4942 }
 0x605   : > { %v12072_v38 = vsub.f32 %v11783_v23, %v5001_v28  ;;  %v12089_v23 = vsub.f32 %v14808_v24, %v5005_v61  ;;  %v4999_v22 = vmul.f32 %v4943_v2, %v14780_v12 }
 0x607   : > { %14807 = vst [vmem:[#allocation211_spill] sm:$0xff] %v12072_v38  ;;  %v5065_v3 = vmul.f32 %v12072_v38, %v12072_v38  ;;  %v5069_v11 = vmul.f32 %v12089_v23, %v12089_v23  ;;  %v12108_v48 = vsub.f32 %v11817_v49, %v4999_v22 }
 0x608   : > { %14809 = vst [vmem:[#allocation98_spill] sm:$0xff] %v12089_v23 }
 0x609   : > { %14812 = vst [vmem:[#allocation123_spill] sm:$0xff] %v12108_v48 }
 0x60a   : > { %v5117_v27 = vpop.permute.xlu2 %5116 }
 0x60b   : > { %5110 = vrot.lane.b32.xlu2 %v5045_v59, %s7113_s15  ;;  %5126 = vrot.lane.b32.xlu0 %v5053_v15, %s7113_s15 }
 0x60c   : > { %5138 = vrot.lane.b32.xlu1 %v5059_v40, %s7113_s15 }
 0x60e   : > { %v4973_v4 = vpop.xlane.xlu0 %4972 }
 0x60f   : > { %v5009_v46 = vmul.f32 %v4973_v4, %v14780_v12 }
 0x611   : > { %v12122_v49 = vsub.f32 %v11857_v8, %v5009_v46 }
 0x613   : > { %5150 = vrot.lane.b32.xlu0 %v5065_v3, %s7113_s15  ;;  %5134 = vrot.lane.b32.xlu2 %v5057_v17, %s7113_s15  ;;  %14814 = vst [vmem:[#allocation70_spill] sm:$0xff] %v12122_v49  ;;  %v5073_v20 = vmul.f32 %v12122_v49, %v12122_v49  ;;  %v5216_v17 = vsel %vm436_vm0, %v5117_v27, 0.0 }
 0x614   : > { %5142 = vrot.lane.b32.xlu1 %v5061_v30, %s7113_s15 }
 0x616   : > { %v4955_v55 = vpop.xlane.xlu0 %4954 }
 0x617   : > { %v5003_v14 = vmul.f32 %v4955_v55, %v14780_v12 }
 0x619   : > { %v12099_v13 = vsub.f32 %v11840_v6, %v5003_v14  ;;  %v5063_v6 = vmul.f32 %v12108_v48, %v12108_v48 }
 0x61b   : > { %14811 = vst [vmem:[#allocation92_spill] sm:$0xff] %v12099_v13  ;;  %5158 = vrot.lane.b32.xlu2 %v5069_v11, %s7113_s15  ;;  %v5067_v16 = vmul.f32 %v12099_v13, %v12099_v13  ;;  %v1450_v11 = vpop.f32.mrf.mxu1 }
 0x61c   : > { %5162 = vrot.lane.b32.xlu1 %v5071_v45, %s7113_s15 }
 0x61d   : > { %5154 = vrot.lane.b32.xlu0 %v5067_v16, %s7113_s15  ;;  %v1470_v16 = vpop.f32.mrf.mxu3 }
 0x61e   : > { %v4979_v56 = vpop.xlane.xlu0 %4978 }
 0x61f   : > { %v5011_v60 = vmul.f32 %v4979_v56, %v14780_v12 }
 0x621   : > { %v12116_v58 = vsub.f32 %v11869_v57, %v5011_v60 }
 0x623   : > { %14813 = vst [vmem:[#allocation67_spill] sm:$0xff] %v12116_v58  ;;  %5146 = vrot.lane.b32.xlu2 %v5063_v6, %s7113_s15  ;;  %v5075_v0 = vmul.f32 %v12116_v58, %v12116_v58 }
 0x625   : > { %5170 = vrot.lane.b32.xlu0 %v5075_v0, %s7113_s15  ;;  %v1452_v0 = vpop.f32.mrf.mxu1 }
 0x62b   : > { %5166 = vrot.lane.b32.xlu2 %v5073_v20, %s7113_s15 }
 0x62d   : > { %v5121_v26 = vpop.permute.xlu2 %5120 }
 0x62e   : > { %v5222_v4 = vsel %vm436_vm0, %v5121_v26, 0.0  ;;  %v14815_v26 = vld [vmem:[#allocation25_spill] sm:$0xff] }
 0x631   : > { %v5109_v15 = vpop.permute.xlu0 %5108 }
 0x632   : > { %v5204_v43 = vsel %vm436_vm0, %v5109_v15, 0.0 }
 0x635   : > { %v5125_v59 = vpop.permute.xlu2 %5124 }
 0x636   : > { %v5228_v30 = vsel %vm436_vm0, %v5125_v59, 0.0  ;;  %v1453_v59 = vadd.f32 %v1452_v0, %v14815_v26 }
 0x63d   : > { %v5129_v57 = vpop.permute.xlu2 %5128  ;;  %v5113_v40 = vpop.permute.xlu0 %5112 }
 0x63e   : > { %v5210_v8 = vsel %vm436_vm0, %v5113_v40, 0.0  ;;  %v5234_v24 = vsel %vm436_vm0, %v5129_v57, 0.0 }
 0x645   : > { %v5137_v28 = vpop.permute.xlu2 %5136 }
 0x646   : > { %5205 = vadd.xlane.f32.xlu1 %v5204_v43  ;;  %v5246_v27 = vsel %vm436_vm0, %v5137_v28, 0.0  ;;  %v1472_v43 = vpop.f32.mrf.mxu3 }
 0x64d   : > { %v5133_v31 = vpop.permute.xlu1 %5132  ;;  %v5141_v5 = vpop.permute.xlu2 %5140 }
 0x64e   : > { %5211 = vadd.xlane.f32.xlu1 %v5210_v8  ;;  %v5252_v14 = vsel %vm436_vm0, %v5141_v5, 0.0  ;;  %v5240_v45 = vsel %vm436_vm0, %v5133_v31, 0.0  ;;  %v1451_v8 = vadd.f32 %v1450_v11, %v14815_v26  ;;  %v2275_v31 = vsub.f32 0.0, %v1453_v59 }
 0x64f   : > { %5223 = vadd.xlane.f32.xlu0 %v5222_v4  ;;  %v1473_v5 = vadd.f32 %v1472_v43, %v14815_v26 }
 0x650   : > { %v2274_v28 = vsub.f32 0.0, %v1451_v8 }
 0x654   : > { %5217 = vadd.xlane.f32.xlu2 %v5216_v17 }
 0x655   : > { %v5157_v3 = vpop.permute.xlu1 %5156  ;;  %v12132_v61 = vpop.permute.xlu2 %5160 }
 0x656   : > { %v5276_v47 = vsel %vm436_vm0, %v5157_v3, 0.0  ;;  %v2324_v3 = vmul.f32 1.442695, %v2275_v31 }
 0x657   : > { %5277 = vadd.xlane.f32.xlu1 %v5276_v47  ;;  %5229 = vadd.xlane.f32.xlu0 %v5228_v30  ;;  %v1471_v30 = vadd.f32 %v1470_v16, %v14815_v26  ;;  %v2283_v47 = vsub.f32 0.0, %v1473_v5 }
 0x658   : > { %6777 = vpow2.f32 %v2324_v3 }
 0x659   : > { %v2282_v11 = vsub.f32 0.0, %v1471_v30 }
 0x65c   : > { %5235 = vadd.xlane.f32.xlu2 %v5234_v24 }
 0x65d   : > { %v12137_v2 = vpop.permute.xlu2 %5152  ;;  %v12139_v55 = vpop.permute.xlu0 %5148 }
 0x65e   : > { %v5145_v22 = vpop.permute.xlu1 %5144 }
 0x65f   : > { %5253 = vadd.xlane.f32.xlu0 %v5252_v14  ;;  %v5258_v4 = vsel %vm436_vm0, %v5145_v22, 0.0 }
 0x664   : > { %5241 = vadd.xlane.f32.xlu2 %v5240_v45 }
 0x665   : > { %v5111_v56 = vpop.permute.xlu2 %5110  ;;  %v12143_v60 = vpop.permute.xlu0 %5164 }
 0x666   : > { %v5207_v6 = vsel %vm436_vm0, %v5111_v56, 0.0  ;;  %v12146_v46 = vpop.permute.xlu1 %5168  ;;  %v2322_v56 = vmul.f32 1.442695, %v2274_v28 }
 0x667   : > { %5208 = vadd.xlane.f32.xlu0 %v5207_v6  ;;  %v2340_v6 = vmul.f32 1.442695, %v2283_v47 }
 0x668   : > { %6779 = vpow2.f32 %v2322_v56 }
 0x669   : > { %6781 = vpow2.f32 %v2340_v6 }
 0x66c   : > { %5247 = vadd.xlane.f32.xlu2 %v5246_v27  ;;  %v2338_v27 = vmul.f32 1.442695, %v2282_v11  ;;  %v5282_v11 = vsel %vm436_vm0, %v12132_v61, 0.0 }
 0x66d   : > { %v5115_v20 = vpop.permute.xlu0 %5114  ;;  %v5135_v14 = vpop.permute.xlu2 %5134 }
 0x66e   : > { %v5119_v57 = vpop.permute.xlu1 %5118  ;;  %v5213_v15 = vsel %vm436_vm0, %v5115_v20, 0.0  ;;  %v5243_v59 = vsel %vm436_vm0, %v5135_v14, 0.0  ;;  %6783 = vpow2.f32 %v2338_v27 }
 0x66f   : > { %v5219_v40 = vsel %vm436_vm0, %v5119_v57, 0.0  ;;  %5214 = vadd.xlane.f32.xlu1 %v5213_v15  ;;  %v6778_v57 = vpop.eup %6777 }
 0x670   : > { %5220 = vadd.xlane.f32.xlu0 %v5219_v40  ;;  %v6780_v43 = vpop.eup %6779  ;;  %v2371_v40 = vadd.f32 1.0, %v6778_v57 }
 0x671   : > { %v6782_v8 = vpop.eup %6781  ;;  %v12160_v31 = vadd.f32 1.0, %v6780_v43 }
 0x672   : > { %6785 = vrcp.f32 %v2371_v40  ;;  %v12163_v28 = vadd.f32 1.0, %v6782_v8  ;;  %vm2646_vm6 = vweird.f32 %v2371_v40 }
 0x673   : > { %6787 = vrcp.f32 %v12160_v31  ;;  %vm2631_vm10 = vweird.f32 %v12160_v31 }
 0x674   : > { %5259 = vadd.xlane.f32.xlu2 %v5258_v4  ;;  %v6784_v30 = vpop.eup %6783  ;;  %6789 = vrcp.f32 %v12163_v28  ;;  %vm2766_vm12 = vweird.f32 %v12163_v28 }
 0x675   : > { %v5123_v17 = vpop.permute.xlu0 %5122  ;;  %v5159_v15 = vpop.permute.xlu2 %5158  ;;  %v12168_v47 = vadd.f32 1.0, %v6784_v30  ;;  %v2652_v30 = vand.u32 2147483648, %v2371_v40 }
 0x676   : > { %v5131_v24 = vpop.permute.xlu1 %5130  ;;  %v5225_v0 = vsel %vm436_vm0, %v5123_v17, 0.0  ;;  %v5279_v17 = vsel %vm436_vm0, %v5159_v15, 0.0 }
 0x677   : > { %v5237_v45 = vsel %vm436_vm0, %v5131_v24, 0.0  ;;  %6791 = vrcp.f32 %v12168_v47  ;;  %vm2751_vm3 = vweird.f32 %v12168_v47 }
 0x678   : > { %5238 = vadd.xlane.f32.xlu0 %v5237_v45  ;;  %v6786_v14 = vpop.eup %6785 }
 0x679   : > { %vm2647_vm5 = vweird.f32 %v6786_v14 }
 0x67a   : > { %vm12179_vm8 = vmor %vm2646_vm6, %vm2647_vm5 }
 0x67c   : > { %5226 = vadd.xlane.f32.xlu2 %v5225_v0  ;;  %v6788_v0 = vpop.eup %6787 }
 0x67d   : > { %v5127_v22 = vpop.permute.xlu0 %5126  ;;  %v5147_v24 = vpop.permute.xlu2 %5146  ;;  %vm2632_vm7 = vweird.f32 %v6788_v0 }
 0x67e   : > { %v5139_v20 = vpop.permute.xlu1 %5138  ;;  %v5231_v16 = vsel %vm436_vm0, %v5127_v22, 0.0  ;;  %v5261_v45 = vsel %vm436_vm0, %v5147_v24, 0.0  ;;  %v2642_v22 = vmul.f32 %v6786_v14, %v2371_v40  ;;  %v6790_v27 = vpop.eup %6789  ;;  %v2650_v24 = vand.u32 2147483647, %v2371_v40  ;;  %vm12188_vm11 = vmor %vm2631_vm10, %vm2632_vm7 }
 0x67f   : > { %5232 = vadd.xlane.f32.xlu1 %v5231_v16  ;;  %v5249_v5 = vsel %vm436_vm0, %v5139_v20, 0.0  ;;  %v2627_v20 = vmul.f32 %v6788_v0, %v12160_v31  ;;  %v2762_v16 = vmul.f32 %v6790_v27, %v12163_v28  ;;  %v6792_v57 = vpop.eup %6791  ;;  %vm2767_vm9 = vweird.f32 %v6790_v27 }
 0x680   : > { %5244 = vadd.xlane.f32.xlu0 %v5243_v59  ;;  %v2643_v59 = vsub.f32 1.0, %v2642_v22  ;;  %vm2651_vm14 = vcmp.eq.f32.partialorder %v2650_v24, 8.507059e+37  ;;  %vm12195_vm13 = vmor %vm2766_vm12, %vm2767_vm9  ;;  %vm2752_vm15 = vweird.f32 %v6792_v57 }
 0x681   : > { %v2628_v15 = vsub.f32 1.0, %v2627_v20  ;;  %v2763_v43 = vsub.f32 1.0, %v2762_v16  ;;  %v2637_v20 = vand.u32 2147483648, %v12160_v31  ;;  %v2772_v16 = vand.u32 2147483648, %v12163_v28  ;;  %vm2753_vm4 = vmor %vm2751_vm3, %vm2752_vm15 }
 0x682   : > { %v2644_v8 = vmul.f32 %v6786_v14, %v2643_v59  ;;  %v2653_v59 = vor.u32 1.1754944e-38, %v2652_v30 }
 0x683   : > { %v2629_v61 = vmul.f32 %v6788_v0, %v2628_v15  ;;  %v2635_v15 = vand.u32 2147483647, %v12160_v31  ;;  %v2638_v31 = vor.u32 1.1754944e-38, %v2637_v20 }
 0x685   : > { %vm2636_vm1 = vcmp.eq.f32.partialorder %v2635_v15, 8.507059e+37 }
 0x686   : > { %v5143_v4 = vpop.permute.xlu1 %5142 }
 0x687   : > { %v5255_v3 = vsel %vm436_vm0, %v5143_v4, 0.0  ;;  %5250 = vadd.xlane.f32.xlu1 %v5249_v5  ;;  %v2747_v5 = vmul.f32 %v6792_v57, %v12168_v47  ;;  %v2764_v4 = vmul.f32 %v6790_v27, %v2763_v43  ;;  %v2770_v43 = vand.u32 2147483647, %v12163_v28 }
 0x688   : > { %5256 = vadd.xlane.f32.xlu2 %v5255_v3  ;;  %5280 = vadd.xlane.f32.xlu0 %v5279_v17  ;;  %v2645_v17 = vadd.f32 %v6786_v14, %v2644_v8  ;;  %v2757_v28 = vand.u32 2147483648, %v12168_v47 }
 0x689   : > { %v2748_v3 = vsub.f32 1.0, %v2747_v5  ;;  %vm2771_vm2 = vcmp.eq.f32.partialorder %v2770_v43, 8.507059e+37 }
 0x68b   : > { %v2749_v22 = vmul.f32 %v6792_v57, %v2748_v3  ;;  %v2755_v3 = vand.u32 2147483647, %v12168_v47 }
 0x68d   : > { %vm2756_vm5 = vcmp.eq.f32.partialorder %v2755_v3, 8.507059e+37 }
 0x68e   : > { %v5163_v56 = vpop.permute.xlu1 %5162 }
 0x68f   : > { %v5285_v6 = vsel %vm436_vm0, %v5163_v56, 0.0  ;;  %5262 = vadd.xlane.f32.xlu1 %v5261_v45  ;;  %v2630_v45 = vadd.f32 %v6788_v0, %v2629_v61 }
 0x690   : > { %5286 = vadd.xlane.f32.xlu2 %v5285_v6  ;;  %5283 = vadd.xlane.f32.xlu0 %v5282_v11  ;;  %v2765_v11 = vadd.f32 %v6790_v27, %v2764_v4  ;;  %v2649_v6 = vsel %vm12179_vm8, %v6786_v14, %v2645_v17  ;;  %v2750_v4 = vadd.f32 %v6792_v57, %v2749_v22  ;;  %v2773_v17 = vor.u32 1.1754944e-38, %v2772_v16 }
 0x691   : > { %v2654_v8 = vsel %vm2651_vm14, %v2653_v59, %v2649_v6  ;;  %v2634_v5 = vsel %vm12188_vm11, %v6788_v0, %v2630_v45  ;;  %v5151_v0 = vpop.permute.xlu0 %5150  ;;  %v2758_v45 = vor.u32 1.1754944e-38, %v2757_v28  ;;  %v1475_v6 = vpop.f32.mrf.mxu3 }
 0x692   : > { %v2769_v61 = vsel %vm12195_vm13, %v6790_v27, %v2765_v11  ;;  %v2639_v30 = vsel %vm2636_vm1, %v2638_v31, %v2634_v5  ;;  %v2754_v27 = vsel %vm2753_vm4, %v6792_v57, %v2750_v4  ;;  %v1476_v22 = vadd.f32 %v1475_v6, %v14815_v26  ;;  %v12215_v59 = vpop.permute.xlu2 %5166 }
 0x693   : > { %v2774_v24 = vsel %vm2771_vm2, %v2773_v17, %v2769_v61  ;;  %v2759_v56 = vsel %vm2756_vm5, %v2758_v45, %v2754_v27  ;;  %v5264_v61 = vsel %vm436_vm0, %v12139_v55, 0.0  ;;  %v5267_v28 = vsel %vm436_vm0, %v5151_v0, 0.0 }
 0x694   : > { %v2284_v47 = vsub.f32 0.0, %v1476_v22 }
 0x696   : > { %v2342_v16 = vmul.f32 1.442695, %v2284_v47 }
 0x698   : > { %6793 = vpow2.f32 %v2342_v16 }
 0x699   : > { %v12210_v11 = vpop.permute.xlu0 %5154 }
 0x69e   : > { %v6794_v57 = vpop.eup %6793 }
 0x69f   : > { %v2380_v14 = vadd.f32 1.0, %v6794_v57 }
 0x6a1   : > { %v12213_v20 = vpop.permute.xlu0 %5170  ;;  %6795 = vrcp.f32 %v2380_v14  ;;  %vm2781_vm7 = vweird.f32 %v2380_v14 }
 0x6a4   : > { %5856 = vrot.lane.b32.xlu0 %v2654_v8, %s7111_s22 }
 0x6a7   : > { %v6796_v31 = vpop.eup %6795 }
 0x6a8   : > { %5854 = vrot.lane.b32.xlu2 %v2639_v30, %s7111_s22  ;;  %5872 = vrot.lane.b32.xlu1 %v2774_v24, %s7111_s22  ;;  %v2777_v3 = vmul.f32 %v6796_v31, %v2380_v14  ;;  %vm2782_vm6 = vweird.f32 %v6796_v31 }
 0x6a9   : > { %vm2783_vm8 = vmor %vm2781_vm7, %vm2782_vm6 }
 0x6aa   : > { %v2778_v45 = vsub.f32 1.0, %v2777_v3  ;;  %v2787_v3 = vand.u32 2147483648, %v2380_v14 }
 0x6ac   : > { %5870 = vrot.lane.b32.xlu0 %v2759_v56, %s7111_s22  ;;  %v2779_v47 = vmul.f32 %v6796_v31, %v2778_v45  ;;  %v2788_v52 = vor.u32 1.1754944e-38, %v2787_v3 }
 0x6b9   : > { %v5206_v43 = vpop.xlane.xlu1 %5205 }
 0x6ba   : > { %v5300_v6 = vmul.f32 %v5206_v43, %v14780_v12 }
 0x6bc   : > { %v12238_v0 = vadd.f32 1e-05, %v5300_v6 }
 0x6be   : > { %vm5370_vm3 = vweird.f32 %v12238_v0 }
 0x6c1   : > { %v5212_v4 = vpop.xlane.xlu1 %5211 }
 0x6c2   : > { %v12217_v40 = vpop.xlane.xlu0 %5223  ;;  %v5302_v24 = vmul.f32 %v5212_v4, %v14780_v12  ;;  %v2780_v4 = vadd.f32 %v6796_v31, %v2779_v47 }
 0x6c4   : > { %v12231_v56 = vadd.f32 1e-05, %v5302_v24  ;;  %v2785_v24 = vand.u32 2147483647, %v2380_v14  ;;  %v2784_v6 = vsel %vm2783_vm8, %v6796_v31, %v2780_v4 }
 0x6c6   : > { %6797 = vrsqrt.f32 %v12231_v56  ;;  %vm2786_vm9 = vcmp.eq.f32.partialorder %v2785_v24, 8.507059e+37  ;;  %vm5390_vm12 = vweird.f32 %v12231_v56 }
 0x6c7   : > { %v12219_v15 = vpop.xlane.xlu2 %5217  ;;  %6799 = vrsqrt.f32 %v12238_v0  ;;  %v2789_v58 = vsel %vm2786_vm9, %v2788_v52, %v2784_v6 }
 0x6ca   : > { %v12221_v8 = vpop.xlane.xlu0 %5229  ;;  %v12229_v27 = vpop.xlane.xlu1 %5277 }
 0x6cf   : > { %v12223_v5 = vpop.xlane.xlu2 %5235 }
 0x6d1   : > { %5265 = vadd.xlane.f32.xlu2 %v5264_v61 }
 0x6d2   : > { %v5254_v17 = vpop.xlane.xlu0 %5253 }
 0x6d3   : > { %v5316_v14 = vmul.f32 %v5254_v17, %v14780_v12 }
 0x6d6   : > { %5268 = vadd.xlane.f32.xlu0 %v5267_v28 }
 0x6d7   : > { %v5242_v30 = vpop.xlane.xlu2 %5241 }
 0x6d8   : > { %v5312_v28 = vmul.f32 %v5242_v30, %v14780_v12 }
 0x6da   : > { %v5209_v22 = vpop.xlane.xlu0 %5208 }
 0x6db   : > { %v5301_v55 = vmul.f32 %v5209_v22, %v14780_v12  ;;  %v12247_v22 = vpop.eup %6797 }
 0x6dc   : > { %v5385_v30 = vmul.f32 %v12247_v22, %v12231_v56  ;;  %v12258_v13 = vpop.eup %6799  ;;  %vm5391_vm10 = vweird.f32 %v12247_v22 }
 0x6dd   : > { %v12240_v61 = vadd.f32 1e-05, %v5301_v55  ;;  %v12250_v55 = vadd.f32 1e-05, %v5312_v28  ;;  %v12264_v28 = vadd.f32 1e-05, %v5316_v14  ;;  %v5365_v17 = vmul.f32 %v12258_v13, %v12238_v0  ;;  %vm12290_vm14 = vmor %vm5390_vm12, %vm5391_vm10 }
 0x6de   : > { %v5386_v4 = vmul.f32 %v12247_v22, %v5385_v30  ;;  %vm5371_vm15 = vweird.f32 %v12258_v13 }
 0x6df   : > { %v12235_v16 = vpop.xlane.xlu2 %5247  ;;  %6801 = vrsqrt.f32 %v12240_v61  ;;  %v5366_v30 = vmul.f32 %v12258_v13, %v5365_v17  ;;  %vm12310_vm4 = vmor %vm5370_vm3, %vm5371_vm15  ;;  %vm5380_vm5 = vweird.f32 %v12240_v61  ;;  %vm5490_vm8 = vweird.f32 %v12250_v55 }
 0x6e0   : > { %v5387_v6 = vmul.f32 0.5, %v5386_v4  ;;  %vm5530_vm12 = vweird.f32 %v12264_v28 }
 0x6e1   : > { %v5367_v48 = vmul.f32 0.5, %v5366_v30 }
 0x6e2   : > { %v5215_v57 = vpop.xlane.xlu1 %5214  ;;  %v5388_v44 = vsub.f32 1.5, %v5387_v6 }
 0x6e3   : > { %v5303_v43 = vmul.f32 %v5215_v57, %v14780_v12  ;;  %v12245_v45 = vpop.xlane.xlu0 %5220 }
 0x6e5   : > { %v5335_v47 = vadd.f32 1e-05, %v5303_v43  ;;  %v12261_v31 = vpop.eup %6801 }
 0x6e6   : > { %v5375_v52 = vmul.f32 %v12261_v31, %v12240_v61  ;;  %vm5381_vm2 = vweird.f32 %v12261_v31 }
 0x6e7   : > { %6803 = vrsqrt.f32 %v5335_v47  ;;  %v12255_v57 = vpop.xlane.xlu2 %5259  ;;  %vm5400_vm13 = vweird.f32 %v5335_v47  ;;  %vm5382_vm6 = vmor %vm5380_vm5, %vm5381_vm2 }
 0x6e8   : > { %6805 = vrsqrt.f32 %v12250_v55  ;;  %v5376_v14 = vmul.f32 %v12261_v31, %v5375_v52 }
 0x6e9   : > { %6807 = vrsqrt.f32 %v12264_v28 }
 0x6ea   : > { %5874 = vrot.lane.b32.xlu0 %v2789_v58, %s7111_s22  ;;  %v5377_v4 = vmul.f32 0.5, %v5376_v14 }
 0x6eb   : > { %v12266_v3 = vpop.xlane.xlu0 %5238 }
 0x6ed   : > { %v6804_v43 = vpop.eup %6803 }
 0x6ee   : > { %v5395_v58 = vmul.f32 %v6804_v43, %v5335_v47  ;;  %v12272_v24 = vpop.eup %6805  ;;  %vm5401_vm11 = vweird.f32 %v6804_v43 }
 0x6ef   : > { %v12277_v54 = vpop.xlane.xlu2 %5226  ;;  %v5485_v35 = vmul.f32 %v12272_v24, %v12250_v55  ;;  %v12281_v18 = vpop.eup %6807  ;;  %vm5402_vm1 = vmor %vm5400_vm13, %vm5401_vm11  ;;  %vm5491_vm7 = vweird.f32 %v12272_v24 }
 0x6f0   : > { %v5396_v38 = vmul.f32 %v6804_v43, %v5395_v58  ;;  %v5389_v58 = vmul.f32 %v12247_v22, %v5388_v44  ;;  %v5525_v52 = vmul.f32 %v12281_v18, %v12264_v28  ;;  %vm12335_vm9 = vmor %vm5490_vm8, %vm5491_vm7  ;;  %vm5531_vm10 = vweird.f32 %v12281_v18 }
 0x6f1   : > { %v5486_v63 = vmul.f32 %v12272_v24, %v5485_v35 }
 0x6f2   : > { %v5397_v49 = vmul.f32 0.5, %v5396_v38  ;;  %v5368_v38 = vsub.f32 1.5, %v5367_v48 }
 0x6f3   : > { %v5245_v41 = vpop.xlane.xlu0 %5244  ;;  %v5487_v35 = vmul.f32 0.5, %v5486_v63 }
 0x6f4   : > { %v5398_v9 = vsub.f32 1.5, %v5397_v49  ;;  %v5313_v17 = vmul.f32 %v5245_v41, %v14780_v12  ;;  %v5378_v49 = vsub.f32 1.5, %v5377_v4  ;;  %v5393_v41 = vsel %vm12290_vm14, %v12247_v22, %v5389_v58  ;;  %v12317_v58 = vpop.f32.mrf.mxu1  ;;  %vm5532_vm14 = vmor %vm5530_vm12, %vm5531_vm10 }
 0x6f5   : > { %v5369_v63 = vmul.f32 %v12258_v13, %v5368_v38  ;;  %v5488_v4 = vsub.f32 1.5, %v5487_v35 }
 0x6f6   : > { %v5399_v23 = vmul.f32 %v6804_v43, %v5398_v9  ;;  %v12295_v14 = vadd.f32 1e-05, %v5313_v17  ;;  %v5526_v9 = vmul.f32 %v12281_v18, %v5525_v52  ;;  %v5379_v47 = vmul.f32 %v12261_v31, %v5378_v49 }
 0x6f7   : > { %v5373_v0 = vsel %vm12310_vm4, %v12258_v13, %v5369_v63  ;;  %v5304_v49 = vmul.f32 %v12219_v15, %v14780_v12 }
 0x6f8   : > { %v5403_v48 = vsel %vm5402_vm1, %v6804_v43, %v5399_v23  ;;  %6809 = vrsqrt.f32 %v12295_v14  ;;  %v5686_v23 = vmul.f32 %v5393_v41, %v11920_v42  ;;  %v5527_v17 = vmul.f32 0.5, %v5526_v9 }
 0x6f9   : > { %v5687_v43 = vmul.f32 %v5403_v48, %v12009_v29  ;;  %v5383_v52 = vsel %vm5382_vm6, %v12261_v31, %v5379_v47  ;;  %v5489_v42 = vmul.f32 %v12272_v24, %v5488_v4  ;;  %v14826_v29 = vld [vmem:[#allocation34_spill] sm:$0xff]  ;;  %v5684_v13 = vmul.f32 %v5373_v0, %v11913_v25  ;;  %v14829_v4 = vld [vmem:[#allocation21_spill] sm:$0xff] }
 0x6fa   : > { %v5723_v61 = vmul.f32 %v14826_v29, %v5686_v23  ;;  %v5528_v31 = vsub.f32 1.5, %v5527_v17  ;;  %v12341_v48 = vadd.f32 1e-05, %v5304_v49  ;;  %v5305_v25 = vmul.f32 %v12245_v45, %v14780_v12 }
 0x6fb   : > { %v5257_v6 = vpop.xlane.xlu2 %5256  ;;  %v5493_v63 = vsel %vm12335_vm9, %v12272_v24, %v5489_v42  ;;  %v12357_v0 = vpop.xlane.xlu0 %5280  ;;  %vm5500_vm13 = vweird.f32 %v12295_v14 }
 0x6fc   : > { %v5317_v44 = vmul.f32 %v5257_v6, %v14780_v12  ;;  %v5724_v6 = vmul.f32 %v14826_v29, %v5687_v43  ;;  %v5760_v22 = vadd.f32 %v14829_v4, %v5723_v61  ;;  %v5721_v43 = vmul.f32 %v14826_v29, %v5684_v13  ;;  %v12360_v49 = vpop.f32.mrf.mxu1 }
 0x6fd   : > { %v5529_v17 = vmul.f32 %v12281_v18, %v5528_v31  ;;  %v5696_v45 = vmul.f32 %v5493_v63, %v11938_v19  ;;  %v12363_v42 = vadd.f32 1e-05, %v5305_v25  ;;  %v14831_v31 = vld [vmem:[#allocation35_spill] sm:$0xff]  ;;  %vm5410_vm6 = vweird.f32 %v12341_v48 }
 0x6fe   : > { %v12302_v56 = vadd.f32 1e-05, %v5317_v44  ;;  %v6810_v38 = vpop.eup %6809  ;;  %v5685_v44 = vmul.f32 %v5383_v52, %v12048_v50  ;;  %v5761_v23 = vadd.f32 %v14829_v4, %v5724_v6  ;;  %v5758_v19 = vadd.f32 %v14829_v4, %v5721_v43 }
 0x6ff   : > { %v5495_v30 = vmul.f32 %v6810_v38, %v12295_v14  ;;  %vm5501_vm11 = vweird.f32 %v6810_v38  ;;  %v5533_v28 = vsel %vm5532_vm14, %v12281_v18, %v5529_v17  ;;  %v12381_v18 = vpop.xlane.xlu1 %5232  ;;  %v14833_v17 = vld [vmem:[#allocation27_spill] sm:$0xff]  ;;  %vm5420_vm8 = vweird.f32 %v12363_v42 }
 0x700   : > { %6811 = vrsqrt.f32 %v12302_v56  ;;  %v5722_v24 = vmul.f32 %v14826_v29, %v5685_v44  ;;  %v5921_v44 = vmul.f32 %v14831_v31, %v5761_v23  ;;  %vm5502_vm15 = vmor %vm5500_vm13, %vm5501_vm11  ;;  %v5700_v25 = vmul.f32 %v5533_v28, %v11983_v10 }
 0x701   : > { %v5496_v9 = vmul.f32 %v6810_v38, %v5495_v30  ;;  %v14830_v30 = vld [vmem:[#allocation33_spill] sm:$0xff]  ;;  %6813 = vrsqrt.f32 %v12341_v48  ;;  %vm5540_vm2 = vweird.f32 %v12302_v56  ;;  %v5311_v28 = vmul.f32 %v12266_v3, %v14780_v12 }
 0x702   : > { %v5920_v13 = vmul.f32 %v14830_v30, %v5760_v22  ;;  %v5759_v15 = vadd.f32 %v14829_v4, %v5722_v24  ;;  %6815 = vrsqrt.f32 %v12363_v42  ;;  %v14832_v22 = vld [vmem:[#allocation30_spill] sm:$0xff]  ;;  %v5737_v43 = vmul.f32 %v14826_v29, %v5700_v25 }
 0x703   : > { %v5497_v50 = vmul.f32 0.5, %v5496_v9  ;;  %v12349_v47 = vpop.xlane.xlu2 %5286  ;;  %v5918_v24 = vmul.f32 %v14833_v17, %v5758_v19  ;;  %v12391_v30 = vpop.xlane.xlu0 %5283  ;;  %v5310_v19 = vmul.f32 %v12223_v5, %v14780_v12 }
 0x704   : > { %v5951_v63 = vpack.c.bf16 %v5921_v44, %v5920_v13  ;;  %v5919_v23 = vmul.f32 %v14832_v22, %v5759_v15  ;;  %v12396_v44 = vpop.f32.mrf.mxu1 }
 0x705   : > { %v5498_v52 = vsub.f32 1.5, %v5497_v50  ;;  %v12376_v50 = vpop.f32.mrf.mxu3  ;;  %v12416_v3 = vadd.f32 1e-05, %v5310_v19 }
 0x706   : > { %v12330_v35 = vpop.eup %6811  ;;  %5992 = vrot.lane.b32.xlu1 %v5951_v63, %s7113_s15  ;;  %v14836_v63 = vld [vmem:[#allocation55_spill] sm:$0xff] }
 0x707   : > { %v5535_v41 = vmul.f32 %v12330_v35, %v12302_v56  ;;  %v5499_v6 = vmul.f32 %v6810_v38, %v5498_v52  ;;  %v12386_v52 = vpop.eup %6813  ;;  %vm5541_vm1 = vweird.f32 %v12330_v35  ;;  %6817 = vrsqrt.f32 %v12416_v3 }
 0x708   : > { %v12394_v31 = vpop.eup %6815  ;;  %vm5542_vm3 = vmor %vm5540_vm2, %vm5541_vm1  ;;  %v5405_v5 = vmul.f32 %v12386_v52, %v12341_v48  ;;  %vm5411_vm4 = vweird.f32 %v12386_v52  ;;  %vm5470_vm12 = vweird.f32 %v12416_v3 }
 0x709   : > { %v5536_v55 = vmul.f32 %v12330_v35, %v5535_v41  ;;  %v5733_v41 = vmul.f32 %v14826_v29, %v5696_v45  ;;  %v5503_v9 = vsel %vm5502_vm15, %v6810_v38, %v5499_v6  ;;  %v5774_v6 = vadd.f32 %v14829_v4, %v5737_v43  ;;  %vm12468_vm7 = vmor %vm5410_vm6, %vm5411_vm4 }
 0x70a   : > { %v5415_v56 = vmul.f32 %v12394_v31, %v12363_v42  ;;  %vm5421_vm5 = vweird.f32 %v12394_v31 }
 0x70b   : > { %v5537_v61 = vmul.f32 0.5, %v5536_v55  ;;  %v5697_v55 = vmul.f32 %v5503_v9, %v12069_v37  ;;  %v5855_v10 = vpop.permute.xlu2 %5854  ;;  %v5770_v45 = vadd.f32 %v14829_v4, %v5733_v41  ;;  %v14835_v41 = vld [vmem:[#allocation54_spill] sm:$0xff]  ;;  %vm12474_vm9 = vmor %vm5420_vm8, %vm5421_vm5 }
 0x70c   : > { %v12402_v15 = vmul.f32 %v5855_v10, %v5774_v6  ;;  %v5406_v10 = vmul.f32 %v12386_v52, %v5405_v5  ;;  %v12432_v19 = vpop.f32.mrf.mxu1 }
 0x70d   : > { %v5538_v14 = vsub.f32 1.5, %v5537_v61  ;;  %v5734_v38 = vmul.f32 %v14826_v29, %v5697_v55  ;;  %v5950_v61 = vpack.c.bf16 %v5919_v23, %v5918_v24  ;;  %v5930_v9 = vmul.f32 %v14835_v41, %v5770_v45  ;;  %v1480_v43 = vpop.f32.mrf.mxu3  ;;  %v12444_v5 = vpop.eup %6817 }
 0x70e   : > { %14834 = vst [vmem:[#allocation77_spill] sm:$0xff] %v12402_v15  ;;  %v5416_v45 = vmul.f32 %v12394_v31, %v5415_v56  ;;  %v5407_v41 = vmul.f32 0.5, %v5406_v10  ;;  %v5309_v15 = vmul.f32 %v12381_v18, %v14780_v12  ;;  %vm5471_vm10 = vweird.f32 %v12444_v5 }
 0x70f   : > { %v5539_v37 = vmul.f32 %v12330_v35, %v5538_v14  ;;  %v5771_v13 = vadd.f32 %v14829_v4, %v5734_v38  ;;  %5990 = vrot.lane.b32.xlu2 %v5950_v61, %s7113_s15  ;;  %v1456_v14 = vadd.f32 %v12317_v58, %v14815_v26  ;;  %v12418_v38 = vadd.f32 1e-05, %v5311_v28  ;;  %vm12537_vm14 = vmor %vm5470_vm12, %vm5471_vm10 }
 0x710   : > { %v5306_v28 = vmul.f32 %v12217_v40, %v14780_v12  ;;  %v5408_v40 = vsub.f32 1.5, %v5407_v41 }
 0x711   : > { %v5931_v25 = vmul.f32 %v14836_v63, %v5771_v13  ;;  %v5543_v55 = vsel %vm5542_vm3, %v12330_v35, %v5539_v37  ;;  %v2276_v17 = vsub.f32 0.0, %v1456_v14  ;;  %v5251_v35 = vpop.xlane.xlu1 %5250  ;;  %6819 = vrsqrt.f32 %v12418_v38 }
 0x712   : > { %v5701_v23 = vmul.f32 %v5543_v55, %v12075_v36  ;;  %v5315_v36 = vmul.f32 %v5251_v35, %v14780_v12  ;;  %v1458_v13 = vadd.f32 %v12360_v49, %v14815_v26  ;;  %v5417_v63 = vmul.f32 0.5, %v5416_v45 }
 0x713   : > { %v5956_v22 = vpack.c.bf16 %v5931_v25, %v5930_v9  ;;  %v2326_v6 = vmul.f32 1.442695, %v2276_v17  ;;  %v5314_v9 = vmul.f32 %v12235_v16, %v14780_v12  ;;  %v5307_v14 = vmul.f32 %v12277_v54, %v14780_v12 }
 0x714   : > { %v5738_v58 = vmul.f32 %v14826_v29, %v5701_v23  ;;  %v12442_v55 = vadd.f32 1e-05, %v5315_v36  ;;  %v2277_v49 = vsub.f32 0.0, %v1458_v13  ;;  %v12446_v56 = vadd.f32 1e-05, %v5306_v28 }
 0x715   : > { %6002 = vrot.lane.b32.xlu0 %v5956_v22, %s7113_s15  ;;  %6821 = vpow2.f32 %v2326_v6  ;;  %v12450_v23 = vadd.f32 1e-05, %v5314_v9  ;;  %v5418_v16 = vsub.f32 1.5, %v5417_v63  ;;  %v12452_v17 = vadd.f32 1e-05, %v5307_v14 }
 0x716   : > { %v5857_v24 = vpop.permute.xlu0 %5856  ;;  %v5775_v37 = vadd.f32 %v14829_v4, %v5738_v58  ;;  %v1482_v58 = vpop.f32.mrf.mxu3  ;;  %v1481_v35 = vadd.f32 %v1480_v43, %v14815_v26  ;;  %v5465_v54 = vmul.f32 %v12444_v5, %v12416_v3  ;;  %6823 = vrsqrt.f32 %v12442_v55 }
 0x717   : > { %v12448_v22 = vpop.eup %6819  ;;  %6825 = vrsqrt.f32 %v12446_v56  ;;  %v5409_v45 = vmul.f32 %v12386_v52, %v5408_v40  ;;  %v1465_v43 = vpop.f32.mrf.mxu1  ;;  %v1478_v14 = vadd.f32 %v12376_v50, %v14815_v26  ;;  %vm5480_vm13 = vweird.f32 %v12418_v38 }
 0x718   : > { %v12428_v61 = vmul.f32 %v5857_v24, %v5775_v37  ;;  %v2328_v24 = vmul.f32 1.442695, %v2277_v49  ;;  %v5475_v10 = vmul.f32 %v12448_v22, %v12418_v38  ;;  %6827 = vrsqrt.f32 %v12450_v23 }
 0x719   : > { %v5419_v37 = vmul.f32 %v12394_v31, %v5418_v16  ;;  %6829 = vrsqrt.f32 %v12452_v17  ;;  %v2286_v6 = vsub.f32 0.0, %v1481_v35  ;;  %v5466_v28 = vmul.f32 %v12444_v5, %v5465_v54 }
 0x71a   : > { %14837 = vst [vmem:[#allocation133_spill] sm:$0xff] %v12428_v61  ;;  %6831 = vpow2.f32 %v2328_v24  ;;  %v5476_v9 = vmul.f32 %v12448_v22, %v5475_v10  ;;  %v1466_v63 = vadd.f32 %v1465_v43, %v14815_v26  ;;  %v5413_v49 = vsel %vm12468_vm7, %v12386_v52, %v5409_v45 }
 0x71b   : > { %v6822_v36 = vpop.eup %6821  ;;  %v5423_v42 = vsel %vm12474_vm9, %v12394_v31, %v5419_v37  ;;  %v1483_v35 = vadd.f32 %v1482_v58, %v14815_v26  ;;  %v2346_v24 = vmul.f32 1.442695, %v2286_v6  ;;  %v5467_v10 = vmul.f32 0.5, %v5466_v28 }
 0x71c   : > { %v12479_v48 = vpop.eup %6823  ;;  %v12492_v16 = vadd.f32 1.0, %v6822_v36  ;;  %v5688_v52 = vmul.f32 %v5413_v49, %v11904_v53  ;;  %v5689_v45 = vmul.f32 %v5423_v42, %v12012_v1  ;;  %v5477_v13 = vmul.f32 0.5, %v5476_v9 }
 0x71d   : > { %v12490_v40 = vpop.eup %6825  ;;  %v5515_v31 = vmul.f32 %v12479_v48, %v12442_v55  ;;  %v2280_v37 = vsub.f32 0.0, %v1466_v63  ;;  %v2285_v36 = vsub.f32 0.0, %v1478_v14  ;;  %v2287_v58 = vsub.f32 0.0, %v1483_v35 }
 0x71e   : > { %v12495_v54 = vpop.eup %6827  ;;  %v12499_v50 = vpop.f32.mrf.mxu3  ;;  %6833 = vrcp.f32 %v12492_v16  ;;  %v5425_v6 = vmul.f32 %v12490_v40, %v12446_v56  ;;  %v5468_v53 = vsub.f32 1.5, %v5467_v10  ;;  %v5725_v9 = vmul.f32 %v14826_v29, %v5688_v52 }
 0x71f   : > { %v12497_v43 = vpop.eup %6829  ;;  %v5505_v28 = vmul.f32 %v12495_v54, %v12450_v23  ;;  %6835 = vpow2.f32 %v2346_v24  ;;  %v5726_v63 = vmul.f32 %v14826_v29, %v5689_v45  ;;  %v5478_v14 = vsub.f32 1.5, %v5477_v13 }
 0x720   : > { %v6832_v41 = vpop.eup %6831  ;;  %v5435_v1 = vmul.f32 %v12497_v43, %v12452_v17  ;;  %v5516_v49 = vmul.f32 %v12479_v48, %v5515_v31  ;;  %v2334_v35 = vmul.f32 1.442695, %v2280_v37  ;;  %v2344_v25 = vmul.f32 1.442695, %v2285_v36 }
 0x721   : > { %v12515_v42 = vadd.f32 1.0, %v6832_v41  ;;  %v2348_v61 = vmul.f32 1.442695, %v2287_v58  ;;  %v5426_v24 = vmul.f32 %v12490_v40, %v5425_v6  ;;  %v5308_v10 = vmul.f32 %v12221_v8, %v14780_v12 }
 0x722   : > { %v5506_v52 = vmul.f32 %v12495_v54, %v5505_v28  ;;  %v5469_v45 = vmul.f32 %v12444_v5, %v5468_v53  ;;  %v5436_v13 = vmul.f32 %v12497_v43, %v5435_v1  ;;  %vm5481_vm11 = vweird.f32 %v12448_v22 }
 0x723   : > { %v5479_v18 = vmul.f32 %v12448_v22, %v5478_v14  ;;  %v5517_v37 = vmul.f32 0.5, %v5516_v49  ;;  %v5762_v36 = vadd.f32 %v14829_v4, %v5725_v9  ;;  %v5763_v41 = vadd.f32 %v14829_v4, %v5726_v63  ;;  %v14844_v9 = vld [vmem:[#allocation36_spill] sm:$0xff]  ;;  %v14845_v63 = vld [vmem:[#allocation39_spill] sm:$0xff]  ;;  %vm12552_vm15 = vmor %vm5480_vm13, %vm5481_vm11 }
 0x724   : > { %v12527_v31 = vpop.eup %6833  ;;  %6837 = vpow2.f32 %v2344_v25  ;;  %v5288_v58 = vsel %vm436_vm0, %v12143_v60, 0.0  ;;  %v12535_v6 = vadd.f32 1e-05, %v5309_v15  ;;  %v5507_v1 = vmul.f32 0.5, %v5506_v52 }
 0x725   : > { %v6836_v8 = vpop.eup %6835  ;;  %v12543_v14 = vmul.f32 %v14844_v9, %v5762_v36  ;;  %v12546_v25 = vmul.f32 %v14845_v63, %v5763_v41  ;;  %6839 = vpow2.f32 %v2348_v61  ;;  %v5427_v60 = vmul.f32 0.5, %v5426_v24 }
 0x726   : > { %v1487_v28 = vpop.f32.mrf.mxu3  ;;  %v12548_v49 = vadd.f32 1e-05, %v5308_v10  ;;  %v5437_v15 = vmul.f32 0.5, %v5436_v13  ;;  %v5473_v38 = vsel %vm12537_vm14, %v12444_v5, %v5469_v45  ;;  %v5483_v52 = vsel %vm12552_vm15, %v12448_v22, %v5479_v18 }
 0x727   : > { %v5518_v61 = vsub.f32 1.5, %v5517_v37  ;;  %v5952_v24 = vpack.c.bf16 %v12546_v25, %v12543_v14  ;;  %v12564_v10 = vadd.f32 1.0, %v6836_v8  ;;  %v1488_v13 = vadd.f32 %v1487_v28, %v14815_v26 }
 0x728   : > { %6841 = vrsqrt.f32 %v12535_v6  ;;  %v2657_v36 = vmul.f32 %v12527_v31, %v12492_v16  ;;  %v5291_v5 = vsel %vm436_vm0, %v12215_v59, 0.0  ;;  %v5508_v45 = vsub.f32 1.5, %v5507_v1 }
 0x729   : > { %6843 = vrcp.f32 %v12515_v42  ;;  %v5694_v18 = vmul.f32 %v5473_v38, %v11948_v32  ;;  %v5438_v37 = vsub.f32 1.5, %v5437_v15  ;;  %v5695_v41 = vmul.f32 %v5483_v52, %v12033_v34 }
 0x72a   : > { %v6838_v22 = vpop.eup %6837  ;;  %6845 = vrsqrt.f32 %v12548_v49  ;;  %v5428_v8 = vsub.f32 1.5, %v5427_v60  ;;  %vm5521_vm1 = vweird.f32 %v12479_v48  ;;  %v2289_v59 = vsub.f32 0.0, %v1488_v13 }
 0x72b   : > { %6847 = vpow2.f32 %v2334_v35  ;;  %v6840_v28 = vpop.eup %6839  ;;  %v2658_v53 = vsub.f32 1.0, %v2657_v36  ;;  %v5273_v32 = vsel %vm436_vm0, %v12210_v11, 0.0  ;;  %v5509_v1 = vmul.f32 %v12495_v54, %v5508_v45 }
 0x72c   : > { %6849 = vrcp.f32 %v12564_v10  ;;  %vm5511_vm2 = vweird.f32 %v12495_v54  ;;  %vm5520_vm3 = vweird.f32 %v12442_v55  ;;  %v5731_v35 = vmul.f32 %v14826_v29, %v5694_v18 }
 0x72d   : > { %v5439_v9 = vmul.f32 %v12497_v43, %v5438_v37  ;;  %vm5441_vm4 = vweird.f32 %v12497_v43  ;;  %v5732_v63 = vmul.f32 %v14826_v29, %v5695_v41  ;;  %vm12590_vm5 = vmor %vm5520_vm3, %vm5521_vm1  ;;  %v5429_v15 = vmul.f32 %v12490_v40, %v5428_v8  ;;  %v6419_v37 = vld [vmem:[#allocation8 + $0x8] sm:$0xff] }
 0x72e   : > { %v12584_v34 = vpop.eup %6841  ;;  %vm5431_vm6 = vweird.f32 %v12490_v40  ;;  %vm5510_vm7 = vweird.f32 %v12450_v23  ;;  %v12604_v38 = vadd.f32 1.0, %v6838_v22  ;;  %v12606_v52 = vadd.f32 1.0, %v6840_v28  ;;  %v14856_v28 = vld [vmem:[#allocation60_spill] sm:$0xff]  ;;  %6088 = vmatpush.bf16.msra.mxu2 %v6419_v37  ;;  %6425 = vmatpush.bf16.msra.mxu3 %v6419_v37 }
 0x72f   : > { %v12594_v11 = vpop.eup %6843  ;;  %vm12610_vm8 = vmor %vm5510_vm7, %vm5511_vm2  ;;  %vm5440_vm9 = vweird.f32 %v12452_v17  ;;  %v2352_v13 = vmul.f32 1.442695, %v2289_v59  ;;  %vm5430_vm10 = vweird.f32 %v12446_v56  ;;  %v5768_v22 = vadd.f32 %v14829_v4, %v5731_v35  ;;  %v14857_v59 = vld [vmem:[#allocation53_spill] sm:$0xff] }
 0x730   : > { %5289 = vadd.xlane.f32.xlu1 %v5288_v58  ;;  %v5519_v58 = vmul.f32 %v12479_v48, %v5518_v61  ;;  %v12602_v3 = vpop.eup %6845  ;;  %vm12621_vm11 = vmor %vm5440_vm9, %vm5441_vm4  ;;  %v5769_v18 = vadd.f32 %v14829_v4, %v5732_v63  ;;  %6851 = vrcp.f32 %v12604_v38  ;;  %vm2662_vm14 = vweird.f32 %v12527_v31 }
 0x731   : > { %v6848_v23 = vpop.eup %6847  ;;  %vm12631_vm12 = vmor %vm5430_vm10, %vm5431_vm6  ;;  %v5443_v56 = vsel %vm12621_vm11, %v12497_v43, %v5439_v9  ;;  %v5445_v8 = vmul.f32 %v12602_v3, %v12548_v49  ;;  %6853 = vrcp.f32 %v12606_v52  ;;  %v2667_v61 = vand.u32 2147483648, %v12492_v16 }
 0x732   : > { %v5523_v55 = vsel %vm12590_vm5, %v12479_v48, %v5519_v58  ;;  %v5513_v48 = vsel %vm12610_vm8, %v12495_v54, %v5509_v1  ;;  %v12627_v45 = vpop.eup %6849  ;;  %v5433_v41 = vsel %vm12631_vm12, %v12490_v40, %v5429_v15  ;;  %v2659_v58 = vmul.f32 %v12527_v31, %v2658_v53  ;;  %v6418_v1 = vld [vmem:[#allocation8] sm:$0xff] }
 0x733   : > { %v5699_v54 = vmul.f32 %v5523_v55, %v12054_v39  ;;  %v5698_v43 = vmul.f32 %v5513_v48, %v11963_v21  ;;  %v12650_v39 = vmul.f32 %v14856_v28, %v5768_v22  ;;  %v5691_v40 = vmul.f32 %v5443_v56, %v12030_v62  ;;  %6089 = vmatpush.bf16.msra.mxu2 %v6418_v1 }
 0x734   : > { %6855 = vpow2.f32 %v2352_v13  ;;  %v2672_v21 = vmul.f32 %v12594_v11, %v12515_v42  ;;  %v5690_v63 = vmul.f32 %v5433_v41, %v11927_v51  ;;  %v5446_v60 = vmul.f32 %v12602_v3, %v5445_v8  ;;  %6426 = vmatpush.bf16.msra.mxu3 %v6418_v1 }
 0x735   : > { %v5736_v53 = vmul.f32 %v14826_v29, %v5699_v54  ;;  %v2660_v15 = vadd.f32 %v12527_v31, %v2659_v58  ;;  %v12667_v62 = vadd.f32 1.0, %v6848_v23  ;;  %v5735_v55 = vmul.f32 %v14826_v29, %v5698_v43 }
 0x736   : > { %v2807_v13 = vmul.f32 %v12627_v45, %v12564_v10  ;;  %v5728_v48 = vmul.f32 %v14826_v29, %v5691_v40  ;;  %vm2661_vm13 = vweird.f32 %v12492_v16  ;;  %v2665_v36 = vand.u32 2147483647, %v12492_v16 }
 0x737   : > { %vm12678_vm15 = vmor %vm2661_vm13, %vm2662_vm14  ;;  %v2673_v17 = vsub.f32 1.0, %v2672_v21  ;;  %v5773_v56 = vadd.f32 %v14829_v4, %v5736_v53  ;;  %v5727_v22 = vmul.f32 %v14826_v29, %v5690_v63  ;;  %v2668_v16 = vor.u32 1.1754944e-38, %v2667_v61 }
 0x738   : > { %5292 = vadd.xlane.f32.xlu2 %v5291_v5  ;;  %v5455_v5 = vmul.f32 %v12584_v34, %v12535_v6  ;;  %v2664_v37 = vsel %vm12678_vm15, %v12527_v31, %v2660_v15  ;;  %v5772_v8 = vadd.f32 %v14829_v4, %v5735_v55  ;;  %v2808_v58 = vsub.f32 1.0, %v2807_v13 }
 0x739   : > { %6857 = vrcp.f32 %v12667_v62  ;;  %vm2666_vm1 = vcmp.eq.f32.partialorder %v2665_v36, 8.507059e+37  ;;  %v5765_v28 = vadd.f32 %v14829_v4, %v5728_v48  ;;  %v2674_v1 = vmul.f32 %v12594_v11, %v2673_v17  ;;  %v14862_v48 = vld [vmem:[#allocation56_spill] sm:$0xff] }
 0x73a   : > { %v5456_v35 = vmul.f32 %v12584_v34, %v5455_v5  ;;  %v12676_v5 = vpop.eup %6851  ;;  %v5764_v63 = vadd.f32 %v14829_v4, %v5727_v22  ;;  %vm2676_vm2 = vweird.f32 %v12515_v42  ;;  %v2809_v55 = vmul.f32 %v12627_v45, %v2808_v58 }
 0x73b   : > { %v12683_v54 = vpop.eup %6853  ;;  %v2792_v40 = vmul.f32 %v12676_v5, %v12604_v38  ;;  %vm5461_vm3 = vweird.f32 %v12584_v34  ;;  %vm2677_vm4 = vweird.f32 %v12594_v11  ;;  %v2675_v36 = vadd.f32 %v12594_v11, %v2674_v1 }
 0x73c   : > { %v5457_v51 = vmul.f32 0.5, %v5456_v35  ;;  %v6856_v41 = vpop.eup %6855  ;;  %v14860_v35 = vld [vmem:[#allocation59_spill] sm:$0xff]  ;;  %v2822_v61 = vmul.f32 %v12683_v54, %v12606_v52  ;;  %v2682_v23 = vand.u32 2147483648, %v12515_v42  ;;  %vm5451_vm5 = vweird.f32 %v12602_v3  ;;  %vm12737_vm10 = vmor %vm2676_vm2, %vm2677_vm4 }
 0x73d   : > { %v5933_v53 = vmul.f32 %v14860_v35, %v5773_v56  ;;  %v12696_v31 = vadd.f32 1.0, %v6856_v41  ;;  %v2793_v17 = vsub.f32 1.0, %v2792_v40  ;;  %vm5460_vm6 = vweird.f32 %v12535_v6 }
 0x73e   : > { %v5458_v43 = vsub.f32 1.5, %v5457_v51  ;;  %v5925_v51 = vmul.f32 %v14862_v48, %v5765_v28  ;;  %vm12721_vm7 = vmor %vm5460_vm6, %vm5461_vm3  ;;  %v2680_v14 = vand.u32 2147483647, %v12515_v42  ;;  %v2810_v25 = vadd.f32 %v12627_v45, %v2809_v55 }
 0x73f   : > { %5274 = vadd.xlane.f32.xlu0 %v5273_v32  ;;  %v12653_v32 = vmul.f32 %v14857_v59, %v5769_v18  ;;  %v5447_v18 = vmul.f32 0.5, %v5446_v60  ;;  %v2669_v59 = vsel %vm2666_vm1, %v2668_v16, %v2664_v37  ;;  %v14861_v60 = vld [vmem:[#allocation63_spill] sm:$0xff]  ;;  %v12715_v22 = vpop.eup %6857  ;;  %v14863_v37 = vld [vmem:[#allocation44_spill] sm:$0xff]  ;;  %vm2812_vm8 = vweird.f32 %v12627_v45 }
 0x740   : > { %v5932_v15 = vmul.f32 %v14861_v60, %v5772_v8  ;;  %v5459_v13 = vmul.f32 %v12584_v34, %v5458_v43  ;;  %v5924_v41 = vmul.f32 %v14863_v37, %v5764_v63  ;;  %vm5450_vm9 = vweird.f32 %v12548_v49 }
 0x741   : > { %v5955_v9 = vpack.c.bf16 %v12653_v32, %v12650_v39  ;;  %v5448_v21 = vsub.f32 1.5, %v5447_v18  ;;  %v2817_v43 = vand.u32 2147483648, %v12564_v10  ;;  %vm12742_vm11 = vmor %vm5450_vm9, %vm5451_vm5  ;;  %v2679_v49 = vsel %vm12737_vm10, %v12594_v11, %v2675_v36  ;;  %v14872_v32 = vld [vmem:[#allocation51_spill] sm:$0xff] }
 0x742   : > { %v5957_v56 = vpack.c.bf16 %v5933_v53, %v5932_v15  ;;  %v5463_v6 = vsel %vm12721_vm7, %v12584_v34, %v5459_v13  ;;  %v5953_v58 = vpack.c.bf16 %v5925_v51, %v5924_v41  ;;  %v2794_v34 = vmul.f32 %v12676_v5, %v2793_v17 }
 0x743   : > { %v5449_v18 = vmul.f32 %v12602_v3, %v5448_v21  ;;  %vm2811_vm12 = vweird.f32 %v12564_v10  ;;  %v2815_v42 = vand.u32 2147483647, %v12564_v10  ;;  %6859 = vrcp.f32 %v12696_v31 }
 0x744   : > { %v2683_v1 = vor.u32 1.1754944e-38, %v2682_v23  ;;  %vm12759_vm14 = vmor %vm2811_vm12, %vm2812_vm8  ;;  %v2717_v11 = vmul.f32 %v12715_v22, %v12667_v62  ;;  %v5693_v10 = vmul.f32 %v5463_v6, %v12051_v33  ;;  %vm2681_vm13 = vcmp.eq.f32.partialorder %v2680_v14, 8.507059e+37  ;;  %v12796_v16 = vpop.xlane.xlu2 %5265 }
 0x745   : > { %v2814_v35 = vsel %vm12759_vm14, %v12627_v45, %v2810_v25  ;;  %v2818_v21 = vor.u32 1.1754944e-38, %v2817_v43  ;;  %v2795_v60 = vadd.f32 %v12676_v5, %v2794_v34  ;;  %vm2797_vm15 = vweird.f32 %v12676_v5 }
 0x746   : > { %v2684_v53 = vsel %vm2681_vm13, %v2683_v1, %v2679_v49  ;;  %vm2816_vm1 = vcmp.eq.f32.partialorder %v2815_v42, 8.507059e+37  ;;  %vm2796_vm2 = vweird.f32 %v12604_v38  ;;  %v2802_v33 = vand.u32 2147483648, %v12604_v38 }
 0x747   : > { %v2819_v15 = vsel %vm2816_vm1, %v2818_v21, %v2814_v35  ;;  %v2718_v55 = vsub.f32 1.0, %v2717_v11  ;;  %v5730_v45 = vmul.f32 %v14826_v29, %v5693_v10  ;;  %vm2827_vm3 = vweird.f32 %v12683_v54  ;;  %vm2798_vm4 = vmor %vm2796_vm2, %vm2797_vm15 }
 0x748   : > { %v2832_v48 = vand.u32 2147483648, %v12606_v52  ;;  %v2799_v36 = vsel %vm2798_vm4, %v12676_v5, %v2795_v60  ;;  %vm2826_vm5 = vweird.f32 %v12606_v52  ;;  %v2830_v23 = vand.u32 2147483647, %v12606_v52 }
 0x749   : > { %5858 = vrot.lane.b32.xlu1 %v2669_v59, %s7111_s22  ;;  %v5453_v59 = vsel %vm12742_vm11, %v12602_v3, %v5449_v18  ;;  %v6860_v13 = vpop.eup %6859  ;;  %v2803_v17 = vor.u32 1.1754944e-38, %v2802_v33  ;;  %vm2828_vm6 = vmor %vm2826_vm5, %vm2827_vm3  ;;  %vm2722_vm9 = vweird.f32 %v12715_v22  ;;  %v2727_v25 = vand.u32 2147483648, %v12667_v62 }
 0x74a   : > { %v5692_v63 = vmul.f32 %v5453_v59, %v11934_v7  ;;  %v2852_v5 = vmul.f32 %v6860_v13, %v12696_v31  ;;  %v2833_v41 = vor.u32 1.1754944e-38, %v2832_v48  ;;  %vm2831_vm8 = vcmp.eq.f32.partialorder %v2830_v23, 8.507059e+37 }
 0x74b   : > { %vm2721_vm10 = vweird.f32 %v12667_v62  ;;  %v2725_v8 = vand.u32 2147483647, %v12667_v62  ;;  %v2728_v49 = vor.u32 1.1754944e-38, %v2727_v25  ;;  %vm2857_vm14 = vweird.f32 %v6860_v13  ;;  %v5263_v62 = vpop.xlane.xlu1 %5262 }
 0x74c   : > { %v5729_v51 = vmul.f32 %v14826_v29, %v5692_v63  ;;  %vm2723_vm11 = vmor %vm2721_vm10, %vm2722_vm9  ;;  %v2862_v1 = vand.u32 2147483648, %v12696_v31  ;;  %vm2856_vm13 = vweird.f32 %v12696_v31  ;;  %v1461_v10 = vadd.f32 %v12396_v44, %v14815_v26 }
 0x74d   : > { %vm2726_vm12 = vcmp.eq.f32.partialorder %v2725_v8, 8.507059e+37  ;;  %vm2858_vm15 = vmor %vm2856_vm13, %vm2857_vm14  ;;  %v5325_v60 = vmul.f32 %v12357_v0, %v14780_v12  ;;  %v5270_v23 = vsel %vm436_vm0, %v12137_v2, 0.0  ;;  %v5318_v2 = vmul.f32 %v12255_v57, %v14780_v12 }
 0x74e   : > { %v5766_v52 = vadd.f32 %v14829_v4, %v5729_v51  ;;  %v2863_v11 = vor.u32 1.1754944e-38, %v2862_v1  ;;  %v2278_v21 = vsub.f32 0.0, %v1461_v10  ;;  %v5326_v25 = vmul.f32 %v12391_v30, %v14780_v12 }
 0x74f   : > { %v12826_v44 = vadd.f32 1e-05, %v5325_v60 }
 0x750   : > { %5994 = vrot.lane.b32.xlu2 %v5952_v24, %s7113_s15  ;;  %v2823_v24 = vsub.f32 1.0, %v2822_v61  ;;  %v2800_v61 = vand.u32 2147483647, %v12604_v38  ;;  %v2719_v38 = vmul.f32 %v12715_v22, %v2718_v55  ;;  %v2330_v33 = vmul.f32 1.442695, %v2278_v21 }
 0x751   : > { %5996 = vrot.lane.b32.xlu1 %v5953_v58, %s7113_s15 }
 0x752   : > { %v2824_v3 = vmul.f32 %v12683_v54, %v2823_v24  ;;  %vm2801_vm7 = vcmp.eq.f32.partialorder %v2800_v61, 8.507059e+37  ;;  %v2720_v14 = vadd.f32 %v12715_v22, %v2719_v38  ;;  %v14873_v24 = vld [vmem:[#allocation48_spill] sm:$0xff]  ;;  %6861 = vpow2.f32 %v2330_v33 }
 0x753   : > { %6004 = vrot.lane.b32.xlu0 %v5957_v56, %s7113_s15  ;;  %v5767_v56 = vadd.f32 %v14829_v4, %v5730_v45  ;;  %v2804_v37 = vsel %vm2801_vm7, %v2803_v17, %v2799_v36  ;;  %v5926_v6 = vmul.f32 %v14873_v24, %v5766_v52  ;;  %v5319_v52 = vmul.f32 %v5263_v62, %v14780_v12 }
 0x754   : > { %v2825_v7 = vadd.f32 %v12683_v54, %v2824_v3  ;;  %v2724_v43 = vsel %vm2723_vm11, %v12715_v22, %v2720_v14  ;;  %v2860_v22 = vand.u32 2147483647, %v12696_v31  ;;  %v1463_v3 = vadd.f32 %v12432_v19, %v14815_v26  ;;  %v1467_v19 = vpop.f32.mrf.mxu1 }
 0x755   : > { %v2729_v42 = vsel %vm2726_vm12, %v2728_v49, %v2724_v43  ;;  %v5324_v31 = vmul.f32 %v12229_v27, %v14780_v12  ;;  %v1486_v27 = vadd.f32 %v12499_v50, %v14815_v26  ;;  %v1468_v61 = vadd.f32 %v1467_v19, %v14815_v26 }
 0x756   : > { %v2829_v18 = vsel %vm2828_vm6, %v12683_v54, %v2825_v7  ;;  %v2853_v54 = vsub.f32 1.0, %v2852_v5  ;;  %vm2861_vm1 = vcmp.eq.f32.partialorder %v2860_v22, 8.507059e+37  ;;  %v2279_v63 = vsub.f32 0.0, %v1463_v3 }
 0x757   : > { %v2834_v39 = vsel %vm2831_vm8, %v2833_v41, %v2829_v18  ;;  %v12824_v55 = vadd.f32 1e-05, %v5324_v31  ;;  %v2288_v36 = vsub.f32 0.0, %v1486_v27  ;;  %v2281_v38 = vsub.f32 0.0, %v1468_v61  ;;  %v14877_v27 = vld [vmem:[#allocation213_spill] sm:$0xff] }
 0x758   : > { %5860 = vrot.lane.b32.xlu2 %v2684_v53, %s7111_s22  ;;  %v2854_v28 = vmul.f32 %v6860_v13, %v2853_v54  ;;  %v12818_v53 = vpop.permute.xlu1 %5872  ;;  %v6862_v0 = vpop.eup %6861  ;;  %v5297_v41 = vsel %vm436_vm0, %v12213_v20, 0.0  ;;  %v12863_v54 = vadd.f32 1e-05, %v5318_v2  ;;  %v5327_v20 = vmul.f32 %v12349_v47, %v14780_v12 }
 0x759   : > { %6000 = vrot.lane.b32.xlu1 %v5955_v9, %s7113_s15  ;;  %v5927_v9 = vmul.f32 %v14872_v32, %v5767_v56  ;;  %v12838_v51 = vadd.f32 1.0, %v6862_v0  ;;  %v2350_v56 = vmul.f32 1.442695, %v2288_v36  ;;  %v2336_v18 = vmul.f32 1.442695, %v2281_v38 }
 0x75a   : > { %v2855_v59 = vadd.f32 %v6860_v13, %v2854_v28  ;;  %v5294_v32 = vsel %vm436_vm0, %v12146_v46, 0.0  ;;  %v12869_v24 = vadd.f32 1e-05, %v5319_v52  ;;  %v12876_v49 = vadd.f32 1e-05, %v5326_v25 }
 0x75b   : > { %5878 = vrot.lane.b32.xlu0 %v2819_v15, %s7111_s22  ;;  %v5954_v58 = vpack.c.bf16 %v5927_v9, %v5926_v6  ;;  %v2332_v15 = vmul.f32 1.442695, %v2279_v63  ;;  %v12878_v30 = vadd.f32 1e-05, %v5327_v20  ;;  %vm5610_vm4 = vweird.f32 %v12824_v55 }
 0x75c   : > { %v2859_v40 = vsel %vm2858_vm15, %v6860_v13, %v2855_v59  ;;  %vm5620_vm6 = vweird.f32 %v12826_v44  ;;  %v2697_v31 = vand.u32 2147483648, %v12838_v51  ;;  %vm2691_vm10 = vweird.f32 %v12838_v51 }
 0x75d   : > { %v2864_v35 = vsel %vm2861_vm1, %v2863_v11, %v2859_v40  ;;  %6863 = vpow2.f32 %v2332_v15 }
 0x75e   : > { %6865 = vrsqrt.f32 %v12824_v55 }
 0x75f   : > { %6867 = vrsqrt.f32 %v12826_v44 }
 0x760   : > { %5876 = vrot.lane.b32.xlu2 %v2804_v37, %s7111_s22  ;;  %6869 = vrcp.f32 %v12838_v51 }
 0x763   : > { %5880 = vrot.lane.b32.xlu0 %v2834_v39, %s7111_s22  ;;  %v6864_v7 = vpop.eup %6863 }
 0x764   : > { %v12834_v13 = vpop.eup %6865  ;;  %v12842_v17 = vadd.f32 1.0, %v6864_v7 }
 0x765   : > { %v12836_v48 = vpop.eup %6867  ;;  %v5605_v50 = vmul.f32 %v12834_v13, %v12824_v55  ;;  %vm5611_vm2 = vweird.f32 %v12834_v13 }
 0x766   : > { %v5615_v26 = vmul.f32 %v12836_v48, %v12826_v44  ;;  %6871 = vrcp.f32 %v12842_v17  ;;  %v12857_v39 = vpop.eup %6869  ;;  %vm5621_vm3 = vweird.f32 %v12836_v48  ;;  %vm12895_vm5 = vmor %vm5610_vm4, %vm5611_vm2  ;;  %vm2706_vm12 = vweird.f32 %v12842_v17 }
 0x767   : > { %v5606_v5 = vmul.f32 %v12834_v13, %v5605_v50  ;;  %6873 = vpow2.f32 %v2350_v56  ;;  %v2687_v6 = vmul.f32 %v12857_v39, %v12838_v51  ;;  %vm5622_vm7 = vmor %vm5620_vm6, %vm5621_vm3  ;;  %vm2692_vm8 = vweird.f32 %v12857_v39 }
 0x768   : > { %5998 = vrot.lane.b32.xlu2 %v5954_v58, %s7113_s15  ;;  %v5616_v37 = vmul.f32 %v12836_v48, %v5615_v26  ;;  %6875 = vpow2.f32 %v2336_v18  ;;  %vm12933_vm11 = vmor %vm2691_vm10, %vm2692_vm8  ;;  %v2698_v50 = vor.u32 1.1754944e-38, %v2697_v31  ;;  %v2710_v26 = vand.u32 2147483647, %v12842_v17 }
 0x769   : > { %v5991_v34 = vpop.permute.xlu2 %5990  ;;  %v5607_v14 = vmul.f32 0.5, %v5606_v5  ;;  %6877 = vrsqrt.f32 %v12863_v54  ;;  %vm5550_vm4 = vweird.f32 %v12863_v54 }
 0x76a   : > { %6392 = vmatmul.msk.bf16.vlgmr.msra.gmra.mxu2 %vm436_vm0, %v5991_v34  ;;  %v5617_v57 = vmul.f32 0.5, %v5616_v37  ;;  %6879 = vrsqrt.f32 %v12869_v24  ;;  %v2688_v34 = vsub.f32 1.0, %v2687_v6  ;;  %vm2711_vm15 = vcmp.eq.f32.partialorder %v2710_v26, 8.507059e+37  ;;  %v14885_v26 = vld [vmem:[#allocation77_spill] sm:$0xff] }
 0x76b   : > { %5866 = vrot.lane.b32.xlu0 %v2729_v42, %s7111_s22  ;;  %v5608_v43 = vsub.f32 1.5, %v5607_v14  ;;  %6881 = vrsqrt.f32 %v12876_v49 }
 0x76c   : > { %v12861_v9 = vpop.eup %6871  ;;  %v5618_v28 = vsub.f32 1.5, %v5617_v57  ;;  %6883 = vrsqrt.f32 %v12878_v30  ;;  %v2689_v11 = vmul.f32 %v12857_v39, %v2688_v34 }
 0x76d   : > { %v6874_v8 = vpop.eup %6873  ;;  %v2702_v46 = vmul.f32 %v12861_v9, %v12842_v17  ;;  %v5609_v1 = vmul.f32 %v12834_v13, %v5608_v43  ;;  %vm2707_vm9 = vweird.f32 %v12861_v9 }
 0x76e   : > { %v6876_v58 = vpop.eup %6875  ;;  %v12881_v47 = vadd.f32 1.0, %v6874_v8  ;;  %v5619_v62 = vmul.f32 %v12836_v48, %v5618_v28  ;;  %v2690_v55 = vadd.f32 %v12857_v39, %v2689_v11  ;;  %vm12948_vm14 = vmor %vm2706_vm12, %vm2707_vm9 }
 0x76f   : > { %v12883_v42 = vadd.f32 1.0, %v6876_v58  ;;  %v2703_v59 = vsub.f32 1.0, %v2702_v46  ;;  %v12892_v22 = vpop.eup %6877  ;;  %v5613_v63 = vsel %vm12895_vm5, %v12834_v13, %v5609_v1  ;;  %v2695_v13 = vand.u32 2147483647, %v12838_v51 }
 0x770   : > { %6885 = vrcp.f32 %v12881_v47  ;;  %v12901_v10 = vpop.eup %6879  ;;  %v5623_v21 = vsel %vm5622_vm7, %v12836_v48, %v5619_v62  ;;  %v5545_v33 = vmul.f32 %v12892_v22, %v12863_v54  ;;  %v5708_v0 = vmul.f32 %v5613_v63, %v14877_v27 }
 0x771   : > { %6887 = vrcp.f32 %v12883_v42  ;;  %v2704_v3 = vmul.f32 %v12861_v9, %v2703_v59  ;;  %v12910_v60 = vpop.eup %6881  ;;  %v5555_v15 = vmul.f32 %v12901_v10, %v12869_v24  ;;  %v2712_v48 = vand.u32 2147483648, %v12842_v17 }
 0x772   : > { %v12918_v44 = vpop.eup %6883  ;;  %v5546_v56 = vmul.f32 %v12892_v22, %v5545_v33  ;;  %v2694_v5 = vsel %vm12933_vm11, %v12857_v39, %v2690_v55  ;;  %v5745_v17 = vmul.f32 %v14826_v29, %v5708_v0  ;;  %vm2696_vm13 = vcmp.eq.f32.partialorder %v2695_v13, 8.507059e+37 }
 0x773   : > { %5884 = vrot.lane.b32.xlu0 %v2864_v35, %s7111_s22  ;;  %v5871_v35 = vpop.permute.xlu0 %5870  ;;  %v2705_v61 = vadd.f32 %v12861_v9, %v2704_v3  ;;  %v5635_v51 = vmul.f32 %v12918_v44, %v12878_v30  ;;  %v5556_v18 = vmul.f32 %v12901_v10, %v5555_v15  ;;  %v2713_v39 = vor.u32 1.1754944e-38, %v2712_v48 }
 0x774   : > { %v2699_v25 = vsel %vm2696_vm13, %v2698_v50, %v2694_v5  ;;  %v5547_v20 = vmul.f32 0.5, %v5546_v56  ;;  %v5782_v43 = vadd.f32 %v14829_v4, %v5745_v17  ;;  %vm2736_vm1 = vweird.f32 %v12883_v42  ;;  %v14884_v50 = vld [vmem:[#allocation133_spill] sm:$0xff] }
 0x775   : > { %v2709_v52 = vsel %vm12948_vm14, %v12861_v9, %v2705_v61  ;;  %v5636_v6 = vmul.f32 %v12918_v44, %v5635_v51  ;;  %v5557_v8 = vmul.f32 0.5, %v5556_v18  ;;  %vm5551_vm2 = vweird.f32 %v12892_v22 }
 0x776   : > { %v12924_v7 = vpop.eup %6885  ;;  %v2714_v58 = vsel %vm2711_vm15, %v2713_v39, %v2709_v52  ;;  %v5942_v62 = vmul.f32 %v5871_v35, %v5782_v43  ;;  %v5548_v11 = vsub.f32 1.5, %v5547_v20  ;;  %v2740_v35 = vand.u32 2147483647, %v12883_v42  ;;  %vm12993_vm6 = vmor %vm5550_vm4, %vm5551_vm2 }
 0x777   : > { %v12929_v36 = vpop.eup %6887  ;;  %v5637_v3 = vmul.f32 0.5, %v5636_v6  ;;  %vm5561_vm3 = vweird.f32 %v12901_v10  ;;  %vm2842_vm5 = vweird.f32 %v12924_v7  ;;  %vm5560_vm7 = vweird.f32 %v12869_v24 }
 0x778   : > { %v5993_v45 = vpop.permute.xlu1 %5992  ;;  %v2732_v14 = vmul.f32 %v12929_v36, %v12883_v42  ;;  %v5549_v61 = vmul.f32 %v12892_v22, %v5548_v11  ;;  %v14886_v56 = vpack.c.bf16 %v14884_v50, %v14885_v26  ;;  %vm2737_vm8 = vweird.f32 %v12929_v36  ;;  %vm13007_vm9 = vmor %vm5560_vm7, %vm5561_vm3  ;;  %v14900_v11 = vld [vmem:[#allocation194_spill] sm:$0xff] }
 0x779   : > { %v5638_v13 = vsub.f32 1.5, %v5637_v3  ;;  %v2847_v51 = vand.u32 2147483648, %v12881_v47  ;;  %vm5631_vm10 = vweird.f32 %v12910_v60  ;;  %vm2841_vm11 = vweird.f32 %v12881_v47  ;;  %vm13039_vm15 = vmor %vm2736_vm1, %vm2737_vm8 }
 0x77a   : > { %6393 = vmatmul.msk.bf16.gmra.mxu2 %vm436_vm0, %v5993_v45  ;;  %v14876_v45 = vld [vmem:[#allocation98_spill] sm:$0xff]  ;;  %v2733_v59 = vsub.f32 1.0, %v2732_v14  ;;  %v2845_v24 = vand.u32 2147483647, %v12881_v47  ;;  %vm5641_vm12 = vweird.f32 %v12918_v44  ;;  %vm13022_vm14 = vmor %vm2841_vm11, %vm2842_vm5  ;;  %v5553_v39 = vsel %vm12993_vm6, %v12892_v22, %v5549_v61 }
 0x77b   : > { %v5709_v19 = vmul.f32 %v5623_v21, %v14876_v45  ;;  %v5558_v21 = vsub.f32 1.5, %v5557_v8  ;;  %vm5630_vm13 = vweird.f32 %v12876_v49  ;;  %vm5640_vm2 = vweird.f32 %v12878_v30 }
 0x77c   : > { %v2734_v45 = vmul.f32 %v12929_v36, %v2733_v59  ;;  %vm13049_vm3 = vmor %vm5630_vm13, %vm5631_vm10  ;;  %vm2846_vm4 = vcmp.eq.f32.partialorder %v2845_v24, 8.507059e+37  ;;  %vm2741_vm5 = vcmp.eq.f32.partialorder %v2740_v35, 8.507059e+37  ;;  %v14899_v59 = vld [vmem:[#allocation180_spill] sm:$0xff] }
 0x77d   : > { %v5746_v37 = vmul.f32 %v14826_v29, %v5709_v19  ;;  %v2742_v19 = vand.u32 2147483648, %v12883_v42  ;;  %v5559_v48 = vmul.f32 %v12901_v10, %v5558_v21  ;;  %vm13058_vm1 = vmor %vm5640_vm2, %vm5641_vm12 }
 0x77e   : > { %v2735_v54 = vadd.f32 %v12929_v36, %v2734_v45 }
 0x77f   : > { %v5783_v9 = vadd.f32 %v14829_v4, %v5746_v37  ;;  %v5639_v37 = vmul.f32 %v12918_v44, %v5638_v13  ;;  %v5563_v52 = vsel %vm13007_vm9, %v12901_v10, %v5559_v48 }
 0x780   : > { %v2739_v42 = vsel %vm13039_vm15, %v12929_v36, %v2735_v54 }
 0x781   : > { %v5943_v31 = vmul.f32 %v12818_v53, %v5783_v9  ;;  %v5643_v43 = vsel %vm13058_vm1, %v12918_v44, %v5639_v37 }
 0x782   : > { %v5711_v3 = vmul.f32 %v5643_v43, %v14900_v11 }
 0x783   : > { %5271 = vadd.xlane.f32.xlu1 %v5270_v23  ;;  %v5625_v23 = vmul.f32 %v12910_v60, %v12876_v49  ;;  %v5962_v53 = vpack.c.bf16 %v5943_v31, %v5942_v62 }
 0x784   : > { %v5748_v35 = vmul.f32 %v14826_v29, %v5711_v3 }
 0x785   : > { %v5626_v57 = vmul.f32 %v12910_v60, %v5625_v23 }
 0x786   : > { %v5785_v38 = vadd.f32 %v14829_v4, %v5748_v35 }
 0x787   : > { %v5627_v1 = vmul.f32 0.5, %v5626_v57  ;;  %v2743_v57 = vor.u32 1.1754944e-38, %v2742_v19 }
 0x789   : > { %v5628_v27 = vsub.f32 1.5, %v5627_v1 }
 0x78b   : > { %5298 = vadd.xlane.f32.xlu1 %v5297_v41  ;;  %v12954_v41 = vpop.xlane.xlu0 %5268  ;;  %v5629_v2 = vmul.f32 %v12910_v60, %v5628_v27 }
 0x78d   : > { %v5633_v30 = vsel %vm13049_vm3, %v12910_v60, %v5629_v2 }
 0x78e   : > { %v5710_v60 = vmul.f32 %v5633_v30, %v14899_v59  ;;  %v5320_v30 = vmul.f32 %v12796_v16, %v14780_v12 }
 0x791   : > { %5295 = vadd.xlane.f32.xlu2 %v5294_v32  ;;  %v2837_v32 = vmul.f32 %v12924_v7, %v12881_v47 }
 0x793   : > { %v2838_v34 = vsub.f32 1.0, %v2837_v32  ;;  %v12973_v33 = vpop.permute.xlu0 %5874 }
 0x795   : > { %v2839_v55 = vmul.f32 %v12924_v7, %v2838_v34  ;;  %v2744_v34 = vsel %vm2741_vm5, %v2743_v57, %v2739_v42 }
 0x797   : > { %v2840_v23 = vadd.f32 %v12924_v7, %v2839_v55  ;;  %v5747_v55 = vmul.f32 %v14826_v29, %v5710_v60 }
 0x799   : > { %v2844_v22 = vsel %vm13022_vm14, %v12924_v7, %v2840_v23  ;;  %v14897_v7 = vld [vmem:[#allocation123_spill] sm:$0xff]  ;;  %v5784_v23 = vadd.f32 %v14829_v4, %v5747_v55 }
 0x79a   : > { %v5703_v8 = vmul.f32 %v5563_v52, %v14897_v7  ;;  %v14901_v52 = vld [vmem:[#allocation173_spill] sm:$0xff]  ;;  %v5321_v7 = vmul.f32 %v12954_v41, %v14780_v12 }
 0x79b   : > { %v13030_v47 = vpop.permute.xlu0 %6002  ;;  %v5944_v26 = vmul.f32 %v12973_v33, %v5784_v23 }
 0x79c   : > { %v5740_v62 = vmul.f32 %v14826_v29, %v5703_v8  ;;  %v13111_v8 = vld [vmem:[%s13351_s8] ss:$0 sm:$0xff] }
 0x79e   : > { %v5777_v45 = vadd.f32 %v14829_v4, %v5740_v62 }
 0x7a3   : > { %v5290_v46 = vpop.xlane.xlu1 %5289 }
 0x7a4   : > { %v5328_v28 = vmul.f32 %v5290_v46, %v14780_v12  ;;  %5864 = vrot.lane.b32.xlu1 %v2714_v58, %s7111_s22  ;;  %v14898_v46 = vld [vmem:[#allocation201_spill] sm:$0xff] }
 0x7a5   : > { %v5702_v58 = vmul.f32 %v5553_v39, %v14898_v46  ;;  %v14902_v39 = vld [vmem:[#allocation70_spill] sm:$0xff] }
 0x7a6   : > { %v12970_v40 = vadd.f32 1e-05, %v5328_v28 }
 0x7a7   : > { %v5739_v21 = vmul.f32 %v14826_v29, %v5702_v58  ;;  %v5352_v58 = vadd.f32 1e-05, %v5320_v30 }
 0x7a8   : > { %6889 = vrsqrt.f32 %v12970_v40  ;;  %vm5650_vm8 = vweird.f32 %v12970_v40 }
 0x7a9   : > { %5862 = vrot.lane.b32.xlu2 %v2699_v25, %s7111_s22  ;;  %v2848_v25 = vor.u32 1.1754944e-38, %v2847_v51  ;;  %v5776_v19 = vadd.f32 %v14829_v4, %v5739_v21  ;;  %vm5570_vm13 = vweird.f32 %v5352_v58 }
 0x7ab   : > { %v5293_v63 = vpop.xlane.xlu2 %5292  ;;  %v2849_v9 = vsel %vm2846_vm4, %v2848_v25, %v2844_v22 }
 0x7ac   : > { %v5329_v15 = vmul.f32 %v5293_v63, %v14780_v12  ;;  %6014 = vrot.lane.b32.xlu1 %v5962_v53, %s7113_s15 }
 0x7ae   : > { %v12983_v0 = vadd.f32 1e-05, %v5329_v15  ;;  %v13005_v18 = vpop.eup %6889 }
 0x7af   : > { %v5645_v14 = vmul.f32 %v13005_v18, %v12970_v40  ;;  %vm5651_vm6 = vweird.f32 %v13005_v18 }
 0x7b0   : > { %6891 = vrsqrt.f32 %v12983_v0  ;;  %vm5660_vm9 = vweird.f32 %v12983_v0  ;;  %vm5652_vm10 = vmor %vm5650_vm8, %vm5651_vm6 }
 0x7b1   : > { %6006 = vrot.lane.b32.xlu2 %v14886_v56, %s7113_s15  ;;  %v5646_v28 = vmul.f32 %v13005_v18, %v5645_v14  ;;  %6893 = vrsqrt.f32 %v5352_v58 }
 0x7b2   : > { %v5275_v44 = vpop.xlane.xlu0 %5274 }
 0x7b3   : > { %v5995_v17 = vpop.permute.xlu2 %5994  ;;  %v5647_v15 = vmul.f32 0.5, %v5646_v28  ;;  %v5323_v46 = vmul.f32 %v5275_v44, %v14780_v12 }
 0x7b4   : > { %6394 = vmatmul.msk.bf16.gmra.mxu2 %vm436_vm0, %v5995_v17  ;;  %5882 = vrot.lane.b32.xlu1 %v2849_v9, %s7111_s22 }
 0x7b5   : > { %v5648_v61 = vsub.f32 1.5, %v5647_v15  ;;  %v13117_v28 = vadd.f32 1e-05, %v5323_v46 }
 0x7b6   : > { %v6892_v20 = vpop.eup %6891 }
 0x7b7   : > { %v5655_v36 = vmul.f32 %v6892_v20, %v12983_v0  ;;  %vm5661_vm7 = vweird.f32 %v6892_v20  ;;  %v5649_v51 = vmul.f32 %v13005_v18, %v5648_v61  ;;  %v13127_v41 = vpop.eup %6893  ;;  %vm5600_vm5 = vweird.f32 %v13117_v28 }
 0x7b8   : > { %vm5662_vm11 = vmor %vm5660_vm9, %vm5661_vm7  ;;  %vm5571_vm12 = vweird.f32 %v13127_v41 }
 0x7b9   : > { %v5656_v1 = vmul.f32 %v6892_v20, %v5655_v36  ;;  %5868 = vrot.lane.b32.xlu2 %v2744_v34, %s7111_s22  ;;  %v5653_v37 = vsel %vm5652_vm10, %v13005_v18, %v5649_v51  ;;  %v13114_v36 = vadd.f32 1e-05, %v5321_v7  ;;  %vm13168_vm2 = vmor %vm5570_vm13, %vm5571_vm12  ;;  %v14910_v7 = vld [vmem:[#allocation240_spill] sm:$0xff]  ;;  %s6216_s22 = sshll.u32 %s13121_s25, 4  ;;  %s6217_s22 = int_to_ptr.vmem [resolvable:$true] %s6216_s22 }
 0x7ba   : > { %v5712_v32 = vmul.f32 %v5653_v37, %v14901_v52 }
 0x7bb   : > { %v5861_v63 = vpop.permute.xlu2 %5860  ;;  %v5657_v31 = vmul.f32 0.5, %v5656_v1  ;;  %v5859_v27 = vpop.permute.xlu1 %5858  ;;  %6895 = vrsqrt.f32 %v13114_v36  ;;  %v5565_v1 = vmul.f32 %v13127_v41, %v5352_v58  ;;  %vm5580_vm3 = vweird.f32 %v13114_v36  ;;  %v14911_v58 = vld [vmem:[#allocation211_spill] sm:$0xff] }
 0x7bc   : > { %v5937_v13 = vmul.f32 %v5861_v63, %v5777_v45  ;;  %v5936_v48 = vmul.f32 %v5859_v27, %v5776_v19  ;;  %v5749_v40 = vmul.f32 %v14826_v29, %v5712_v32  ;;  %6897 = vrsqrt.f32 %v13117_v28 }
 0x7bd   : > { %v5658_v53 = vsub.f32 1.5, %v5657_v31  ;;  %v5566_v63 = vmul.f32 %v13127_v41, %v5565_v1 }
 0x7be   : > { %v5959_v50 = vpack.c.bf16 %v5937_v13, %v5936_v48  ;;  %v5786_v22 = vadd.f32 %v14829_v4, %v5749_v40 }
 0x7bf   : > { %v5659_v54 = vmul.f32 %v6892_v20, %v5658_v53  ;;  %v5567_v55 = vmul.f32 0.5, %v5566_v63 }
 0x7c1   : > { %6008 = vrot.lane.b32.xlu2 %v5959_v50, %s7113_s15  ;;  %v5663_v17 = vsel %vm5662_vm11, %v6892_v20, %v5659_v54  ;;  %v13130_v59 = vpop.eup %6895  ;;  %v5568_v48 = vsub.f32 1.5, %v5567_v55 }
 0x7c2   : > { %v5713_v14 = vmul.f32 %v5663_v17, %v14902_v39  ;;  %v13136_v60 = vpop.eup %6897  ;;  %v5575_v62 = vmul.f32 %v13130_v59, %v13114_v36  ;;  %vm5581_vm14 = vweird.f32 %v13130_v59 }
 0x7c3   : > { %v5877_v56 = vpop.permute.xlu2 %5876  ;;  %v5997_v33 = vpop.permute.xlu1 %5996  ;;  %v5595_v21 = vmul.f32 %v13136_v60, %v13117_v28  ;;  %vm5601_vm15 = vweird.f32 %v13136_v60  ;;  %vm13174_vm4 = vmor %vm5580_vm3, %vm5581_vm14 }
 0x7c4   : > { %v5945_v5 = vmul.f32 %v5877_v56, %v5785_v38  ;;  %6395 = vmatmul.msk.bf16.gmra.mxu2 %vm436_vm0, %v5997_v33  ;;  %v5750_v0 = vmul.f32 %v14826_v29, %v5713_v14  ;;  %v5576_v15 = vmul.f32 %v13130_v59, %v5575_v62  ;;  %vm13182_vm6 = vmor %vm5600_vm5, %vm5601_vm15 }
 0x7c5   : > { %v13088_v2 = vpop.permute.xlu0 %6004 }
 0x7c6   : > { %v5963_v24 = vpack.c.bf16 %v5945_v5, %v5944_v26  ;;  %v5787_v49 = vadd.f32 %v14829_v4, %v5750_v0  ;;  %v5577_v35 = vmul.f32 0.5, %v5576_v15 }
 0x7c8   : > { %6016 = vrot.lane.b32.xlu1 %v5963_v24, %s7113_s15  ;;  %v5578_v50 = vsub.f32 1.5, %v5577_v35  ;;  %v5569_v24 = vmul.f32 %v13127_v41, %v5568_v48 }
 0x7ca   : > { %v5579_v33 = vmul.f32 %v13130_v59, %v5578_v50  ;;  %v14913_v50 = vld [vmem:[#allocation67_spill] sm:$0xff] }
 0x7cb   : > { %v5999_v6 = vpop.permute.xlu2 %5998  ;;  %v6001_v20 = vpop.permute.xlu1 %6000 }
 0x7cd   : > { %v5879_v10 = vpop.permute.xlu0 %5878 }
 0x7ce   : > { %v5946_v57 = vmul.f32 %v5879_v10, %v5786_v22  ;;  %v5573_v10 = vsel %vm13168_vm2, %v13127_v41, %v5569_v24 }
 0x7cf   : > { %v5704_v46 = vmul.f32 %v5573_v10, %v14910_v7 }
 0x7d1   : > { %v5741_v62 = vmul.f32 %v14826_v29, %v5704_v46 }
 0x7d4   : > { %6396 = vmatmul.msk.bf16.gmra.mxu2 %vm436_vm0, %v5999_v6 }
 0x7d5   : > { %v5881_v42 = vpop.permute.xlu0 %5880 }
 0x7d6   : > { %v5947_v25 = vmul.f32 %v5881_v42, %v5787_v49  ;;  %v5583_v49 = vsel %vm13174_vm4, %v13130_v59, %v5579_v33 }
 0x7d7   : > { %v5705_v36 = vmul.f32 %v5583_v49, %v14911_v58 }
 0x7d8   : > { %v5964_v18 = vpack.c.bf16 %v5947_v25, %v5946_v57 }
 0x7da   : > { %6018 = vrot.lane.b32.xlu2 %v5964_v18, %s7113_s15 }
 0x7e4   : > { %6397 = vmatmul.msk.bf16.gmra.mxu2 %vm436_vm0, %v6001_v20  ;;  %v14909_v20 = vld [vmem:[#allocation79_spill] sm:$0xff] }
 0x7ed   : > { %v6091_v9 = vpop.f32.mrf.mxu2 }
 0x7ee   : > { %v6092_v43 = vadd.f32 %v13111_v8, %v6091_v9 }
 0x7f0   : > { %6171 = vst.msk [vmem:[%s13121_s25] sm:$0xff] %vm436_vm0, %v6092_v43 }
 0x7f4   : > { %6398 = vmatmul.msk.bf16.gmra.mxu2 %vm436_vm0, %v13030_v47  ;;  %v5596_v47 = vmul.f32 %v13136_v60, %v5595_v21 }
 0x7f5   : > { %v6093_v16 = vpop.f32.mrf.mxu2 }
 0x7f6   : > { %v6094_v34 = vadd.f32 %v13111_v8, %v6093_v16  ;;  %v5272_v11 = vpop.xlane.xlu1 %5271  ;;  %v5597_v53 = vmul.f32 0.5, %v5596_v47  ;;  %v14912_v16 = vld [vmem:[#allocation92_spill] sm:$0xff]  ;;  %v5867_v47 = vpop.permute.xlu0 %5866 }
 0x7f7   : > { %v5322_v3 = vmul.f32 %v5272_v11, %v14780_v12  ;;  %v5742_v11 = vmul.f32 %v14826_v29, %v5705_v36 }
 0x7f8   : > { %6172 = vst.msk [vmem:[%s13121_s25 + $0x8] sm:$0xff] %vm436_vm0, %v6094_v34  ;;  %v5598_v54 = vsub.f32 1.5, %v5597_v53 }
 0x7f9   : > { %v5354_v31 = vadd.f32 1e-05, %v5322_v3  ;;  %v5779_v15 = vadd.f32 %v14829_v4, %v5742_v11 }
 0x7fa   : > { %v5599_v17 = vmul.f32 %v13136_v60, %v5598_v54 }
 0x7fb   : > { %6899 = vrsqrt.f32 %v5354_v31  ;;  %vm5590_vm7 = vweird.f32 %v5354_v31 }
 0x7fc   : > { %v5603_v18 = vsel %vm13182_vm6, %v13136_v60, %v5599_v17 }
 0x7fd   : > { %v6096_v44 = vpop.f32.mrf.mxu2  ;;  %v5707_v41 = vmul.f32 %v5603_v18, %v14912_v16 }
 0x7fe   : > { %v6097_v45 = vadd.f32 %v13111_v8, %v6096_v44  ;;  %v5299_v19 = vpop.xlane.xlu1 %5298 }
 0x7ff   : > { %v5331_v27 = vmul.f32 %v5299_v19, %v14780_v12  ;;  %v5744_v21 = vmul.f32 %v14826_v29, %v5707_v41 }
 0x800   : > { %6173 = vst.msk [vmem:[%s13121_s25 + $0x10] sm:$0xff] %vm436_vm0, %v6097_v45 }
 0x801   : > { %v6900_v13 = vpop.eup %6899  ;;  %v13152_v38 = vadd.f32 1e-05, %v5331_v27  ;;  %v5781_v35 = vadd.f32 %v14829_v4, %v5744_v21 }
 0x802   : > { %v5585_v26 = vmul.f32 %v6900_v13, %v5354_v31  ;;  %vm5591_vm1 = vweird.f32 %v6900_v13  ;;  %v5778_v31 = vadd.f32 %v14829_v4, %v5741_v62 }
 0x803   : > { %6901 = vrsqrt.f32 %v13152_v38  ;;  %vm5592_vm8 = vmor %vm5590_vm7, %vm5591_vm1  ;;  %vm5680_vm11 = vweird.f32 %v13152_v38 }
 0x804   : > { %v5296_v61 = vpop.xlane.xlu2 %5295  ;;  %v5586_v51 = vmul.f32 %v6900_v13, %v5585_v26  ;;  %6399 = vmatmul.msk.bf16.gmra.mxu2 %vm436_vm0, %v13088_v2  ;;  %v5885_v2 = vpop.permute.xlu0 %5884 }
 0x805   : > { %v5330_v23 = vmul.f32 %v5296_v61, %v14780_v12  ;;  %v6098_v5 = vpop.f32.mrf.mxu2 }
 0x806   : > { %v6099_v12 = vadd.f32 %v13111_v8, %v6098_v5  ;;  %v5587_v37 = vmul.f32 0.5, %v5586_v51 }
 0x807   : > { %v13154_v56 = vadd.f32 1e-05, %v5330_v23 }
 0x808   : > { %6174 = vst.msk [vmem:[%s13121_s25 + $0x18] sm:$0xff] %vm436_vm0, %v6099_v12  ;;  %v5588_v52 = vsub.f32 1.5, %v5587_v37 }
 0x809   : > { %6903 = vrsqrt.f32 %v13154_v56  ;;  %v6902_v39 = vpop.eup %6901  ;;  %vm5670_vm14 = vweird.f32 %v13154_v56 }
 0x80a   : > { %v5589_v0 = vmul.f32 %v6900_v13, %v5588_v52  ;;  %v5675_v22 = vmul.f32 %v6902_v39, %v13152_v38  ;;  %vm5681_vm9 = vweird.f32 %v6902_v39  ;;  %v14914_v38 = vld [vmem:[#allocation47_spill] sm:$0xff] }
 0x80b   : > { %vm5682_vm12 = vmor %vm5680_vm11, %vm5681_vm9 }
 0x80c   : > { %v5863_v32 = vpop.permute.xlu2 %5862  ;;  %v5593_v57 = vsel %vm5592_vm8, %v6900_v13, %v5589_v0  ;;  %v5676_v6 = vmul.f32 %v6902_v39, %v5675_v22 }
 0x80d   : > { %v5706_v30 = vmul.f32 %v5593_v57, %v14909_v20  ;;  %v5938_v45 = vmul.f32 %v5863_v32, %v5778_v31 }
 0x80e   : > { %v5677_v43 = vmul.f32 0.5, %v5676_v6 }
 0x80f   : > { %v6904_v42 = vpop.eup %6903  ;;  %v5743_v28 = vmul.f32 %v14826_v29, %v5706_v30 }
 0x810   : > { %v5665_v25 = vmul.f32 %v6904_v42, %v13154_v56  ;;  %v5678_v59 = vsub.f32 1.5, %v5677_v43  ;;  %vm5671_vm10 = vweird.f32 %v6904_v42 }
 0x811   : > { %v5780_v3 = vadd.f32 %v14829_v4, %v5743_v28  ;;  %vm5672_vm13 = vmor %vm5670_vm14, %vm5671_vm10 }
 0x812   : > { %v5666_v9 = vmul.f32 %v6904_v42, %v5665_v25  ;;  %v5679_v63 = vmul.f32 %v6902_v39, %v5678_v59 }
 0x813   : > { %v5940_v19 = vmul.f32 %v5867_v47, %v5780_v3 }
 0x814   : > { %v5667_v34 = vmul.f32 0.5, %v5666_v9  ;;  %v6007_v1 = vpop.permute.xlu2 %6006  ;;  %v5683_v53 = vsel %vm5682_vm12, %v6902_v39, %v5679_v63 }
 0x815   : > { %6400 = vmatmul.msk.bf16.gmra.mxu2 %vm436_vm0, %v6007_v1  ;;  %v5715_v26 = vmul.f32 %v5683_v53, %v14913_v50 }
 0x816   : > { %v5668_v60 = vsub.f32 1.5, %v5667_v34  ;;  %v5865_v55 = vpop.permute.xlu1 %5864 }
 0x817   : > { %v5939_v27 = vmul.f32 %v5865_v55, %v5779_v15  ;;  %v5752_v56 = vmul.f32 %v14826_v29, %v5715_v26 }
 0x818   : > { %v5669_v44 = vmul.f32 %v6904_v42, %v5668_v60 }
 0x819   : > { %v5960_v48 = vpack.c.bf16 %v5939_v27, %v5938_v45  ;;  %v5789_v33 = vadd.f32 %v14829_v4, %v5752_v56 }
 0x81a   : > { %v5673_v23 = vsel %vm5672_vm13, %v6904_v42, %v5669_v44 }
 0x81b   : > { %6010 = vrot.lane.b32.xlu0 %v5960_v48, %s7113_s15  ;;  %v5714_v51 = vmul.f32 %v5673_v23, %v14914_v38  ;;  %v5949_v32 = vmul.f32 %v5885_v2, %v5789_v33 }
 0x81c   : > { %v5869_v61 = vpop.permute.xlu2 %5868 }
 0x81d   : > { %v5941_v13 = vmul.f32 %v5869_v61, %v5781_v35  ;;  %v5751_v24 = vmul.f32 %v14826_v29, %v5714_v51 }
 0x81e   : > { %v6015_v5 = vpop.permute.xlu1 %6014 }
 0x81f   : > { %v5961_v54 = vpack.c.bf16 %v5941_v13, %v5940_v19  ;;  %6404 = vmatmul.msk.bf16.vlgmr.msra.gmra.mxu3 %vm436_vm0, %v6015_v5  ;;  %v5788_v37 = vadd.f32 %v14829_v4, %v5751_v24 }
 0x821   : > { %6012 = vrot.lane.b32.xlu1 %v5961_v54, %s7113_s15 }
 0x824   : > { %v6009_v12 = vpop.permute.xlu2 %6008 }
 0x825   : > { %6401 = vmatmul.msk.bf16.gmra.mxu2 %vm436_vm0, %v6009_v12 }
 0x826   : > { %v5883_v17 = vpop.permute.xlu1 %5882 }
 0x827   : > { %v5948_v52 = vmul.f32 %v5883_v17, %v5788_v37 }
 0x829   : > { %v5965_v39 = vpack.c.bf16 %v5949_v32, %v5948_v52 }
 0x82b   : > { %6020 = vrot.lane.b32.xlu0 %v5965_v39, %s7113_s15  ;;  %s7047_s15 = scalar_lea.hbm %s13352_s9, 512 }
 0x82c   : > { %p7049_p9 = scmp.lt.s32.totalorder %s7047_s15, %s7043_s7 }
 0x82e   : > { %p7050_p2 = por %p7049_p9, %p7048_p11 }
 0x830   : > { %p7051_p10 = pnand %p7050_p2, %p7046_p8 }
 0x834   : > { %v6019_v0 = vpop.permute.xlu2 %6018 }
 0x837   : > { %v6101_v14 = vpop.f32.mrf.mxu2 }
 0x838   : > { %v6102_v29 = vadd.f32 %v13111_v8, %v6101_v14 }
 0x83a   : > { %6175 = vst.msk [vmem:[%s13121_s25 + $0x20] sm:$0xff] %vm436_vm0, %v6102_v29  ;;  %v6017_v10 = vpop.permute.xlu1 %6016 }
 0x83b   : > { %6405 = vmatmul.msk.bf16.gmra.mxu3 %vm436_vm0, %v6017_v10 }
 0x83f   : > { %v6103_v40 = vpop.f32.mrf.mxu2 }
 0x840   : > { %v6104_v4 = vadd.f32 %v13111_v8, %v6103_v40 }
 0x842   : > { %6176 = vst.msk [vmem:[%s13121_s25 + $0x28] sm:$0xff] %vm436_vm0, %v6104_v4 }
 0x847   : > { %v6106_v22 = vpop.f32.mrf.mxu2 }
 0x848   : > { %v6107_v49 = vadd.f32 %v13111_v8, %v6106_v22 }
 0x84a   : > { %6177 = vst.msk [vmem:[%s13121_s25 + $0x30] sm:$0xff] %vm436_vm0, %v6107_v49 }
 0x84b   : > { %6406 = vmatmul.msk.bf16.gmra.mxu3 %vm436_vm0, %v6019_v0 }
 0x84f   : > { %v6108_v42 = vpop.f32.mrf.mxu2 }
 0x850   : > { %v6109_v57 = vadd.f32 %v13111_v8, %v6108_v42 }
 0x852   : > { %6178 = vst.msk [vmem:[%s13121_s25 + $0x38] sm:$0xff] %vm436_vm0, %v6109_v57 }
 0x857   : > { %v6111_v25 = vpop.f32.mrf.mxu2 }
 0x858   : > { %v6112_v6 = vadd.f32 %v13111_v8, %v6111_v25 }
 0x85a   : > { %6179 = vst.msk [vmem:[%s13121_s25 + $0x40] sm:$0xff] %vm436_vm0, %v6112_v6 }
 0x85f   : > { %v6113_v18 = vpop.f32.mrf.mxu2 }
 0x860   : > { %v6114_v20 = vadd.f32 %v13111_v8, %v6113_v18 }
 0x862   : > { %6180 = vst.msk [vmem:[%s13121_s25 + $0x48] sm:$0xff] %vm436_vm0, %v6114_v20 }
 0x867   : > { %v6116_v30 = vpop.f32.mrf.mxu2 }
 0x868   : > { %v6117_v7 = vadd.f32 %v13111_v8, %v6116_v30 }
 0x86a   : > { %6181 = vst.msk [vmem:[%s13121_s25 + $0x50] sm:$0xff] %vm436_vm0, %v6117_v7 }
 0x86f   : > { %v6118_v46 = vpop.f32.mrf.mxu2 }
 0x870   : > { %v6119_v58 = vadd.f32 %v13111_v8, %v6118_v46 }
 0x872   : > { %6182 = vst.msk [vmem:[%s13121_s25 + $0x58] sm:$0xff] %vm436_vm0, %v6119_v58 }
 0x877   : > { %v6121_v36 = vpop.f32.mrf.mxu2 }
 0x878   : > { %v6122_v9 = vadd.f32 %v13111_v8, %v6121_v36 }
 0x87a   : > { %6183 = vst.msk [vmem:[%s13121_s25 + $0x60] sm:$0xff] %vm436_vm0, %v6122_v9 }
 0x87f   : > { %v6123_v43 = vpop.f32.mrf.mxu2 }
 0x880   : > { %v6124_v28 = vadd.f32 %v13111_v8, %v6123_v43 }
 0x882   : > { %6184 = vst.msk [vmem:[%s13121_s25 + $0x68] sm:$0xff] %vm436_vm0, %v6124_v28 }
 0x887   : > { %v6126_v16 = vpop.f32.mrf.mxu2 }
 0x888   : > { %v6127_v41 = vadd.f32 %v13111_v8, %v6126_v16 }
 0x88a   : > { %6185 = vst.msk [vmem:[%s13121_s25 + $0x70] sm:$0xff] %vm436_vm0, %v6127_v41 }
 0x88d   : > { %v6011_v34 = vpop.permute.xlu0 %6010 }
 0x88e   : > { %6402 = vmatmul.msk.bf16.gmra.mxu2 %vm436_vm0, %v6011_v34 }
 0x88f   : > { %v6128_v59 = vpop.f32.mrf.mxu2 }
 0x890   : > { %v6129_v1 = vadd.f32 %v13111_v8, %v6128_v59 }
 0x892   : > { %6186 = vst.msk [vmem:[%s13121_s25 + $0x78] sm:$0xff] %vm436_vm0, %v6129_v1 }
 0x893   : > { %v6013_v60 = vpop.permute.xlu1 %6012 }
 0x898   : > { %v6131_v62 = vpop.f32.mrf.mxu2 }
 0x899   : > { %v6132_v11 = vadd.f32 %v13111_v8, %v6131_v62 }
 0x89b   : > { %6187 = vst.msk [vmem:[%s13121_s25 + $0x80] sm:$0xff] %vm436_vm0, %v6132_v11 }
 0x89d   : > { %v6021_v3 = vpop.permute.xlu0 %6020 }
 0x89e   : > { %6403 = vmatmul.msk.bf16.gmra.mxu2 %vm436_vm0, %v6013_v60  ;;  %6407 = vmatmul.msk.bf16.gmra.mxu3 %vm436_vm0, %v6021_v3 }
 0x8a0   : > { %v6133_v21 = vpop.f32.mrf.mxu2 }
 0x8a1   : > { %v6134_v63 = vadd.f32 %v13111_v8, %v6133_v21 }
 0x8a2   : > { %v6151_v31 = vpop.f32.mrf.mxu3 }
 0x8a3   : > { %6188 = vst.msk [vmem:[%s13121_s25 + $0x88] sm:$0xff] %vm436_vm0, %v6134_v63  ;;  %v6152_v15 = vadd.f32 %v13111_v8, %v6151_v31 }
 0x8a5   : > { %6195 = vst.msk [vmem:[%s13121_s25 + $0xc0] sm:$0xff] %vm436_vm0, %v6152_v15 }
 0x8a8   : > { %v6136_v47 = vpop.f32.mrf.mxu2 }
 0x8a9   : > { %v6137_v44 = vadd.f32 %v13111_v8, %v6136_v47 }
 0x8aa   : > { %v6153_v55 = vpop.f32.mrf.mxu3 }
 0x8ab   : > { %6189 = vst.msk [vmem:[%s13121_s25 + $0x90] sm:$0xff] %vm436_vm0, %v6137_v44  ;;  %v6154_v45 = vadd.f32 %v13111_v8, %v6153_v55 }
 0x8ad   : > { %6196 = vst.msk [vmem:[%s13121_s25 + $0xc8] sm:$0xff] %vm436_vm0, %v6154_v45 }
 0x8b0   : > { %v6138_v35 = vpop.f32.mrf.mxu2 }
 0x8b1   : > { %v6139_v19 = vadd.f32 %v13111_v8, %v6138_v35 }
 0x8b3   : > { %6190 = vst.msk [vmem:[%s13121_s25 + $0x98] sm:$0xff] %vm436_vm0, %v6139_v19 }
 0x8be   : > { %v6156_v27 = vpop.f32.mrf.mxu3 }
 0x8bf   : > { %v6157_v53 = vadd.f32 %v13111_v8, %v6156_v27 }
 0x8c1   : > { %6197 = vst.msk [vmem:[%s13121_s25 + $0xd0] sm:$0xff] %vm436_vm0, %v6157_v53 }
 0x8c6   : > { %v6158_v61 = vpop.f32.mrf.mxu3 }
 0x8c7   : > { %v6159_v13 = vadd.f32 %v13111_v8, %v6158_v61 }
 0x8c9   : > { %6198 = vst.msk [vmem:[%s13121_s25 + $0xd8] sm:$0xff] %vm436_vm0, %v6159_v13 }
 0x8ce   : > { %v6161_v48 = vpop.f32.mrf.mxu3 }
 0x8cf   : > { %v6162_v23 = vadd.f32 %v13111_v8, %v6161_v48 }
 0x8d1   : > { %6199 = vst.msk [vmem:[%s13121_s25 + $0xe0] sm:$0xff] %vm436_vm0, %v6162_v23 }
 0x8d6   : > { %v6163_v50 = vpop.f32.mrf.mxu3 }
 0x8d7   : > { %v6164_v26 = vadd.f32 %v13111_v8, %v6163_v50 }
 0x8d9   : > { %6200 = vst.msk [vmem:[%s13121_s25 + $0xe8] sm:$0xff] %vm436_vm0, %v6164_v26 }
 0x911   : > { %v6141_v54 = vpop.f32.mrf.mxu2 }
 0x912   : > { %v6142_v38 = vadd.f32 %v13111_v8, %v6141_v54 }
 0x914   : > { %6191 = vst.msk [vmem:[%s13121_s25 + $0xa0] sm:$0xff] %vm436_vm0, %v6142_v38 }
 0x919   : > { %v6143_v51 = vpop.f32.mrf.mxu2 }
 0x91a   : > { %v6144_v5 = vadd.f32 %v13111_v8, %v6143_v51 }
 0x91c   : > { %6192 = vst.msk [vmem:[%s13121_s25 + $0xa8] sm:$0xff] %vm436_vm0, %v6144_v5 }
 0x921   : > { %v6146_v56 = vpop.f32.mrf.mxu2  ;;  %v6166_v24 = vpop.f32.mrf.mxu3 }
 0x922   : > { %v6147_v12 = vadd.f32 %v13111_v8, %v6146_v56  ;;  %v6167_v33 = vadd.f32 %v13111_v8, %v6166_v24 }
 0x924   : > { %6193 = vst.msk [vmem:[%s13121_s25 + $0xb0] sm:$0xff] %vm436_vm0, %v6147_v12 }
 0x925   : > { %6201 = vst.msk [vmem:[%s13121_s25 + $0xf0] sm:$0xff] %vm436_vm0, %v6167_v33 }
 0x929   : > { %v6148_v37 = vpop.f32.mrf.mxu2  ;;  %v6168_v2 = vpop.f32.mrf.mxu3 }
 0x92a   : > { %v6149_v17 = vadd.f32 %v13111_v8, %v6148_v37  ;;  %v6169_v52 = vadd.f32 %v13111_v8, %v6168_v2 }
 0x92c   : > { %6194 = vst.msk [vmem:[%s13121_s25 + $0xb8] sm:$0xff] %vm436_vm0, %v6149_v17 }
 0x92d   : > { %6202 = vst.msk [vmem:[%s13121_s25 + $0xf8] sm:$0xff] %vm436_vm0, %v6169_v52 }
 0x92e   : > { %7054 = shalt.err (!%p7051_p10)
}
 0x92f   : > { %s7114_s24 = smov 128   ;;  %s7115_s25 = smov 8  }
 0x930   : > { %6441 = dma.vmem_to_hbm [thread:$0]  (%p7251_p3), %s6217_s22, 4096, %s6219_s14, %s6204_s13, %s7114_s24, %s7114_s24, %s7115_s25  }
 0x931 PF: > { %s6233_s2 = sand.u32 1, %s7089_s30   ;;  %p14915_p12 = scmp.ge.s32.totalorder %s7101_s12, 2 }
 0x932   : > { %s6234_s18 = scalar_lea.sflag [#allocation4], %s6233_s2 }
 0x933   : > { %p6458_p13 = pnand %p14915_p12, %p7201_p6 }
 0x935   : > { %p6459_p0 = pneg %p6458_p13 }
 0x937   : > { %7084 = dma.done.wait (%p6459_p0), %s6234_s18, 4096  }
 0x938   : > { %7086 = vsyncadd (%p6459_p0), %s6234_s18, 4294963200  ;;  %p24_p5 = scmp.ge.s32.totalorder %s7238_s29, 4   ;;  %s14916_s30 = smov %s7093_s10 }
 0x939   : > { %s14917_s10 = smov %s7097_s11  ;;  %s14918_s11 = smov %s7247_s27 }
 0x93a   : > { %s14919_s12 = smov %s7238_s29  ;;  %26 = sbr.rel (!%p24_p5) target bundleno = 11 (0xb), region = 113 }
 0x93f   :  { %6240 = vsyncpa [#allocation3], 1 }
 0x940   :  { %6242 = vsyncpa [#allocation3 + $0x1], 1 }
 0x941   :  { %6243 = vsyncpa [#allocation6], 1 }
 0x942   :  { %6244 = vsyncpa [#allocation9], 1 }
 0x943   :  { %6245 = vsyncpa [#allocation4], 1 }
 0x944   :  { %6247 = vsyncpa [#allocation4 + $0x1], 1 }

</bundles_post_ra>
